<compile_context>
chip_gen: v5e
topology: v5e:2x2
jax: 0.10.0
libtpu: 0.0.40
codegen_flags: <defaults>
</compile_context>

<pallas_src>
import functools

import jax
import jax.numpy as jnp
import numpy as np
from jax.experimental import pallas as pl
from jax.experimental.pallas import tpu as pltpu

EPS = 1e-5  # InstanceNorm3d eps


# ---------------------------------------------------------------------------
# Fused kernel (one invocation per batch element)
#   x_ref:       (8, Cp, M)   bf16  raw input, parity-major, M = Do*Ho*Wo on lanes
#   masks_ref:   (8, M)       f32   combined 0/1 boundary masks, row = d*4 + h*2 + w
#   g_ref/b_ref: (Cp, 1)      f32   InstanceNorm affine params
#   w_ref:       (Cp, 27*Cp)  bf16  block-diagonal conv weight, column = tap*Cp + cin
#   out_ref:     (Cp, 2*M)    f32   lanes [0, M) = conv, lanes [M, 2M) = pool
#   patches_ref: (27*Cp, M)   bf16  im2col scratch consumed by ONE MXU matmul
# ---------------------------------------------------------------------------
def _fused_kernel(x_ref, masks_ref, g_ref, b_ref, w_ref, out_ref, patches_ref,
                  *, ho, wo):
    n_par, cp, m = x_ref.shape
    f32 = jnp.float32

    # ---- pass 1 over the 8 parity slabs: per-channel sum + max (pool), f32 math ----
    x0 = x_ref[0].astype(f32)
    s1 = x0
    mx = x0
    for p in range(1, n_par):
        xp = x_ref[p].astype(f32)
        s1 = s1 + xp
        mx = jnp.maximum(mx, xp)
    # MaxPool3d(2, 2) acts on the RAW input (matches the PyTorch module).
    out_ref[:, pl.ds(m, m)] = mx

    inv_cnt = 1.0 / float(n_par * m)                         # = 1 / (D*H*W)
    mean = jnp.sum(s1, axis=1, keepdims=True) * inv_cnt      # (Cp, 1)

    # ---- pass 2: centered (two-pass) variance, robust against cancellation ----
    mean_b = jnp.broadcast_to(mean, (cp, m))
    var = jnp.zeros((cp, 1), f32)
    for p in range(n_par):
        d = x_ref[p].astype(f32) - mean_b
        var = var + jnp.sum(d * d, axis=1, keepdims=True)
    var = var * inv_cnt
    scale = g_ref[...] * jax.lax.rsqrt(var + EPS)            # (Cp, 1)
    shift = b_ref[...] - mean * scale

    # hoisted broadcasts (JAX does not CSE broadcast_in_dim)
    scale_b = jnp.broadcast_to(scale, (cp, m))
    shift_b = jnp.broadcast_to(shift, (cp, m))

    # ---- parity-major 27-tap im2col: normalize each slab just-in-time, then for
    #      each tap of that parity: lane-roll + (at most one) combined-mask vmul.
    for p8 in range(n_par):
        pd, ph, pw = (p8 >> 2) & 1, (p8 >> 1) & 1, p8 & 1
        xn = jnp.maximum(x_ref[p8].astype(f32) * scale_b + shift_b, 0.0)
        for kd in ((1,) if pd == 0 else (0, 2)):
            for kh in ((1,) if ph == 0 else (0, 2)):
                for kw in ((1,) if pw == 0 else (0, 2)):
                    k = kd * 9 + kh * 3 + kw
                    shift_amt = ((ho * wo) if kd == 0 else 0) \
                        + (wo if kh == 0 else 0) + (1 if kw == 0 else 0)
                    tap = xn
                    if shift_amt:
                        # tap[:, i] = xn[:, i - shift_amt]; wrapped lanes masked below
                        tap = pltpu.roll(tap, shift_amt, axis=1)
                    midx = (4 if kd == 0 else 0) + (2 if kh == 0 else 0) \
                        + (1 if kw == 0 else 0)
                    if midx:
                        tap = tap * masks_ref[pl.ds(midx, 1), :]
                    # 8-sublane aligned, full-lane dense bf16 store into im2col scratch
                    patches_ref[pl.ds(k * cp, cp), :] = tap.astype(patches_ref.dtype)

    # ---- grouped conv == ONE block-diagonal MXU matmul (bf16 x bf16 -> f32 acc) ----
    conv = jnp.dot(w_ref[...], patches_ref[...], preferred_element_type=jnp.float32)
    out_ref[:, pl.ds(0, m)] = conv


# ---------------------------------------------------------------------------
# Forward pass
# ---------------------------------------------------------------------------
def downsampling_forward(x, gamma, beta, conv_w, groups, *, vmem_limit_mb=48):
    N, C, D, H, W = x.shape
    assert D % 2 == 0 and H % 2 == 0 and W % 2 == 0, "even spatial dims required"
    assert C % groups == 0
    Do, Ho, Wo = D // 2, H // 2, W // 2
    M = Do * Ho * Wo
    cin_g = C // groups
    Cp = ((C + 7) // 8) * 8            # pad channels to full sublanes (no-op if C%8==0)
    f32 = jnp.float32
    bf16 = jnp.bfloat16

    # ---- the ONLY wrapper-side pass over x: parity relayout fused with the bf16 cast
    #      (read f32 once, write bf16 once).  See TODO(synk) in the header re:
    #      eliminating this pass with strided in-kernel DMAs.
    xr = x.astype(bf16).reshape(N, C, Do, 2, Ho, 2, Wo, 2)
    xr = xr.transpose(0, 3, 5, 7, 1, 2, 4, 6).reshape(N, 8, C, M)
    if Cp != C:
        # Padded channels stay exactly zero through norm/conv because gamma and the
        # weight are zero-padded below (scale = 0 -> xn = 0; weight rows/cols = 0).
        xr = jnp.pad(xr, ((0, 0), (0, 0), (0, Cp - C), (0, 0)))

    gamma_col = jnp.pad(gamma.astype(f32), (0, Cp - C)).reshape(Cp, 1)
    beta_col = jnp.pad(beta.astype(f32), (0, Cp - C)).reshape(Cp, 1)

    # ---- block-diagonal dense weight (Cp, 27*Cp); column index = tap*Cp + cin ----
    blocks = []
    for gi in range(groups):
        rows = conv_w[gi * cin_g:(gi + 1) * cin_g]            # (cout_g, cin_g, 3,3,3)
        rows = jnp.pad(rows, ((0, 0), (gi * cin_g, C - (gi + 1) * cin_g),
                              (0, 0), (0, 0), (0, 0)))
        blocks.append(rows)
    w_full = jnp.concatenate(blocks, axis=0)                  # (C, C, 3, 3, 3)
    w_bd = jnp.transpose(w_full, (0, 2, 3, 4, 1)).reshape(C, 27, C)   # [oc, k, ci]
    w_bd = jnp.pad(w_bd, ((0, Cp - C), (0, 0), (0, Cp - C)))
    w_bd = w_bd.reshape(Cp, 27 * Cp).astype(bf16)

    # ---- 7 combined 0/1 boundary masks, row index = d_bit*4 + h_bit*2 + w_bit ------
    lane = np.arange(M)
    basic = {4: (lane // (Ho * Wo)) > 0,      # keep where do > 0
             2: ((lane // Wo) % Ho) > 0,      # keep where ho > 0
             1: (lane % Wo) > 0}              # keep where wo > 0
    mask_tbl = np.ones((8, M), np.float32)
    for i in range(1, 8):
        row = np.ones((M,), np.float32)
        for bit, keep in basic.items():
            if i & bit:
                row = row * keep
        mask_tbl[i] = row
    masks = jnp.asarray(mask_tbl)

    kernel = functools.partial(_fused_kernel, ho=Ho, wo=Wo)

    out_flat = pl.pallas_call(
        kernel,
        out_shape=jax.ShapeDtypeStruct((N, Cp, 2 * M), f32),
        grid=(N,),
        in_specs=[
            pl.BlockSpec((None, 8, Cp, M), lambda n: (n, 0, 0, 0)),
            pl.BlockSpec((8, M), lambda n: (0, 0)),
            pl.BlockSpec((Cp, 1), lambda n: (0, 0)),
            pl.BlockSpec((Cp, 1), lambda n: (0, 0)),
            pl.BlockSpec((Cp, 27 * Cp), lambda n: (0, 0)),
        ],
        out_specs=pl.BlockSpec((None, Cp, 2 * M), lambda n: (n, 0, 0)),
        scratch_shapes=[pltpu.VMEM((27 * Cp, M), bf16)],
        compiler_params=pltpu.CompilerParams(
            # batch axis sharded across TensorCores on multi-TC parts
            dimension_semantics=("parallel",),
            # 48 MiB: above the 32 MiB default (bigger resident blocks on v5e/v6e for
            # larger volumes), safely below v7x's 64 MiB physical VMEM.
            vmem_limit_bytes=vmem_limit_mb * 1024 * 1024,
        ),
    )(xr, masks, gamma_col, beta_col, w_bd)

    # conv/pool are already interleaved on lanes: (N, Cp, 2*M) == (N, Cp, 2, M), so
    # channel 2c = conv_c, 2c+1 = pool_c.  With Cp == C this epilogue is free reshapes.
    out = out_flat if Cp == C else out_flat[:, :C, :]
    return out.reshape(N, 2 * C, Do, Ho, Wo).astype(x.dtype)


# ---------------------------------------------------------------------------
# Pure-JAX reference (numerical verification of the Pallas path)
# ---------------------------------------------------------------------------
def _reference(x, gamma, beta, conv_w, groups):
    N, C = x.shape[0], x.shape[1]
    mean = x.mean(axis=(2, 3, 4), keepdims=True)
    var = ((x - mean) ** 2).mean(axis=(2, 3, 4), keepdims=True)
    xn = (x - mean) * jax.lax.rsqrt(var + EPS)
    xn = xn * gamma.reshape(1, C, 1, 1, 1) + beta.reshape(1, C, 1, 1, 1)
    xn = jnp.maximum(xn, 0.0)
    conv = jax.lax.conv_general_dilated(
        xn, conv_w, window_strides=(2, 2, 2), padding=((1, 1),) * 3,
        dimension_numbers=("NCDHW", "OIDHW", "NCDHW"),
        feature_group_count=groups)
    pool = jax.lax.reduce_window(
        x, -jnp.inf, jax.lax.max, (1, 1, 2, 2, 2), (1, 1, 2, 2, 2), "VALID")
    out = jnp.stack([conv, pool], axis=2)
    return out.reshape(N, 2 * C, *conv.shape[2:])


if __name__ == "__main__":
    # channels=24: divisible by groups=k=3 (the PyTorch defaults 16 / k=3 are
    # inconsistent) and by 8 sublanes, so no channel padding anywhere; spatial 16 so
    # the flattened output volume M = 8*8*8 = 512 is lane-dense (multiple of 128).
    N, C, D, H, W = 2, 24, 16, 16, 16
    groups = 3
    cin_g = C // groups

    key = jax.random.PRNGKey(0)
    k_x, k_w = jax.random.split(key)

    x = jax.random.normal(k_x, (N, C, D, H, W), jnp.float32)

    # InstanceNorm3d(affine=True) default init: weight=1, bias=0
    gamma = jnp.ones((C,), jnp.float32)
    beta = jnp.zeros((C,), jnp.float32)

    # Conv3d weight, kaiming-normal-like (fan_out, relu), bias=False
    fan_out = C * 3 * 3 * 3
    conv_w = jax.random.normal(k_w, (C, cin_g, 3, 3, 3), jnp.float32) * np.sqrt(2.0 / fan_out)

    fwd = jax.jit(downsampling_forward, static_argnames=("groups",))
    out = jax.block_until_ready(fwd(x, gamma, beta, conv_w, groups=groups))
    assert out.shape == (N, 2 * C, D // 2, H // 2, W // 2)

    ref = jax.block_until_ready(_reference(x, gamma, beta, conv_w, groups))
    np.testing.assert_allclose(np.asarray(out), np.asarray(ref), atol=2e-2, rtol=2e-2)

    print("KERNEL_OK")
</pallas_src>

<mosaic_0001>
module attributes {stable_mosaic.version = 11 : i64} {
  func.func @_fused_kernel(%arg0: i32, %arg1: memref<1x8x24x512xbf16, #tpu.memory_space<vmem>>, %arg2: memref<8x512xf32, #tpu.memory_space<vmem>>, %arg3: memref<24x1xf32, #tpu.memory_space<vmem>>, %arg4: memref<24x1xf32, #tpu.memory_space<vmem>>, %arg5: memref<24x648xbf16, #tpu.memory_space<vmem>>, %arg6: memref<1x24x1024xf32, #tpu.memory_space<vmem>>, %arg7: memref<648x512xbf16, #tpu.memory_space<vmem>>) attributes {dimension_semantics = [#tpu.dimension_semantics<parallel>], iteration_bounds = array<i64: 2>, scalar_prefetch = 0 : i64, scratch_operands = 1 : i64, tpu.core_type = #tpu.core_type<tc>, window_params = [{transform_indices = @transform_0, window_bounds = array<i64: 1, 8, 24, 512>}, {pipeline_mode = #tpu.pipeline_mode<synchronous>, transform_indices = @transform_1, window_bounds = array<i64: 8, 512>}, {pipeline_mode = #tpu.pipeline_mode<synchronous>, transform_indices = @transform_2, window_bounds = array<i64: 24, 1>}, {pipeline_mode = #tpu.pipeline_mode<synchronous>, transform_indices = @transform_3, window_bounds = array<i64: 24, 1>}, {pipeline_mode = #tpu.pipeline_mode<synchronous>, transform_indices = @transform_4, window_bounds = array<i64: 24, 648>}, {transform_indices = @transform_5, window_bounds = array<i64: 1, 24, 1024>}]} {
    %c0 = arith.constant 0 : index
    %c0_0 = arith.constant 0 : index
    %c0_1 = arith.constant 0 : index
    %c0_2 = arith.constant 0 : index
    %0 = vector.load %arg1[%c0, %c0_0, %c0_1, %c0_2] : memref<1x8x24x512xbf16, #tpu.memory_space<vmem>>, vector<1x1x24x512xbf16>
    %1 = vector.shape_cast %0 : vector<1x1x24x512xbf16> to vector<24x512xbf16>
    %2 = arith.extf %1 : vector<24x512xbf16> to vector<24x512xf32>
    %c0_3 = arith.constant 0 : index
    %c1 = arith.constant 1 : index
    %c0_4 = arith.constant 0 : index
    %c0_5 = arith.constant 0 : index
    %3 = vector.load %arg1[%c0_3, %c1, %c0_4, %c0_5] : memref<1x8x24x512xbf16, #tpu.memory_space<vmem>>, vector<1x1x24x512xbf16>
    %4 = vector.shape_cast %3 : vector<1x1x24x512xbf16> to vector<24x512xbf16>
    %5 = arith.extf %4 : vector<24x512xbf16> to vector<24x512xf32>
    %6 = arith.addf %2, %5 : vector<24x512xf32>
    %7 = arith.maximumf %2, %5 : vector<24x512xf32>
    %c0_6 = arith.constant 0 : index
    %c2 = arith.constant 2 : index
    %c0_7 = arith.constant 0 : index
    %c0_8 = arith.constant 0 : index
    %8 = vector.load %arg1[%c0_6, %c2, %c0_7, %c0_8] : memref<1x8x24x512xbf16, #tpu.memory_space<vmem>>, vector<1x1x24x512xbf16>
    %9 = vector.shape_cast %8 : vector<1x1x24x512xbf16> to vector<24x512xbf16>
    %10 = arith.extf %9 : vector<24x512xbf16> to vector<24x512xf32>
    %11 = arith.addf %6, %10 : vector<24x512xf32>
    %12 = arith.maximumf %7, %10 : vector<24x512xf32>
    %c0_9 = arith.constant 0 : index
    %c3 = arith.constant 3 : index
    %c0_10 = arith.constant 0 : index
    %c0_11 = arith.constant 0 : index
    %13 = vector.load %arg1[%c0_9, %c3, %c0_10, %c0_11] : memref<1x8x24x512xbf16, #tpu.memory_space<vmem>>, vector<1x1x24x512xbf16>
    %14 = vector.shape_cast %13 : vector<1x1x24x512xbf16> to vector<24x512xbf16>
    %15 = arith.extf %14 : vector<24x512xbf16> to vector<24x512xf32>
    %16 = arith.addf %11, %15 : vector<24x512xf32>
    %17 = arith.maximumf %12, %15 : vector<24x512xf32>
    %c0_12 = arith.constant 0 : index
    %c4 = arith.constant 4 : index
    %c0_13 = arith.constant 0 : index
    %c0_14 = arith.constant 0 : index
    %18 = vector.load %arg1[%c0_12, %c4, %c0_13, %c0_14] : memref<1x8x24x512xbf16, #tpu.memory_space<vmem>>, vector<1x1x24x512xbf16>
    %19 = vector.shape_cast %18 : vector<1x1x24x512xbf16> to vector<24x512xbf16>
    %20 = arith.extf %19 : vector<24x512xbf16> to vector<24x512xf32>
    %21 = arith.addf %16, %20 : vector<24x512xf32>
    %22 = arith.maximumf %17, %20 : vector<24x512xf32>
    %c0_15 = arith.constant 0 : index
    %c5 = arith.constant 5 : index
    %c0_16 = arith.constant 0 : index
    %c0_17 = arith.constant 0 : index
    %23 = vector.load %arg1[%c0_15, %c5, %c0_16, %c0_17] : memref<1x8x24x512xbf16, #tpu.memory_space<vmem>>, vector<1x1x24x512xbf16>
    %24 = vector.shape_cast %23 : vector<1x1x24x512xbf16> to vector<24x512xbf16>
    %25 = arith.extf %24 : vector<24x512xbf16> to vector<24x512xf32>
    %26 = arith.addf %21, %25 : vector<24x512xf32>
    %27 = arith.maximumf %22, %25 : vector<24x512xf32>
    %c0_18 = arith.constant 0 : index
    %c6 = arith.constant 6 : index
    %c0_19 = arith.constant 0 : index
    %c0_20 = arith.constant 0 : index
    %28 = vector.load %arg1[%c0_18, %c6, %c0_19, %c0_20] : memref<1x8x24x512xbf16, #tpu.memory_space<vmem>>, vector<1x1x24x512xbf16>
    %29 = vector.shape_cast %28 : vector<1x1x24x512xbf16> to vector<24x512xbf16>
    %30 = arith.extf %29 : vector<24x512xbf16> to vector<24x512xf32>
    %31 = arith.addf %26, %30 : vector<24x512xf32>
    %32 = arith.maximumf %27, %30 : vector<24x512xf32>
    %c0_21 = arith.constant 0 : index
    %c7 = arith.constant 7 : index
    %c0_22 = arith.constant 0 : index
    %c0_23 = arith.constant 0 : index
    %33 = vector.load %arg1[%c0_21, %c7, %c0_22, %c0_23] : memref<1x8x24x512xbf16, #tpu.memory_space<vmem>>, vector<1x1x24x512xbf16>
    %34 = vector.shape_cast %33 : vector<1x1x24x512xbf16> to vector<24x512xbf16>
    %35 = arith.extf %34 : vector<24x512xbf16> to vector<24x512xf32>
    %36 = arith.addf %31, %35 : vector<24x512xf32>
    %37 = arith.maximumf %32, %35 : vector<24x512xf32>
    %c0_24 = arith.constant 0 : index
    %c0_25 = arith.constant 0 : index
    %c512 = arith.constant 512 : index
    %38 = vector.load %arg6[%c0_24, %c0_25, %c512] : memref<1x24x1024xf32, #tpu.memory_space<vmem>>, vector<1x24x512xf32>
    %39 = vector.shape_cast %38 : vector<1x24x512xf32> to vector<24x512xf32>
    %40 = vector.shape_cast %37 : vector<24x512xf32> to vector<1x24x512xf32>
    tpu.vector_store %arg6[%c0_24, %c0_25, %c512], %40 {strides = array<i32>} : memref<1x24x1024xf32, #tpu.memory_space<vmem>>, vector<1x24x512xf32>,
    %cst = arith.constant dense<0.000000e+00> : vector<24xf32>
    %41 = vector.multi_reduction <add>, %36, %cst [1] : vector<24x512xf32> to vector<24xf32>
    %42 = vector.shape_cast %41 : vector<24xf32> to vector<24x1xf32>
    %cst_26 = arith.constant 2.44140625E-4 : f32
    %43 = vector.broadcast %cst_26 : f32 to vector<24x1xf32>
    %44 = arith.mulf %42, %43 : vector<24x1xf32>
    %45 = vector.shape_cast %44 : vector<24x1xf32> to vector<24x1xf32>
    %46 = vector.broadcast %45 : vector<24x1xf32> to vector<24x512xf32>
    %cst_27 = arith.constant 0.000000e+00 : f32
    %47 = vector.broadcast %cst_27 : f32 to vector<24x1xf32>
    %c0_28 = arith.constant 0 : index
    %c0_29 = arith.constant 0 : index
    %c0_30 = arith.constant 0 : index
    %c0_31 = arith.constant 0 : index
    %48 = vector.load %arg1[%c0_28, %c0_29, %c0_30, %c0_31] : memref<1x8x24x512xbf16, #tpu.memory_space<vmem>>, vector<1x1x24x512xbf16>
    %49 = vector.shape_cast %48 : vector<1x1x24x512xbf16> to vector<24x512xbf16>
    %50 = arith.extf %49 : vector<24x512xbf16> to vector<24x512xf32>
    %51 = arith.subf %50, %46 : vector<24x512xf32>
    %52 = arith.mulf %51, %51 : vector<24x512xf32>
    %cst_32 = arith.constant dense<0.000000e+00> : vector<24xf32>
    %53 = vector.multi_reduction <add>, %52, %cst_32 [1] : vector<24x512xf32> to vector<24xf32>
    %54 = vector.shape_cast %53 : vector<24xf32> to vector<24x1xf32>
    %55 = arith.addf %47, %54 : vector<24x1xf32>
    %c0_33 = arith.constant 0 : index
    %c1_34 = arith.constant 1 : index
    %c0_35 = arith.constant 0 : index
    %c0_36 = arith.constant 0 : index
    %56 = vector.load %arg1[%c0_33, %c1_34, %c0_35, %c0_36] : memref<1x8x24x512xbf16, #tpu.memory_space<vmem>>, vector<1x1x24x512xbf16>
    %57 = vector.shape_cast %56 : vector<1x1x24x512xbf16> to vector<24x512xbf16>
    %58 = arith.extf %57 : vector<24x512xbf16> to vector<24x512xf32>
    %59 = arith.subf %58, %46 : vector<24x512xf32>
    %60 = arith.mulf %59, %59 : vector<24x512xf32>
    %cst_37 = arith.constant dense<0.000000e+00> : vector<24xf32>
    %61 = vector.multi_reduction <add>, %60, %cst_37 [1] : vector<24x512xf32> to vector<24xf32>
    %62 = vector.shape_cast %61 : vector<24xf32> to vector<24x1xf32>
    %63 = arith.addf %55, %62 : vector<24x1xf32>
    %c0_38 = arith.constant 0 : index
    %c2_39 = arith.constant 2 : index
    %c0_40 = arith.constant 0 : index
    %c0_41 = arith.constant 0 : index
    %64 = vector.load %arg1[%c0_38, %c2_39, %c0_40, %c0_41] : memref<1x8x24x512xbf16, #tpu.memory_space<vmem>>, vector<1x1x24x512xbf16>
    %65 = vector.shape_cast %64 : vector<1x1x24x512xbf16> to vector<24x512xbf16>
    %66 = arith.extf %65 : vector<24x512xbf16> to vector<24x512xf32>
    %67 = arith.subf %66, %46 : vector<24x512xf32>
    %68 = arith.mulf %67, %67 : vector<24x512xf32>
    %cst_42 = arith.constant dense<0.000000e+00> : vector<24xf32>
    %69 = vector.multi_reduction <add>, %68, %cst_42 [1] : vector<24x512xf32> to vector<24xf32>
    %70 = vector.shape_cast %69 : vector<24xf32> to vector<24x1xf32>
    %71 = arith.addf %63, %70 : vector<24x1xf32>
    %c0_43 = arith.constant 0 : index
    %c3_44 = arith.constant 3 : index
    %c0_45 = arith.constant 0 : index
    %c0_46 = arith.constant 0 : index
    %72 = vector.load %arg1[%c0_43, %c3_44, %c0_45, %c0_46] : memref<1x8x24x512xbf16, #tpu.memory_space<vmem>>, vector<1x1x24x512xbf16>
    %73 = vector.shape_cast %72 : vector<1x1x24x512xbf16> to vector<24x512xbf16>
    %74 = arith.extf %73 : vector<24x512xbf16> to vector<24x512xf32>
    %75 = arith.subf %74, %46 : vector<24x512xf32>
    %76 = arith.mulf %75, %75 : vector<24x512xf32>
    %cst_47 = arith.constant dense<0.000000e+00> : vector<24xf32>
    %77 = vector.multi_reduction <add>, %76, %cst_47 [1] : vector<24x512xf32> to vector<24xf32>
    %78 = vector.shape_cast %77 : vector<24xf32> to vector<24x1xf32>
    %79 = arith.addf %71, %78 : vector<24x1xf32>
    %c0_48 = arith.constant 0 : index
    %c4_49 = arith.constant 4 : index
    %c0_50 = arith.constant 0 : index
    %c0_51 = arith.constant 0 : index
    %80 = vector.load %arg1[%c0_48, %c4_49, %c0_50, %c0_51] : memref<1x8x24x512xbf16, #tpu.memory_space<vmem>>, vector<1x1x24x512xbf16>
    %81 = vector.shape_cast %80 : vector<1x1x24x512xbf16> to vector<24x512xbf16>
    %82 = arith.extf %81 : vector<24x512xbf16> to vector<24x512xf32>
    %83 = arith.subf %82, %46 : vector<24x512xf32>
    %84 = arith.mulf %83, %83 : vector<24x512xf32>
    %cst_52 = arith.constant dense<0.000000e+00> : vector<24xf32>
    %85 = vector.multi_reduction <add>, %84, %cst_52 [1] : vector<24x512xf32> to vector<24xf32>
    %86 = vector.shape_cast %85 : vector<24xf32> to vector<24x1xf32>
    %87 = arith.addf %79, %86 : vector<24x1xf32>
    %c0_53 = arith.constant 0 : index
    %c5_54 = arith.constant 5 : index
    %c0_55 = arith.constant 0 : index
    %c0_56 = arith.constant 0 : index
    %88 = vector.load %arg1[%c0_53, %c5_54, %c0_55, %c0_56] : memref<1x8x24x512xbf16, #tpu.memory_space<vmem>>, vector<1x1x24x512xbf16>
    %89 = vector.shape_cast %88 : vector<1x1x24x512xbf16> to vector<24x512xbf16>
    %90 = arith.extf %89 : vector<24x512xbf16> to vector<24x512xf32>
    %91 = arith.subf %90, %46 : vector<24x512xf32>
    %92 = arith.mulf %91, %91 : vector<24x512xf32>
    %cst_57 = arith.constant dense<0.000000e+00> : vector<24xf32>
    %93 = vector.multi_reduction <add>, %92, %cst_57 [1] : vector<24x512xf32> to vector<24xf32>
    %94 = vector.shape_cast %93 : vector<24xf32> to vector<24x1xf32>
    %95 = arith.addf %87, %94 : vector<24x1xf32>
    %c0_58 = arith.constant 0 : index
    %c6_59 = arith.constant 6 : index
    %c0_60 = arith.constant 0 : index
    %c0_61 = arith.constant 0 : index
    %96 = vector.load %arg1[%c0_58, %c6_59, %c0_60, %c0_61] : memref<1x8x24x512xbf16, #tpu.memory_space<vmem>>, vector<1x1x24x512xbf16>
    %97 = vector.shape_cast %96 : vector<1x1x24x512xbf16> to vector<24x512xbf16>
    %98 = arith.extf %97 : vector<24x512xbf16> to vector<24x512xf32>
    %99 = arith.subf %98, %46 : vector<24x512xf32>
    %100 = arith.mulf %99, %99 : vector<24x512xf32>
    %cst_62 = arith.constant dense<0.000000e+00> : vector<24xf32>
    %101 = vector.multi_reduction <add>, %100, %cst_62 [1] : vector<24x512xf32> to vector<24xf32>
    %102 = vector.shape_cast %101 : vector<24xf32> to vector<24x1xf32>
    %103 = arith.addf %95, %102 : vector<24x1xf32>
    %c0_63 = arith.constant 0 : index
    %c7_64 = arith.constant 7 : index
    %c0_65 = arith.constant 0 : index
    %c0_66 = arith.constant 0 : index
    %104 = vector.load %arg1[%c0_63, %c7_64, %c0_65, %c0_66] : memref<1x8x24x512xbf16, #tpu.memory_space<vmem>>, vector<1x1x24x512xbf16>
    %105 = vector.shape_cast %104 : vector<1x1x24x512xbf16> to vector<24x512xbf16>
    %106 = arith.extf %105 : vector<24x512xbf16> to vector<24x512xf32>
    %107 = arith.subf %106, %46 : vector<24x512xf32>
    %108 = arith.mulf %107, %107 : vector<24x512xf32>
    %cst_67 = arith.constant dense<0.000000e+00> : vector<24xf32>
    %109 = vector.multi_reduction <add>, %108, %cst_67 [1] : vector<24x512xf32> to vector<24xf32>
    %110 = vector.shape_cast %109 : vector<24xf32> to vector<24x1xf32>
    %111 = arith.addf %103, %110 : vector<24x1xf32>
    %cst_68 = arith.constant 2.44140625E-4 : f32
    %112 = vector.broadcast %cst_68 : f32 to vector<24x1xf32>
    %113 = arith.mulf %111, %112 : vector<24x1xf32>
    %c0_69 = arith.constant 0 : index
    %c0_70 = arith.constant 0 : index
    %114 = vector.load %arg3[%c0_69, %c0_70] : memref<24x1xf32, #tpu.memory_space<vmem>>, vector<24x1xf32>
    %cst_71 = arith.constant 9.99999974E-6 : f32
    %115 = vector.broadcast %cst_71 : f32 to vector<24x1xf32>
    %116 = arith.addf %113, %115 : vector<24x1xf32>
    %117 = math.rsqrt %116 : vector<24x1xf32>
    %118 = arith.mulf %114, %117 : vector<24x1xf32>
    %c0_72 = arith.constant 0 : index
    %c0_73 = arith.constant 0 : index
    %119 = vector.load %arg4[%c0_72, %c0_73] : memref<24x1xf32, #tpu.memory_space<vmem>>, vector<24x1xf32>
    %120 = arith.mulf %44, %118 : vector<24x1xf32>
    %121 = arith.subf %119, %120 : vector<24x1xf32>
    %122 = vector.shape_cast %118 : vector<24x1xf32> to vector<24x1xf32>
    %123 = vector.broadcast %122 : vector<24x1xf32> to vector<24x512xf32>
    %124 = vector.shape_cast %121 : vector<24x1xf32> to vector<24x1xf32>
    %125 = vector.broadcast %124 : vector<24x1xf32> to vector<24x512xf32>
    %c0_74 = arith.constant 0 : index
    %c0_75 = arith.constant 0 : index
    %c0_76 = arith.constant 0 : index
    %c0_77 = arith.constant 0 : index
    %126 = vector.load %arg1[%c0_74, %c0_75, %c0_76, %c0_77] : memref<1x8x24x512xbf16, #tpu.memory_space<vmem>>, vector<1x1x24x512xbf16>
    %127 = vector.shape_cast %126 : vector<1x1x24x512xbf16> to vector<24x512xbf16>
    %128 = arith.extf %127 : vector<24x512xbf16> to vector<24x512xf32>
    %129 = arith.mulf %128, %123 : vector<24x512xf32>
    %130 = arith.addf %129, %125 : vector<24x512xf32>
    %cst_78 = arith.constant 0.000000e+00 : f32
    %131 = vector.broadcast %cst_78 : f32 to vector<24x512xf32>
    %132 = arith.maximumf %130, %131 : vector<24x512xf32>
    %133 = arith.truncf %132 : vector<24x512xf32> to vector<24x512xbf16>
    %c312 = arith.constant 312 : index
    %c0_79 = arith.constant 0 : index
    %134 = vector.load %arg7[%c312, %c0_79] : memref<648x512xbf16, #tpu.memory_space<vmem>>, vector<24x512xbf16>
    tpu.vector_store %arg7[%c312, %c0_79], %133 {strides = array<i32>} : memref<648x512xbf16, #tpu.memory_space<vmem>>, vector<24x512xbf16>,
    %c0_80 = arith.constant 0 : index
    %c1_81 = arith.constant 1 : index
    %c0_82 = arith.constant 0 : index
    %c0_83 = arith.constant 0 : index
    %135 = vector.load %arg1[%c0_80, %c1_81, %c0_82, %c0_83] : memref<1x8x24x512xbf16, #tpu.memory_space<vmem>>, vector<1x1x24x512xbf16>
    %136 = vector.shape_cast %135 : vector<1x1x24x512xbf16> to vector<24x512xbf16>
    %137 = arith.extf %136 : vector<24x512xbf16> to vector<24x512xf32>
    %138 = arith.mulf %137, %123 : vector<24x512xf32>
    %139 = arith.addf %138, %125 : vector<24x512xf32>
    %cst_84 = arith.constant 0.000000e+00 : f32
    %140 = vector.broadcast %cst_84 : f32 to vector<24x512xf32>
    %141 = arith.maximumf %139, %140 : vector<24x512xf32>
    %c1_i32 = arith.constant 1 : i32
    %142 = tpu.dynamic_rotate %141 by %c1_i32 dim 1 : vector<24x512xf32>, i32 -> vector<24x512xf32>
    %c1_85 = arith.constant 1 : index
    %c0_86 = arith.constant 0 : index
    %143 = vector.load %arg2[%c1_85, %c0_86] : memref<8x512xf32, #tpu.memory_space<vmem>>, vector<1x512xf32>
    %144 = vector.broadcast %143 : vector<1x512xf32> to vector<24x512xf32>
    %145 = arith.mulf %142, %144 : vector<24x512xf32>
    %146 = arith.truncf %145 : vector<24x512xf32> to vector<24x512xbf16>
    %c288 = arith.constant 288 : index
    %c0_87 = arith.constant 0 : index
    %147 = vector.load %arg7[%c288, %c0_87] : memref<648x512xbf16, #tpu.memory_space<vmem>>, vector<24x512xbf16>
    tpu.vector_store %arg7[%c288, %c0_87], %146 {strides = array<i32>} : memref<648x512xbf16, #tpu.memory_space<vmem>>, vector<24x512xbf16>,
    %148 = arith.truncf %141 : vector<24x512xf32> to vector<24x512xbf16>
    %c336 = arith.constant 336 : index
    %c0_88 = arith.constant 0 : index
    %149 = vector.load %arg7[%c336, %c0_88] : memref<648x512xbf16, #tpu.memory_space<vmem>>, vector<24x512xbf16>
    tpu.vector_store %arg7[%c336, %c0_88], %148 {strides = array<i32>} : memref<648x512xbf16, #tpu.memory_space<vmem>>, vector<24x512xbf16>,
    %c0_89 = arith.constant 0 : index
    %c2_90 = arith.constant 2 : index
    %c0_91 = arith.constant 0 : index
    %c0_92 = arith.constant 0 : index
    %150 = vector.load %arg1[%c0_89, %c2_90, %c0_91, %c0_92] : memref<1x8x24x512xbf16, #tpu.memory_space<vmem>>, vector<1x1x24x512xbf16>
    %151 = vector.shape_cast %150 : vector<1x1x24x512xbf16> to vector<24x512xbf16>
    %152 = arith.extf %151 : vector<24x512xbf16> to vector<24x512xf32>
    %153 = arith.mulf %152, %123 : vector<24x512xf32>
    %154 = arith.addf %153, %125 : vector<24x512xf32>
    %cst_93 = arith.constant 0.000000e+00 : f32
    %155 = vector.broadcast %cst_93 : f32 to vector<24x512xf32>
    %156 = arith.maximumf %154, %155 : vector<24x512xf32>
    %c8_i32 = arith.constant 8 : i32
    %157 = tpu.dynamic_rotate %156 by %c8_i32 dim 1 : vector<24x512xf32>, i32 -> vector<24x512xf32>
    %c2_94 = arith.constant 2 : index
    %c0_95 = arith.constant 0 : index
    %158 = vector.load %arg2[%c2_94, %c0_95] : memref<8x512xf32, #tpu.memory_space<vmem>>, vector<1x512xf32>
    %159 = vector.broadcast %158 : vector<1x512xf32> to vector<24x512xf32>
    %160 = arith.mulf %157, %159 : vector<24x512xf32>
    %161 = arith.truncf %160 : vector<24x512xf32> to vector<24x512xbf16>
    %c240 = arith.constant 240 : index
    %c0_96 = arith.constant 0 : index
    %162 = vector.load %arg7[%c240, %c0_96] : memref<648x512xbf16, #tpu.memory_space<vmem>>, vector<24x512xbf16>
    tpu.vector_store %arg7[%c240, %c0_96], %161 {strides = array<i32>} : memref<648x512xbf16, #tpu.memory_space<vmem>>, vector<24x512xbf16>,
    %163 = arith.truncf %156 : vector<24x512xf32> to vector<24x512xbf16>
    %c384 = arith.constant 384 : index
    %c0_97 = arith.constant 0 : index
    %164 = vector.load %arg7[%c384, %c0_97] : memref<648x512xbf16, #tpu.memory_space<vmem>>, vector<24x512xbf16>
    tpu.vector_store %arg7[%c384, %c0_97], %163 {strides = array<i32>} : memref<648x512xbf16, #tpu.memory_space<vmem>>, vector<24x512xbf16>,
    %c0_98 = arith.constant 0 : index
    %c3_99 = arith.constant 3 : index
    %c0_100 = arith.constant 0 : index
    %c0_101 = arith.constant 0 : index
    %165 = vector.load %arg1[%c0_98, %c3_99, %c0_100, %c0_101] : memref<1x8x24x512xbf16, #tpu.memory_space<vmem>>, vector<1x1x24x512xbf16>
    %166 = vector.shape_cast %165 : vector<1x1x24x512xbf16> to vector<24x512xbf16>
    %167 = arith.extf %166 : vector<24x512xbf16> to vector<24x512xf32>
    %168 = arith.mulf %167, %123 : vector<24x512xf32>
    %169 = arith.addf %168, %125 : vector<24x512xf32>
    %cst_102 = arith.constant 0.000000e+00 : f32
    %170 = vector.broadcast %cst_102 : f32 to vector<24x512xf32>
    %171 = arith.maximumf %169, %170 : vector<24x512xf32>
    %c9_i32 = arith.constant 9 : i32
    %172 = tpu.dynamic_rotate %171 by %c9_i32 dim 1 : vector<24x512xf32>, i32 -> vector<24x512xf32>
    %c3_103 = arith.constant 3 : index
    %c0_104 = arith.constant 0 : index
    %173 = vector.load %arg2[%c3_103, %c0_104] : memref<8x512xf32, #tpu.memory_space<vmem>>, vector<1x512xf32>
    %174 = vector.broadcast %173 : vector<1x512xf32> to vector<24x512xf32>
    %175 = arith.mulf %172, %174 : vector<24x512xf32>
    %176 = arith.truncf %175 : vector<24x512xf32> to vector<24x512xbf16>
    %c216 = arith.constant 216 : index
    %c0_105 = arith.constant 0 : index
    %177 = vector.load %arg7[%c216, %c0_105] : memref<648x512xbf16, #tpu.memory_space<vmem>>, vector<24x512xbf16>
    tpu.vector_store %arg7[%c216, %c0_105], %176 {strides = array<i32>} : memref<648x512xbf16, #tpu.memory_space<vmem>>, vector<24x512xbf16>,
    %c8_i32_106 = arith.constant 8 : i32
    %178 = tpu.dynamic_rotate %171 by %c8_i32_106 dim 1 : vector<24x512xf32>, i32 -> vector<24x512xf32>
    %c2_107 = arith.constant 2 : index
    %c0_108 = arith.constant 0 : index
    %179 = vector.load %arg2[%c2_107, %c0_108] : memref<8x512xf32, #tpu.memory_space<vmem>>, vector<1x512xf32>
    %180 = vector.broadcast %179 : vector<1x512xf32> to vector<24x512xf32>
    %181 = arith.mulf %178, %180 : vector<24x512xf32>
    %182 = arith.truncf %181 : vector<24x512xf32> to vector<24x512xbf16>
    %c264 = arith.constant 264 : index
    %c0_109 = arith.constant 0 : index
    %183 = vector.load %arg7[%c264, %c0_109] : memref<648x512xbf16, #tpu.memory_space<vmem>>, vector<24x512xbf16>
    tpu.vector_store %arg7[%c264, %c0_109], %182 {strides = array<i32>} : memref<648x512xbf16, #tpu.memory_space<vmem>>, vector<24x512xbf16>,
    %c1_i32_110 = arith.constant 1 : i32
    %184 = tpu.dynamic_rotate %171 by %c1_i32_110 dim 1 : vector<24x512xf32>, i32 -> vector<24x512xf32>
    %c1_111 = arith.constant 1 : index
    %c0_112 = arith.constant 0 : index
    %185 = vector.load %arg2[%c1_111, %c0_112] : memref<8x512xf32, #tpu.memory_space<vmem>>, vector<1x512xf32>
    %186 = vector.broadcast %185 : vector<1x512xf32> to vector<24x512xf32>
    %187 = arith.mulf %184, %186 : vector<24x512xf32>
    %188 = arith.truncf %187 : vector<24x512xf32> to vector<24x512xbf16>
    %c360 = arith.constant 360 : index
    %c0_113 = arith.constant 0 : index
    %189 = vector.load %arg7[%c360, %c0_113] : memref<648x512xbf16, #tpu.memory_space<vmem>>, vector<24x512xbf16>
    tpu.vector_store %arg7[%c360, %c0_113], %188 {strides = array<i32>} : memref<648x512xbf16, #tpu.memory_space<vmem>>, vector<24x512xbf16>,
    %190 = arith.truncf %171 : vector<24x512xf32> to vector<24x512xbf16>
    %c408 = arith.constant 408 : index
    %c0_114 = arith.constant 0 : index
    %191 = vector.load %arg7[%c408, %c0_114] : memref<648x512xbf16, #tpu.memory_space<vmem>>, vector<24x512xbf16>
    tpu.vector_store %arg7[%c408, %c0_114], %190 {strides = array<i32>} : memref<648x512xbf16, #tpu.memory_space<vmem>>, vector<24x512xbf16>,
    %c0_115 = arith.constant 0 : index
    %c4_116 = arith.constant 4 : index
    %c0_117 = arith.constant 0 : index
    %c0_118 = arith.constant 0 : index
    %192 = vector.load %arg1[%c0_115, %c4_116, %c0_117, %c0_118] : memref<1x8x24x512xbf16, #tpu.memory_space<vmem>>, vector<1x1x24x512xbf16>
    %193 = vector.shape_cast %192 : vector<1x1x24x512xbf16> to vector<24x512xbf16>
    %194 = arith.extf %193 : vector<24x512xbf16> to vector<24x512xf32>
    %195 = arith.mulf %194, %123 : vector<24x512xf32>
    %196 = arith.addf %195, %125 : vector<24x512xf32>
    %cst_119 = arith.constant 0.000000e+00 : f32
    %197 = vector.broadcast %cst_119 : f32 to vector<24x512xf32>
    %198 = arith.maximumf %196, %197 : vector<24x512xf32>
    %c64_i32 = arith.constant 64 : i32
    %199 = tpu.dynamic_rotate %198 by %c64_i32 dim 1 : vector<24x512xf32>, i32 -> vector<24x512xf32>
    %c4_120 = arith.constant 4 : index
    %c0_121 = arith.constant 0 : index
    %200 = vector.load %arg2[%c4_120, %c0_121] : memref<8x512xf32, #tpu.memory_space<vmem>>, vector<1x512xf32>
    %201 = vector.broadcast %200 : vector<1x512xf32> to vector<24x512xf32>
    %202 = arith.mulf %199, %201 : vector<24x512xf32>
    %203 = arith.truncf %202 : vector<24x512xf32> to vector<24x512xbf16>
    %c96 = arith.constant 96 : index
    %c0_122 = arith.constant 0 : index
    %204 = vector.load %arg7[%c96, %c0_122] : memref<648x512xbf16, #tpu.memory_space<vmem>>, vector<24x512xbf16>
    tpu.vector_store %arg7[%c96, %c0_122], %203 {strides = array<i32>} : memref<648x512xbf16, #tpu.memory_space<vmem>>, vector<24x512xbf16>,
    %205 = arith.truncf %198 : vector<24x512xf32> to vector<24x512xbf16>
    %c528 = arith.constant 528 : index
    %c0_123 = arith.constant 0 : index
    %206 = vector.load %arg7[%c528, %c0_123] : memref<648x512xbf16, #tpu.memory_space<vmem>>, vector<24x512xbf16>
    tpu.vector_store %arg7[%c528, %c0_123], %205 {strides = array<i32>} : memref<648x512xbf16, #tpu.memory_space<vmem>>, vector<24x512xbf16>,
    %c0_124 = arith.constant 0 : index
    %c5_125 = arith.constant 5 : index
    %c0_126 = arith.constant 0 : index
    %c0_127 = arith.constant 0 : index
    %207 = vector.load %arg1[%c0_124, %c5_125, %c0_126, %c0_127] : memref<1x8x24x512xbf16, #tpu.memory_space<vmem>>, vector<1x1x24x512xbf16>
    %208 = vector.shape_cast %207 : vector<1x1x24x512xbf16> to vector<24x512xbf16>
    %209 = arith.extf %208 : vector<24x512xbf16> to vector<24x512xf32>
    %210 = arith.mulf %209, %123 : vector<24x512xf32>
    %211 = arith.addf %210, %125 : vector<24x512xf32>
    %cst_128 = arith.constant 0.000000e+00 : f32
    %212 = vector.broadcast %cst_128 : f32 to vector<24x512xf32>
    %213 = arith.maximumf %211, %212 : vector<24x512xf32>
    %c65_i32 = arith.constant 65 : i32
    %214 = tpu.dynamic_rotate %213 by %c65_i32 dim 1 : vector<24x512xf32>, i32 -> vector<24x512xf32>
    %c5_129 = arith.constant 5 : index
    %c0_130 = arith.constant 0 : index
    %215 = vector.load %arg2[%c5_129, %c0_130] : memref<8x512xf32, #tpu.memory_space<vmem>>, vector<1x512xf32>
    %216 = vector.broadcast %215 : vector<1x512xf32> to vector<24x512xf32>
    %217 = arith.mulf %214, %216 : vector<24x512xf32>
    %218 = arith.truncf %217 : vector<24x512xf32> to vector<24x512xbf16>
    %c72 = arith.constant 72 : index
    %c0_131 = arith.constant 0 : index
    %219 = vector.load %arg7[%c72, %c0_131] : memref<648x512xbf16, #tpu.memory_space<vmem>>, vector<24x512xbf16>
    tpu.vector_store %arg7[%c72, %c0_131], %218 {strides = array<i32>} : memref<648x512xbf16, #tpu.memory_space<vmem>>, vector<24x512xbf16>,
    %c64_i32_132 = arith.constant 64 : i32
    %220 = tpu.dynamic_rotate %213 by %c64_i32_132 dim 1 : vector<24x512xf32>, i32 -> vector<24x512xf32>
    %c4_133 = arith.constant 4 : index
    %c0_134 = arith.constant 0 : index
    %221 = vector.load %arg2[%c4_133, %c0_134] : memref<8x512xf32, #tpu.memory_space<vmem>>, vector<1x512xf32>
    %222 = vector.broadcast %221 : vector<1x512xf32> to vector<24x512xf32>
    %223 = arith.mulf %220, %222 : vector<24x512xf32>
    %224 = arith.truncf %223 : vector<24x512xf32> to vector<24x512xbf16>
    %c120 = arith.constant 120 : index
    %c0_135 = arith.constant 0 : index
    %225 = vector.load %arg7[%c120, %c0_135] : memref<648x512xbf16, #tpu.memory_space<vmem>>, vector<24x512xbf16>
    tpu.vector_store %arg7[%c120, %c0_135], %224 {strides = array<i32>} : memref<648x512xbf16, #tpu.memory_space<vmem>>, vector<24x512xbf16>,
    %c1_i32_136 = arith.constant 1 : i32
    %226 = tpu.dynamic_rotate %213 by %c1_i32_136 dim 1 : vector<24x512xf32>, i32 -> vector<24x512xf32>
    %c1_137 = arith.constant 1 : index
    %c0_138 = arith.constant 0 : index
    %227 = vector.load %arg2[%c1_137, %c0_138] : memref<8x512xf32, #tpu.memory_space<vmem>>, vector<1x512xf32>
    %228 = vector.broadcast %227 : vector<1x512xf32> to vector<24x512xf32>
    %229 = arith.mulf %226, %228 : vector<24x512xf32>
    %230 = arith.truncf %229 : vector<24x512xf32> to vector<24x512xbf16>
    %c504 = arith.constant 504 : index
    %c0_139 = arith.constant 0 : index
    %231 = vector.load %arg7[%c504, %c0_139] : memref<648x512xbf16, #tpu.memory_space<vmem>>, vector<24x512xbf16>
    tpu.vector_store %arg7[%c504, %c0_139], %230 {strides = array<i32>} : memref<648x512xbf16, #tpu.memory_space<vmem>>, vector<24x512xbf16>,
    %232 = arith.truncf %213 : vector<24x512xf32> to vector<24x512xbf16>
    %c552 = arith.constant 552 : index
    %c0_140 = arith.constant 0 : index
    %233 = vector.load %arg7[%c552, %c0_140] : memref<648x512xbf16, #tpu.memory_space<vmem>>, vector<24x512xbf16>
    tpu.vector_store %arg7[%c552, %c0_140], %232 {strides = array<i32>} : memref<648x512xbf16, #tpu.memory_space<vmem>>, vector<24x512xbf16>,
    %c0_141 = arith.constant 0 : index
    %c6_142 = arith.constant 6 : index
    %c0_143 = arith.constant 0 : index
    %c0_144 = arith.constant 0 : index
    %234 = vector.load %arg1[%c0_141, %c6_142, %c0_143, %c0_144] : memref<1x8x24x512xbf16, #tpu.memory_space<vmem>>, vector<1x1x24x512xbf16>
    %235 = vector.shape_cast %234 : vector<1x1x24x512xbf16> to vector<24x512xbf16>
    %236 = arith.extf %235 : vector<24x512xbf16> to vector<24x512xf32>
    %237 = arith.mulf %236, %123 : vector<24x512xf32>
    %238 = arith.addf %237, %125 : vector<24x512xf32>
    %cst_145 = arith.constant 0.000000e+00 : f32
    %239 = vector.broadcast %cst_145 : f32 to vector<24x512xf32>
    %240 = arith.maximumf %238, %239 : vector<24x512xf32>
    %c72_i32 = arith.constant 72 : i32
    %241 = tpu.dynamic_rotate %240 by %c72_i32 dim 1 : vector<24x512xf32>, i32 -> vector<24x512xf32>
    %c6_146 = arith.constant 6 : index
    %c0_147 = arith.constant 0 : index
    %242 = vector.load %arg2[%c6_146, %c0_147] : memref<8x512xf32, #tpu.memory_space<vmem>>, vector<1x512xf32>
    %243 = vector.broadcast %242 : vector<1x512xf32> to vector<24x512xf32>
    %244 = arith.mulf %241, %243 : vector<24x512xf32>
    %245 = arith.truncf %244 : vector<24x512xf32> to vector<24x512xbf16>
    %c24 = arith.constant 24 : index
    %c0_148 = arith.constant 0 : index
    %246 = vector.load %arg7[%c24, %c0_148] : memref<648x512xbf16, #tpu.memory_space<vmem>>, vector<24x512xbf16>
    tpu.vector_store %arg7[%c24, %c0_148], %245 {strides = array<i32>} : memref<648x512xbf16, #tpu.memory_space<vmem>>, vector<24x512xbf16>,
    %c64_i32_149 = arith.constant 64 : i32
    %247 = tpu.dynamic_rotate %240 by %c64_i32_149 dim 1 : vector<24x512xf32>, i32 -> vector<24x512xf32>
    %c4_150 = arith.constant 4 : index
    %c0_151 = arith.constant 0 : index
    %248 = vector.load %arg2[%c4_150, %c0_151] : memref<8x512xf32, #tpu.memory_space<vmem>>, vector<1x512xf32>
    %249 = vector.broadcast %248 : vector<1x512xf32> to vector<24x512xf32>
    %250 = arith.mulf %247, %249 : vector<24x512xf32>
    %251 = arith.truncf %250 : vector<24x512xf32> to vector<24x512xbf16>
    %c168 = arith.constant 168 : index
    %c0_152 = arith.constant 0 : index
    %252 = vector.load %arg7[%c168, %c0_152] : memref<648x512xbf16, #tpu.memory_space<vmem>>, vector<24x512xbf16>
    tpu.vector_store %arg7[%c168, %c0_152], %251 {strides = array<i32>} : memref<648x512xbf16, #tpu.memory_space<vmem>>, vector<24x512xbf16>,
    %c8_i32_153 = arith.constant 8 : i32
    %253 = tpu.dynamic_rotate %240 by %c8_i32_153 dim 1 : vector<24x512xf32>, i32 -> vector<24x512xf32>
    %c2_154 = arith.constant 2 : index
    %c0_155 = arith.constant 0 : index
    %254 = vector.load %arg2[%c2_154, %c0_155] : memref<8x512xf32, #tpu.memory_space<vmem>>, vector<1x512xf32>
    %255 = vector.broadcast %254 : vector<1x512xf32> to vector<24x512xf32>
    %256 = arith.mulf %253, %255 : vector<24x512xf32>
    %257 = arith.truncf %256 : vector<24x512xf32> to vector<24x512xbf16>
    %c456 = arith.constant 456 : index
    %c0_156 = arith.constant 0 : index
    %258 = vector.load %arg7[%c456, %c0_156] : memref<648x512xbf16, #tpu.memory_space<vmem>>, vector<24x512xbf16>
    tpu.vector_store %arg7[%c456, %c0_156], %257 {strides = array<i32>} : memref<648x512xbf16, #tpu.memory_space<vmem>>, vector<24x512xbf16>,
    %259 = arith.truncf %240 : vector<24x512xf32> to vector<24x512xbf16>
    %c600 = arith.constant 600 : index
    %c0_157 = arith.constant 0 : index
    %260 = vector.load %arg7[%c600, %c0_157] : memref<648x512xbf16, #tpu.memory_space<vmem>>, vector<24x512xbf16>
    tpu.vector_store %arg7[%c600, %c0_157], %259 {strides = array<i32>} : memref<648x512xbf16, #tpu.memory_space<vmem>>, vector<24x512xbf16>,
    %c0_158 = arith.constant 0 : index
    %c7_159 = arith.constant 7 : index
    %c0_160 = arith.constant 0 : index
    %c0_161 = arith.constant 0 : index
    %261 = vector.load %arg1[%c0_158, %c7_159, %c0_160, %c0_161] : memref<1x8x24x512xbf16, #tpu.memory_space<vmem>>, vector<1x1x24x512xbf16>
    %262 = vector.shape_cast %261 : vector<1x1x24x512xbf16> to vector<24x512xbf16>
    %263 = arith.extf %262 : vector<24x512xbf16> to vector<24x512xf32>
    %264 = arith.mulf %263, %123 : vector<24x512xf32>
    %265 = arith.addf %264, %125 : vector<24x512xf32>
    %cst_162 = arith.constant 0.000000e+00 : f32
    %266 = vector.broadcast %cst_162 : f32 to vector<24x512xf32>
    %267 = arith.maximumf %265, %266 : vector<24x512xf32>
    %c73_i32 = arith.constant 73 : i32
    %268 = tpu.dynamic_rotate %267 by %c73_i32 dim 1 : vector<24x512xf32>, i32 -> vector<24x512xf32>
    %c7_163 = arith.constant 7 : index
    %c0_164 = arith.constant 0 : index
    %269 = vector.load %arg2[%c7_163, %c0_164] : memref<8x512xf32, #tpu.memory_space<vmem>>, vector<1x512xf32>
    %270 = vector.broadcast %269 : vector<1x512xf32> to vector<24x512xf32>
    %271 = arith.mulf %268, %270 : vector<24x512xf32>
    %272 = arith.truncf %271 : vector<24x512xf32> to vector<24x512xbf16>
    %c0_165 = arith.constant 0 : index
    %c0_166 = arith.constant 0 : index
    %273 = vector.load %arg7[%c0_165, %c0_166] : memref<648x512xbf16, #tpu.memory_space<vmem>>, vector<24x512xbf16>
    tpu.vector_store %arg7[%c0_165, %c0_166], %272 {strides = array<i32>} : memref<648x512xbf16, #tpu.memory_space<vmem>>, vector<24x512xbf16>,
    %c72_i32_167 = arith.constant 72 : i32
    %274 = tpu.dynamic_rotate %267 by %c72_i32_167 dim 1 : vector<24x512xf32>, i32 -> vector<24x512xf32>
    %c6_168 = arith.constant 6 : index
    %c0_169 = arith.constant 0 : index
    %275 = vector.load %arg2[%c6_168, %c0_169] : memref<8x512xf32, #tpu.memory_space<vmem>>, vector<1x512xf32>
    %276 = vector.broadcast %275 : vector<1x512xf32> to vector<24x512xf32>
    %277 = arith.mulf %274, %276 : vector<24x512xf32>
    %278 = arith.truncf %277 : vector<24x512xf32> to vector<24x512xbf16>
    %c48 = arith.constant 48 : index
    %c0_170 = arith.constant 0 : index
    %279 = vector.load %arg7[%c48, %c0_170] : memref<648x512xbf16, #tpu.memory_space<vmem>>, vector<24x512xbf16>
    tpu.vector_store %arg7[%c48, %c0_170], %278 {strides = array<i32>} : memref<648x512xbf16, #tpu.memory_space<vmem>>, vector<24x512xbf16>,
    %c65_i32_171 = arith.constant 65 : i32
    %280 = tpu.dynamic_rotate %267 by %c65_i32_171 dim 1 : vector<24x512xf32>, i32 -> vector<24x512xf32>
    %c5_172 = arith.constant 5 : index
    %c0_173 = arith.constant 0 : index
    %281 = vector.load %arg2[%c5_172, %c0_173] : memref<8x512xf32, #tpu.memory_space<vmem>>, vector<1x512xf32>
    %282 = vector.broadcast %281 : vector<1x512xf32> to vector<24x512xf32>
    %283 = arith.mulf %280, %282 : vector<24x512xf32>
    %284 = arith.truncf %283 : vector<24x512xf32> to vector<24x512xbf16>
    %c144 = arith.constant 144 : index
    %c0_174 = arith.constant 0 : index
    %285 = vector.load %arg7[%c144, %c0_174] : memref<648x512xbf16, #tpu.memory_space<vmem>>, vector<24x512xbf16>
    tpu.vector_store %arg7[%c144, %c0_174], %284 {strides = array<i32>} : memref<648x512xbf16, #tpu.memory_space<vmem>>, vector<24x512xbf16>,
    %c64_i32_175 = arith.constant 64 : i32
    %286 = tpu.dynamic_rotate %267 by %c64_i32_175 dim 1 : vector<24x512xf32>, i32 -> vector<24x512xf32>
    %c4_176 = arith.constant 4 : index
    %c0_177 = arith.constant 0 : index
    %287 = vector.load %arg2[%c4_176, %c0_177] : memref<8x512xf32, #tpu.memory_space<vmem>>, vector<1x512xf32>
    %288 = vector.broadcast %287 : vector<1x512xf32> to vector<24x512xf32>
    %289 = arith.mulf %286, %288 : vector<24x512xf32>
    %290 = arith.truncf %289 : vector<24x512xf32> to vector<24x512xbf16>
    %c192 = arith.constant 192 : index
    %c0_178 = arith.constant 0 : index
    %291 = vector.load %arg7[%c192, %c0_178] : memref<648x512xbf16, #tpu.memory_space<vmem>>, vector<24x512xbf16>
    tpu.vector_store %arg7[%c192, %c0_178], %290 {strides = array<i32>} : memref<648x512xbf16, #tpu.memory_space<vmem>>, vector<24x512xbf16>,
    %c9_i32_179 = arith.constant 9 : i32
    %292 = tpu.dynamic_rotate %267 by %c9_i32_179 dim 1 : vector<24x512xf32>, i32 -> vector<24x512xf32>
    %c3_180 = arith.constant 3 : index
    %c0_181 = arith.constant 0 : index
    %293 = vector.load %arg2[%c3_180, %c0_181] : memref<8x512xf32, #tpu.memory_space<vmem>>, vector<1x512xf32>
    %294 = vector.broadcast %293 : vector<1x512xf32> to vector<24x512xf32>
    %295 = arith.mulf %292, %294 : vector<24x512xf32>
    %296 = arith.truncf %295 : vector<24x512xf32> to vector<24x512xbf16>
    %c432 = arith.constant 432 : index
    %c0_182 = arith.constant 0 : index
    %297 = vector.load %arg7[%c432, %c0_182] : memref<648x512xbf16, #tpu.memory_space<vmem>>, vector<24x512xbf16>
    tpu.vector_store %arg7[%c432, %c0_182], %296 {strides = array<i32>} : memref<648x512xbf16, #tpu.memory_space<vmem>>, vector<24x512xbf16>,
    %c8_i32_183 = arith.constant 8 : i32
    %298 = tpu.dynamic_rotate %267 by %c8_i32_183 dim 1 : vector<24x512xf32>, i32 -> vector<24x512xf32>
    %c2_184 = arith.constant 2 : index
    %c0_185 = arith.constant 0 : index
    %299 = vector.load %arg2[%c2_184, %c0_185] : memref<8x512xf32, #tpu.memory_space<vmem>>, vector<1x512xf32>
    %300 = vector.broadcast %299 : vector<1x512xf32> to vector<24x512xf32>
    %301 = arith.mulf %298, %300 : vector<24x512xf32>
    %302 = arith.truncf %301 : vector<24x512xf32> to vector<24x512xbf16>
    %c480 = arith.constant 480 : index
    %c0_186 = arith.constant 0 : index
    %303 = vector.load %arg7[%c480, %c0_186] : memref<648x512xbf16, #tpu.memory_space<vmem>>, vector<24x512xbf16>
    tpu.vector_store %arg7[%c480, %c0_186], %302 {strides = array<i32>} : memref<648x512xbf16, #tpu.memory_space<vmem>>, vector<24x512xbf16>,
    %c1_i32_187 = arith.constant 1 : i32
    %304 = tpu.dynamic_rotate %267 by %c1_i32_187 dim 1 : vector<24x512xf32>, i32 -> vector<24x512xf32>
    %c1_188 = arith.constant 1 : index
    %c0_189 = arith.constant 0 : index
    %305 = vector.load %arg2[%c1_188, %c0_189] : memref<8x512xf32, #tpu.memory_space<vmem>>, vector<1x512xf32>
    %306 = vector.broadcast %305 : vector<1x512xf32> to vector<24x512xf32>
    %307 = arith.mulf %304, %306 : vector<24x512xf32>
    %308 = arith.truncf %307 : vector<24x512xf32> to vector<24x512xbf16>
    %c576 = arith.constant 576 : index
    %c0_190 = arith.constant 0 : index
    %309 = vector.load %arg7[%c576, %c0_190] : memref<648x512xbf16, #tpu.memory_space<vmem>>, vector<24x512xbf16>
    tpu.vector_store %arg7[%c576, %c0_190], %308 {strides = array<i32>} : memref<648x512xbf16, #tpu.memory_space<vmem>>, vector<24x512xbf16>,
    %310 = arith.truncf %267 : vector<24x512xf32> to vector<24x512xbf16>
    %c624 = arith.constant 624 : index
    %c0_191 = arith.constant 0 : index
    %311 = vector.load %arg7[%c624, %c0_191] : memref<648x512xbf16, #tpu.memory_space<vmem>>, vector<24x512xbf16>
    tpu.vector_store %arg7[%c624, %c0_191], %310 {strides = array<i32>} : memref<648x512xbf16, #tpu.memory_space<vmem>>, vector<24x512xbf16>,
    %c0_192 = arith.constant 0 : index
    %c0_193 = arith.constant 0 : index
    %312 = vector.load %arg5[%c0_192, %c0_193] : memref<24x648xbf16, #tpu.memory_space<vmem>>, vector<24x648xbf16>
    %c0_194 = arith.constant 0 : index
    %c0_195 = arith.constant 0 : index
    %313 = vector.load %arg7[%c0_194, %c0_195] : memref<648x512xbf16, #tpu.memory_space<vmem>>, vector<648x512xbf16>
    %cst_196 = arith.constant dense<0.000000e+00> : vector<24x512xf32>
    %314 = tpu.matmul %312, %313, %cst_196 {dimension_numbers = #tpu.dot_dimension_numbers<[1], [0], [0], [1], [0, 0, 1, 1], [], []>} : vector<24x648xbf16>, vector<648x512xbf16>, vector<24x512xf32> -> vector<24x512xf32>
    %c0_197 = arith.constant 0 : index
    %c0_198 = arith.constant 0 : index
    %c0_199 = arith.constant 0 : index
    %315 = vector.load %arg6[%c0_197, %c0_198, %c0_199] : memref<1x24x1024xf32, #tpu.memory_space<vmem>>, vector<1x24x512xf32>
    %316 = vector.shape_cast %315 : vector<1x24x512xf32> to vector<24x512xf32>
    %317 = vector.shape_cast %314 : vector<24x512xf32> to vector<1x24x512xf32>
    tpu.vector_store %arg6[%c0_197, %c0_198, %c0_199], %317 {strides = array<i32>} : memref<1x24x1024xf32, #tpu.memory_space<vmem>>, vector<1x24x512xf32>,
    return
  }
  func.func @transform_0(%arg0: i32) -> (i32, i32, i32, i32) {
    %c0_i32 = arith.constant 0 : i32
    %c0_i32_0 = arith.constant 0 : i32
    %c0_i32_1 = arith.constant 0 : i32
    %c0_i32_2 = arith.constant 0 : i32
    return %arg0, %c0_i32, %c0_i32_0, %c0_i32_1 : i32, i32, i32, i32
  }
  func.func @transform_1(%arg0: i32) -> (i32, i32) {
    %c0_i32 = arith.constant 0 : i32
    %c0_i32_0 = arith.constant 0 : i32
    %c0_i32_1 = arith.constant 0 : i32
    return %c0_i32, %c0_i32_0 : i32, i32
  }
  func.func @transform_2(%arg0: i32) -> (i32, i32) {
    %c0_i32 = arith.constant 0 : i32
    %c0_i32_0 = arith.constant 0 : i32
    %c0_i32_1 = arith.constant 0 : i32
    return %c0_i32, %c0_i32_0 : i32, i32
  }
  func.func @transform_3(%arg0: i32) -> (i32, i32) {
    %c0_i32 = arith.constant 0 : i32
    %c0_i32_0 = arith.constant 0 : i32
    %c0_i32_1 = arith.constant 0 : i32
    return %c0_i32, %c0_i32_0 : i32, i32
  }
  func.func @transform_4(%arg0: i32) -> (i32, i32) {
    %c0_i32 = arith.constant 0 : i32
    %c0_i32_0 = arith.constant 0 : i32
    %c0_i32_1 = arith.constant 0 : i32
    return %c0_i32, %c0_i32_0 : i32, i32
  }
  func.func @transform_5(%arg0: i32) -> (i32, i32, i32) {
    %c0_i32 = arith.constant 0 : i32
    %c0_i32_0 = arith.constant 0 : i32
    %c0_i32_1 = arith.constant 0 : i32
    return %arg0, %c0_i32, %c0_i32_0 : i32, i32, i32
  }
}

</mosaic_0001>

<bundles_post_ra>
// kernel: downsampling_forward.1
= control target key start
LH: loop header
LB: loop body
LE: loop exit
PB: predicated region body
PF: predicated region fallthrough
CT: control target
= control target key end

     0   :  { %s5618_s18 = smov 0   ;;  %s8738_s0 = inlined_call_operand.vmem [shape: bf16[2,8,24,512], index: 0, kind: input, shape index: {}]   ;;  %s8739_s1 = inlined_call_operand.vmem [shape: f32[8,512], index: 1, kind: input, shape index: {}]   ;;  %s8740_s2 = inlined_call_operand.vmem [shape: f32[24,1], index: 2, kind: input, shape index: {}]   ;;  %s8741_s3 = inlined_call_operand.vmem [shape: f32[24,1], index: 3, kind: input, shape index: {}]   ;;  %s8742_s4 = inlined_call_operand.vmem [shape: bf16[24,648], index: 4, kind: input, shape index: {}]   ;;  %s8743_s5 = inlined_call_operand.vmem [shape: f32[2,24,1024], index: 5, kind: output, shape index: {}]  }
   0x1 LB: > { %s4541_s19 = sadd.s32 4294967295, %s5578_s18   ;;  %p4545_p0 = scmp.ge.s32.totalorder %s5578_s18, 1  ;;  %s5578_s18 = sphi %s5618_s18, %s15_s18  }
   0x2   : > { %p187_p1 = scmp.lt.s32.totalorder %s5578_s18, 3 }
   0x4   : > { %p188_p2 = pnand %p4545_p0, %p187_p1 }
   0x6   : > { %191 = sbr.rel (%p188_p2) target bundleno = 1472 (0x5c0), region = 40 }
   0xb   : > { %p215_p3 = scmp.lt.s32.totalorder %s4541_s19, 1  ;;  %s5581_s15 = smov 1   ;;  %vm4029_vm9 = vcmask 1043456  }
   0xc   : > { %s5582_s16 = smov 8   ;;  %s5583_s17 = smov 9  }
   0xd   : > { %s9139_s19 = smov (!%p215_p3, %s4541_s19), 1  ;;  %s5585_s26 = smov 65  }
   0xe   : > { %s5533_s20 = smul.u32 384, %s9139_s19  ;;  %s5586_s13 = smov 72  }
   0xf   : > { %s5534_s24 = smul.u32 192, %s9139_s19  ;;  %s5587_s6 = smov 73  }
  0x10   : > { %s5632_s23 = scalar_lea.vmem %s8738_s0, %s5533_s20 }
  0x11   : > { %v226_v0 = vld [vmem:[%s5632_s23] sm:$0xff]  ;;  %v227_v1 = vld [vmem:[%s5632_s23 + $0x8] sm:$0xff]  ;;  %v4548_v2 = vld [vmem:[%s5632_s23 + $0x30] sm:$0xff]  ;;  %s5764_s27 = scalar_lea.vmem %s8743_s5, %s5534_s24 }
  0x12   : > { %v5637_v3 = vunpack.c.l.bf16 %v226_v0  ;;  %v5639_v4 = vunpack.c.h.bf16 %v226_v0  ;;  %v5641_v5 = vunpack.c.l.bf16 %v227_v1  ;;  %v5643_v6 = vunpack.c.h.bf16 %v227_v1  ;;  %v4549_v7 = vld [vmem:[%s5632_s23 + $0x38] sm:$0xff]  ;;  %v4554_v8 = vld [vmem:[%s5632_s23 + $0x60] sm:$0xff]  ;;  %v4555_v9 = vld [vmem:[%s5632_s23 + $0x68] sm:$0xff] }
  0x13   : > { %v5648_v10 = vunpack.c.l.bf16 %v4548_v2  ;;  %v5650_v11 = vunpack.c.h.bf16 %v4548_v2  ;;  %v5652_v12 = vunpack.c.l.bf16 %v4549_v7  ;;  %v5654_v13 = vunpack.c.h.bf16 %v4549_v7  ;;  %v4560_v26 = vld [vmem:[%s5632_s23 + $0x90] sm:$0xff]  ;;  %v4561_v27 = vld [vmem:[%s5632_s23 + $0x98] sm:$0xff]  ;;  %v4566_v32 = vld [vmem:[%s5632_s23 + $0xc0] sm:$0xff] }
  0x14   : > { %8891 = vst [vmem:[#allocation3_spill] sm:$0xff] %v5641_v5  ;;  %v5656_v14 = vunpack.c.l.bf16 %v4554_v8  ;;  %v5658_v15 = vunpack.c.h.bf16 %v4554_v8  ;;  %v5660_v16 = vunpack.c.l.bf16 %v4555_v9  ;;  %v5662_v17 = vunpack.c.h.bf16 %v4555_v9  ;;  %v4567_v33 = vld [vmem:[%s5632_s23 + $0xc8] sm:$0xff]  ;;  %v4572_v54 = vld [vmem:[%s5632_s23 + $0xf0] sm:$0xff]  ;;  %v4573_v55 = vld [vmem:[%s5632_s23 + $0xf8] sm:$0xff] }
  0x15   : > { %8892 = vst [vmem:[#allocation4_spill] sm:$0xff] %v5643_v6  ;;  %v263_v18 = vadd.f32 %v5648_v10, %v5637_v3  ;;  %v264_v19 = vadd.f32 %v5650_v11, %v5639_v4  ;;  %v265_v20 = vadd.f32 %v5652_v12, %v5641_v5  ;;  %v266_v21 = vadd.f32 %v5654_v13, %v5643_v6  ;;  %v4578_v60 = vld [vmem:[%s5632_s23 + $0x120] sm:$0xff]  ;;  %v4579_v61 = vld [vmem:[%s5632_s23 + $0x128] sm:$0xff] }
  0x16   : > { %v275_v22 = vmax.f32 %v5637_v3, %v5648_v10  ;;  %v276_v23 = vmax.f32 %v5639_v4, %v5650_v11  ;;  %v277_v24 = vmax.f32 %v5641_v5, %v5652_v12  ;;  %v278_v25 = vmax.f32 %v5643_v6, %v5654_v13 }
  0x17   : > { %v306_v28 = vadd.f32 %v5656_v14, %v263_v18  ;;  %v307_v29 = vadd.f32 %v5658_v15, %v264_v19  ;;  %v308_v30 = vadd.f32 %v5660_v16, %v265_v20  ;;  %v309_v31 = vadd.f32 %v5662_v17, %v266_v21 }
  0x18   : > { %v318_v34 = vmax.f32 %v275_v22, %v5656_v14  ;;  %v319_v35 = vmax.f32 %v276_v23, %v5658_v15  ;;  %v320_v36 = vmax.f32 %v277_v24, %v5660_v16  ;;  %v321_v37 = vmax.f32 %v278_v25, %v5662_v17 }
  0x19   : > { %v5692_v38 = vunpack.c.l.bf16 %v4560_v26  ;;  %v5694_v39 = vunpack.c.h.bf16 %v4560_v26  ;;  %v5696_v40 = vunpack.c.l.bf16 %v4561_v27  ;;  %v5698_v41 = vunpack.c.h.bf16 %v4561_v27 }
  0x1a   : > { %v5700_v42 = vunpack.c.l.bf16 %v4566_v32  ;;  %v5702_v43 = vunpack.c.h.bf16 %v4566_v32  ;;  %v5704_v44 = vunpack.c.l.bf16 %v4567_v33  ;;  %v5706_v45 = vunpack.c.h.bf16 %v4567_v33 }
  0x1b   : > { %v349_v46 = vadd.f32 %v5692_v38, %v306_v28  ;;  %v350_v47 = vadd.f32 %v5694_v39, %v307_v29  ;;  %v351_v48 = vadd.f32 %v5696_v40, %v308_v30  ;;  %v352_v49 = vadd.f32 %v5698_v41, %v309_v31  ;;  %v4584_v30 = vld [vmem:[%s5632_s23 + $0x150] sm:$0xff]  ;;  %v4585_v31 = vld [vmem:[%s5632_s23 + $0x158] sm:$0xff] }
  0x1c   : > { %v361_v50 = vmax.f32 %v318_v34, %v5692_v38  ;;  %v362_v51 = vmax.f32 %v319_v35, %v5694_v39  ;;  %v363_v52 = vmax.f32 %v320_v36, %v5696_v40  ;;  %v364_v53 = vmax.f32 %v321_v37, %v5698_v41  ;;  %v228_v36 = vld [vmem:[%s5632_s23 + $0x10] sm:$0xff]  ;;  %v229_v37 = vld [vmem:[%s5632_s23 + $0x18] sm:$0xff] }
  0x1d   : > { %v392_v56 = vadd.f32 %v5700_v42, %v349_v46  ;;  %v393_v57 = vadd.f32 %v5702_v43, %v350_v47  ;;  %v394_v58 = vadd.f32 %v5704_v44, %v351_v48  ;;  %v395_v59 = vadd.f32 %v5706_v45, %v352_v49 }
  0x1e   : > { %v404_v62 = vmax.f32 %v361_v50, %v5700_v42  ;;  %v405_v63 = vmax.f32 %v362_v51, %v5702_v43  ;;  %v406_v0 = vmax.f32 %v363_v52, %v5704_v44  ;;  %v407_v1 = vmax.f32 %v364_v53, %v5706_v45 }
  0x1f   : > { %v5728_v2 = vunpack.c.l.bf16 %v4572_v54  ;;  %v5730_v7 = vunpack.c.h.bf16 %v4572_v54  ;;  %v5732_v8 = vunpack.c.l.bf16 %v4573_v55  ;;  %v5734_v9 = vunpack.c.h.bf16 %v4573_v55 }
  0x20   : > { %v466_v18 = vunpack.c.l.bf16 %v4578_v60  ;;  %v467_v19 = vunpack.c.h.bf16 %v4578_v60  ;;  %v468_v20 = vunpack.c.l.bf16 %v4579_v61  ;;  %v469_v21 = vunpack.c.h.bf16 %v4579_v61 }
  0x21   : > { %v435_v22 = vadd.f32 %v5728_v2, %v392_v56  ;;  %v436_v23 = vadd.f32 %v5730_v7, %v393_v57  ;;  %v437_v24 = vadd.f32 %v5732_v8, %v394_v58  ;;  %v438_v25 = vadd.f32 %v5734_v9, %v395_v59  ;;  %v4550_v58 = vld [vmem:[%s5632_s23 + $0x40] sm:$0xff]  ;;  %v4551_v59 = vld [vmem:[%s5632_s23 + $0x48] sm:$0xff] }
  0x22   : > { %v447_v26 = vmax.f32 %v404_v62, %v5728_v2  ;;  %v448_v27 = vmax.f32 %v405_v63, %v5730_v7  ;;  %v449_v28 = vmax.f32 %v406_v0, %v5732_v8  ;;  %v450_v29 = vmax.f32 %v407_v1, %v5734_v9  ;;  %v4556_v0 = vld [vmem:[%s5632_s23 + $0x70] sm:$0xff]  ;;  %v4557_v1 = vld [vmem:[%s5632_s23 + $0x78] sm:$0xff] }
  0x23   : > { %v478_v32 = vadd.f32 %v466_v18, %v435_v22  ;;  %v479_v33 = vadd.f32 %v467_v19, %v436_v23  ;;  %v480_v34 = vadd.f32 %v468_v20, %v437_v24  ;;  %v481_v35 = vadd.f32 %v469_v21, %v438_v25 }
  0x24   : > { %v490_v46 = vmax.f32 %v447_v26, %v466_v18  ;;  %v491_v47 = vmax.f32 %v448_v27, %v467_v19  ;;  %v492_v48 = vmax.f32 %v449_v28, %v468_v20  ;;  %v493_v49 = vmax.f32 %v450_v29, %v469_v21 }
  0x25   : > { %v509_v50 = vunpack.c.l.bf16 %v4584_v30  ;;  %v510_v51 = vunpack.c.h.bf16 %v4584_v30  ;;  %v511_v52 = vunpack.c.l.bf16 %v4585_v31  ;;  %v512_v53 = vunpack.c.h.bf16 %v4585_v31 }
  0x26   : > { %v5749_v54 = vunpack.c.l.bf16 %v228_v36  ;;  %v5751_v55 = vunpack.c.h.bf16 %v228_v36  ;;  %v5753_v56 = vunpack.c.l.bf16 %v229_v37  ;;  %v5755_v57 = vunpack.c.h.bf16 %v229_v37 }
  0x27   : > { %v521_v60 = vadd.f32 %v509_v50, %v478_v32  ;;  %v522_v61 = vadd.f32 %v510_v51, %v479_v33  ;;  %v523_v62 = vadd.f32 %v511_v52, %v480_v34  ;;  %v524_v63 = vadd.f32 %v512_v53, %v481_v35 }
  0x28   : > { %v533_v18 = vmax.f32 %v490_v46, %v509_v50  ;;  %v534_v19 = vmax.f32 %v491_v47, %v510_v51  ;;  %v535_v20 = vmax.f32 %v492_v48, %v511_v52  ;;  %v536_v21 = vmax.f32 %v493_v49, %v512_v53  ;;  %v4562_v46 = vld [vmem:[%s5632_s23 + $0xa0] sm:$0xff]  ;;  %v4563_v51 = vld [vmem:[%s5632_s23 + $0xa8] sm:$0xff]  ;;  %v4568_v52 = vld [vmem:[%s5632_s23 + $0xd0] sm:$0xff] }
  0x29   : > { %v557_v22 = vadd.f32 %v522_v61, %v521_v60  ;;  %v5766_v23 = vunpack.c.l.bf16 %v4550_v58  ;;  %v5768_v24 = vunpack.c.h.bf16 %v4550_v58  ;;  %v5770_v25 = vunpack.c.l.bf16 %v4551_v59  ;;  %v4569_v61 = vld [vmem:[%s5632_s23 + $0xd8] sm:$0xff] }
  0x2a   : > { %545 = vst [vmem:[%s5764_s27 + $0x20] sm:$0xff] %v533_v18  ;;  %v5773_v26 = vunpack.c.h.bf16 %v4551_v59  ;;  %v5775_v27 = vunpack.c.l.bf16 %v4556_v0  ;;  %v5777_v28 = vunpack.c.h.bf16 %v4556_v0  ;;  %v5779_v29 = vunpack.c.l.bf16 %v4557_v1 }
  0x2b   : > { %546 = vst [vmem:[%s5764_s27 + $0x28] sm:$0xff] %v534_v19  ;;  %v558_v30 = vadd.f32 %v557_v22, %v523_v62  ;;  %v267_v31 = vadd.f32 %v5766_v23, %v5749_v54  ;;  %v268_v32 = vadd.f32 %v5768_v24, %v5751_v55  ;;  %v269_v33 = vadd.f32 %v5770_v25, %v5753_v56 }
  0x2c   : > { %547 = vst [vmem:[%s5764_s27 + $0x30] sm:$0xff] %v535_v20  ;;  %v270_v34 = vadd.f32 %v5773_v26, %v5755_v57  ;;  %v279_v35 = vmax.f32 %v5749_v54, %v5766_v23  ;;  %v280_v36 = vmax.f32 %v5751_v55, %v5768_v24  ;;  %v281_v37 = vmax.f32 %v5753_v56, %v5770_v25 }
  0x2d   : > { %548 = vst [vmem:[%s5764_s27 + $0x38] sm:$0xff] %v536_v21  ;;  %v559_v47 = vadd.f32 %v558_v30, %v524_v63  ;;  %v282_v48 = vmax.f32 %v5755_v57, %v5773_v26  ;;  %v5801_v49 = vunpack.c.h.bf16 %v4557_v1  ;;  %v310_v50 = vadd.f32 %v5775_v27, %v267_v31 }
  0x2e   : > { %v311_v53 = vadd.f32 %v5777_v28, %v268_v32  ;;  %v312_v58 = vadd.f32 %v5779_v29, %v269_v33  ;;  %v322_v59 = vmax.f32 %v279_v35, %v5775_v27  ;;  %v323_v60 = vmax.f32 %v280_v36, %v5777_v28 }
  0x2f   : > { %8893 = vst [vmem:[#allocation5_spill] sm:$0xff] %v5801_v49  ;;  %560 = vadd.xlane.f32.xlu0 %v559_v47  ;;  %v313_v62 = vadd.f32 %v5801_v49, %v270_v34  ;;  %v324_v63 = vmax.f32 %v281_v37, %v5779_v29  ;;  %v325_v0 = vmax.f32 %v282_v48, %v5801_v49  ;;  %v5814_v1 = vunpack.c.l.bf16 %v4562_v46  ;;  %v4574_v37 = vld [vmem:[%s5632_s23 + $0x100] sm:$0xff] }
  0x30   : > { %v5816_v18 = vunpack.c.h.bf16 %v4562_v46  ;;  %v5818_v19 = vunpack.c.l.bf16 %v4563_v51  ;;  %v5820_v20 = vunpack.c.h.bf16 %v4563_v51  ;;  %v5822_v21 = vunpack.c.l.bf16 %v4568_v52  ;;  %v4575_v51 = vld [vmem:[%s5632_s23 + $0x108] sm:$0xff] }
  0x31   : > { %v353_v22 = vadd.f32 %v5814_v1, %v310_v50  ;;  %v365_v30 = vmax.f32 %v322_v59, %v5814_v1  ;;  %v5826_v31 = vunpack.c.h.bf16 %v4568_v52  ;;  %v5828_v32 = vunpack.c.l.bf16 %v4569_v61  ;;  %v4580_v52 = vld [vmem:[%s5632_s23 + $0x130] sm:$0xff] }
  0x32   : > { %8894 = vst [vmem:[#allocation6_spill] sm:$0xff] %v5818_v19  ;;  %v354_v33 = vadd.f32 %v5816_v18, %v311_v53  ;;  %v355_v34 = vadd.f32 %v5818_v19, %v312_v58  ;;  %v356_v35 = vadd.f32 %v5820_v20, %v313_v62  ;;  %v366_v36 = vmax.f32 %v323_v60, %v5816_v18  ;;  %v4581_v60 = vld [vmem:[%s5632_s23 + $0x138] sm:$0xff] }
  0x33   : > { %8895 = vst [vmem:[#allocation7_spill] sm:$0xff] %v5820_v20  ;;  %v367_v46 = vmax.f32 %v324_v63, %v5818_v19  ;;  %v368_v47 = vmax.f32 %v325_v0, %v5820_v20  ;;  %v5837_v48 = vunpack.c.h.bf16 %v4569_v61  ;;  %v396_v50 = vadd.f32 %v5822_v21, %v353_v22 }
  0x34   : > { %8896 = vst [vmem:[#allocation8_spill] sm:$0xff] %v5822_v21  ;;  %v397_v59 = vadd.f32 %v5826_v31, %v354_v33  ;;  %v398_v53 = vadd.f32 %v5828_v32, %v355_v34  ;;  %v408_v58 = vmax.f32 %v365_v30, %v5822_v21  ;;  %v409_v62 = vmax.f32 %v366_v36, %v5826_v31 }
  0x35   : > { %8897 = vst [vmem:[#allocation9_spill] sm:$0xff] %v5826_v31  ;;  %v399_v49 = vadd.f32 %v5837_v48, %v356_v35  ;;  %v410_v63 = vmax.f32 %v367_v46, %v5828_v32  ;;  %v411_v61 = vmax.f32 %v368_v47, %v5837_v48  ;;  %v5850_v0 = vunpack.c.l.bf16 %v4574_v37 }
  0x36   : > { %8898 = vst [vmem:[#allocation10_spill] sm:$0xff] %v5828_v32  ;;  %v5852_v22 = vunpack.c.h.bf16 %v4574_v37  ;;  %v5854_v20 = vunpack.c.l.bf16 %v4575_v51  ;;  %v5856_v33 = vunpack.c.h.bf16 %v4575_v51  ;;  %v5858_v30 = vunpack.c.l.bf16 %v4580_v52  ;;  %v4586_v32 = vld [vmem:[%s5632_s23 + $0x160] sm:$0xff] }
  0x37   : > { %8899 = vst [vmem:[#allocation11_spill] sm:$0xff] %v5837_v48  ;;  %v439_v34 = vadd.f32 %v5850_v0, %v396_v50  ;;  %v451_v35 = vmax.f32 %v408_v58, %v5850_v0  ;;  %v5862_v36 = vunpack.c.h.bf16 %v4580_v52  ;;  %v5864_v46 = vunpack.c.l.bf16 %v4581_v60  ;;  %v4587_v58 = vld [vmem:[%s5632_s23 + $0x168] sm:$0xff] }
  0x38   : > { %8900 = vst [vmem:[#allocation12_spill] sm:$0xff] %v5850_v0  ;;  %v440_v37 = vadd.f32 %v5852_v22, %v397_v59  ;;  %v441_v47 = vadd.f32 %v5854_v20, %v398_v53  ;;  %v442_v48 = vadd.f32 %v5856_v33, %v399_v49  ;;  %v452_v51 = vmax.f32 %v409_v62, %v5852_v22  ;;  %v230_v0 = vld [vmem:[%s5632_s23 + $0x20] sm:$0xff] }
  0x39   : > { %8901 = vst [vmem:[#allocation13_spill] sm:$0xff] %v5852_v22  ;;  %v453_v31 = vmax.f32 %v410_v63, %v5854_v20  ;;  %v454_v50 = vmax.f32 %v411_v61, %v5856_v33  ;;  %v5873_v21 = vunpack.c.h.bf16 %v4581_v60  ;;  %v482_v52 = vadd.f32 %v5858_v30, %v439_v34  ;;  %v231_v22 = vld [vmem:[%s5632_s23 + $0x28] sm:$0xff] }
  0x3a   : > { %8902 = vst [vmem:[#allocation14_spill] sm:$0xff] %v5854_v20  ;;  %v483_v59 = vadd.f32 %v5862_v36, %v440_v37  ;;  %v484_v53 = vadd.f32 %v5864_v46, %v441_v47  ;;  %v494_v49 = vmax.f32 %v451_v35, %v5858_v30  ;;  %v495_v62 = vmax.f32 %v452_v51, %v5862_v36  ;;  %v4552_v51 = vld [vmem:[%s5632_s23 + $0x50] sm:$0xff]  ;;  %v4558_v20 = vld [vmem:[%s5632_s23 + $0x80] sm:$0xff] }
  0x3b   : > { %8903 = vst [vmem:[#allocation15_spill] sm:$0xff] %v5856_v33  ;;  %v485_v63 = vadd.f32 %v5873_v21, %v442_v48  ;;  %v496_v60 = vmax.f32 %v453_v31, %v5864_v46  ;;  %v497_v61 = vmax.f32 %v454_v50, %v5873_v21  ;;  %v5886_v34 = vunpack.c.l.bf16 %v4586_v32 }
  0x3c   : > { %8904 = vst [vmem:[#allocation16_spill] sm:$0xff] %v5858_v30  ;;  %v5888_v33 = vunpack.c.h.bf16 %v4586_v32  ;;  %v5890_v37 = vunpack.c.l.bf16 %v4587_v58  ;;  %v5892_v47 = vunpack.c.h.bf16 %v4587_v58  ;;  %v5894_v35 = vunpack.c.l.bf16 %v230_v0 }
  0x3d   : > { %8905 = vst [vmem:[#allocation17_spill] sm:$0xff] %v5862_v36  ;;  %v525_v48 = vadd.f32 %v5886_v34, %v482_v52  ;;  %v537_v31 = vmax.f32 %v494_v49, %v5886_v34  ;;  %v5901_v50 = vunpack.c.l.bf16 %v231_v22  ;;  %v5912_v49 = vunpack.c.h.bf16 %v231_v22 }
  0x3e   : > { %8906 = vst [vmem:[#allocation18_spill] sm:$0xff] %v5864_v46  ;;  %v5899_v46 = vunpack.c.h.bf16 %v230_v0  ;;  %v526_v32 = vadd.f32 %v5888_v33, %v483_v59  ;;  %v527_v58 = vadd.f32 %v5890_v37, %v484_v53  ;;  %v528_v36 = vadd.f32 %v5892_v47, %v485_v63 }
  0x3f   : > { %8907 = vst [vmem:[#allocation19_spill] sm:$0xff] %v5873_v21  ;;  %v4553_v21 = vld [vmem:[%s5632_s23 + $0x58] sm:$0xff]  ;;  %v538_v30 = vmax.f32 %v495_v62, %v5888_v33  ;;  %v539_v52 = vmax.f32 %v496_v60, %v5890_v37  ;;  %v540_v0 = vmax.f32 %v497_v61, %v5892_v47  ;;  %v5917_v19 = vunpack.c.h.bf16 %v4552_v51  ;;  %v4559_v62 = vld [vmem:[%s5632_s23 + $0x88] sm:$0xff] }
  0x40   : > { %8908 = vst [vmem:[#allocation20_spill] sm:$0xff] %v5886_v34  ;;  %v5914_v34 = vunpack.c.l.bf16 %v4552_v51  ;;  %v562_v59 = vadd.f32 %v526_v32, %v525_v48  ;;  %v5919_v53 = vunpack.c.l.bf16 %v4553_v21  ;;  %v5921_v63 = vunpack.c.h.bf16 %v4553_v21 }
  0x41   : > { %8909 = vst [vmem:[#allocation21_spill] sm:$0xff] %v5888_v33  ;;  %v5929_v61 = vunpack.c.l.bf16 %v4558_v20  ;;  %v272_v21 = vadd.f32 %v5917_v19, %v5899_v46  ;;  %v284_v32 = vmax.f32 %v5899_v46, %v5917_v19 }
  0x42   : > { %8910 = vst [vmem:[#allocation22_spill] sm:$0xff] %v5890_v37  ;;  %v271_v60 = vadd.f32 %v5914_v34, %v5894_v35  ;;  %v283_v22 = vmax.f32 %v5894_v35, %v5914_v34  ;;  %v563_v51 = vadd.f32 %v562_v59, %v527_v58  ;;  %v273_v48 = vadd.f32 %v5919_v53, %v5901_v50  ;;  %v4564_v58 = vld [vmem:[%s5632_s23 + $0xb0] sm:$0xff] }
  0x43   : > { %8911 = vst [vmem:[#allocation23_spill] sm:$0xff] %v5892_v47  ;;  %v5949_v47 = vunpack.c.h.bf16 %v4559_v62 }
  0x44   : > { %8912 = vst [vmem:[#allocation24_spill] sm:$0xff] %v5894_v35  ;;  %v564_v59 = vadd.f32 %v563_v51, %v528_v36  ;;  %v314_v37 = vadd.f32 %v5929_v61, %v271_v60  ;;  %v4570_v35 = vld [vmem:[%s5632_s23 + $0xe0] sm:$0xff]  ;;  %v5961_v51 = vunpack.c.l.bf16 %v4564_v58  ;;  %v5963_v60 = vunpack.c.h.bf16 %v4564_v58 }
  0x45   : > { %8913 = vst [vmem:[#allocation25_spill] sm:$0xff] %v5901_v50 }
  0x46   : > { %549 = vst [vmem:[%s5764_s27 + $0x60] sm:$0xff] %v537_v31  ;;  %v274_v31 = vadd.f32 %v5921_v63, %v5912_v49  ;;  %565 = vadd.xlane.f32.xlu0 %v564_v59  ;;  %v4576_v59 = vld [vmem:[%s5632_s23 + $0x110] sm:$0xff] }
  0x47   : > { %8914 = vst [vmem:[#allocation26_spill] sm:$0xff] %v5912_v49 }
  0x48   : > { %8915 = vst [vmem:[#allocation27_spill] sm:$0xff] %v5914_v34  ;;  %v4565_v34 = vld [vmem:[%s5632_s23 + $0xb8] sm:$0xff]  ;;  %v317_v36 = vadd.f32 %v5949_v47, %v274_v31 }
  0x49   : > { %550 = vst [vmem:[%s5764_s27 + $0x68] sm:$0xff] %v538_v30  ;;  %v5931_v30 = vunpack.c.h.bf16 %v4558_v20  ;;  %v286_v20 = vmax.f32 %v5912_v49, %v5921_v63  ;;  %v5967_v49 = vunpack.c.h.bf16 %v4565_v34 }
  0x4a   : > { %8916 = vst [vmem:[#allocation28_spill] sm:$0xff] %v5917_v19 }
  0x4b   : > { %8917 = vst [vmem:[#allocation29_spill] sm:$0xff] %v5919_v53  ;;  %v315_v33 = vadd.f32 %v5931_v30, %v272_v21  ;;  %v5965_v21 = vunpack.c.l.bf16 %v4565_v34  ;;  %v360_v34 = vadd.f32 %v5967_v49, %v317_v36  ;;  %v4582_v36 = vld [vmem:[%s5632_s23 + $0x140] sm:$0xff] }
  0x4c   : > { %8918 = vst [vmem:[#allocation30_spill] sm:$0xff] %v5921_v63 }
  0x4d   : > { %551 = vst [vmem:[%s5764_s27 + $0x70] sm:$0xff] %v539_v52  ;;  %v285_v52 = vmax.f32 %v5901_v50, %v5919_v53  ;;  %v326_v53 = vmax.f32 %v283_v22, %v5929_v61  ;;  %v327_v50 = vmax.f32 %v284_v32, %v5931_v30  ;;  %v5970_v22 = vunpack.c.l.bf16 %v4570_v35 }
  0x4e   : > { %8919 = vst [vmem:[#allocation31_spill] sm:$0xff] %v5929_v61  ;;  %v5972_v32 = vunpack.c.h.bf16 %v4570_v35  ;;  %v358_v31 = vadd.f32 %v5963_v60, %v315_v33 }
  0x4f   : > { %8920 = vst [vmem:[#allocation32_spill] sm:$0xff] %v5931_v30  ;;  %v370_v58 = vmax.f32 %v327_v50, %v5963_v60 }
  0x50   : > { %552 = vst [vmem:[%s5764_s27 + $0x78] sm:$0xff] %v540_v0  ;;  %v5946_v0 = vunpack.c.l.bf16 %v4559_v62  ;;  %v329_v62 = vmax.f32 %v286_v20, %v5949_v47  ;;  %v369_v20 = vmax.f32 %v326_v53, %v5961_v51  ;;  %v4577_v53 = vld [vmem:[%s5632_s23 + $0x118] sm:$0xff] }
  0x51   : > { %8922 = vst [vmem:[#allocation34_spill] sm:$0xff] %v5949_v47 }
  0x52   : > { %8921 = vst [vmem:[#allocation33_spill] sm:$0xff] %v5946_v0  ;;  %v316_v19 = vadd.f32 %v5946_v0, %v273_v48  ;;  %v328_v63 = vmax.f32 %v285_v52, %v5946_v0  ;;  %v4571_v48 = vld [vmem:[%s5632_s23 + $0xe8] sm:$0xff]  ;;  %v357_v52 = vadd.f32 %v5961_v51, %v314_v37  ;;  %v372_v30 = vmax.f32 %v329_v62, %v5967_v49 }
  0x53   : > { %8923 = vst [vmem:[#allocation35_spill] sm:$0xff] %v5963_v60  ;;  %v5983_v35 = vunpack.c.l.bf16 %v4571_v48  ;;  %v5985_v61 = vunpack.c.h.bf16 %v4571_v48  ;;  %v401_v37 = vadd.f32 %v5972_v32, %v358_v31  ;;  %v412_v50 = vmax.f32 %v369_v20, %v5970_v22 }
  0x54   : > { %8924 = vst [vmem:[#allocation36_spill] sm:$0xff] %v5965_v21  ;;  %v359_v47 = vadd.f32 %v5965_v21, %v316_v19  ;;  %v371_v0 = vmax.f32 %v328_v63, %v5965_v21  ;;  %v400_v33 = vadd.f32 %v5970_v22, %v357_v52  ;;  %v413_v19 = vmax.f32 %v370_v58, %v5972_v32 }
  0x55   : > { %8925 = vst [vmem:[#allocation37_spill] sm:$0xff] %v5967_v49  ;;  %v5992_v60 = vunpack.c.l.bf16 %v4576_v59  ;;  %v5994_v63 = vunpack.c.h.bf16 %v4576_v59  ;;  %v403_v48 = vadd.f32 %v5985_v61, %v360_v34  ;;  %v415_v49 = vmax.f32 %v372_v30, %v5985_v61  ;;  %v4583_v59 = vld [vmem:[%s5632_s23 + $0x148] sm:$0xff] }
  0x56   : > { %8926 = vst [vmem:[#allocation38_spill] sm:$0xff] %v5970_v22  ;;  %v402_v62 = vadd.f32 %v5983_v35, %v359_v47  ;;  %v414_v52 = vmax.f32 %v371_v0, %v5983_v35  ;;  %v6001_v31 = vunpack.c.l.bf16 %v4577_v53  ;;  %v6003_v21 = vunpack.c.h.bf16 %v4577_v53  ;;  %v4588_v0 = vld [vmem:[%s5632_s23 + $0x170] sm:$0xff] }
  0x57   : > { %8927 = vst [vmem:[#allocation39_spill] sm:$0xff] %v5972_v32  ;;  %v443_v20 = vadd.f32 %v5992_v60, %v400_v33  ;;  %v444_v58 = vadd.f32 %v5994_v63, %v401_v37  ;;  %v455_v32 = vmax.f32 %v412_v50, %v5992_v60  ;;  %v456_v47 = vmax.f32 %v413_v19, %v5994_v63 }
  0x58   : > { %8928 = vst [vmem:[#allocation40_spill] sm:$0xff] %v5983_v35  ;;  %v6010_v22 = vunpack.c.l.bf16 %v4582_v36  ;;  %v6012_v34 = vunpack.c.h.bf16 %v4582_v36  ;;  %v445_v30 = vadd.f32 %v6001_v31, %v402_v62  ;;  %v446_v53 = vadd.f32 %v6003_v21, %v403_v48 }
  0x59   : > { %8929 = vst [vmem:[#allocation41_spill] sm:$0xff] %v5985_v61  ;;  %v457_v61 = vmax.f32 %v414_v52, %v6001_v31  ;;  %v458_v33 = vmax.f32 %v415_v49, %v6003_v21  ;;  %v6019_v35 = vunpack.c.l.bf16 %v4583_v59  ;;  %v6021_v37 = vunpack.c.h.bf16 %v4583_v59 }
  0x5a   : > { %8930 = vst [vmem:[#allocation42_spill] sm:$0xff] %v5992_v60  ;;  %v486_v50 = vadd.f32 %v6010_v22, %v443_v20  ;;  %v487_v19 = vadd.f32 %v6012_v34, %v444_v58  ;;  %v498_v36 = vmax.f32 %v455_v32, %v6010_v22  ;;  %v499_v60 = vmax.f32 %v456_v47, %v6012_v34 }
  0x5b   : > { %8931 = vst [vmem:[#allocation43_spill] sm:$0xff] %v5994_v63  ;;  %v4589_v63 = vld [vmem:[%s5632_s23 + $0x178] sm:$0xff]  ;;  %v6028_v62 = vunpack.c.l.bf16 %v4588_v0  ;;  %v6030_v48 = vunpack.c.h.bf16 %v4588_v0  ;;  %v488_v49 = vadd.f32 %v6019_v35, %v445_v30  ;;  %v489_v52 = vadd.f32 %v6021_v37, %v446_v53 }
  0x5c   : > { %8932 = vst [vmem:[#allocation44_spill] sm:$0xff] %v6010_v22  ;;  %v500_v20 = vmax.f32 %v457_v61, %v6019_v35  ;;  %v501_v58 = vmax.f32 %v458_v33, %v6021_v37  ;;  %v6036_v59 = vunpack.c.l.bf16 %v4589_v63  ;;  %v6038_v32 = vunpack.c.h.bf16 %v4589_v63 }
  0x5d   : > { %8933 = vst [vmem:[#allocation45_spill] sm:$0xff] %v6012_v34  ;;  %v529_v47 = vadd.f32 %v6028_v62, %v486_v50  ;;  %v530_v0 = vadd.f32 %v6030_v48, %v487_v19  ;;  %v541_v34 = vmax.f32 %v498_v36, %v6028_v62  ;;  %v542_v30 = vmax.f32 %v499_v60, %v6030_v48 }
  0x5e   : > { %8934 = vst [vmem:[#allocation46_spill] sm:$0xff] %v6021_v37  ;;  %v531_v53 = vadd.f32 %v6036_v59, %v488_v49  ;;  %v543_v22 = vmax.f32 %v500_v20, %v6036_v59  ;;  %v544_v61 = vmax.f32 %v501_v58, %v6038_v32  ;;  %v532_v33 = vadd.f32 %v6038_v32, %v489_v52 }
  0x5f   : > { %553 = vst [vmem:[%s5764_s27 + $0xa0] sm:$0xff] %v541_v34  ;;  %v567_v37 = vadd.f32 %v530_v0, %v529_v47 }
  0x60   : > { %554 = vst [vmem:[%s5764_s27 + $0xa8] sm:$0xff] %v542_v30 }
  0x61   : > { %555 = vst [vmem:[%s5764_s27 + $0xb0] sm:$0xff] %v543_v22  ;;  %v568_v63 = vadd.f32 %v567_v37, %v531_v53 }
  0x62   : > { %556 = vst [vmem:[%s5764_s27 + $0xb8] sm:$0xff] %v544_v61 }
  0x63   : > { %v569_v50 = vadd.f32 %v568_v63, %v532_v33 }
  0x65   : > { %570 = vadd.xlane.f32.xlu1 %v569_v50 }
  0xa2   : > { %v561_v19 = vpop.xlane.xlu0 %560 }
  0xa3   : > { %v6052_v36 = vmul.f32 0.00024414063, %v561_v19 }
  0xa5   : > { %v653_v60 = vsub.f32 %v5648_v10, %v6052_v36  ;;  %v654_v49 = vsub.f32 %v5650_v11, %v6052_v36  ;;  %v655_v52 = vsub.f32 %v5652_v12, %v6052_v36  ;;  %v656_v34 = vsub.f32 %v5654_v13, %v6052_v36 }
  0xa6   : > { %v593_v22 = vsub.f32 %v5637_v3, %v6052_v36  ;;  %v594_v37 = vsub.f32 %v5639_v4, %v6052_v36  ;;  %v595_v20 = vsub.f32 %v5641_v5, %v6052_v36  ;;  %v596_v11 = vsub.f32 %v5643_v6, %v6052_v36  ;;  %v4659_v5 = vld [vmem:[%s5632_s23 + $0xe0] sm:$0xff] }
  0xa7   : > { %v665_v58 = vmul.f32 %v653_v60, %v653_v60  ;;  %v666_v10 = vmul.f32 %v654_v49, %v654_v49  ;;  %v667_v47 = vmul.f32 %v655_v52, %v655_v52  ;;  %v668_v30 = vmul.f32 %v656_v34, %v656_v34 }
  0xa8   : > { %v605_v0 = vmul.f32 %v593_v22, %v593_v22  ;;  %v606_v12 = vmul.f32 %v594_v37, %v594_v37  ;;  %v713_v13 = vsub.f32 %v5656_v14, %v6052_v36  ;;  %v714_v61 = vsub.f32 %v5658_v15, %v6052_v36 }
  0xa9   : > { %v677_v53 = vadd.f32 %v666_v10, %v665_v58  ;;  %v607_v33 = vmul.f32 %v595_v20, %v595_v20  ;;  %v715_v50 = vsub.f32 %v5660_v16, %v6052_v36  ;;  %v773_v19 = vsub.f32 %v5692_v38, %v6052_v36 }
  0xaa   : > { %v617_v63 = vadd.f32 %v606_v12, %v605_v0  ;;  %v725_v49 = vmul.f32 %v713_v13, %v713_v13  ;;  %v726_v52 = vmul.f32 %v714_v61, %v714_v61  ;;  %v774_v34 = vsub.f32 %v5694_v39, %v6052_v36 }
  0xab   : > { %v678_v60 = vadd.f32 %v677_v53, %v667_v47  ;;  %v608_v22 = vmul.f32 %v596_v11, %v596_v11  ;;  %v716_v15 = vsub.f32 %v5662_v17, %v6052_v36  ;;  %v727_v20 = vmul.f32 %v715_v50, %v715_v50 }
  0xac   : > { %v618_v37 = vadd.f32 %v617_v63, %v607_v33  ;;  %v737_v58 = vadd.f32 %v726_v52, %v725_v49  ;;  %v785_v16 = vmul.f32 %v773_v19, %v773_v19  ;;  %v786_v0 = vmul.f32 %v774_v34, %v774_v34 }
  0xad   : > { %v679_v14 = vadd.f32 %v678_v60, %v668_v30  ;;  %v775_v47 = vsub.f32 %v5696_v40, %v6052_v36  ;;  %v728_v12 = vmul.f32 %v716_v15, %v716_v15  ;;  %v833_v39 = vsub.f32 %v5700_v42, %v6052_v36 }
  0xae   : > { %v619_v10 = vadd.f32 %v618_v37, %v608_v22  ;;  %v738_v38 = vadd.f32 %v737_v58, %v727_v20  ;;  %v797_v53 = vadd.f32 %v786_v0, %v785_v16  ;;  %v834_v11 = vsub.f32 %v5702_v43, %v6052_v36  ;;  %v4620_v22 = vld [vmem:[%s5632_s23 + $0x120] sm:$0xff] }
  0xaf   : > { %680 = vadd.xlane.f32.xlu0 %v679_v14  ;;  %v776_v17 = vsub.f32 %v5698_v41, %v6052_v36  ;;  %v787_v13 = vmul.f32 %v775_v47, %v775_v47  ;;  %v835_v61 = vsub.f32 %v5704_v44, %v6052_v36  ;;  %v836_v33 = vsub.f32 %v5706_v45, %v6052_v36 }
  0xb0   : > { %620 = vadd.xlane.f32.xlu1 %v619_v10  ;;  %v739_v30 = vadd.f32 %v738_v38, %v728_v12  ;;  %v893_v42 = vsub.f32 %v5728_v2, %v6052_v36  ;;  %v845_v63 = vmul.f32 %v833_v39, %v833_v39  ;;  %v846_v50 = vmul.f32 %v834_v11, %v834_v11 }
  0xb1   : > { %v798_v40 = vadd.f32 %v797_v53, %v787_v13  ;;  %v788_v19 = vmul.f32 %v776_v17, %v776_v17  ;;  %v847_v41 = vmul.f32 %v835_v61, %v835_v61  ;;  %v848_v49 = vmul.f32 %v836_v33, %v836_v33 }
  0xb2   : > { %v894_v44 = vsub.f32 %v5730_v7, %v6052_v36  ;;  %v895_v45 = vsub.f32 %v5732_v8, %v6052_v36  ;;  %v6104_v34 = vsub.f32 %v5734_v9, %v6052_v36  ;;  %v905_v2 = vmul.f32 %v893_v42, %v893_v42 }
  0xb3   : > { %v799_v52 = vadd.f32 %v798_v40, %v788_v19  ;;  %v857_v7 = vadd.f32 %v846_v50, %v845_v63 }
  0xb4   : > { %v906_v16 = vmul.f32 %v894_v44, %v894_v44 }
  0xb5   : > { %v858_v13 = vadd.f32 %v857_v7, %v847_v41  ;;  %v4626_v41 = vld [vmem:[%s5632_s23 + $0x150] sm:$0xff]  ;;  %v8935_v7 = vld [vmem:[#allocation5_spill] sm:$0xff] }
  0xb7   : > { %740 = vadd.xlane.f32.xlu0 %v739_v30 }
  0xb9   : > { %v566_v43 = vpop.xlane.xlu0 %565 }
  0xba   : > { %v6096_v60 = vmul.f32 0.00024414063, %v566_v43 }
  0xbc   : > { %v657_v37 = vsub.f32 %v5766_v23, %v6096_v60  ;;  %v658_v14 = vsub.f32 %v5768_v24, %v6096_v60  ;;  %v659_v58 = vsub.f32 %v5770_v25, %v6096_v60  ;;  %v660_v10 = vsub.f32 %v5773_v26, %v6096_v60 }
  0xbd   : > { %v597_v8 = vsub.f32 %v5749_v54, %v6096_v60  ;;  %v598_v9 = vsub.f32 %v5751_v55, %v6096_v60  ;;  %v599_v15 = vsub.f32 %v5753_v56, %v6096_v60  ;;  %v941_v24 = vunpack.c.l.bf16 %v4620_v22 }
  0xbe   : > { %v669_v23 = vmul.f32 %v657_v37, %v657_v37  ;;  %v670_v20 = vmul.f32 %v658_v14, %v658_v14  ;;  %v600_v25 = vsub.f32 %v5755_v57, %v6096_v60  ;;  %v942_v26 = vunpack.c.h.bf16 %v4620_v22 }
  0xbf   : > { %v609_v0 = vmul.f32 %v597_v8, %v597_v8  ;;  %v610_v38 = vmul.f32 %v598_v9, %v598_v9  ;;  %800 = vadd.xlane.f32.xlu0 %v799_v52  ;;  %v671_v47 = vmul.f32 %v659_v58, %v659_v58  ;;  %v717_v53 = vsub.f32 %v5775_v27, %v6096_v60 }
  0xc0   : > { %v682_v12 = vadd.f32 %v670_v20, %v669_v23  ;;  %v718_v39 = vsub.f32 %v5777_v28, %v6096_v60  ;;  %v672_v11 = vmul.f32 %v660_v10, %v660_v10  ;;  %v611_v30 = vmul.f32 %v599_v15, %v599_v15  ;;  %v4621_v28 = vld [vmem:[%s5632_s23 + $0x128] sm:$0xff]  ;;  %v4627_v20 = vld [vmem:[%s5632_s23 + $0x158] sm:$0xff] }
  0xc1   : > { %v622_v17 = vadd.f32 %v610_v38, %v609_v0  ;;  %v719_v33 = vsub.f32 %v5779_v29, %v6096_v60  ;;  %v729_v40 = vmul.f32 %v717_v53, %v717_v53  ;;  %v612_v63 = vmul.f32 %v600_v25, %v600_v25 }
  0xc2   : > { %v683_v61 = vadd.f32 %v682_v12, %v671_v47  ;;  %v730_v42 = vmul.f32 %v718_v39, %v718_v39  ;;  %v777_v43 = vsub.f32 %v5814_v1, %v6096_v60  ;;  %v778_v27 = vsub.f32 %v5816_v18, %v6096_v60 }
  0xc3   : > { %v623_v50 = vadd.f32 %v622_v17, %v611_v30  ;;  %v907_v52 = vmul.f32 %v895_v45, %v895_v45  ;;  %v917_v22 = vadd.f32 %v906_v16, %v905_v2  ;;  %v859_v14 = vadd.f32 %v858_v13, %v848_v49  ;;  %v8936_v49 = vld [vmem:[#allocation6_spill] sm:$0xff]  ;;  %v8937_v13 = vld [vmem:[#allocation7_spill] sm:$0xff] }
  0xc4   : > { %v684_v19 = vadd.f32 %v683_v61, %v672_v11  ;;  %v742_v44 = vadd.f32 %v730_v42, %v729_v40  ;;  %v953_v29 = vsub.f32 %v941_v24, %v6052_v36  ;;  %v954_v58 = vsub.f32 %v942_v26, %v6052_v36  ;;  %v8939_v42 = vld [vmem:[#allocation9_spill] sm:$0xff] }
  0xc5   : > { %v624_v37 = vadd.f32 %v623_v50, %v612_v63  ;;  %v720_v1 = vsub.f32 %v8935_v7, %v6096_v60  ;;  %v731_v10 = vmul.f32 %v719_v33, %v719_v33  ;;  %v943_v8 = vunpack.c.l.bf16 %v4621_v28  ;;  %v8938_v33 = vld [vmem:[#allocation8_spill] sm:$0xff] }
  0xc6   : > { %685 = vadd.xlane.f32.xlu1 %v684_v19  ;;  %v944_v18 = vunpack.c.h.bf16 %v4621_v28  ;;  %v789_v9 = vmul.f32 %v777_v43, %v777_v43  ;;  %v790_v45 = vmul.f32 %v778_v27, %v778_v27  ;;  %v1001_v2 = vunpack.c.l.bf16 %v4626_v41 }
  0xc7   : > { %625 = vadd.xlane.f32.xlu2 %v624_v37  ;;  %860 = vadd.xlane.f32.xlu0 %v859_v14  ;;  %v1002_v15 = vunpack.c.h.bf16 %v4626_v41  ;;  %v743_v23 = vadd.f32 %v742_v44, %v731_v10  ;;  %v779_v16 = vsub.f32 %v8936_v49, %v6096_v60  ;;  %v918_v24 = vadd.f32 %v917_v22, %v907_v52  ;;  %v8944_v49 = vld [vmem:[#allocation25_spill] sm:$0xff] }
  0xc8   : > { %v965_v25 = vmul.f32 %v953_v29, %v953_v29  ;;  %v966_v0 = vmul.f32 %v954_v58, %v954_v58  ;;  %v732_v38 = vmul.f32 %v720_v1, %v720_v1  ;;  %v908_v26 = vmul.f32 %v6104_v34, %v6104_v34  ;;  %v8940_v1 = vld [vmem:[#allocation10_spill] sm:$0xff] }
  0xc9   : > { %v955_v47 = vsub.f32 %v943_v8, %v6052_v36  ;;  %v956_v12 = vsub.f32 %v944_v18, %v6052_v36  ;;  %v802_v53 = vadd.f32 %v790_v45, %v789_v9  ;;  %v1003_v39 = vunpack.c.l.bf16 %v4627_v20  ;;  %v8941_v8 = vld [vmem:[#allocation11_spill] sm:$0xff]  ;;  %v8942_v45 = vld [vmem:[#allocation12_spill] sm:$0xff] }
  0xca   : > { %v1013_v11 = vsub.f32 %v1001_v2, %v6052_v36  ;;  %v1014_v30 = vsub.f32 %v1002_v15, %v6052_v36  ;;  %v744_v17 = vadd.f32 %v743_v23, %v732_v38  ;;  %v780_v61 = vsub.f32 %v8937_v13, %v6096_v60  ;;  %v8943_v15 = vld [vmem:[#allocation24_spill] sm:$0xff]  ;;  %v8946_v38 = vld [vmem:[#allocation27_spill] sm:$0xff] }
  0xcb   : > { %v837_v40 = vsub.f32 %v8938_v33, %v6096_v60  ;;  %v838_v34 = vsub.f32 %v8939_v42, %v6096_v60  ;;  %v791_v63 = vmul.f32 %v779_v16, %v779_v16  ;;  %v919_v50 = vadd.f32 %v918_v24, %v908_v26  ;;  %v8945_v24 = vld [vmem:[#allocation26_spill] sm:$0xff] }
  0xcc   : > { %v977_v43 = vadd.f32 %v966_v0, %v965_v25  ;;  %v967_v27 = vmul.f32 %v955_v47, %v955_v47  ;;  %v968_v28 = vmul.f32 %v956_v12, %v956_v12  ;;  %v1004_v19 = vunpack.c.h.bf16 %v4627_v20  ;;  %v8947_v47 = vld [vmem:[#allocation28_spill] sm:$0xff] }
  0xcd   : > { %v803_v52 = vadd.f32 %v802_v53, %v791_v63  ;;  %v1015_v22 = vsub.f32 %v1003_v39, %v6052_v36  ;;  %v1025_v41 = vmul.f32 %v1013_v11, %v1013_v11  ;;  %v1026_v37 = vmul.f32 %v1014_v30, %v1014_v30  ;;  %v8948_v53 = vld [vmem:[#allocation13_spill] sm:$0xff] }
  0xce   : > { %745 = vadd.xlane.f32.xlu1 %v744_v17  ;;  %v792_v29 = vmul.f32 %v780_v61, %v780_v61  ;;  %v849_v58 = vmul.f32 %v837_v40, %v837_v40  ;;  %v850_v7 = vmul.f32 %v838_v34, %v838_v34  ;;  %v839_v10 = vsub.f32 %v8940_v1, %v6096_v60  ;;  %v8949_v61 = vld [vmem:[#allocation29_spill] sm:$0xff] }
  0xcf   : > { %920 = vadd.xlane.f32.xlu0 %v919_v50  ;;  %v840_v18 = vsub.f32 %v8941_v8, %v6096_v60  ;;  %v978_v9 = vadd.f32 %v977_v43, %v967_v27  ;;  %v897_v2 = vsub.f32 %v8942_v45, %v6096_v60  ;;  %v898_v39 = vsub.f32 %v8948_v53, %v6096_v60 }
  0xd0   : > { %v804_v0 = vadd.f32 %v803_v52, %v792_v29  ;;  %v862_v13 = vadd.f32 %v850_v7, %v849_v58  ;;  %v851_v40 = vmul.f32 %v839_v10, %v839_v10  ;;  %v1037_v34 = vadd.f32 %v1026_v37, %v1025_v41  ;;  %v8950_v7 = vld [vmem:[#allocation30_spill] sm:$0xff] }
  0xd1   : > { %v979_v42 = vadd.f32 %v978_v9, %v968_v28  ;;  %v1016_v52 = vsub.f32 %v1004_v19, %v6052_v36  ;;  %v1027_v29 = vmul.f32 %v1015_v22, %v1015_v22  ;;  %v909_v45 = vmul.f32 %v897_v2, %v897_v2  ;;  %v8951_v28 = vld [vmem:[#allocation14_spill] sm:$0xff]  ;;  %v8953_v19 = vld [vmem:[#allocation32_spill] sm:$0xff] }
  0xd2   : > { %v863_v8 = vadd.f32 %v862_v13, %v851_v40  ;;  %v910_v58 = vmul.f32 %v898_v39, %v898_v39  ;;  %v899_v41 = vsub.f32 %v8951_v28, %v6096_v60  ;;  %v8956_v39 = vld [vmem:[#allocation15_spill] sm:$0xff] }
  0xd3   : > { %v1038_v37 = vadd.f32 %v1037_v34, %v1027_v29  ;;  %v8959_v29 = vld [vmem:[#allocation18_spill] sm:$0xff] }
  0xd6   : > { %805 = vadd.xlane.f32.xlu1 %v804_v0  ;;  %v922_v0 = vadd.f32 %v910_v58, %v909_v45  ;;  %v8960_v45 = vld [vmem:[#allocation34_spill] sm:$0xff] }
  0xd7   : > { %980 = vadd.xlane.f32.xlu0 %v979_v42 }
  0xd8   : > { %v571_v44 = vpop.xlane.xlu1 %570 }
  0xd9   : > { %v6155_v14 = vmul.f32 0.00024414063, %v571_v44  ;;  %v852_v44 = vmul.f32 %v840_v18, %v840_v18  ;;  %v8952_v18 = vld [vmem:[#allocation31_spill] sm:$0xff] }
  0xdb   : > { %v601_v23 = vsub.f32 %v8943_v15, %v6155_v14  ;;  %v602_v20 = vsub.f32 %v5899_v46, %v6155_v14  ;;  %v603_v16 = vsub.f32 %v8944_v49, %v6155_v14  ;;  %v604_v25 = vsub.f32 %v8945_v24, %v6155_v14 }
  0xdc   : > { %v661_v26 = vsub.f32 %v8946_v38, %v6155_v14  ;;  %v662_v12 = vsub.f32 %v8947_v47, %v6155_v14  ;;  %v663_v33 = vsub.f32 %v8949_v61, %v6155_v14  ;;  %v722_v22 = vsub.f32 %v8953_v19, %v6155_v14  ;;  %v8954_v38 = vld [vmem:[#allocation16_spill] sm:$0xff]  ;;  %v8955_v47 = vld [vmem:[#allocation17_spill] sm:$0xff] }
  0xdd   : > { %v613_v11 = vmul.f32 %v601_v23, %v601_v23  ;;  %v614_v30 = vmul.f32 %v602_v20, %v602_v20  ;;  %v615_v17 = vmul.f32 %v603_v16, %v603_v16  ;;  %v616_v63 = vmul.f32 %v604_v25, %v604_v25  ;;  %v8957_v61 = vld [vmem:[#allocation33_spill] sm:$0xff] }
  0xde   : > { %v673_v43 = vmul.f32 %v661_v26, %v661_v26  ;;  %v674_v27 = vmul.f32 %v662_v12, %v662_v12  ;;  %v664_v23 = vsub.f32 %v8950_v7, %v6155_v14  ;;  %v675_v10 = vmul.f32 %v663_v33, %v663_v33 }
  0xdf   : > { %v627_v50 = vadd.f32 %v614_v30, %v613_v11  ;;  %v721_v16 = vsub.f32 %v8952_v18, %v6155_v14  ;;  %v1028_v25 = vmul.f32 %v1016_v52, %v1016_v52  ;;  %v864_v2 = vadd.f32 %v863_v8, %v852_v44  ;;  %v8958_v44 = vld [vmem:[#allocation35_spill] sm:$0xff] }
  0xe0   : > { %v687_v20 = vadd.f32 %v674_v27, %v673_v43  ;;  %v957_v26 = vsub.f32 %v8954_v38, %v6096_v60  ;;  %v958_v12 = vsub.f32 %v8955_v47, %v6096_v60  ;;  %v676_v53 = vmul.f32 %v664_v23, %v664_v23 }
  0xe1   : > { %v628_v1 = vadd.f32 %v627_v50, %v615_v17  ;;  %v900_v11 = vsub.f32 %v8956_v39, %v6096_v60  ;;  %v911_v30 = vmul.f32 %v899_v41, %v899_v41  ;;  %v1039_v17 = vadd.f32 %v1038_v37, %v1028_v25  ;;  %865 = vadd.xlane.f32.xlu1 %v864_v2  ;;  %v8961_v41 = vld [vmem:[#allocation20_spill] sm:$0xff] }
  0xe2   : > { %v688_v13 = vadd.f32 %v687_v20, %v675_v10  ;;  %v723_v33 = vsub.f32 %v8957_v61, %v6155_v14  ;;  %v733_v40 = vmul.f32 %v721_v16, %v721_v16  ;;  %v734_v42 = vmul.f32 %v722_v22, %v722_v22  ;;  %v8963_v20 = vld [vmem:[#allocation36_spill] sm:$0xff]  ;;  %v8964_v22 = vld [vmem:[#allocation19_spill] sm:$0xff]  ;;  %v8966_v61 = vld [vmem:[#allocation38_spill] sm:$0xff] }
  0xe3   : > { %v629_v9 = vadd.f32 %v628_v1, %v616_v63  ;;  %1040 = vadd.xlane.f32.xlu0 %v1039_v17  ;;  %v923_v34 = vadd.f32 %v922_v0, %v911_v30  ;;  %v969_v63 = vmul.f32 %v957_v26, %v957_v26  ;;  %v970_v50 = vmul.f32 %v958_v12, %v958_v12 }
  0xe4   : > { %v912_v43 = vmul.f32 %v900_v11, %v900_v11  ;;  %v781_v27 = vsub.f32 %v5961_v51, %v6155_v14  ;;  %v782_v52 = vsub.f32 %v8958_v44, %v6155_v14  ;;  %v959_v1 = vsub.f32 %v8959_v29, %v6096_v60  ;;  %v8962_v51 = vld [vmem:[#allocation21_spill] sm:$0xff] }
  0xe5   : > { %630 = vadd.xlane.f32.xlu2 %v629_v9  ;;  %v689_v8 = vadd.f32 %v688_v13, %v676_v53  ;;  %v724_v58 = vsub.f32 %v8960_v45, %v6155_v14  ;;  %v735_v7 = vmul.f32 %v723_v33, %v723_v33  ;;  %v747_v23 = vadd.f32 %v734_v42, %v733_v40  ;;  %v8965_v53 = vld [vmem:[#allocation37_spill] sm:$0xff]  ;;  %v8967_v40 = vld [vmem:[#allocation39_spill] sm:$0xff] }
  0xe6   : > { %v924_v10 = vadd.f32 %v923_v34, %v912_v43  ;;  %v982_v28 = vadd.f32 %v970_v50, %v969_v63  ;;  %v1017_v37 = vsub.f32 %v8961_v41, %v6096_v60  ;;  %v1018_v9 = vsub.f32 %v8962_v51, %v6096_v60  ;;  %v8968_v34 = vld [vmem:[#allocation22_spill] sm:$0xff]  ;;  %v8970_v45 = vld [vmem:[#allocation23_spill] sm:$0xff] }
  0xe7   : > { %v783_v18 = vsub.f32 %v8963_v20, %v6155_v14  ;;  %v793_v16 = vmul.f32 %v781_v27, %v781_v27  ;;  %v794_v19 = vmul.f32 %v782_v52, %v782_v52  ;;  %v960_v25 = vsub.f32 %v8964_v22, %v6096_v60  ;;  %v8969_v52 = vld [vmem:[#allocation40_spill] sm:$0xff]  ;;  %v8972_v20 = vld [vmem:[#allocation42_spill] sm:$0xff] }
  0xe8   : > { %v736_v2 = vmul.f32 %v724_v58, %v724_v58  ;;  %v748_v0 = vadd.f32 %v747_v23, %v735_v7  ;;  %v971_v38 = vmul.f32 %v959_v1, %v959_v1  ;;  %v1029_v47 = vmul.f32 %v1017_v37, %v1017_v37 }
  0xe9   : > { %925 = vadd.xlane.f32.xlu1 %v924_v10  ;;  %v1030_v12 = vmul.f32 %v1018_v9, %v1018_v9  ;;  %v784_v39 = vsub.f32 %v8965_v53, %v6155_v14  ;;  %v795_v11 = vmul.f32 %v783_v18, %v783_v18  ;;  %v807_v30 = vadd.f32 %v794_v19, %v793_v16  ;;  %v8973_v16 = vld [vmem:[#allocation43_spill] sm:$0xff] }
  0xea   : > { %v983_v26 = vadd.f32 %v982_v28, %v971_v38  ;;  %v972_v17 = vmul.f32 %v960_v25, %v960_v25  ;;  %v749_v13 = vadd.f32 %v748_v0, %v736_v2  ;;  %v841_v33 = vsub.f32 %v8966_v61, %v6155_v14  ;;  %v8971_v28 = vld [vmem:[#allocation41_spill] sm:$0xff] }
  0xeb   : > { %v842_v42 = vsub.f32 %v8967_v40, %v6155_v14  ;;  %v1019_v63 = vsub.f32 %v8968_v34, %v6096_v60  ;;  %v1042_v43 = vadd.f32 %v1030_v12, %v1029_v47  ;;  %v796_v27 = vmul.f32 %v784_v39, %v784_v39  ;;  %v8974_v12 = vld [vmem:[#allocation44_spill] sm:$0xff]  ;;  %v8976_v34 = vld [vmem:[#allocation46_spill] sm:$0xff] }
  0xec   : > { %v984_v50 = vadd.f32 %v983_v26, %v972_v17  ;;  %v808_v44 = vadd.f32 %v807_v30, %v795_v11  ;;  %v843_v29 = vsub.f32 %v8969_v52, %v6155_v14  ;;  %v853_v1 = vmul.f32 %v841_v33, %v841_v33  ;;  %v8975_v17 = vld [vmem:[#allocation45_spill] sm:$0xff] }
  0xed   : > { %690 = vadd.xlane.f32.xlu2 %v689_v8  ;;  %v854_v8 = vmul.f32 %v842_v42, %v842_v42  ;;  %v1020_v58 = vsub.f32 %v8970_v45, %v6096_v60  ;;  %v1031_v7 = vmul.f32 %v1019_v63, %v1019_v63  ;;  %v844_v41 = vsub.f32 %v8971_v28, %v6155_v14 }
  0xee   : > { %v809_v10 = vadd.f32 %v808_v44, %v796_v27  ;;  %v855_v37 = vmul.f32 %v843_v29, %v843_v29  ;;  %v901_v18 = vsub.f32 %v8972_v20, %v6155_v14  ;;  %v902_v19 = vsub.f32 %v8973_v16, %v6155_v14 }
  0xef   : > { %v1043_v23 = vadd.f32 %v1042_v43, %v1031_v7  ;;  %v867_v51 = vadd.f32 %v854_v8, %v853_v1  ;;  %v1032_v9 = vmul.f32 %v1020_v58, %v1020_v58  ;;  %v856_v25 = vmul.f32 %v844_v41, %v844_v41 }
  0xf0   : > { %v903_v0 = vsub.f32 %v6001_v31, %v6155_v14  ;;  %v913_v38 = vmul.f32 %v901_v18, %v901_v18  ;;  %v914_v26 = vmul.f32 %v902_v19, %v902_v19  ;;  %v904_v47 = vsub.f32 %v6003_v21, %v6155_v14 }
  0xf1   : > { %985 = vadd.xlane.f32.xlu1 %v984_v50  ;;  %v1044_v22 = vadd.f32 %v1043_v23, %v1032_v9  ;;  %v868_v2 = vadd.f32 %v867_v51, %v855_v37  ;;  %v961_v53 = vsub.f32 %v8974_v12, %v6155_v14  ;;  %v963_v31 = vsub.f32 %v6019_v35, %v6155_v14 }
  0xf2   : > { %v915_v11 = vmul.f32 %v903_v0, %v903_v0  ;;  %v927_v30 = vadd.f32 %v914_v26, %v913_v38  ;;  %v916_v61 = vmul.f32 %v904_v47, %v904_v47  ;;  %v964_v21 = vsub.f32 %v8976_v34, %v6155_v14 }
  0xf3   : > { %v869_v39 = vadd.f32 %v868_v2, %v856_v25  ;;  %v973_v40 = vmul.f32 %v961_v53, %v961_v53  ;;  %v1021_v63 = vsub.f32 %v6028_v62, %v6155_v14  ;;  %v975_v43 = vmul.f32 %v963_v31, %v963_v31 }
  0xf4   : > { %v928_v33 = vadd.f32 %v927_v30, %v915_v11  ;;  %v1022_v44 = vsub.f32 %v6030_v48, %v6155_v14  ;;  %v976_v52 = vmul.f32 %v964_v21, %v964_v21  ;;  %v1023_v35 = vsub.f32 %v6036_v59, %v6155_v14 }
  0xf5   : > { %750 = vadd.xlane.f32.xlu2 %v749_v13  ;;  %v962_v13 = vsub.f32 %v8975_v17, %v6155_v14  ;;  %v1033_v1 = vmul.f32 %v1021_v63, %v1021_v63  ;;  %v1024_v58 = vsub.f32 %v6038_v32, %v6155_v14 }
  0xf6   : > { %v929_v50 = vadd.f32 %v928_v33, %v916_v61  ;;  %v1034_v8 = vmul.f32 %v1022_v44, %v1022_v44  ;;  %v1035_v7 = vmul.f32 %v1023_v35, %v1023_v35 }
  0xf7   : > { %v974_v42 = vmul.f32 %v962_v13, %v962_v13  ;;  %v1036_v23 = vmul.f32 %v1024_v58, %v1024_v58 }
  0xf8   : > { %v1047_v62 = vadd.f32 %v1034_v8, %v1033_v1 }
  0xf9   : > { %1045 = vadd.xlane.f32.xlu1 %v1044_v22  ;;  %v987_v27 = vadd.f32 %v974_v42, %v973_v40 }
  0xfb   : > { %v988_v29 = vadd.f32 %v987_v27, %v975_v43 }
  0xfd   : > { %810 = vadd.xlane.f32.xlu2 %v809_v10  ;;  %v989_v45 = vadd.f32 %v988_v29, %v976_v52  ;;  %v1048_v10 = vadd.f32 %v1047_v62, %v1035_v7 }
  0xff   : > { %v1049_v28 = vadd.f32 %v1048_v10, %v1036_v23 }
 0x105   : > { %870 = vadd.xlane.f32.xlu2 %v869_v39 }
 0x10d   : > { %930 = vadd.xlane.f32.xlu2 %v929_v50 }
 0x115   : > { %990 = vadd.xlane.f32.xlu2 %v989_v45 }
 0x11d   : > { %1050 = vadd.xlane.f32.xlu2 %v1049_v28 }
 0x122   : > { %v681_v48 = vpop.xlane.xlu0 %680 }
 0x123   : > { %v621_v37 = vpop.xlane.xlu1 %620 }
 0x124   : > { %v692_v19 = vadd.f32 %v681_v48, %v621_v37 }
 0x12a   : > { %v741_v41 = vpop.xlane.xlu0 %740 }
 0x12b   : > { %v752_v32 = vadd.f32 %v741_v41, %v692_v19  ;;  %v1058_v41 = vld [vmem:[%s8740_s2] sm:$0xff]  ;;  %v1059_v19 = vld [vmem:[%s8740_s2 + $0x8] sm:$0xff] }
 0x132   : > { %v801_v51 = vpop.xlane.xlu0 %800 }
 0x133   : > { %v812_v2 = vadd.f32 %v801_v51, %v752_v32  ;;  %v5580_v51 = vmov 0  }
 0x134   : > { %5551 = vset.pattern.permute.xlu0 %v5580_v51  ;;  %5552 = vset.pattern.permute.xlu1 %v5580_v51 }
 0x135   : > { %5553 = vset.pattern.permute.xlu2 %v5580_v51 }
 0x139   : > { %v686_v9 = vpop.xlane.xlu1 %685 }
 0x13a   : > { %v861_v20 = vpop.xlane.xlu0 %860  ;;  %v626_v16 = vpop.xlane.xlu2 %625 }
 0x13b   : > { %v872_v38 = vadd.f32 %v861_v20, %v812_v2  ;;  %v693_v61 = vadd.f32 %v686_v9, %v626_v16 }
 0x141   : > { %v746_v59 = vpop.xlane.xlu1 %745 }
 0x142   : > { %v921_v18 = vpop.xlane.xlu0 %920  ;;  %v753_v31 = vadd.f32 %v746_v59, %v693_v61 }
 0x143   : > { %v932_v47 = vadd.f32 %v921_v18, %v872_v38 }
 0x149   : > { %v806_v22 = vpop.xlane.xlu1 %805 }
 0x14a   : > { %v981_v25 = vpop.xlane.xlu0 %980  ;;  %v813_v42 = vadd.f32 %v806_v22, %v753_v31 }
 0x14b   : > { %v992_v53 = vadd.f32 %v981_v25, %v932_v47 }
 0x154   : > { %v866_v26 = vpop.xlane.xlu1 %865 }
 0x155   : > { %v873_v34 = vadd.f32 %v866_v26, %v813_v42 }
 0x156   : > { %v1041_v12 = vpop.xlane.xlu0 %1040 }
 0x157   : > { %v1052_v39 = vadd.f32 %v1041_v12, %v992_v53  ;;  %v1098_v53 = vld [vmem:[%s8741_s3 + $0x8] sm:$0xff] }
 0x158   : > { %v631_v0 = vpop.xlane.xlu2 %630 }
 0x159   : > { %v1055_v17 = vmul.f32 0.00024414063, %v1052_v39 }
 0x15b   : > { %v1061_v13 = vadd.f32 1e-05, %v1055_v17 }
 0x15c   : > { %v926_v30 = vpop.xlane.xlu1 %925 }
 0x15d   : > { %5554 = vrsqrt.f32 %v1061_v13  ;;  %v933_v21 = vadd.f32 %v926_v30, %v873_v34  ;;  %vm1070_vm1 = vweird.f32 %v1061_v13 }
 0x160   : > { %v691_v11 = vpop.xlane.xlu2 %690 }
 0x161   : > { %v694_v37 = vadd.f32 %v691_v11, %v631_v0 }
 0x163   : > { %v5555_v63 = vpop.eup %5554 }
 0x164   : > { %v986_v40 = vpop.xlane.xlu1 %985  ;;  %v1065_v44 = vmul.f32 %v5555_v63, %v1061_v13  ;;  %vm1071_vm0 = vweird.f32 %v5555_v63 }
 0x165   : > { %v993_v43 = vadd.f32 %v986_v40, %v933_v21  ;;  %vm1072_vm2 = vmor %vm1070_vm1, %vm1071_vm0  ;;  %vm4022_vm1 = vcmask 64512  }
 0x166   : > { %v1066_v35 = vmul.f32 %v5555_v63, %v1065_v44  ;;  %v1099_v44 = vld [vmem:[%s8741_s3 + $0x10] sm:$0xff] }
 0x168   : > { %v751_v33 = vpop.xlane.xlu2 %750  ;;  %v1067_v45 = vmul.f32 0.5, %v1066_v35  ;;  %v4634_v35 = vld [vmem:[%s5632_s23 + $0x40] sm:$0xff] }
 0x169   : > { %v754_v18 = vadd.f32 %v751_v33, %v694_v37  ;;  %v1195_v51 = vunpack.c.h.bf16 %v4634_v35 }
 0x16a   : > { %v1068_v7 = vsub.f32 1.5, %v1067_v45  ;;  %v6274_v45 = vld [vmem:[%s5632_s23 + $0x50] sm:$0xff] }
 0x16c   : > { %v1046_v27 = vpop.xlane.xlu1 %1045  ;;  %v1069_v28 = vmul.f32 %v5555_v63, %v1068_v7  ;;  %v1198_v7 = vunpack.c.l.bf16 %v6274_v45 }
 0x16d   : > { %v1053_v52 = vadd.f32 %v1046_v27, %v993_v43 }
 0x16e   : > { %v1073_v9 = vsel %vm1072_vm2, %v5555_v63, %v1069_v28  ;;  %v4639_v28 = vld [vmem:[%s5632_s23 + $0x60] sm:$0xff] }
 0x16f   : > { %v1056_v29 = vmul.f32 0.00024414063, %v1053_v52  ;;  %v1094_v59 = vmul.f32 %v1073_v9, %v1058_v41  ;;  %v4640_v41 = vld [vmem:[%s5632_s23 + $0x68] sm:$0xff] }
 0x170   : > { %v811_v50 = vpop.xlane.xlu2 %810 }
 0x171   : > { %v1062_v1 = vadd.f32 1e-05, %v1056_v29  ;;  %1108 = vperm.xlu0 %5551, %v1094_v59   ;;  %v814_v25 = vadd.f32 %v811_v50, %v754_v18  ;;  %v1100_v63 = vmul.f32 %v1094_v59, %v6052_v36  ;;  %v1097_v50 = vld [vmem:[%s8741_s3] sm:$0xff]  ;;  %v4632_v29 = vld [vmem:[%s5632_s23 + $0x30] sm:$0xff]  ;;  %v6292_v18 = vld [vmem:[%s5632_s23 + $0x88] sm:$0xff] }
 0x172   : > { %v1190_v36 = vunpack.c.l.bf16 %v4632_v29 }
 0x173   : > { %5556 = vrsqrt.f32 %v1062_v1  ;;  %vm1080_vm4 = vweird.f32 %v1062_v1  ;;  %v1103_v43 = vsub.f32 %v1097_v50, %v1100_v63  ;;  %v4635_v50 = vld [vmem:[%s5632_s23 + $0x48] sm:$0xff] }
 0x178   : > { %v871_v8 = vpop.xlane.xlu2 %870 }
 0x179   : > { %v5557_v58 = vpop.eup %5556  ;;  %v874_v2 = vadd.f32 %v871_v8, %v814_v25  ;;  %v1194_v8 = vunpack.c.l.bf16 %v4634_v35  ;;  %v1197_v35 = vunpack.c.h.bf16 %v4635_v50 }
 0x17a   : > { %v1075_v62 = vmul.f32 %v5557_v58, %v1062_v1  ;;  %vm1081_vm3 = vweird.f32 %v5557_v58  ;;  %v1191_v1 = vunpack.c.h.bf16 %v4632_v29  ;;  %v1196_v29 = vunpack.c.l.bf16 %v4635_v50 }
 0x17b   : > { %vm1082_vm5 = vmor %vm1080_vm4, %vm1081_vm3 }
 0x17c   : > { %v1076_v10 = vmul.f32 %v5557_v58, %v1075_v62 }
 0x17e   : > { %v1077_v48 = vmul.f32 0.5, %v1076_v10 }
 0x180   : > { %v931_v23 = vpop.xlane.xlu2 %930  ;;  %v1078_v20 = vsub.f32 1.5, %v1077_v48  ;;  %v6284_v48 = vld [vmem:[%s5632_s23 + $0x80] sm:$0xff] }
 0x181   : > { %v934_v38 = vadd.f32 %v931_v23, %v874_v2  ;;  %v1199_v23 = vunpack.c.h.bf16 %v6274_v45 }
 0x182   : > { %v1079_v22 = vmul.f32 %v5557_v58, %v1078_v20  ;;  %v1330_v20 = vunpack.c.l.bf16 %v4639_v28 }
 0x184   : > { %v1083_v32 = vsel %vm1082_vm5, %v5557_v58, %v1079_v22  ;;  %v4633_v58 = vld [vmem:[%s5632_s23 + $0x38] sm:$0xff] }
 0x185   : > { %v1095_v0 = vmul.f32 %v1083_v32, %v1059_v19  ;;  %v1192_v62 = vunpack.c.l.bf16 %v4633_v58  ;;  %v1193_v10 = vunpack.c.h.bf16 %v4633_v58  ;;  %v4648_v58 = vld [vmem:[%s5632_s23 + $0xa0] sm:$0xff] }
 0x187   : > { %1113 = vperm.xlu1 %5552, %v1095_v0   ;;  %v1101_v47 = vmul.f32 %v1095_v0, %v6096_v60  ;;  %v1060_v60 = vld [vmem:[%s8740_s2 + $0x10] sm:$0xff]  ;;  %v1331_v0 = vunpack.c.h.bf16 %v4639_v28  ;;  %v6340_v28 = vld [vmem:[%s5632_s23 + $0xa8] sm:$0xff] }
 0x188   : > { %v991_v16 = vpop.xlane.xlu2 %990 }
 0x189   : > { %v994_v26 = vadd.f32 %v991_v16, %v934_v38  ;;  %v1104_v30 = vsub.f32 %v1098_v53, %v1101_v47  ;;  %v4646_v16 = vld [vmem:[%s5632_s23 + $0x90] sm:$0xff]  ;;  %v1338_v38 = vunpack.c.l.bf16 %v6284_v48  ;;  %v1339_v53 = vunpack.c.h.bf16 %v6284_v48  ;;  %v6343_v48 = vld [vmem:[%s5632_s23 + $0xb8] sm:$0xff] }
 0x18a   : > { %v4650_v47 = vld [vmem:[%s5632_s23 + $0xb0] sm:$0xff] }
 0x18f   : > { %1128 = vperm.xlu1 %5552, %v1104_v30   ;;  %v1468_v30 = vunpack.c.l.bf16 %v4646_v16 }
 0x190   : > { %v1051_v12 = vpop.xlane.xlu2 %1050 }
 0x191   : > { %v1054_v39 = vadd.f32 %v1051_v12, %v994_v26  ;;  %v1332_v26 = vunpack.c.l.bf16 %v4640_v41  ;;  %v4647_v12 = vld [vmem:[%s5632_s23 + $0x98] sm:$0xff] }
 0x192   : > { %v1471_v50 = vunpack.c.h.bf16 %v4647_v12 }
 0x193   : > { %v1057_v11 = vmul.f32 0.00024414063, %v1054_v39  ;;  %v1333_v39 = vunpack.c.h.bf16 %v4640_v41 }
 0x195   : > { %v1063_v17 = vadd.f32 1e-05, %v1057_v11  ;;  %v1340_v11 = vunpack.c.l.bf16 %v6292_v18 }
 0x197   : > { %5558 = vrsqrt.f32 %v1063_v17  ;;  %vm1090_vm7 = vweird.f32 %v1063_v17 }
 0x19d   : > { %v5559_v13 = vpop.eup %5558 }
 0x19e   : > { %v1085_v61 = vmul.f32 %v5559_v13, %v1063_v17  ;;  %vm1091_vm6 = vweird.f32 %v5559_v13 }
 0x19f   : > { %vm1092_vm8 = vmor %vm1090_vm7, %vm1091_vm6 }
 0x1a0   : > { %v1086_v33 = vmul.f32 %v5559_v13, %v1085_v61  ;;  %v1341_v61 = vunpack.c.h.bf16 %v6292_v18 }
 0x1a2   : > { %v1087_v31 = vmul.f32 0.5, %v1086_v33  ;;  %v1469_v33 = vunpack.c.h.bf16 %v4646_v16 }
 0x1a4   : > { %v1088_v40 = vsub.f32 1.5, %v1087_v31 }
 0x1a6   : > { %v1089_v42 = vmul.f32 %v5559_v13, %v1088_v40 }
 0x1a8   : > { %v1093_v34 = vsel %vm1092_vm8, %v5559_v13, %v1089_v42  ;;  %v1476_v42 = vunpack.c.l.bf16 %v4650_v47 }
 0x1a9   : > { %v1096_v21 = vmul.f32 %v1093_v34, %v1060_v60  ;;  %v1470_v34 = vunpack.c.l.bf16 %v4647_v12 }
 0x1ab   : > { %1118 = vperm.xlu2 %5553, %v1096_v21   ;;  %v1102_v27 = vmul.f32 %v1096_v21, %v6155_v14  ;;  %v6278_v14 = vld [vmem:[%s5632_s23 + $0x58] sm:$0xff] }
 0x1ac   : > { %v1200_v9 = vunpack.c.l.bf16 %v6278_v14  ;;  %v1201_v59 = vunpack.c.h.bf16 %v6278_v14 }
 0x1ad   : > { %v1105_v52 = vsub.f32 %v1099_v44, %v1102_v27  ;;  %v4642_v27 = vld [vmem:[%s5632_s23 + $0x78] sm:$0xff] }
 0x1ae   : > { %v1336_v14 = vunpack.c.l.bf16 %v4642_v27 }
 0x1b3   : > { %1123 = vperm.xlu2 %5553, %v1103_v43   ;;  %v4641_v43 = vld [vmem:[%s5632_s23 + $0x70] sm:$0xff] }
 0x1bb   : > { %1133 = vperm.xlu2 %5553, %v1105_v52   ;;  %v1477_v52 = vunpack.c.h.bf16 %v4650_v47 }
 0x1e3   : > { %v6287_v37 = vpop.permute.xlu0 %1108 }
 0x1e4   : > { %v6296_v19 = vmul.f32 %v1190_v36, %v6287_v37  ;;  %v6299_v22 = vmul.f32 %v1191_v1, %v6287_v37  ;;  %v6302_v25 = vmul.f32 %v1192_v62, %v6287_v37  ;;  %v6305_v32 = vmul.f32 %v1193_v10, %v6287_v37 }
 0x1e5   : > { %v6308_v2 = vmul.f32 %v1330_v20, %v6287_v37  ;;  %v6316_v17 = vmul.f32 %v1331_v0, %v6287_v37  ;;  %v6319_v13 = vmul.f32 %v1332_v26, %v6287_v37  ;;  %v6325_v40 = vmul.f32 %v1333_v39, %v6287_v37 }
 0x1e6   : > { %v6328_v60 = vmul.f32 %v1468_v30, %v6287_v37  ;;  %v6336_v44 = vmul.f32 %v1469_v33, %v6287_v37  ;;  %v1334_v36 = vunpack.c.l.bf16 %v4641_v43  ;;  %v1335_v1 = vunpack.c.h.bf16 %v4641_v43 }
 0x1e7   : > { %v1337_v62 = vunpack.c.h.bf16 %v4642_v27  ;;  %v1472_v10 = vunpack.c.l.bf16 %v4648_v58  ;;  %v6356_v30 = vmul.f32 %v1470_v34, %v6287_v37  ;;  %v1474_v33 = vunpack.c.l.bf16 %v6340_v28 }
 0x1e8   : > { %v1478_v43 = vunpack.c.l.bf16 %v6343_v48 }
 0x1f9   : > { %v6322_v31 = vpop.permute.xlu1 %1113 }
 0x1fa   : > { %v1206_v21 = vmul.f32 %v1194_v8, %v6322_v31  ;;  %v1207_v63 = vmul.f32 %v1195_v51, %v6322_v31  ;;  %v1473_v8 = vunpack.c.h.bf16 %v4648_v58  ;;  %v1208_v41 = vmul.f32 %v1196_v29, %v6322_v31 }
 0x1fb   : > { %v1209_v51 = vmul.f32 %v1197_v35, %v6322_v31  ;;  %v1346_v20 = vmul.f32 %v1334_v36, %v6322_v31  ;;  %v1347_v18 = vmul.f32 %v1335_v1, %v6322_v31  ;;  %v1348_v16 = vmul.f32 %v1336_v14, %v6322_v31 }
 0x1fc   : > { %v1349_v0 = vmul.f32 %v1337_v62, %v6322_v31  ;;  %v1484_v26 = vmul.f32 %v1472_v10, %v6322_v31  ;;  %v1485_v47 = vmul.f32 %v1473_v8, %v6322_v31 }
 0x201   : > { %v6376_v36 = vpop.permute.xlu1 %1128 }
 0x202   : > { %v6408_v62 = vadd.f32 %v1209_v51, %v6376_v36  ;;  %v6417_v10 = vadd.f32 %v1348_v16, %v6376_v36  ;;  %v6420_v8 = vadd.f32 %v1349_v0, %v6376_v36  ;;  %v1496_v51 = vadd.f32 %v1484_v26, %v6376_v36 }
 0x205   : > { %v6353_v39 = vpop.permute.xlu2 %1118 }
 0x206   : > { %v6363_v27 = vmul.f32 %v1198_v7, %v6353_v39  ;;  %v6368_v29 = vmul.f32 %v1199_v23, %v6353_v39  ;;  %v6371_v35 = vmul.f32 %v1200_v9, %v6353_v39  ;;  %v6374_v34 = vmul.f32 %v1201_v59, %v6353_v39 }
 0x207   : > { %v6379_v12 = vmul.f32 %v1338_v38, %v6353_v39  ;;  %v6382_v1 = vmul.f32 %v1339_v53, %v6353_v39  ;;  %v6385_v7 = vmul.f32 %v1340_v11, %v6353_v39  ;;  %v6388_v45 = vmul.f32 %v1341_v61, %v6353_v39 }
 0x208   : > { %v1218_v23 = vadd.f32 %v1206_v21, %v6376_v36  ;;  %v1219_v9 = vadd.f32 %v1207_v63, %v6376_v36  ;;  %v6393_v59 = vadd.f32 %v1208_v41, %v6376_v36  ;;  %v6396_v58 = vmul.f32 %v1476_v42, %v6353_v39 }
 0x209   : > { %v6399_v38 = vmul.f32 %v1477_v52, %v6353_v39  ;;  %v1486_v53 = vmul.f32 %v1474_v33, %v6322_v31  ;;  %v1483_v11 = vmul.f32 %v1471_v50, %v6287_v37  ;;  %v6404_v61 = vmul.f32 %v1478_v43, %v6353_v39 }
 0x20a   : > { %v1230_v14 = vmax.f32 %v1218_v23, 0.0  ;;  %v1231_v21 = vmax.f32 %v1219_v9, 0.0  ;;  %v8790_v63 = vmax.f32 %v6393_v59, 0.0  ;;  %v6411_v42 = vadd.f32 %v1346_v20, %v6376_v36 }
 0x20b   : > { %v6414_v52 = vadd.f32 %v1347_v18, %v6376_v36  ;;  %v8789_v33 = vmax.f32 %v6408_v62, 0.0  ;;  %v1497_v20 = vadd.f32 %v1485_v47, %v6376_v36 }
 0x20c   : > { %1240 = vrot.lane.b32.xlu0 %v1230_v14, %s5581_s15  ;;  %v1314_v41 = vpack.c.bf16 %v1231_v21, %v1230_v14  ;;  %v8792_v18 = vmax.f32 %v6411_v42, 0.0 }
 0x20d   : > { %v6426_v50 = vpop.permute.xlu2 %1123  ;;  %v8791_v16 = vmax.f32 %v6414_v52, 0.0  ;;  %v1315_v14 = vpack.c.bf16 %v8789_v33, %v8790_v63 }
 0x20e   : > { %v1214_v23 = vadd.f32 %v6296_v19, %v6426_v50  ;;  %v1215_v9 = vadd.f32 %v6299_v22, %v6426_v50  ;;  %1320 = vst [vmem:[#allocation2 + $0x2b0] sm:$0xff] %v1314_v41  ;;  %v6438_v26 = vadd.f32 %v6302_v25, %v6426_v50  ;;  %v6442_v47 = vadd.f32 %v6305_v32, %v6426_v50 }
 0x20f   : > { %v6450_v19 = vadd.f32 %v6308_v2, %v6426_v50  ;;  %v6454_v22 = vadd.f32 %v6316_v17, %v6426_v50  ;;  %v1452_v25 = vpack.c.bf16 %v8791_v16, %v8792_v18  ;;  %1321 = vst [vmem:[#allocation2 + $0x2b8] sm:$0xff] %v1315_v14  ;;  %v6466_v17 = vadd.f32 %v6319_v13, %v6426_v50 }
 0x210   : > { %v1226_v32 = vmax.f32 %v1214_v23, 0.0  ;;  %v1227_v41 = vmax.f32 %v1215_v9, 0.0  ;;  %v8805_v0 = vmax.f32 %v6438_v26, 0.0  ;;  %v8794_v43 = vmax.f32 %v6442_v47, 0.0 }
 0x211   : > { %v8803_v33 = vmax.f32 %v6450_v19, 0.0  ;;  %v8795_v2 = vmax.f32 %v6454_v22, 0.0  ;;  %v6470_v63 = vadd.f32 %v6325_v40, %v6426_v50  ;;  %1458 = vst [vmem:[#allocation2 + $0x310] sm:$0xff] %v1452_v25  ;;  %v8977_v14 = vmax.f32 %v6417_v10, 0.0 }
 0x212   : > { %1238 = vrot.lane.b32.xlu1 %v1226_v32, %s5581_s15  ;;  %v1312_v23 = vpack.c.bf16 %v1227_v41, %v1226_v32  ;;  %v1313_v9 = vpack.c.bf16 %v8794_v43, %v8805_v0  ;;  %v8978_v16 = vmax.f32 %v6420_v8, 0.0  ;;  %v6481_v13 = vmax.f32 %v1496_v51, 0.0 }
 0x213   : > { %v1450_v40 = vpack.c.bf16 %v8795_v2, %v8803_v33  ;;  %v8797_v32 = vmax.f32 %v6466_v17, 0.0  ;;  %v8796_v6 = vmax.f32 %v6470_v63, 0.0  ;;  %v1492_v43 = vadd.f32 %v6328_v60, %v6426_v50 }
 0x214   : > { %v1453_v18 = vpack.c.bf16 %v8978_v16, %v8977_v14  ;;  %1318 = vst [vmem:[#allocation2 + $0x2a0] sm:$0xff] %v1312_v23  ;;  %1246 = vrot.lane.b32.xlu0 %v1231_v21, %s5581_s15  ;;  %v1493_v16 = vadd.f32 %v6336_v44, %v6426_v50  ;;  %v6494_v51 = vmax.f32 %v1497_v20, 0.0  ;;  %v1494_v25 = vadd.f32 %v6356_v30, %v6426_v50 }
 0x215   : > { %v1498_v14 = vadd.f32 %v1486_v53, %v6376_v36  ;;  %v6499_v2 = vpop.permute.xlu2 %1133  ;;  %1319 = vst [vmem:[#allocation2 + $0x2a8] sm:$0xff] %v1313_v9  ;;  %v1451_v60 = vpack.c.bf16 %v8796_v6, %v8797_v32  ;;  %v6505_v23 = vmax.f32 %v1492_v43, 0.0  ;;  %v1495_v21 = vadd.f32 %v1483_v11, %v6426_v50 }
 0x216   : > { %v1475_v44 = vunpack.c.h.bf16 %v6340_v28  ;;  %v1222_v20 = vadd.f32 %v6363_v27, %v6499_v2  ;;  %v6513_v30 = vadd.f32 %v6368_v29, %v6499_v2  ;;  %v6517_v53 = vadd.f32 %v6371_v35, %v6499_v2  ;;  %1456 = vst [vmem:[#allocation2 + $0x300] sm:$0xff] %v1450_v40 }
 0x217   : > { %v6521_v9 = vadd.f32 %v6374_v34, %v6499_v2  ;;  %v6525_v11 = vadd.f32 %v6379_v12, %v6499_v2  ;;  %v6529_v28 = vadd.f32 %v6382_v1, %v6499_v2  ;;  %1457 = vst [vmem:[#allocation2 + $0x308] sm:$0xff] %v1451_v60  ;;  %v6533_v27 = vadd.f32 %v6385_v7, %v6499_v2 }
 0x218   : > { %v6537_v29 = vadd.f32 %v6388_v45, %v6499_v2  ;;  %v1234_v35 = vmax.f32 %v1222_v20, 0.0  ;;  %v1235_v34 = vmax.f32 %v6513_v30, 0.0  ;;  %v8804_v43 = vmax.f32 %v6517_v53, 0.0  ;;  %1459 = vst [vmem:[#allocation2 + $0x318] sm:$0xff] %v1453_v18 }
 0x219   : > { %v8798_v12 = vmax.f32 %v6521_v9, 0.0  ;;  %v8800_v1 = vmax.f32 %v6525_v11, 0.0  ;;  %v8799_v40 = vmax.f32 %v6529_v28, 0.0  ;;  %v8802_v7 = vmax.f32 %v6533_v27, 0.0 }
 0x21a   : > { %v8801_v60 = vmax.f32 %v6537_v29, 0.0  ;;  %1244 = vrot.lane.b32.xlu1 %v1227_v41, %s5581_s15  ;;  %1242 = vrot.lane.b32.xlu2 %v1234_v35, %s5581_s15  ;;  %v1316_v45 = vpack.c.bf16 %v1235_v34, %v1234_v35  ;;  %v6552_v18 = vmax.f32 %v1493_v16, 0.0  ;;  %v1500_v30 = vadd.f32 %v6396_v58, %v6499_v2  ;;  %v4655_v16 = vld [vmem:[%s5632_s23 + $0xc0] sm:$0xff] }
 0x21b   : > { %v1317_v20 = vpack.c.bf16 %v8798_v12, %v8804_v43  ;;  %v1454_v6 = vpack.c.bf16 %v8799_v40, %v8800_v1  ;;  %v1730_v35 = vpack.c.bf16 %v6494_v51, %v6481_v13  ;;  %v6566_v32 = vmax.f32 %v1494_v25, 0.0  ;;  %v4657_v12 = vld [vmem:[%s5632_s23 + $0xd0] sm:$0xff] }
 0x21c   : > { %v1455_v41 = vpack.c.bf16 %v8801_v60, %v8802_v7  ;;  %1322 = vst [vmem:[#allocation2 + $0x2c0] sm:$0xff] %v1316_v45  ;;  %v8979_v58 = vmax.f32 %v6393_v59, 0.0  ;;  %v1728_v40 = vpack.c.bf16 %v6552_v18, %v6505_v23  ;;  %v6575_v1 = vmax.f32 %v1500_v30, 0.0 }
 0x21d   : > { %v1501_v60 = vadd.f32 %v6399_v38, %v6499_v2  ;;  %v6579_v7 = vmax.f32 %v1498_v14, 0.0  ;;  %1323 = vst [vmem:[#allocation2 + $0x2c8] sm:$0xff] %v1317_v20  ;;  %v6581_v25 = vmax.f32 %v1495_v21, 0.0  ;;  %v1502_v45 = vadd.f32 %v6404_v61, %v6499_v2 }
 0x21e   : > { %1252 = vrot.lane.b32.xlu0 %v8979_v58, %s5581_s15  ;;  %v1487_v59 = vmul.f32 %v1475_v44, %v6322_v31  ;;  %v1479_v58 = vunpack.c.h.bf16 %v6343_v48  ;;  %1460 = vst [vmem:[#allocation2 + $0x320] sm:$0xff] %v1454_v6  ;;  %v1746_v30 = vunpack.c.l.bf16 %v4655_v16  ;;  %v1750_v43 = vunpack.c.l.bf16 %v4657_v12 }
 0x21f   : > { %v6587_v33 = vmax.f32 %v1501_v60, 0.0  ;;  %v1747_v0 = vunpack.c.h.bf16 %v4655_v16  ;;  %1461 = vst [vmem:[#allocation2 + $0x328] sm:$0xff] %v1455_v41  ;;  %v1729_v38 = vpack.c.bf16 %v6581_v25, %v6566_v32  ;;  %v6592_v14 = vmax.f32 %v1502_v45, 0.0 }
 0x220   : > { %v1499_v61 = vadd.f32 %v1487_v59, %v6376_v36  ;;  %v1491_v21 = vmul.f32 %v1479_v58, %v6353_v39  ;;  %1734 = vst [vmem:[#allocation2 + $0x330] sm:$0xff] %v1728_v40  ;;  %v1758_v48 = vmul.f32 %v1746_v30, %v6287_v37  ;;  %v1762_v44 = vmul.f32 %v1750_v43, %v6322_v31  ;;  %v4656_v59 = vld [vmem:[%s5632_s23 + $0xc8] sm:$0xff]  ;;  %v4658_v30 = vld [vmem:[%s5632_s23 + $0xd8] sm:$0xff] }
 0x221   : > { %8980 = vst [vmem:[#allocation5_spill] sm:$0xff] %v6592_v14  ;;  %v1732_v6 = vpack.c.bf16 %v6587_v33, %v6575_v1  ;;  %v1759_v60 = vmul.f32 %v1747_v0, %v6287_v37  ;;  %v1754_v16 = vunpack.c.l.bf16 %v4659_v5  ;;  %v1751_v45 = vunpack.c.h.bf16 %v4657_v12 }
 0x222   : > { %1736 = vst [vmem:[#allocation2 + $0x340] sm:$0xff] %v1730_v35  ;;  %v6601_v20 = vmax.f32 %v1499_v61, 0.0  ;;  %v1503_v41 = vadd.f32 %v1491_v21, %v6499_v2  ;;  %v8981_v40 = vmax.f32 %v6438_v26, 0.0  ;;  %1248 = vrot.lane.b32.xlu2 %v1235_v34, %s5581_s15  ;;  %v6610_v43 = vadd.f32 %v1758_v48, %v6426_v50 }
 0x223   : > { %1738 = vst [vmem:[#allocation2 + $0x350] sm:$0xff] %v1732_v6  ;;  %v6613_v0 = vadd.f32 %v1762_v44, %v6376_v36  ;;  %v6616_v35 = vadd.f32 %v1759_v60, %v6426_v50  ;;  %v1766_v26 = vmul.f32 %v1754_v16, %v6353_v39  ;;  %v1763_v34 = vmul.f32 %v1751_v45, %v6322_v31  ;;  %v4660_v44 = vld [vmem:[%s5632_s23 + $0xe8] sm:$0xff] }
 0x224   : > { %1250 = vrot.lane.b32.xlu1 %v8981_v40, %s5581_s15  ;;  %8982 = vst [vmem:[#allocation6_spill] sm:$0xff] %v6610_v43  ;;  %v1731_v12 = vpack.c.bf16 %v6601_v20, %v6579_v7  ;;  %v6620_v58 = vmax.f32 %v1503_v41, 0.0  ;;  %v8985_v61 = vmax.f32 %v6408_v62, 0.0  ;;  %v8812_v21 = vmax.f32 %v6610_v43, 0.0 }
 0x225   : > { %8983 = vst [vmem:[#allocation7_spill] sm:$0xff] %v6616_v35  ;;  %v1748_v48 = vunpack.c.l.bf16 %v4656_v59  ;;  %v6635_v41 = vadd.f32 %v1766_v26, %v6499_v2  ;;  %v6638_v16 = vadd.f32 %v1763_v34, %v6376_v36  ;;  %v1755_v62 = vunpack.c.h.bf16 %v4659_v5 }
 0x226   : > { %1735 = vst [vmem:[#allocation2 + $0x338] sm:$0xff] %v1729_v38  ;;  %1258 = vrot.lane.b32.xlu0 %v8985_v61, %s5581_s15  ;;  %v8811_v38 = vmax.f32 %v6616_v35, 0.0  ;;  %v1733_v60 = vpack.c.bf16 %v6620_v58, %v6592_v14  ;;  %v1752_v61 = vunpack.c.l.bf16 %v4658_v30  ;;  %v1749_v6 = vunpack.c.h.bf16 %v4656_v59 }
 0x227   : > { %8984 = vst [vmem:[#allocation8_spill] sm:$0xff] %v6620_v58  ;;  %v1760_v40 = vmul.f32 %v1748_v48, %v6287_v37  ;;  %v8814_v26 = vmax.f32 %v6638_v16, 0.0  ;;  %v1767_v34 = vmul.f32 %v1755_v62, %v6353_v39  ;;  %v1756_v14 = vunpack.c.l.bf16 %v4660_v44 }
 0x228   : > { %1737 = vst [vmem:[#allocation2 + $0x348] sm:$0xff] %v1731_v12  ;;  %v1866_v45 = vpack.c.bf16 %v8811_v38, %v8812_v21  ;;  %v4662_v12 = vld [vmem:[%s5632_s23 + $0xf0] sm:$0xff]  ;;  %v1764_v38 = vmul.f32 %v1752_v61, %v6322_v31  ;;  %v1761_v48 = vmul.f32 %v1749_v6, %v6287_v37  ;;  %v1753_v21 = vunpack.c.h.bf16 %v4658_v30 }
 0x229   : > { %8986 = vst [vmem:[#allocation9_spill] sm:$0xff] %v6635_v41  ;;  %v6650_v5 = vadd.f32 %v1760_v40, %v6426_v50  ;;  %v8988_v59 = vmax.f32 %v6613_v0, 0.0  ;;  %v6659_v58 = vadd.f32 %v1767_v34, %v6499_v2  ;;  %v1768_v62 = vmul.f32 %v1756_v14, %v6353_v39 }
 0x22a   : > { %8987 = vst [vmem:[#allocation10_spill] sm:$0xff] %v6638_v16  ;;  %v1884_v35 = vunpack.c.l.bf16 %v4662_v12  ;;  %v8990_v40 = vmax.f32 %v6442_v47, 0.0  ;;  %v8991_v6 = vmax.f32 %v6517_v53, 0.0  ;;  %v6671_v61 = vadd.f32 %v1764_v38, %v6376_v36 }
 0x22b   : > { %1739 = vst [vmem:[#allocation2 + $0x358] sm:$0xff] %v1733_v60  ;;  %v1868_v60 = vpack.c.bf16 %v8814_v26, %v8988_v59  ;;  %v8821_v30 = vmax.f32 %v6650_v5, 0.0  ;;  %v6674_v34 = vadd.f32 %v1761_v48, %v6426_v50  ;;  %v1765_v14 = vmul.f32 %v1753_v21, %v6322_v31  ;;  %v4666_v26 = vld [vmem:[%s5632_s23 + $0x110] sm:$0xff]  ;;  %v4663_v48 = vld [vmem:[%s5632_s23 + $0xf8] sm:$0xff] }
 0x22c   : > { %1872 = vst [vmem:[#allocation2 + $0x420] sm:$0xff] %v1866_v45  ;;  %v4664_v45 = vld [vmem:[%s5632_s23 + $0x100] sm:$0xff]  ;;  %1256 = vrot.lane.b32.xlu1 %v8990_v40, %s5581_s15  ;;  %1254 = vrot.lane.b32.xlu2 %v8991_v6, %s5581_s15  ;;  %v8819_v47 = vmax.f32 %v6659_v58, 0.0  ;;  %v6679_v59 = vadd.f32 %v1768_v62, %v6499_v2  ;;  %v1896_v53 = vmul.f32 %v1884_v35, %v6287_v37  ;;  %v1757_v40 = vunpack.c.h.bf16 %v4660_v44 }
 0x22d   : > { %8989 = vst [vmem:[#allocation11_spill] sm:$0xff] %v6659_v58  ;;  %v8993_v38 = vmax.f32 %v6411_v42, 0.0  ;;  %v8820_v6 = vmax.f32 %v6674_v34, 0.0  ;;  %v6688_v21 = vadd.f32 %v1765_v14, %v6376_v36  ;;  %v8994_v62 = vmax.f32 %v6635_v41, 0.0 }
 0x22e   : > { %8992 = vst [vmem:[#allocation12_spill] sm:$0xff] %v6674_v34  ;;  %v1908_v42 = vadd.f32 %v1896_v53, %v6426_v50  ;;  %v1885_v41 = vunpack.c.h.bf16 %v4662_v12  ;;  %v1892_v53 = vunpack.c.l.bf16 %v4666_v26  ;;  %v8996_v44 = vmax.f32 %v6671_v61, 0.0 }
 0x22f   : > { %1874 = vst [vmem:[#allocation2 + $0x430] sm:$0xff] %v1868_v60  ;;  %1380 = vrot.lane.b32.xlu0 %v8993_v38, %s5582_s16  ;;  %v1888_v60 = vunpack.c.l.bf16 %v4664_v45  ;;  %v1870_v35 = vpack.c.bf16 %v8819_v47, %v8994_v62  ;;  %v1769_v38 = vmul.f32 %v1757_v40, %v6353_v39  ;;  %v1867_v14 = vpack.c.bf16 %v8820_v6, %v8821_v30  ;;  %v4665_v40 = vld [vmem:[%s5632_s23 + $0x108] sm:$0xff] }
 0x230   : > { %v8823_v16 = vmax.f32 %v6688_v21, 0.0  ;;  %v6705_v58 = vmax.f32 %v1908_v42, 0.0  ;;  %v1889_v47 = vunpack.c.h.bf16 %v4664_v45  ;;  %v1897_v12 = vmul.f32 %v1885_v41, %v6287_v37 }
 0x231   : > { %v1900_v43 = vmul.f32 %v1888_v60, %v6322_v31  ;;  %1876 = vst [vmem:[#allocation2 + $0x440] sm:$0xff] %v1870_v35  ;;  %v6708_v62 = vadd.f32 %v1769_v38, %v6499_v2  ;;  %v1886_v60 = vunpack.c.l.bf16 %v4663_v48  ;;  %v1904_v42 = vmul.f32 %v1892_v53, %v6353_v39  ;;  %v4667_v53 = vld [vmem:[%s5632_s23 + $0x118] sm:$0xff] }
 0x232   : > { %1873 = vst [vmem:[#allocation2 + $0x428] sm:$0xff] %v1867_v14  ;;  %v1869_v6 = vpack.c.bf16 %v8823_v16, %v8996_v44  ;;  %v1901_v38 = vmul.f32 %v1889_v47, %v6322_v31  ;;  %v1893_v45 = vunpack.c.h.bf16 %v4666_v26  ;;  %v8997_v14 = vmax.f32 %v6450_v19, 0.0 }
 0x233   : > { %8995 = vst [vmem:[#allocation24_spill] sm:$0xff] %v6708_v62  ;;  %v1912_v30 = vadd.f32 %v1900_v43, %v6376_v36  ;;  %v8825_v35 = vmax.f32 %v6708_v62, 0.0  ;;  %v8998_v34 = vmax.f32 %v6521_v9, 0.0  ;;  %v1909_v41 = vadd.f32 %v1897_v12, %v6426_v50 }
 0x234   : > { %1378 = vrot.lane.b32.xlu1 %v8997_v14, %s5582_s16  ;;  %1875 = vst [vmem:[#allocation2 + $0x438] sm:$0xff] %v1869_v6  ;;  %v1898_v44 = vmul.f32 %v1886_v60, %v6287_v37  ;;  %v1890_v16 = vunpack.c.l.bf16 %v4665_v40  ;;  %v8999_v47 = vmax.f32 %v6679_v59, 0.0  ;;  %v1916_v19 = vadd.f32 %v1904_v42, %v6499_v2 }
 0x235   : > { %1260 = vrot.lane.b32.xlu2 %v8998_v34, %s5581_s15  ;;  %v6726_v43 = vmax.f32 %v1912_v30, 0.0  ;;  %v1913_v14 = vadd.f32 %v1901_v38, %v6376_v36  ;;  %v1905_v9 = vmul.f32 %v1893_v45, %v6353_v39  ;;  %v9000_v30 = vmax.f32 %v6414_v52, 0.0 }
 0x236   : > { %v1871_v26 = vpack.c.bf16 %v8825_v35, %v8999_v47  ;;  %v6741_v34 = vmax.f32 %v1909_v41, 0.0  ;;  %v1910_v6 = vadd.f32 %v1898_v44, %v6426_v50  ;;  %v1902_v12 = vmul.f32 %v1890_v16, %v6322_v31 }
 0x237   : > { %1386 = vrot.lane.b32.xlu0 %v9000_v30, %s5582_s16  ;;  %v1887_v60 = vunpack.c.h.bf16 %v4663_v48  ;;  %v6745_v62 = vmax.f32 %v1916_v19, 0.0  ;;  %v6747_v47 = vmax.f32 %v1913_v14, 0.0  ;;  %v1917_v42 = vadd.f32 %v1905_v9, %v6499_v2 }
 0x238   : > { %1877 = vst [vmem:[#allocation2 + $0x448] sm:$0xff] %v1871_v26  ;;  %v1894_v38 = vunpack.c.l.bf16 %v4667_v53  ;;  %v2144_v45 = vpack.c.bf16 %v6741_v34, %v6705_v58  ;;  %v1914_v52 = vadd.f32 %v1902_v12, %v6376_v36  ;;  %v1891_v26 = vunpack.c.h.bf16 %v4665_v40 }
 0x239   : > { %v1899_v41 = vmul.f32 %v1887_v60, %v6287_v37  ;;  %v2146_v44 = vpack.c.bf16 %v6747_v47, %v6726_v43  ;;  %v6756_v16 = vmax.f32 %v1917_v42, 0.0  ;;  %v6759_v19 = vmax.f32 %v1910_v6, 0.0 }
 0x23a   : > { %v1906_v48 = vmul.f32 %v1894_v38, %v6353_v39  ;;  %2150 = vst [vmem:[#allocation2 + $0x450] sm:$0xff] %v2144_v45  ;;  %v1895_v9 = vunpack.c.h.bf16 %v4667_v53  ;;  %v1903_v60 = vmul.f32 %v1891_v26, %v6322_v31  ;;  %v9003_v42 = vmax.f32 %v6454_v22, 0.0  ;;  %v4684_v38 = vld [vmem:[%s5632_s23 + $0x170] sm:$0xff] }
 0x23b   : > { %9001 = vst [vmem:[#allocation25_spill] sm:$0xff] %v6756_v16  ;;  %v1911_v14 = vadd.f32 %v1899_v41, %v6426_v50  ;;  %v2148_v30 = vpack.c.bf16 %v6756_v16, %v6745_v62  ;;  %v9004_v40 = vmax.f32 %v6525_v11, 0.0  ;;  %v6776_v45 = vmax.f32 %v1914_v52, 0.0 }
 0x23c   : > { %9002 = vst [vmem:[#allocation26_spill] sm:$0xff] %v6759_v19  ;;  %v1918_v12 = vadd.f32 %v1906_v48, %v6499_v2  ;;  %1384 = vrot.lane.b32.xlu1 %v9003_v42, %s5582_s16  ;;  %v1907_v53 = vmul.f32 %v1895_v9, %v6353_v39  ;;  %v1915_v41 = vadd.f32 %v1903_v60, %v6376_v36  ;;  %v9006_v22 = vmax.f32 %v6417_v10, 0.0  ;;  %v4682_v9 = vld [vmem:[%s5632_s23 + $0x160] sm:$0xff]  ;;  %v4673_v60 = vld [vmem:[%s5632_s23 + $0x130] sm:$0xff] }
 0x23d   : > { %2152 = vst [vmem:[#allocation2 + $0x460] sm:$0xff] %v2146_v44  ;;  %1382 = vrot.lane.b32.xlu2 %v9004_v40, %s5582_s16  ;;  %v6772_v6 = vmax.f32 %v1911_v14, 0.0  ;;  %v2449_v14 = vunpack.c.h.bf16 %v4684_v38  ;;  %v2448_v40 = vunpack.c.l.bf16 %v4684_v38  ;;  %v2166_v35 = vunpack.c.l.bf16 %v4673_v60 }
 0x23e   : > { %2154 = vst [vmem:[#allocation2 + $0x470] sm:$0xff] %v2148_v30  ;;  %v6784_v44 = vmax.f32 %v1918_v12, 0.0  ;;  %v1919_v48 = vadd.f32 %v1907_v53, %v6499_v2  ;;  %v6787_v26 = vmax.f32 %v1915_v41, 0.0  ;;  %v4675_v30 = vld [vmem:[%s5632_s23 + $0x140] sm:$0xff]  ;;  %v2444_v53 = vunpack.c.l.bf16 %v4682_v9  ;;  %v4680_v41 = vld [vmem:[%s5632_s23 + $0x150] sm:$0xff] }
 0x23f   : > { %9005 = vst [vmem:[#allocation27_spill] sm:$0xff] %v6772_v6  ;;  %1392 = vrot.lane.b32.xlu0 %v9006_v22, %s5582_s16  ;;  %v2145_v11 = vpack.c.bf16 %v6772_v6, %v6759_v19  ;;  %v2461_v12 = vmul.f32 %v2449_v14, %v6353_v39  ;;  %v9010_v22 = vmax.f32 %v6466_v17, 0.0  ;;  %v9012_v38 = vmax.f32 %v6420_v8, 0.0 }
 0x240   : > { %9007 = vst [vmem:[#allocation28_spill] sm:$0xff] %v6784_v44  ;;  %v6789_v52 = vmax.f32 %v1919_v48, 0.0  ;;  %v2147_v10 = vpack.c.bf16 %v6787_v26, %v6776_v45  ;;  %v2170_v48 = vunpack.c.l.bf16 %v4675_v30  ;;  %v2440_v14 = vunpack.c.l.bf16 %v4680_v41 }
 0x241   : > { %9008 = vst [vmem:[#allocation13_spill] sm:$0xff] %v6787_v26  ;;  %v2473_v6 = vadd.f32 %v2461_v12, %v6499_v2  ;;  %v2171_v8 = vunpack.c.h.bf16 %v4675_v30  ;;  %v4672_v12 = vld [vmem:[%s5632_s23 + $0x128] sm:$0xff] }
 0x242   : > { %2151 = vst [vmem:[#allocation2 + $0x458] sm:$0xff] %v2145_v11  ;;  %v2149_v42 = vpack.c.bf16 %v6789_v52, %v6784_v44  ;;  %v9011_v11 = vmax.f32 %v6529_v28, 0.0  ;;  %v2182_v17 = vmul.f32 %v2170_v48, %v6353_v39  ;;  %v2460_v28 = vmul.f32 %v2448_v40, %v6353_v39 }
 0x243   : > { %9009 = vst [vmem:[#allocation29_spill] sm:$0xff] %v6789_v52  ;;  %v6808_v52 = vld [vmem:[%s5632_s23 + $0x178] sm:$0xff] }
 0x244   : > { %2153 = vst [vmem:[#allocation2 + $0x468] sm:$0xff] %v2147_v10  ;;  %1390 = vrot.lane.b32.xlu1 %v9010_v22, %s5582_s16  ;;  %v2167_v10 = vunpack.c.h.bf16 %v4673_v60  ;;  %v2178_v22 = vmul.f32 %v2166_v35, %v6322_v31  ;;  %v2194_v60 = vadd.f32 %v2182_v17, %v6499_v2  ;;  %v2472_v48 = vadd.f32 %v2460_v28, %v6499_v2 }
 0x245   : > { %1388 = vrot.lane.b32.xlu2 %v9011_v11, %s5582_s16  ;;  %2155 = vst [vmem:[#allocation2 + $0x478] sm:$0xff] %v2149_v42  ;;  %v2456_v42 = vmul.f32 %v2444_v53, %v6322_v31  ;;  %v2441_v11 = vunpack.c.h.bf16 %v4680_v41  ;;  %v2452_v53 = vmul.f32 %v2440_v14, %v6287_v37  ;;  %v2445_v41 = vunpack.c.h.bf16 %v4682_v9 }
 0x246   : > { %v2179_v44 = vmul.f32 %v2167_v10, %v6322_v31  ;;  %v2190_v26 = vadd.f32 %v2178_v22, %v6376_v36  ;;  %v2183_v17 = vmul.f32 %v2171_v8, %v6353_v39  ;;  %v1140_v22 = vmul.f32 %v6322_v31, %v5749_v54  ;;  %v6857_v8 = vld [vmem:[%s5632_s23 + $0x138] sm:$0xff] }
 0x247   : > { %1398 = vrot.lane.b32.xlu0 %v9012_v38, %s5582_s16  ;;  %v6821_v38 = vmax.f32 %v2473_v6, 0.0  ;;  %v6825_v35 = vadd.f32 %v2456_v42, %v6376_v36  ;;  %v2453_v30 = vmul.f32 %v2441_v11, %v6287_v37  ;;  %v1141_v28 = vmul.f32 %v6322_v31, %v5751_v55  ;;  %v4671_v11 = vld [vmem:[%s5632_s23 + $0x120] sm:$0xff] }
 0x248   : > { %v2191_v40 = vadd.f32 %v2179_v44, %v6376_v36  ;;  %v6829_v10 = vmax.f32 %v2190_v26, 0.0  ;;  %v9015_v44 = vmax.f32 %v6470_v63, 0.0  ;;  %v9016_v26 = vmax.f32 %v6533_v27, 0.0 }
 0x249   : > { %v6845_v9 = vmax.f32 %v2194_v60, 0.0  ;;  %v2195_v14 = vadd.f32 %v2183_v17, %v6499_v2  ;;  %v1144_v42 = vmul.f32 %v6353_v39, %v8943_v15  ;;  %v1145_v54 = vmul.f32 %v6353_v39, %v5899_v46 }
 0x24a   : > { %9013 = vst [vmem:[#allocation30_spill] sm:$0xff] %v6829_v10  ;;  %v6833_v6 = vmax.f32 %v2191_v40, 0.0  ;;  %v2464_v55 = vadd.f32 %v2452_v53, %v6426_v50  ;;  %v1152_v27 = vadd.f32 %v1140_v22, %v6376_v36  ;;  %v1153_v60 = vadd.f32 %v1141_v28, %v6376_v36 }
 0x24b   : > { %v2457_v46 = vmul.f32 %v2445_v41, %v6322_v31  ;;  %v6864_v15 = vmax.f32 %v2195_v14, 0.0  ;;  %v1156_v40 = vadd.f32 %v1144_v42, %v6499_v2  ;;  %v1157_v53 = vadd.f32 %v1145_v54, %v6499_v2  ;;  %v4676_v14 = vld [vmem:[%s5632_s23 + $0x148] sm:$0xff] }
 0x24c   : > { %9014 = vst [vmem:[#allocation14_spill] sm:$0xff] %v6833_v6  ;;  %1396 = vrot.lane.b32.xlu1 %v9015_v44, %s5582_s16  ;;  %v2424_v63 = vpack.c.bf16 %v6833_v6, %v6829_v10  ;;  %v1164_v17 = vmax.f32 %v1152_v27, 0.0  ;;  %v1165_v44 = vmax.f32 %v1153_v60, 0.0  ;;  %v2162_v22 = vunpack.c.l.bf16 %v4671_v11 }
 0x24d   : > { %1394 = vrot.lane.b32.xlu2 %v9016_v26, %s5582_s16  ;;  %v2163_v26 = vunpack.c.h.bf16 %v4671_v11  ;;  %v2169_v28 = vunpack.c.h.bf16 %v6857_v8  ;;  %v2426_v10 = vpack.c.bf16 %v6864_v15, %v6845_v9  ;;  %v1168_v6 = vmax.f32 %v1156_v40, 0.0 }
 0x24e   : > { %2430 = vst [vmem:[#allocation2 + $0x4c0] sm:$0xff] %v2424_v63  ;;  %v1169_v16 = vmax.f32 %v1157_v53, 0.0  ;;  %v1174_v41 = vpack.c.bf16 %v1165_v44, %v1164_v17  ;;  %v2174_v42 = vmul.f32 %v2162_v22, %v6287_v37  ;;  %v1136_v54 = vmul.f32 %v6287_v37, %v5637_v3 }
 0x24f   : > { %1518 = vrot.lane.b32.xlu0 %v6481_v13, %s5583_s17  ;;  %v2175_v19 = vmul.f32 %v2163_v26, %v6287_v37  ;;  %v2465_v63 = vadd.f32 %v2453_v30, %v6426_v50  ;;  %2432 = vst [vmem:[#allocation2 + $0x4d0] sm:$0xff] %v2426_v10  ;;  %v1137_v27 = vmul.f32 %v6287_v37, %v5639_v4  ;;  %v2165_v60 = vunpack.c.h.bf16 %v4672_v12 }
 0x250   : > { %v1176_v11 = vpack.c.bf16 %v1169_v16, %v1168_v6  ;;  %v2469_v40 = vadd.f32 %v2457_v46, %v6376_v36  ;;  %1180 = vst [vmem:[#allocation2 + $0x280] sm:$0xff] %v1174_v41  ;;  %v2186_v17 = vadd.f32 %v2174_v42, %v6426_v50  ;;  %v1148_v44 = vadd.f32 %v1136_v54, %v6426_v50 }
 0x251   : > { %v2187_v53 = vadd.f32 %v2175_v19, %v6426_v50  ;;  %v9017_v3 = vmax.f32 %v6537_v29, 0.0  ;;  %v6889_v16 = vmax.f32 %v2472_v48, 0.0  ;;  %v2181_v4 = vmul.f32 %v2169_v28, %v6322_v31  ;;  %v4681_v19 = vld [vmem:[%s5632_s23 + $0x158] sm:$0xff] }
 0x252   : > { %1182 = vst [vmem:[#allocation2 + $0x290] sm:$0xff] %v1176_v11  ;;  %v2173_v10 = vunpack.c.h.bf16 %v4676_v14  ;;  %v1149_v30 = vadd.f32 %v1137_v27, %v6426_v50  ;;  %v6896_v46 = vmax.f32 %v2186_v17, 0.0  ;;  %v1160_v26 = vmax.f32 %v1148_v44, 0.0  ;;  %v4683_v44 = vld [vmem:[%s5632_s23 + $0x168] sm:$0xff]  ;;  %s5584_s23 = smov 64  }
 0x253   : > { %v6894_v6 = vmax.f32 %v2187_v53, 0.0  ;;  %v2177_v22 = vmul.f32 %v2165_v60, %v6287_v37  ;;  %v6901_v29 = vmax.f32 %v2464_v55, 0.0  ;;  %v6903_v48 = vmax.f32 %v2465_v63, 0.0 }
 0x254   : > { %1516 = vrot.lane.b32.xlu1 %v6505_v23, %s5583_s17  ;;  %v2193_v28 = vadd.f32 %v2181_v4, %v6376_v36  ;;  %v1161_v41 = vmax.f32 %v1149_v30, 0.0  ;;  %v2164_v11 = vunpack.c.l.bf16 %v4672_v12  ;;  %v2168_v27 = vunpack.c.l.bf16 %v6857_v8 }
 0x255   : > { %1400 = vrot.lane.b32.xlu2 %v9017_v3, %s5582_s16  ;;  %v2422_v42 = vpack.c.bf16 %v6894_v6, %v6896_v46  ;;  %v2189_v54 = vadd.f32 %v2177_v22, %v6426_v50  ;;  %v6911_v60 = vmax.f32 %v6825_v35, 0.0  ;;  %v2443_v53 = vunpack.c.h.bf16 %v4681_v19 }
 0x256   : > { %v2185_v55 = vmul.f32 %v2173_v10, %v6353_v39  ;;  %v1172_v17 = vpack.c.bf16 %v1161_v41, %v1160_v26  ;;  %v6914_v63 = vmax.f32 %v2469_v40, 0.0  ;;  %v2176_v3 = vmul.f32 %v2164_v11, %v6287_v37 }
 0x257   : > { %1524 = vrot.lane.b32.xlu0 %v6494_v51, %s5583_s17  ;;  %2428 = vst [vmem:[#allocation2 + $0x4b0] sm:$0xff] %v2422_v42  ;;  %v2180_v4 = vmul.f32 %v2168_v27, %v6322_v31  ;;  %v2172_v30 = vunpack.c.l.bf16 %v4676_v14  ;;  %v6919_v22 = vmax.f32 %v2193_v28, 0.0  ;;  %v2984_v35 = vpack.c.bf16 %v6821_v38, %v6889_v16 }
 0x258   : > { %v2197_v12 = vadd.f32 %v2185_v55, %v6499_v2  ;;  %1178 = vst [vmem:[#allocation2 + $0x270] sm:$0xff] %v1172_v17  ;;  %v2980_v8 = vpack.c.bf16 %v6903_v48, %v6901_v29  ;;  %v6926_v40 = vmax.f32 %v2189_v54, 0.0  ;;  %v2442_v10 = vunpack.c.l.bf16 %v4681_v19 }
 0x259   : > { %v2188_v26 = vadd.f32 %v2176_v3, %v6426_v50  ;;  %v2192_v41 = vadd.f32 %v2180_v4, %v6376_v36  ;;  %v2447_v14 = vunpack.c.h.bf16 %v4683_v44  ;;  %v2184_v28 = vmul.f32 %v2172_v30, %v6353_v39  ;;  %2990 = vst [vmem:[#allocation2 + $0x500] sm:$0xff] %v2984_v35 }
 0x25a   : > { %v9018_v42 = vunpack.c.h.bf16 %v6808_v52  ;;  %v2446_v11 = vunpack.c.l.bf16 %v4683_v44  ;;  %2986 = vst [vmem:[#allocation2 + $0x4e0] sm:$0xff] %v2980_v8  ;;  %v2455_v55 = vmul.f32 %v2443_v53, %v6287_v37  ;;  %v6945_v17 = vmax.f32 %v2197_v12, 0.0 }
 0x25b   : > { %v6938_v19 = vmax.f32 %v2188_v26, 0.0  ;;  %v6940_v27 = vmax.f32 %v2192_v41, 0.0  ;;  %v2450_v3 = vunpack.c.l.bf16 %v6808_v52  ;;  %v2196_v4 = vadd.f32 %v2184_v28, %v6499_v2 }
 0x25c   : > { %1522 = vrot.lane.b32.xlu1 %v6552_v18, %s5583_s17  ;;  %v2463_v54 = vmul.f32 %v9018_v42, %v6353_v39  ;;  %v2454_v30 = vmul.f32 %v2442_v10, %v6287_v37  ;;  %v2982_v8 = vpack.c.bf16 %v6914_v63, %v6911_v60  ;;  %v2467_v53 = vadd.f32 %v2455_v55, %v6426_v50 }
 0x25d   : > { %1520 = vrot.lane.b32.xlu2 %v6575_v1, %s5583_s17  ;;  %9019 = vst [vmem:[#allocation31_spill] sm:$0xff] %v6938_v19  ;;  %v2423_v44 = vpack.c.bf16 %v6926_v40, %v6938_v19  ;;  %v2425_v35 = vpack.c.bf16 %v6919_v22, %v6940_v27  ;;  %v2459_v12 = vmul.f32 %v2447_v14, %v6322_v31  ;;  %v6959_v52 = vmax.f32 %v2196_v4, 0.0 }
 0x25e   : > { %9020 = vst [vmem:[#allocation32_spill] sm:$0xff] %v6940_v27  ;;  %v2475_v26 = vadd.f32 %v2463_v54, %v6499_v2  ;;  %v2458_v41 = vmul.f32 %v2446_v11, %v6322_v31  ;;  %v2466_v10 = vadd.f32 %v2454_v30, %v6426_v50  ;;  %v2462_v42 = vmul.f32 %v2450_v3, %v6353_v39 }
 0x25f   : > { %1530 = vrot.lane.b32.xlu0 %v6579_v7, %s5583_s17  ;;  %9021 = vst [vmem:[#allocation16_spill] sm:$0xff] %v6959_v52  ;;  %v2471_v28 = vadd.f32 %v2459_v12, %v6376_v36  ;;  %v2427_v19 = vpack.c.bf16 %v6945_v17, %v6959_v52  ;;  %v1142_v14 = vmul.f32 %v6322_v31, %v5753_v56  ;;  %v6976_v55 = vmax.f32 %v2467_v53, 0.0 }
 0x260   : > { %2429 = vst [vmem:[#allocation2 + $0x4b8] sm:$0xff] %v2423_v44  ;;  %v2470_v54 = vadd.f32 %v2458_v41, %v6376_v36  ;;  %v6974_v11 = vmax.f32 %v2475_v26, 0.0  ;;  %v2474_v3 = vadd.f32 %v2462_v42, %v6499_v2  ;;  %v1143_v4 = vmul.f32 %v6322_v31, %v5755_v57  ;;  %v9023_v26 = vld [vmem:[#allocation3_spill] sm:$0xff]  ;;  %v9024_v31 = vld [vmem:[#allocation4_spill] sm:$0xff] }
 0x261   : > { %2431 = vst [vmem:[#allocation2 + $0x4c8] sm:$0xff] %v2425_v35  ;;  %v6981_v30 = vmax.f32 %v2466_v10, 0.0  ;;  %v1146_v56 = vmul.f32 %v6353_v39, %v8944_v49  ;;  %v1147_v44 = vmul.f32 %v6353_v39, %v8945_v24  ;;  %v1154_v35 = vadd.f32 %v1142_v14, %v6376_v36 }
 0x262   : > { %2988 = vst [vmem:[#allocation2 + $0x4f0] sm:$0xff] %v2982_v8  ;;  %v6990_v8 = vmax.f32 %v2471_v28, 0.0  ;;  %v1138_v57 = vmul.f32 %v6287_v37, %v9023_v26  ;;  %v1139_v53 = vmul.f32 %v6287_v37, %v9024_v31  ;;  %v6997_v12 = vmax.f32 %v2470_v54, 0.0 }
 0x263   : > { %2433 = vst [vmem:[#allocation2 + $0x4d8] sm:$0xff] %v2427_v19  ;;  %v1155_v19 = vadd.f32 %v1143_v4, %v6376_v36  ;;  %v1158_v49 = vadd.f32 %v1146_v56, %v6499_v2  ;;  %v1159_v24 = vadd.f32 %v1147_v44, %v6499_v2  ;;  %v1166_v39 = vmax.f32 %v1154_v35, 0.0 }
 0x264   : > { %1528 = vrot.lane.b32.xlu1 %v6566_v32, %s5583_s17  ;;  %9022 = vst [vmem:[#allocation17_spill] sm:$0xff] %v6981_v30  ;;  %v7001_v41 = vmax.f32 %v2474_v3, 0.0  ;;  %v1150_v28 = vadd.f32 %v1138_v57, %v6426_v50  ;;  %v1151_v36 = vadd.f32 %v1139_v53, %v6426_v50  ;;  %v2981_v4 = vpack.c.bf16 %v6976_v55, %v6981_v30  ;;  %v9026_v3 = vld [vmem:[#allocation5_spill] sm:$0xff] }
 0x265   : > { %1526 = vrot.lane.b32.xlu2 %v6587_v33, %s5583_s17  ;;  %9025 = vst [vmem:[#allocation15_spill] sm:$0xff] %v6997_v12  ;;  %v1167_v10 = vmax.f32 %v1155_v19, 0.0  ;;  %v1170_v42 = vmax.f32 %v1158_v49, 0.0  ;;  %v1171_v14 = vmax.f32 %v1159_v24, 0.0  ;;  %v2983_v2 = vpack.c.bf16 %v6990_v8, %v6997_v12  ;;  %v9029_v24 = vld [vmem:[#allocation8_spill] sm:$0xff] }
 0x266   : > { %v1162_v54 = vmax.f32 %v1150_v28, 0.0  ;;  %v1163_v26 = vmax.f32 %v1151_v36, 0.0  ;;  %2987 = vst [vmem:[#allocation2 + $0x4e8] sm:$0xff] %v2981_v4  ;;  %v2985_v56 = vpack.c.bf16 %v6974_v11, %v7001_v41  ;;  %v1262_v36 = vlaneseq }
 0x267   : > { %1536 = vrot.lane.b32.xlu0 %v6601_v20, %s5583_s17  ;;  %v1175_v37 = vpack.c.bf16 %v1167_v10, %v1166_v39  ;;  %v1177_v31 = vpack.c.bf16 %v1171_v14, %v1170_v42  ;;  %2989 = vst [vmem:[#allocation2 + $0x4f8] sm:$0xff] %v2983_v2 }
 0x268   : > { %v1173_v50 = vpack.c.bf16 %v1163_v26, %v1162_v54  ;;  %v3696_v44 = vunpack.c.l.b16 %v2985_v56  ;;  %v3697_v35 = vunpack.c.h.b16 %v2985_v56  ;;  %v7039_v42 = vand.u32 127, %v1262_v36  ;;  %v4638_v54 = vld [vmem:[%s8739_s1 + $0x1] ss:$8 sm:$0xf] }
 0x269   : > { %1181 = vst [vmem:[#allocation2 + $0x288] sm:$0xff] %v1175_v37  ;;  %v1281_v26 = vperm.slane %v4638_v54, 1  ;;  %v1280_v2 = vperm.slane %v4638_v54, 0 }
 0x26a   : > { %1183 = vst [vmem:[#allocation2 + $0x298] sm:$0xff] %v1177_v31  ;;  %v3860_v19 = vpack.c.b16 %v3696_v44, %v3696_v44  ;;  %v3861_v57 = vpack.c.b16 %v3697_v35, %v3697_v35  ;;  %vm1264_vm10 = vcmp.lt.s32.totalorder %v7039_v42, 1  ;;  %v1282_v31 = vperm.slane %v4638_v54, 2 }
 0x26b   : > { %1179 = vst [vmem:[#allocation2 + $0x278] sm:$0xff] %v1173_v50  ;;  %v1283_v50 = vperm.slane %v4638_v54, 3  ;;  %vm1402_vm11 = vcmp.lt.s32.totalorder %v7039_v42, 8  ;;  %vm1540_vm12 = vcmp.lt.s32.totalorder %v7039_v42, 9  ;;  %vm1818_vm13 = vcmp.lt.s32.totalorder %v7039_v42, 64 }
 0x26c   : > { %1534 = vrot.lane.b32.xlu1 %v6581_v25, %s5583_s17  ;;  %v7018_v53 = vsel %vm4029_vm9, %v3860_v19, 0  ;;  %v7021_v49 = vsel %vm4029_vm9, %v3861_v57, 0  ;;  %vm1956_vm14 = vcmp.lt.s32.totalorder %v7039_v42, 65  ;;  %vm2234_vm15 = vcmp.lt.s32.totalorder %v7039_v42, 72 }
 0x26d   : > { %1532 = vrot.lane.b32.xlu2 %v9026_v3, %s5583_s17  ;;  %9027 = vst [vmem:[#allocation33_spill] sm:$0xff] %v7018_v53  ;;  %vm2512_vm0 = vcmp.lt.s32.totalorder %v7039_v42, 73 }
 0x26e   : > { %9028 = vst [vmem:[#allocation35_spill] sm:$0xff] %v7021_v49 }
 0x26f   : > { %1590 = vrot.lane.b32.xlu0 %v6481_v13, %s5582_s16 }
 0x274   : > { %1588 = vrot.lane.b32.xlu1 %v6505_v23, %s5582_s16  ;;  %v1243_v39 = vpop.permute.xlu2 %1242 }
 0x275   : > { %1538 = vrot.lane.b32.xlu2 %v9029_v24, %s5583_s17 }
 0x277   : > { %1596 = vrot.lane.b32.xlu0 %v6494_v51, %s5582_s16 }
 0x27c   : > { %1594 = vrot.lane.b32.xlu1 %v6552_v18, %s5582_s16  ;;  %v1249_v10 = vpop.permute.xlu2 %1248 }
 0x27d   : > { %1592 = vrot.lane.b32.xlu2 %v6575_v1, %s5582_s16  ;;  %v1273_v56 = vsel %vm1264_vm10, %v1243_v39, %v1249_v10 }
 0x27e   : > { %v1241_v28 = vpop.permute.xlu0 %1240  ;;  %v1297_v49 = vmul.f32 %v1281_v26, %v1273_v56 }
 0x27f   : > { %1602 = vrot.lane.b32.xlu0 %v6579_v7, %s5582_s16 }
 0x284   : > { %1600 = vrot.lane.b32.xlu1 %v6566_v32, %s5582_s16  ;;  %v1239_v14 = vpop.permute.xlu1 %1238 }
 0x285   : > { %1598 = vrot.lane.b32.xlu2 %v6587_v33, %s5582_s16 }
 0x286   : > { %v1255_v4 = vpop.permute.xlu2 %1254  ;;  %v1247_v37 = vpop.permute.xlu0 %1246 }
 0x287   : > { %1608 = vrot.lane.b32.xlu0 %v6601_v20, %s5582_s16  ;;  %v1270_v44 = vsel %vm1264_vm10, %v1249_v10, %v1255_v4 }
 0x288   : > { %v1298_v53 = vmul.f32 %v1282_v31, %v1270_v44 }
 0x28c   : > { %1606 = vrot.lane.b32.xlu1 %v6581_v25, %s5582_s16  ;;  %v1245_v35 = vpop.permute.xlu1 %1244 }
 0x28d   : > { %1604 = vrot.lane.b32.xlu2 %v9026_v3, %s5582_s16 }
 0x28f   : > { %v1261_v19 = vpop.permute.xlu2 %1260  ;;  %1660 = vrot.lane.b32.xlu0 %v6481_v13, %s5581_s15 }
 0x290   : > { %v1267_v57 = vsel %vm1264_vm10, %v1255_v4, %v1261_v19  ;;  %v1276_v36 = vsel %vm1264_vm10, %v1261_v19, %v1243_v39  ;;  %v1253_v30 = vpop.permute.xlu0 %1252  ;;  %v1272_v39 = vsel %vm1264_vm10, %v1241_v28, %v1247_v37 }
 0x291   : > { %v1296_v54 = vmul.f32 %v1280_v2, %v1276_v36  ;;  %v1299_v52 = vmul.f32 %v1283_v50, %v1267_v57 }
 0x293   : > { %v1304_v12 = vpack.c.bf16 %v1297_v49, %v1296_v54  ;;  %v1305_v27 = vpack.c.bf16 %v1299_v52, %v1298_v53  ;;  %v1269_v49 = vsel %vm1264_vm10, %v1247_v37, %v1253_v30  ;;  %v1293_v53 = vmul.f32 %v1281_v26, %v1272_v39 }
 0x294   : > { %1658 = vrot.lane.b32.xlu1 %v6505_v23, %s5581_s15  ;;  %v1271_v37 = vsel %vm1264_vm10, %v1239_v14, %v1245_v35 }
 0x295   : > { %1310 = vst [vmem:[#allocation2 + $0x260] sm:$0xff] %v1304_v12  ;;  %1610 = vrot.lane.b32.xlu2 %v9029_v24, %s5582_s16  ;;  %v1289_v57 = vmul.f32 %v1281_v26, %v1271_v37  ;;  %v4645_v26 = vld [vmem:[%s8739_s1 + $0x2] ss:$8 sm:$0xf] }
 0x296   : > { %1311 = vst [vmem:[#allocation2 + $0x268] sm:$0xff] %v1305_v27  ;;  %v1251_v13 = vpop.permute.xlu1 %1250  ;;  %v1294_v27 = vmul.f32 %v1282_v31, %v1269_v49 }
 0x297   : > { %v1383_v10 = vpop.permute.xlu2 %1382  ;;  %1666 = vrot.lane.b32.xlu0 %v6494_v51, %s5581_s15 }
 0x298   : > { %v1259_v52 = vpop.permute.xlu0 %1258 }
 0x299   : > { %v1266_v12 = vsel %vm1264_vm10, %v1253_v30, %v1259_v52  ;;  %v1275_v23 = vsel %vm1264_vm10, %v1259_v52, %v1241_v28  ;;  %v1268_v30 = vsel %vm1264_vm10, %v1245_v35, %v1251_v13 }
 0x29a   : > { %v1292_v4 = vmul.f32 %v1280_v2, %v1275_v23  ;;  %v1295_v56 = vmul.f32 %v1283_v50, %v1266_v12  ;;  %v1290_v36 = vmul.f32 %v1282_v31, %v1268_v30  ;;  %v1419_v31 = vperm.slane %v4645_v26, 1 }
 0x29c   : > { %1664 = vrot.lane.b32.xlu1 %v6552_v18, %s5581_s15  ;;  %v1302_v51 = vpack.c.bf16 %v1293_v53, %v1292_v4  ;;  %v1303_v44 = vpack.c.bf16 %v1295_v56, %v1294_v27  ;;  %v9030_v53 = vmax.f32 %v6613_v0, 0.0 }
 0x29d   : > { %1662 = vrot.lane.b32.xlu2 %v6575_v1, %s5581_s15 }
 0x29e   : > { %v1257_v19 = vpop.permute.xlu1 %1256  ;;  %1308 = vst [vmem:[#allocation2 + $0x250] sm:$0xff] %v1302_v51 }
 0x29f   : > { %v1389_v28 = vpop.permute.xlu2 %1388  ;;  %1672 = vrot.lane.b32.xlu0 %v6579_v7, %s5581_s15  ;;  %v1265_v18 = vsel %vm1264_vm10, %v1251_v13, %v1257_v19  ;;  %v1274_v1 = vsel %vm1264_vm10, %v1257_v19, %v1239_v14  ;;  %1309 = vst [vmem:[#allocation2 + $0x258] sm:$0xff] %v1303_v44  ;;  %v9031_v19 = vld [vmem:[#allocation6_spill] sm:$0xff] }
 0x2a0   : > { %v1288_v54 = vmul.f32 %v1280_v2, %v1274_v1  ;;  %v1291_v39 = vmul.f32 %v1283_v50, %v1265_v18  ;;  %v1420_v2 = vperm.slane %v4645_v26, 2 }
 0x2a1   : > { %v1381_v49 = vpop.permute.xlu0 %1380 }
 0x2a2   : > { %v1300_v52 = vpack.c.bf16 %v1289_v57, %v1288_v54  ;;  %v1301_v35 = vpack.c.bf16 %v1291_v39, %v1290_v36 }
 0x2a4   : > { %1306 = vst [vmem:[#allocation2 + $0x240] sm:$0xff] %v1300_v52  ;;  %1670 = vrot.lane.b32.xlu1 %v6566_v32, %s5581_s15  ;;  %v1421_v32 = vperm.slane %v4645_v26, 3 }
 0x2a5   : > { %1668 = vrot.lane.b32.xlu2 %v6587_v33, %s5581_s15  ;;  %1307 = vst [vmem:[#allocation2 + $0x248] sm:$0xff] %v1301_v35  ;;  %v1418_v33 = vperm.slane %v4645_v26, 0 }
 0x2a6   : > { %v1379_v7 = vpop.permute.xlu1 %1378 }
 0x2a7   : > { %v1395_v13 = vpop.permute.xlu2 %1394  ;;  %1678 = vrot.lane.b32.xlu0 %v6601_v20, %s5581_s15  ;;  %v1411_v20 = vsel %vm1402_vm11, %v1383_v10, %v1389_v28 }
 0x2a8   : > { %v1408_v50 = vsel %vm1402_vm11, %v1389_v28, %v1395_v13  ;;  %v1435_v27 = vmul.f32 %v1419_v31, %v1411_v20  ;;  %v9032_v28 = vmax.f32 %v9031_v19, 0.0  ;;  %v9035_v20 = vld [vmem:[#allocation7_spill] sm:$0xff] }
 0x2a9   : > { %v1387_v14 = vpop.permute.xlu0 %1386  ;;  %v1436_v4 = vmul.f32 %v1420_v2, %v1408_v50  ;;  %v9036_v50 = vmax.f32 %v9035_v20, 0.0 }
 0x2aa   : > { %v1410_v57 = vsel %vm1402_vm11, %v1381_v49, %v1387_v14 }
 0x2ab   : > { %v1431_v52 = vmul.f32 %v1419_v31, %v1410_v57  ;;  %v9040_v57 = vmax.f32 %v6650_v5, 0.0 }
 0x2ac   : > { %1676 = vrot.lane.b32.xlu1 %v6581_v25, %s5581_s15 }
 0x2ad   : > { %1674 = vrot.lane.b32.xlu2 %v9026_v3, %s5581_s15 }
 0x2ae   : > { %v1385_v12 = vpop.permute.xlu1 %1384 }
 0x2af   : > { %v1401_v23 = vpop.permute.xlu2 %1400  ;;  %1796 = vrot.lane.b32.xlu0 %v9030_v53, %s5584_s23 }
 0x2b0   : > { %v1405_v25 = vsel %vm1402_vm11, %v1395_v13, %v1401_v23  ;;  %v1414_v3 = vsel %vm1402_vm11, %v1401_v23, %v1383_v10  ;;  %v9033_v10 = vld [vmem:[#allocation10_spill] sm:$0xff]  ;;  %v9037_v23 = vld [vmem:[#allocation9_spill] sm:$0xff] }
 0x2b1   : > { %v1434_v56 = vmul.f32 %v1418_v33, %v1414_v3  ;;  %v1437_v51 = vmul.f32 %v1421_v32, %v1405_v25  ;;  %v1393_v44 = vpop.permute.xlu0 %1392  ;;  %v9034_v1 = vmax.f32 %v9033_v10, 0.0  ;;  %v9038_v53 = vmax.f32 %v9037_v23, 0.0 }
 0x2b2   : > { %v1407_v36 = vsel %vm1402_vm11, %v1387_v14, %v1393_v44  ;;  %v1409_v3 = vsel %vm1402_vm11, %v1379_v7, %v1385_v12 }
 0x2b3   : > { %v1442_v37 = vpack.c.bf16 %v1435_v27, %v1434_v56  ;;  %v1443_v30 = vpack.c.bf16 %v1437_v51, %v1436_v4  ;;  %v1432_v35 = vmul.f32 %v1420_v2, %v1407_v36  ;;  %v9039_v56 = vmax.f32 %v6671_v61, 0.0  ;;  %v9041_v61 = vld [vmem:[#allocation11_spill] sm:$0xff] }
 0x2b4   : > { %1794 = vrot.lane.b32.xlu1 %v9032_v28, %s5584_s23  ;;  %v9042_v36 = vmax.f32 %v9041_v61, 0.0 }
 0x2b5   : > { %1448 = vst [vmem:[#allocation2 + $0x200] sm:$0xff] %v1442_v37  ;;  %1680 = vrot.lane.b32.xlu2 %v9029_v24, %s5581_s15  ;;  %v1427_v37 = vmul.f32 %v1419_v31, %v1409_v3  ;;  %v9043_v31 = vmax.f32 %v6688_v21, 0.0 }
 0x2b6   : > { %1449 = vst [vmem:[#allocation2 + $0x208] sm:$0xff] %v1443_v30  ;;  %v1391_v0 = vpop.permute.xlu1 %1390 }
 0x2b7   : > { %v1521_v18 = vpop.permute.xlu2 %1520  ;;  %1802 = vrot.lane.b32.xlu0 %v9034_v1, %s5584_s23 }
 0x2b9   : > { %v1399_v54 = vpop.permute.xlu0 %1398 }
 0x2ba   : > { %v1404_v39 = vsel %vm1402_vm11, %v1393_v44, %v1399_v54  ;;  %v1413_v24 = vsel %vm1402_vm11, %v1399_v54, %v1381_v49  ;;  %v1406_v49 = vsel %vm1402_vm11, %v1385_v12, %v1391_v0 }
 0x2bb   : > { %v1430_v13 = vmul.f32 %v1418_v33, %v1413_v24  ;;  %v1433_v26 = vmul.f32 %v1421_v32, %v1404_v39  ;;  %v1428_v30 = vmul.f32 %v1420_v2, %v1406_v49  ;;  %v4652_v2 = vld [vmem:[%s8739_s1 + $0x3] ss:$8 sm:$0xf] }
 0x2bc   : > { %1800 = vrot.lane.b32.xlu1 %v9036_v50, %s5584_s23  ;;  %v1557_v5 = vperm.slane %v4652_v2, 1  ;;  %v1558_v39 = vperm.slane %v4652_v2, 2  ;;  %v9044_v24 = vld [vmem:[#allocation12_spill] sm:$0xff]  ;;  %v1556_v21 = vperm.slane %v4652_v2, 0 }
 0x2bd   : > { %1798 = vrot.lane.b32.xlu2 %v9038_v53, %s5584_s23  ;;  %v1440_v14 = vpack.c.bf16 %v1431_v52, %v1430_v13  ;;  %v1441_v25 = vpack.c.bf16 %v1433_v26, %v1432_v35  ;;  %v9045_v52 = vmax.f32 %v9044_v24, 0.0  ;;  %v9046_v35 = vmax.f32 %v6679_v59, 0.0 }
 0x2be   : > { %v1397_v27 = vpop.permute.xlu1 %1396  ;;  %v1559_v13 = vperm.slane %v4652_v2, 3 }
 0x2bf   : > { %v1527_v4 = vpop.permute.xlu2 %1526  ;;  %1446 = vst [vmem:[#allocation2 + $0x1f0] sm:$0xff] %v1440_v14  ;;  %1808 = vrot.lane.b32.xlu0 %v9039_v56, %s5584_s23  ;;  %v1403_v51 = vsel %vm1402_vm11, %v1391_v0, %v1397_v27  ;;  %v1412_v44 = vsel %vm1402_vm11, %v1397_v27, %v1379_v7 }
 0x2c0   : > { %1447 = vst [vmem:[#allocation2 + $0x1f8] sm:$0xff] %v1441_v25  ;;  %v1426_v19 = vmul.f32 %v1418_v33, %v1412_v44  ;;  %v1429_v28 = vmul.f32 %v1421_v32, %v1403_v51  ;;  %v1549_v20 = vsel %vm1540_vm12, %v1521_v18, %v1527_v4  ;;  %v9047_v44 = vld [vmem:[#allocation24_spill] sm:$0xff] }
 0x2c1   : > { %v1519_v10 = vpop.permute.xlu0 %1518  ;;  %v1573_v25 = vmul.f32 %v1557_v5, %v1549_v20 }
 0x2c2   : > { %v1438_v12 = vpack.c.bf16 %v1427_v37, %v1426_v19  ;;  %v1439_v1 = vpack.c.bf16 %v1429_v28, %v1428_v30  ;;  %v9048_v37 = vmax.f32 %v9047_v44, 0.0  ;;  %v9052_v44 = vld [vmem:[#allocation27_spill] sm:$0xff] }
 0x2c4   : > { %1444 = vst [vmem:[#allocation2 + $0x1e0] sm:$0xff] %v1438_v12  ;;  %1806 = vrot.lane.b32.xlu1 %v9040_v57, %s5584_s23 }
 0x2c5   : > { %1804 = vrot.lane.b32.xlu2 %v9042_v36, %s5584_s23  ;;  %1445 = vst [vmem:[#allocation2 + $0x1e8] sm:$0xff] %v1439_v1 }
 0x2c6   : > { %v1517_v0 = vpop.permute.xlu1 %1516  ;;  %v5435_v32 = vld [vmem:[#allocation2 + $0x1ec] sm:$0xf0] }
 0x2c7   : > { %v1533_v7 = vpop.permute.xlu2 %1532  ;;  %1814 = vrot.lane.b32.xlu0 %v9043_v31, %s5584_s23 }
 0x2c8   : > { %v1546_v50 = vsel %vm1540_vm12, %v1527_v4, %v1533_v7 }
 0x2c9   : > { %v1525_v33 = vpop.permute.xlu0 %1524  ;;  %v1574_v3 = vmul.f32 %v1558_v39, %v1546_v50 }
 0x2cb   : > { %v4959_v54 = vld [vmem:[#allocation2 + $0x1e0] sm:$0xf] }
 0x2cc   : > { %1812 = vrot.lane.b32.xlu1 %v9045_v52, %s5584_s23  ;;  %v4960_v26 = vor.u32 %v5435_v32, %v4959_v54 }
 0x2cd   : > { %1810 = vrot.lane.b32.xlu2 %v9046_v35, %s5584_s23 }
 0x2ce   : > { %v1523_v23 = vpop.permute.xlu1 %1522  ;;  %4060 = vmatpush.bf16.msra.mxu1 %v4960_v26 }
 0x2cf   : > { %v1539_v53 = vpop.permute.xlu2 %1538  ;;  %1934 = vrot.lane.b32.xlu0 %v6726_v43, %s5585_s26 }
 0x2d0   : > { %v1543_v59 = vsel %vm1540_vm12, %v1533_v7, %v1539_v53  ;;  %v1552_v14 = vsel %vm1540_vm12, %v1539_v53, %v1521_v18  ;;  %v1548_v18 = vsel %vm1540_vm12, %v1519_v10, %v1525_v33 }
 0x2d1   : > { %v1572_v49 = vmul.f32 %v1556_v21, %v1552_v14  ;;  %v1575_v27 = vmul.f32 %v1559_v13, %v1543_v59  ;;  %v1531_v56 = vpop.permute.xlu0 %1530  ;;  %v1569_v61 = vmul.f32 %v1557_v5, %v1548_v18 }
 0x2d2   : > { %v1545_v28 = vsel %vm1540_vm12, %v1525_v33, %v1531_v56  ;;  %v1547_v33 = vsel %vm1540_vm12, %v1517_v0, %v1523_v23 }
 0x2d3   : > { %v1580_v51 = vpack.c.bf16 %v1573_v25, %v1572_v49  ;;  %v1581_v4 = vpack.c.bf16 %v1575_v27, %v1574_v3  ;;  %v1570_v36 = vmul.f32 %v1558_v39, %v1545_v28  ;;  %v1565_v26 = vmul.f32 %v1557_v5, %v1547_v33  ;;  %v9049_v25 = vld [vmem:[#allocation26_spill] sm:$0xff]  ;;  %v9050_v3 = vld [vmem:[#allocation25_spill] sm:$0xff] }
 0x2d4   : > { %1932 = vrot.lane.b32.xlu1 %v6705_v58, %s5585_s26  ;;  %v9051_v5 = vld [vmem:[#allocation13_spill] sm:$0xff] }
 0x2d5   : > { %1586 = vst [vmem:[#allocation2 + $0x1d0] sm:$0xff] %v1580_v51  ;;  %1816 = vrot.lane.b32.xlu2 %v9048_v37, %s5584_s23  ;;  %v9053_v37 = vld [vmem:[#allocation28_spill] sm:$0xff] }
 0x2d6   : > { %1587 = vst [vmem:[#allocation2 + $0x1d8] sm:$0xff] %v1581_v4  ;;  %v1529_v30 = vpop.permute.xlu1 %1528 }
 0x2d7   : > { %v1593_v19 = vpop.permute.xlu2 %1592  ;;  %1940 = vrot.lane.b32.xlu0 %v6747_v47, %s5585_s26  ;;  %v1544_v54 = vsel %vm1540_vm12, %v1523_v23, %v1529_v30 }
 0x2d8   : > { %v1566_v20 = vmul.f32 %v1558_v39, %v1544_v54 }
 0x2d9   : > { %v1537_v12 = vpop.permute.xlu0 %1536 }
 0x2da   : > { %v1542_v1 = vsel %vm1540_vm12, %v1531_v56, %v1537_v12  ;;  %v1551_v57 = vsel %vm1540_vm12, %v1537_v12, %v1519_v10 }
 0x2db   : > { %v1568_v7 = vmul.f32 %v1556_v21, %v1551_v57  ;;  %v1571_v31 = vmul.f32 %v1559_v13, %v1542_v1 }
 0x2dc   : > { %1938 = vrot.lane.b32.xlu1 %v6741_v34, %s5585_s26  ;;  %v5431_v27 = vld [vmem:[#allocation2 + $0x1cc] sm:$0xf0] }
 0x2dd   : > { %1936 = vrot.lane.b32.xlu2 %v6745_v62, %s5585_s26  ;;  %v1578_v2 = vpack.c.bf16 %v1569_v61, %v1568_v7  ;;  %v1579_v32 = vpack.c.bf16 %v1571_v31, %v1570_v36 }
 0x2de   : > { %v1535_v24 = vpop.permute.xlu1 %1534 }
 0x2df   : > { %v1599_v10 = vpop.permute.xlu2 %1598  ;;  %1584 = vst [vmem:[#allocation2 + $0x1c0] sm:$0xff] %v1578_v2  ;;  %1946 = vrot.lane.b32.xlu0 %v6776_v45, %s5585_s26  ;;  %v1541_v52 = vsel %vm1540_vm12, %v1529_v30, %v1535_v24  ;;  %v1550_v35 = vsel %vm1540_vm12, %v1535_v24, %v1517_v0 }
 0x2e0   : > { %1585 = vst [vmem:[#allocation2 + $0x1c8] sm:$0xff] %v1579_v32  ;;  %v1564_v50 = vmul.f32 %v1556_v21, %v1550_v35  ;;  %v1567_v53 = vmul.f32 %v1559_v13, %v1541_v52  ;;  %v4653_v13 = vld [vmem:[%s8739_s1 + $0x2] ss:$8 sm:$0xf]  ;;  %v1620_v28 = vsel %vm1402_vm11, %v1593_v19, %v1599_v10 }
 0x2e1   : > { %v1591_v59 = vpop.permute.xlu0 %1590  ;;  %v1627_v51 = vperm.slane %v4653_v13, 1  ;;  %v1628_v4 = vperm.slane %v4653_v13, 2  ;;  %v1626_v30 = vperm.slane %v4653_v13, 0  ;;  %v1629_v18 = vperm.slane %v4653_v13, 3 }
 0x2e2   : > { %v1576_v14 = vpack.c.bf16 %v1565_v26, %v1564_v50  ;;  %v1577_v23 = vpack.c.bf16 %v1567_v53, %v1566_v20 }
 0x2e3   : > { %v1643_v7 = vmul.f32 %v1627_v51, %v1620_v28 }
 0x2e4   : > { %1582 = vst [vmem:[#allocation2 + $0x1b0] sm:$0xff] %v1576_v14  ;;  %1944 = vrot.lane.b32.xlu1 %v9049_v25, %s5585_s26 }
 0x2e5   : > { %1942 = vrot.lane.b32.xlu2 %v9050_v3, %s5585_s26  ;;  %1583 = vst [vmem:[#allocation2 + $0x1b8] sm:$0xff] %v1577_v23 }
 0x2e6   : > { %v4943_v49 = vld [vmem:[#allocation2 + $0x1c0] sm:$0xf]  ;;  %v1589_v56 = vpop.permute.xlu1 %1588 }
 0x2e7   : > { %v1605_v0 = vpop.permute.xlu2 %1604  ;;  %1952 = vrot.lane.b32.xlu0 %v9051_v5, %s5585_s26  ;;  %v4944_v39 = vor.u32 %v5431_v27, %v4943_v49 }
 0x2e8   : > { %v1617_v12 = vsel %vm1402_vm11, %v1599_v10, %v1605_v0  ;;  %v9054_v10 = vld [vmem:[#allocation29_spill] sm:$0xff] }
 0x2e9   : > { %v1597_v21 = vpop.permute.xlu0 %1596  ;;  %4061 = vmatpush.bf16.msra.mxu1 %v4944_v39  ;;  %v1644_v31 = vmul.f32 %v1628_v4, %v1617_v12 }
 0x2ec   : > { %1950 = vrot.lane.b32.xlu1 %v9052_v44, %s5585_s26 }
 0x2ed   : > { %1948 = vrot.lane.b32.xlu2 %v9053_v37, %s5585_s26 }
 0x2ee   : > { %v1595_v1 = vpop.permute.xlu1 %1594 }
 0x2ef   : > { %v1611_v57 = vpop.permute.xlu2 %1610  ;;  %2006 = vrot.lane.b32.xlu0 %v6726_v43, %s5584_s23 }
 0x2f0   : > { %v1614_v61 = vsel %vm1402_vm11, %v1605_v0, %v1611_v57  ;;  %v1623_v36 = vsel %vm1402_vm11, %v1611_v57, %v1593_v19  ;;  %v1619_v19 = vsel %vm1402_vm11, %v1591_v59, %v1597_v21 }
 0x2f1   : > { %v1642_v2 = vmul.f32 %v1626_v30, %v1623_v36  ;;  %v1645_v32 = vmul.f32 %v1629_v18, %v1614_v61  ;;  %v1603_v33 = vpop.permute.xlu0 %1602  ;;  %v1639_v14 = vmul.f32 %v1627_v51, %v1619_v19 }
 0x2f2   : > { %v1616_v26 = vsel %vm1402_vm11, %v1597_v21, %v1603_v33  ;;  %v1618_v21 = vsel %vm1402_vm11, %v1589_v56, %v1595_v1 }
 0x2f3   : > { %v1650_v54 = vpack.c.bf16 %v1643_v7, %v1642_v2  ;;  %v1651_v24 = vpack.c.bf16 %v1645_v32, %v1644_v31  ;;  %v1640_v23 = vmul.f32 %v1628_v4, %v1616_v26  ;;  %v1635_v61 = vmul.f32 %v1627_v51, %v1618_v21  ;;  %v4654_v51 = vld [vmem:[%s8739_s1 + $0x1] ss:$8 sm:$0xf] }
 0x2f4   : > { %2004 = vrot.lane.b32.xlu1 %v6705_v58, %s5584_s23 }
 0x2f5   : > { %1656 = vst [vmem:[#allocation2 + $0x230] sm:$0xff] %v1650_v54  ;;  %1954 = vrot.lane.b32.xlu2 %v9054_v10, %s5585_s26 }
 0x2f6   : > { %1657 = vst [vmem:[#allocation2 + $0x238] sm:$0xff] %v1651_v24  ;;  %v1601_v52 = vpop.permute.xlu1 %1600  ;;  %v1699_v24 = vperm.slane %v4654_v51, 3 }
 0x2f7   : > { %v1663_v35 = vpop.permute.xlu2 %1662  ;;  %2012 = vrot.lane.b32.xlu0 %v6747_v47, %s5584_s23  ;;  %v1615_v13 = vsel %vm1402_vm11, %v1595_v1, %v1601_v52 }
 0x2f8   : > { %v1636_v36 = vmul.f32 %v1628_v4, %v1615_v13  ;;  %v1697_v4 = vperm.slane %v4654_v51, 1 }
 0x2f9   : > { %v1609_v20 = vpop.permute.xlu0 %1608 }
 0x2fa   : > { %v1613_v50 = vsel %vm1402_vm11, %v1603_v33, %v1609_v20  ;;  %v1622_v53 = vsel %vm1402_vm11, %v1609_v20, %v1591_v59 }
 0x2fb   : > { %v1638_v49 = vmul.f32 %v1626_v30, %v1622_v53  ;;  %v1641_v27 = vmul.f32 %v1629_v18, %v1613_v50 }
 0x2fc   : > { %2010 = vrot.lane.b32.xlu1 %v6741_v34, %s5584_s23 }
 0x2fd   : > { %2008 = vrot.lane.b32.xlu2 %v6745_v62, %s5584_s23  ;;  %v1648_v0 = vpack.c.bf16 %v1639_v14, %v1638_v49  ;;  %v1649_v39 = vpack.c.bf16 %v1641_v27, %v1640_v23 }
 0x2fe   : > { %v1607_v28 = vpop.permute.xlu1 %1606 }
 0x2ff   : > { %v1669_v59 = vpop.permute.xlu2 %1668  ;;  %1654 = vst [vmem:[#allocation2 + $0x220] sm:$0xff] %v1648_v0  ;;  %2018 = vrot.lane.b32.xlu0 %v6776_v45, %s5584_s23  ;;  %v1612_v12 = vsel %vm1402_vm11, %v1601_v52, %v1607_v28  ;;  %v1621_v57 = vsel %vm1402_vm11, %v1607_v28, %v1589_v56 }
 0x300   : > { %1655 = vst [vmem:[#allocation2 + $0x228] sm:$0xff] %v1649_v39  ;;  %v1634_v7 = vmul.f32 %v1626_v30, %v1621_v57  ;;  %v1637_v31 = vmul.f32 %v1629_v18, %v1612_v12  ;;  %v1698_v30 = vperm.slane %v4654_v51, 2  ;;  %v1696_v18 = vperm.slane %v4654_v51, 0 }
 0x301   : > { %v1661_v2 = vpop.permute.xlu0 %1660  ;;  %v1690_v52 = vsel %vm1264_vm10, %v1663_v35, %v1669_v59 }
 0x302   : > { %v1646_v32 = vpack.c.bf16 %v1635_v61, %v1634_v7  ;;  %v1647_v1 = vpack.c.bf16 %v1637_v31, %v1636_v36  ;;  %v1713_v14 = vmul.f32 %v1697_v4, %v1690_v52 }
 0x304   : > { %1652 = vst [vmem:[#allocation2 + $0x210] sm:$0xff] %v1646_v32  ;;  %2016 = vrot.lane.b32.xlu1 %v9049_v25, %s5584_s23 }
 0x305   : > { %2014 = vrot.lane.b32.xlu2 %v9050_v3, %s5584_s23  ;;  %1653 = vst [vmem:[#allocation2 + $0x218] sm:$0xff] %v1647_v1 }
 0x306   : > { %v1659_v33 = vpop.permute.xlu1 %1658 }
 0x307   : > { %v1675_v54 = vpop.permute.xlu2 %1674  ;;  %2024 = vrot.lane.b32.xlu0 %v9051_v5, %s5584_s23 }
 0x308   : > { %v1687_v19 = vsel %vm1264_vm10, %v1669_v59, %v1675_v54 }
 0x309   : > { %v1667_v56 = vpop.permute.xlu0 %1666  ;;  %v1714_v23 = vmul.f32 %v1698_v30, %v1687_v19 }
 0x30c   : > { %2022 = vrot.lane.b32.xlu1 %v9052_v44, %s5584_s23 }
 0x30d   : > { %2020 = vrot.lane.b32.xlu2 %v9053_v37, %s5584_s23 }
 0x30e   : > { %v1665_v26 = vpop.permute.xlu1 %1664 }
 0x30f   : > { %v1681_v20 = vpop.permute.xlu2 %1680  ;;  %2092 = vrot.lane.b32.xlu0 %v9052_v44, %s5581_s15  ;;  %v1688_v32 = vsel %vm1264_vm10, %v1659_v33, %v1665_v26 }
 0x310   : > { %v1684_v50 = vsel %vm1264_vm10, %v1675_v54, %v1681_v20  ;;  %v1693_v53 = vsel %vm1264_vm10, %v1681_v20, %v1663_v35  ;;  %v1689_v35 = vsel %vm1264_vm10, %v1661_v2, %v1667_v56  ;;  %v1705_v52 = vmul.f32 %v1697_v4, %v1688_v32 }
 0x311   : > { %v1712_v49 = vmul.f32 %v1696_v18, %v1693_v53  ;;  %v1715_v27 = vmul.f32 %v1699_v24, %v1684_v50  ;;  %v1673_v0 = vpop.permute.xlu0 %1672  ;;  %v1709_v12 = vmul.f32 %v1697_v4, %v1689_v35 }
 0x312   : > { %v1686_v28 = vsel %vm1264_vm10, %v1667_v56, %v1673_v0 }
 0x313   : > { %v1720_v39 = vpack.c.bf16 %v1713_v14, %v1712_v49  ;;  %v1721_v21 = vpack.c.bf16 %v1715_v27, %v1714_v23  ;;  %v1710_v57 = vmul.f32 %v1698_v30, %v1686_v28 }
 0x314   : > { %2080 = vrot.lane.b32.xlu1 %v6741_v34, %s5581_s15 }
 0x315   : > { %1726 = vst [vmem:[#allocation2 + $0x2f0] sm:$0xff] %v1720_v39  ;;  %2074 = vrot.lane.b32.xlu2 %v6705_v58, %s5581_s15 }
 0x316   : > { %1727 = vst [vmem:[#allocation2 + $0x2f8] sm:$0xff] %v1721_v21  ;;  %v1671_v44 = vpop.permute.xlu1 %1670 }
 0x317   : > { %v7283_v13 = vpop.permute.xlu2 %1798  ;;  %2862 = vrot.lane.b32.xlu0 %v6974_v11, %s5582_s16  ;;  %v1685_v1 = vsel %vm1264_vm10, %v1665_v26, %v1671_v44 }
 0x318   : > { %v1706_v19 = vmul.f32 %v1698_v30, %v1685_v1 }
 0x319   : > { %v1679_v59 = vpop.permute.xlu0 %1678 }
 0x31a   : > { %v1683_v34 = vsel %vm1264_vm10, %v1673_v0, %v1679_v59  ;;  %v1692_v58 = vsel %vm1264_vm10, %v1679_v59, %v1661_v2  ;;  %v5071_v0 = vld [vmem:[#allocation2 + $0x2c0] sm:$0xf]  ;;  %v5459_v59 = vld [vmem:[#allocation2 + $0x2ac] sm:$0xf0] }
 0x31b   : > { %v1708_v61 = vmul.f32 %v1696_v18, %v1692_v58  ;;  %v1711_v36 = vmul.f32 %v1699_v24, %v1683_v34 }
 0x31c   : > { %2850 = vrot.lane.b32.xlu1 %v6821_v38, %s5582_s16  ;;  %v5467_v49 = vld [vmem:[#allocation2 + $0x2ec] sm:$0xf0] }
 0x31d   : > { %2844 = vrot.lane.b32.xlu2 %v6889_v16, %s5582_s16  ;;  %v1718_v7 = vpack.c.bf16 %v1709_v12, %v1708_v61  ;;  %v1719_v31 = vpack.c.bf16 %v1711_v36, %v1710_v57  ;;  %v9055_v61 = vld [vmem:[#allocation14_spill] sm:$0xff]  ;;  %v5055_v36 = vld [vmem:[#allocation2 + $0x2a0] sm:$0xf] }
 0x31e   : > { %v1677_v54 = vpop.permute.xlu1 %1676  ;;  %v5056_v32 = vor.u32 %v5459_v59, %v5055_v36 }
 0x31f   : > { %v1805_v2 = vpop.permute.xlu2 %1804  ;;  %1724 = vst [vmem:[#allocation2 + $0x2e0] sm:$0xff] %v1718_v7  ;;  %2846 = vrot.lane.b32.xlu0 %v6903_v48, %s5582_s16  ;;  %v1682_v56 = vsel %vm1264_vm10, %v1671_v44, %v1677_v54  ;;  %v1691_v51 = vsel %vm1264_vm10, %v1677_v54, %v1659_v33 }
 0x320   : > { %1725 = vst [vmem:[#allocation2 + $0x2e8] sm:$0xff] %v1719_v31  ;;  %v1704_v20 = vmul.f32 %v1696_v18, %v1691_v51  ;;  %v1707_v50 = vmul.f32 %v1699_v24, %v1682_v56  ;;  %v4661_v18 = vld [vmem:[%s8739_s1 + $0x4] ss:$8 sm:$0xf]  ;;  %v1827_v34 = vsel %vm1818_vm13, %v7283_v13, %v1805_v2 }
 0x321   : > { %v7309_v53 = vpop.permute.xlu0 %1796  ;;  %v7323_v27 = vperm.slane %v4661_v18, 1  ;;  %v7325_v21 = vperm.slane %v4661_v18, 2  ;;  %v7331_v44 = vperm.slane %v4661_v18, 0  ;;  %v7333_v35 = vperm.slane %v4661_v18, 3  ;;  %v5451_v18 = vld [vmem:[#allocation2 + $0x26c] sm:$0xf0] }
 0x322   : > { %v1716_v26 = vpack.c.bf16 %v1705_v52, %v1704_v20  ;;  %v1717_v14 = vpack.c.bf16 %v1707_v50, %v1706_v19  ;;  %v5039_v52 = vld [vmem:[#allocation2 + $0x280] sm:$0xf]  ;;  %v5455_v19 = vld [vmem:[#allocation2 + $0x28c] sm:$0xf0] }
 0x323   : > { %v1851_v1 = vmul.f32 %v7323_v27, %v1827_v34 }
 0x324   : > { %1722 = vst [vmem:[#allocation2 + $0x2d0] sm:$0xff] %v1716_v26  ;;  %2842 = vrot.lane.b32.xlu1 %v6911_v60, %s5582_s16  ;;  %v5040_v26 = vor.u32 %v5455_v19, %v5039_v52 }
 0x325   : > { %2840 = vrot.lane.b32.xlu2 %v6901_v29, %s5582_s16  ;;  %1723 = vst [vmem:[#allocation2 + $0x2d8] sm:$0xff] %v1717_v14  ;;  %v5023_v14 = vld [vmem:[#allocation2 + $0x260] sm:$0xf] }
 0x326   : > { %v5087_v23 = vld [vmem:[#allocation2 + $0x2e0] sm:$0xf]  ;;  %v7315_v33 = vpop.permute.xlu1 %1794 }
 0x327   : > { %v1811_v4 = vpop.permute.xlu2 %1810  ;;  %2860 = vrot.lane.b32.xlu0 %v6990_v8, %s5582_s16  ;;  %v5088_v30 = vor.u32 %v5467_v49, %v5087_v23 }
 0x328   : > { %v1824_v58 = vsel %vm1818_vm13, %v1805_v2, %v1811_v4 }
 0x329   : > { %v1803_v24 = vpop.permute.xlu0 %1802  ;;  %4078 = vmatpush.bf16.msra.mxu2 %v5088_v30  ;;  %v1852_v54 = vmul.f32 %v7325_v21, %v1824_v58 }
 0x32b   : > { %v5463_v39 = vld [vmem:[#allocation2 + $0x2cc] sm:$0xf0] }
 0x32c   : > { %2858 = vrot.lane.b32.xlu1 %v6976_v55, %s5582_s16  ;;  %v5072_v28 = vor.u32 %v5463_v39, %v5071_v0  ;;  %v5024_v39 = vor.u32 %v5451_v18, %v5023_v14  ;;  %v5439_v18 = vld [vmem:[#allocation2 + $0x20c] sm:$0xf0] }
 0x32d   : > { %2848 = vrot.lane.b32.xlu2 %v6914_v63, %s5582_s16 }
 0x32e   : > { %v1801_v12 = vpop.permute.xlu1 %1800  ;;  %4079 = vmatpush.bf16.msra.mxu2 %v5072_v28  ;;  %v5447_v28 = vld [vmem:[#allocation2 + $0x24c] sm:$0xf0] }
 0x32f   : > { %v1817_v57 = vpop.permute.xlu2 %1816  ;;  %2360 = vrot.lane.b32.xlu0 %v9055_v61, %s5582_s16 }
 0x330   : > { %v1821_v7 = vsel %vm1818_vm13, %v1811_v4, %v1817_v57  ;;  %v1830_v31 = vsel %vm1818_vm13, %v1817_v57, %v7283_v13  ;;  %v9056_v13 = vld [vmem:[#allocation30_spill] sm:$0xff]  ;;  %v1826_v4 = vsel %vm1818_vm13, %v7309_v53, %v1803_v24 }
 0x331   : > { %v1850_v2 = vmul.f32 %v7331_v44, %v1830_v31  ;;  %v1853_v56 = vmul.f32 %v7333_v35, %v1821_v7  ;;  %v1809_v51 = vpop.permute.xlu0 %1808  ;;  %v1847_v58 = vmul.f32 %v7323_v27, %v1826_v4 }
 0x332   : > { %4080 = vmatpush.bf16.msra.mxu2 %v5056_v32  ;;  %v1823_v30 = vsel %vm1818_vm13, %v1803_v24, %v1809_v51  ;;  %v5007_v24 = vld [vmem:[#allocation2 + $0x240] sm:$0xf]  ;;  %v1825_v32 = vsel %vm1818_vm13, %v7315_v33, %v1801_v12 }
 0x333   : > { %v1858_v20 = vpack.c.bf16 %v1851_v1, %v1850_v2  ;;  %v1859_v50 = vpack.c.bf16 %v1853_v56, %v1852_v54  ;;  %v1848_v57 = vmul.f32 %v7325_v21, %v1823_v30  ;;  %v5008_v31 = vor.u32 %v5447_v28, %v5007_v24  ;;  %v4991_v2 = vld [vmem:[#allocation2 + $0x220] sm:$0xf] }
 0x334   : > { %2356 = vrot.lane.b32.xlu1 %v6845_v9, %s5582_s16  ;;  %v1843_v52 = vmul.f32 %v7323_v27, %v1825_v32 }
 0x335   : > { %1864 = vst [vmem:[#allocation2 + $0xe0] sm:$0xff] %v1858_v20  ;;  %2354 = vrot.lane.b32.xlu2 %v9056_v13, %s5582_s16 }
 0x336   : > { %1865 = vst [vmem:[#allocation2 + $0xe8] sm:$0xff] %v1859_v50  ;;  %v1807_v23 = vpop.permute.xlu1 %1806  ;;  %4081 = vmatpush.bf16.msra.mxu2 %v5040_v26  ;;  %v5443_v50 = vld [vmem:[#allocation2 + $0x22c] sm:$0xf0] }
 0x337   : > { %v7355_v49 = vpop.permute.xlu2 %1936  ;;  %2374 = vrot.lane.b32.xlu0 %v6945_v17, %s5582_s16  ;;  %v1822_v54 = vsel %vm1818_vm13, %v1801_v12, %v1807_v23  ;;  %v4992_v30 = vor.u32 %v5443_v50, %v4991_v2 }
 0x338   : > { %v1844_v12 = vmul.f32 %v7325_v21, %v1822_v54 }
 0x339   : > { %v1815_v0 = vpop.permute.xlu0 %1814 }
 0x33a   : > { %v1820_v59 = vsel %vm1818_vm13, %v1809_v51, %v1815_v0  ;;  %v1829_v34 = vsel %vm1818_vm13, %v1815_v0, %v7309_v53  ;;  %4082 = vmatpush.bf16.msra.mxu2 %v5024_v39  ;;  %v4975_v39 = vld [vmem:[#allocation2 + $0x200] sm:$0xf] }
 0x33b   : > { %v1846_v36 = vmul.f32 %v7331_v44, %v1829_v34  ;;  %v1849_v7 = vmul.f32 %v7333_v35, %v1820_v59 }
 0x33c   : > { %2372 = vrot.lane.b32.xlu1 %v6919_v22, %s5582_s16 }
 0x33d   : > { %2362 = vrot.lane.b32.xlu2 %v6864_v15, %s5582_s16  ;;  %v1856_v53 = vpack.c.bf16 %v1847_v58, %v1846_v36  ;;  %v1857_v1 = vpack.c.bf16 %v1849_v7, %v1848_v57 }
 0x33e   : > { %v1813_v56 = vpop.permute.xlu1 %1812  ;;  %4083 = vmatpush.bf16.msra.mxu2 %v5008_v31 }
 0x33f   : > { %v1943_v51 = vpop.permute.xlu2 %1942  ;;  %1862 = vst [vmem:[#allocation2 + $0xd0] sm:$0xff] %v1856_v53  ;;  %2370 = vrot.lane.b32.xlu0 %v6926_v40, %s5582_s16  ;;  %v1819_v19 = vsel %vm1818_vm13, %v1807_v23, %v1813_v56  ;;  %v1828_v20 = vsel %vm1818_vm13, %v1813_v56, %v7315_v33  ;;  %v4976_v33 = vor.u32 %v5439_v18, %v4975_v39  ;;  %v4668_v23 = vld [vmem:[%s8739_s1 + $0x5] ss:$8 sm:$0xf] }
 0x340   : > { %1863 = vst [vmem:[#allocation2 + $0xd8] sm:$0xff] %v1857_v1  ;;  %v1842_v26 = vmul.f32 %v7331_v44, %v1828_v20  ;;  %v1845_v14 = vmul.f32 %v7333_v35, %v1819_v19  ;;  %v1973_v28 = vperm.slane %v4668_v23, 1  ;;  %v1974_v59 = vperm.slane %v4668_v23, 2 }
 0x341   : > { %v1935_v4 = vpop.permute.xlu0 %1934  ;;  %v1972_v34 = vperm.slane %v4668_v23, 0  ;;  %v1975_v58 = vperm.slane %v4668_v23, 3  ;;  %v1965_v57 = vsel %vm1956_vm14, %v7355_v49, %v1943_v51 }
 0x342   : > { %v1854_v0 = vpack.c.bf16 %v1843_v52, %v1842_v26  ;;  %v1855_v27 = vpack.c.bf16 %v1845_v14, %v1844_v12  ;;  %4084 = vmatpush.bf16.msra.mxu2 %v4992_v30  ;;  %v1989_v53 = vmul.f32 %v1973_v28, %v1965_v57  ;;  %v4669_v26 = vld [vmem:[%s8739_s1 + $0x4] ss:$8 sm:$0xf] }
 0x344   : > { %1860 = vst [vmem:[#allocation2 + $0xc0] sm:$0xff] %v1854_v0  ;;  %2358 = vrot.lane.b32.xlu1 %v6894_v6, %s5582_s16 }
 0x345   : > { %2352 = vrot.lane.b32.xlu2 %v6896_v46, %s5582_s16  ;;  %1861 = vst [vmem:[#allocation2 + $0xc8] sm:$0xff] %v1855_v27 }
 0x346   : > { %v1933_v21 = vpop.permute.xlu1 %1932  ;;  %4085 = vmatpush.bf16.msra.mxu2 %v4976_v33 }
 0x347   : > { %v1949_v44 = vpop.permute.xlu2 %1948  ;;  %2792 = vrot.lane.b32.xlu0 %v6974_v11, %s5583_s17 }
 0x348   : > { %v1962_v36 = vsel %vm1956_vm14, %v1943_v51, %v1949_v44 }
 0x349   : > { %v1941_v35 = vpop.permute.xlu0 %1940  ;;  %v1990_v1 = vmul.f32 %v1974_v59, %v1962_v36 }
 0x34c   : > { %2780 = vrot.lane.b32.xlu1 %v6821_v38, %s5583_s17 }
 0x34d   : > { %2774 = vrot.lane.b32.xlu2 %v6889_v16, %s5583_s17 }
 0x34e   : > { %v1939_v7 = vpop.permute.xlu1 %1938 }
 0x34f   : > { %v1955_v24 = vpop.permute.xlu2 %1954  ;;  %2722 = vrot.lane.b32.xlu0 %v6974_v11, %s5584_s23  ;;  %v1963_v33 = vsel %vm1956_vm14, %v1933_v21, %v1939_v7 }
 0x350   : > { %v1959_v31 = vsel %vm1956_vm14, %v1949_v44, %v1955_v24  ;;  %v1968_v32 = vsel %vm1956_vm14, %v1955_v24, %v7355_v49  ;;  %v1964_v49 = vsel %vm1956_vm14, %v1935_v4, %v1941_v35  ;;  %v7444_v44 = vperm.slane %v4669_v26, 1 }
 0x351   : > { %v1988_v54 = vmul.f32 %v1972_v34, %v1968_v32  ;;  %v1991_v2 = vmul.f32 %v1975_v58, %v1959_v31  ;;  %v1947_v56 = vpop.permute.xlu0 %1946  ;;  %v1985_v18 = vmul.f32 %v1973_v28, %v1964_v49  ;;  %v1981_v24 = vmul.f32 %v1973_v28, %v1963_v33 }
 0x352   : > { %v1961_v50 = vsel %vm1956_vm14, %v1941_v35, %v1947_v56 }
 0x353   : > { %v1996_v52 = vpack.c.bf16 %v1989_v53, %v1988_v54  ;;  %v1997_v19 = vpack.c.bf16 %v1991_v2, %v1990_v1  ;;  %v1986_v0 = vmul.f32 %v1974_v59, %v1961_v50 }
 0x354   : > { %2710 = vrot.lane.b32.xlu1 %v6821_v38, %s5584_s23 }
 0x355   : > { %2002 = vst [vmem:[#allocation2 + $0xb0] sm:$0xff] %v1996_v52  ;;  %2704 = vrot.lane.b32.xlu2 %v6889_v16, %s5584_s23 }
 0x356   : > { %2003 = vst [vmem:[#allocation2 + $0xb8] sm:$0xff] %v1997_v19  ;;  %v1945_v51 = vpop.permute.xlu1 %1944 }
 0x357   : > { %v7423_v20 = vpop.permute.xlu2 %2008  ;;  %2776 = vrot.lane.b32.xlu0 %v6903_v48, %s5583_s17 }
 0x359   : > { %v1953_v12 = vpop.permute.xlu0 %1952 }
 0x35a   : > { %v1958_v14 = vsel %vm1956_vm14, %v1947_v56, %v1953_v12  ;;  %v1967_v30 = vsel %vm1956_vm14, %v1953_v12, %v1935_v4  ;;  %v1960_v4 = vsel %vm1956_vm14, %v1939_v7, %v1945_v51 }
 0x35b   : > { %v1984_v27 = vmul.f32 %v1972_v34, %v1967_v30  ;;  %v1987_v39 = vmul.f32 %v1975_v58, %v1958_v14  ;;  %v1982_v1 = vmul.f32 %v1974_v59, %v1960_v4 }
 0x35c   : > { %2772 = vrot.lane.b32.xlu1 %v6911_v60, %s5583_s17 }
 0x35d   : > { %2770 = vrot.lane.b32.xlu2 %v6901_v29, %s5583_s17  ;;  %v1994_v35 = vpack.c.bf16 %v1985_v18, %v1984_v27  ;;  %v1995_v23 = vpack.c.bf16 %v1987_v39, %v1986_v0  ;;  %v7491_v27 = vperm.slane %v4669_v26, 0  ;;  %v7493_v39 = vperm.slane %v4669_v26, 3 }
 0x35e   : > { %v1951_v57 = vpop.permute.xlu1 %1950 }
 0x35f   : > { %v2015_v36 = vpop.permute.xlu2 %2014  ;;  %2000 = vst [vmem:[#allocation2 + $0xa0] sm:$0xff] %v1994_v35  ;;  %2790 = vrot.lane.b32.xlu0 %v6990_v8, %s5583_s17  ;;  %v1957_v31 = vsel %vm1956_vm14, %v1945_v51, %v1951_v57  ;;  %v1966_v32 = vsel %vm1956_vm14, %v1951_v57, %v1933_v21  ;;  %v2044_v21 = vperm.slane %v4669_v26, 2 }
 0x360   : > { %v2036_v53 = vsel %vm1818_vm13, %v7423_v20, %v2015_v36  ;;  %2001 = vst [vmem:[#allocation2 + $0xa8] sm:$0xff] %v1995_v23  ;;  %v1980_v7 = vmul.f32 %v1972_v34, %v1966_v32  ;;  %v1983_v54 = vmul.f32 %v1975_v58, %v1957_v31 }
 0x361   : > { %v7458_v2 = vmul.f32 %v7444_v44, %v2036_v53  ;;  %v2007_v56 = vpop.permute.xlu0 %2006 }
 0x362   : > { %v1992_v52 = vpack.c.bf16 %v1981_v24, %v1980_v7  ;;  %v1993_v28 = vpack.c.bf16 %v1983_v54, %v1982_v1 }
 0x364   : > { %1998 = vst [vmem:[#allocation2 + $0x90] sm:$0xff] %v1992_v52  ;;  %2788 = vrot.lane.b32.xlu1 %v6976_v55, %s5583_s17 }
 0x365   : > { %2778 = vrot.lane.b32.xlu2 %v6914_v63, %s5583_s17  ;;  %1999 = vst [vmem:[#allocation2 + $0x98] sm:$0xff] %v1993_v28 }
 0x366   : > { %v2005_v19 = vpop.permute.xlu1 %2004 }
 0x367   : > { %v7464_v51 = vpop.permute.xlu2 %2020  ;;  %2582 = vrot.lane.b32.xlu0 %v6974_v11, %s5586_s13 }
 0x368   : > { %v2033_v59 = vsel %vm1818_vm13, %v2015_v36, %v7464_v51 }
 0x369   : > { %v7471_v34 = vmul.f32 %v2044_v21, %v2033_v59  ;;  %v2013_v58 = vpop.permute.xlu0 %2012 }
 0x36a   : > { %v2035_v18 = vsel %vm1818_vm13, %v2007_v56, %v2013_v58 }
 0x36b   : > { %v2055_v4 = vmul.f32 %v7444_v44, %v2035_v18 }
 0x36c   : > { %2570 = vrot.lane.b32.xlu1 %v6821_v38, %s5586_s13 }
 0x36d   : > { %2564 = vrot.lane.b32.xlu2 %v6889_v16, %s5586_s13 }
 0x36e   : > { %v2011_v49 = vpop.permute.xlu1 %2010 }
 0x36f   : > { %v2075_v50 = vpop.permute.xlu2 %2074  ;;  %2706 = vrot.lane.b32.xlu0 %v6903_v48, %s5584_s23  ;;  %v2034_v32 = vsel %vm1818_vm13, %v2005_v19, %v2011_v49 }
 0x370   : > { %v2051_v52 = vmul.f32 %v7444_v44, %v2034_v32 }
 0x371   : > { %v2019_v12 = vpop.permute.xlu0 %2018 }
 0x372   : > { %v2032_v0 = vsel %vm1818_vm13, %v2013_v58, %v2019_v12 }
 0x373   : > { %v2056_v57 = vmul.f32 %v2044_v21, %v2032_v0 }
 0x374   : > { %2702 = vrot.lane.b32.xlu1 %v6911_v60, %s5584_s23 }
 0x375   : > { %2700 = vrot.lane.b32.xlu2 %v6901_v29, %s5584_s23 }
 0x376   : > { %v2017_v14 = vpop.permute.xlu1 %2016 }
 0x377   : > { %v7483_v30 = vpop.permute.xlu2 %2844  ;;  %2720 = vrot.lane.b32.xlu0 %v6990_v8, %s5584_s23  ;;  %v2031_v53 = vsel %vm1818_vm13, %v2011_v49, %v2017_v14 }
 0x378   : > { %v2052_v28 = vmul.f32 %v2044_v21, %v2031_v53  ;;  %v5401_v53 = vld [vmem:[#allocation2 + $0xe4] sm:$0xf] }
 0x379   : > { %v2025_v33 = vpop.permute.xlu0 %2024 }
 0x37a   : > { %v2029_v35 = vsel %vm1818_vm13, %v2019_v12, %v2025_v33  ;;  %v2038_v23 = vsel %vm1818_vm13, %v2025_v33, %v2007_v56  ;;  %v4670_v12 = vld [vmem:[%s8739_s1 + $0x1] ss:$8 sm:$0xf] }
 0x37b   : > { %v2054_v36 = vmul.f32 %v7491_v27, %v2038_v23  ;;  %v2057_v24 = vmul.f32 %v7493_v39, %v2029_v35  ;;  %v7535_v44 = vperm.slane %v4670_v12, 1 }
 0x37c   : > { %2718 = vrot.lane.b32.xlu1 %v6976_v55, %s5584_s23 }
 0x37d   : > { %2708 = vrot.lane.b32.xlu2 %v6914_v63, %s5584_s23  ;;  %v2064_v26 = vpack.c.bf16 %v2055_v4, %v2054_v36  ;;  %v2065_v31 = vpack.c.bf16 %v2057_v24, %v2056_v57  ;;  %v4691_v36 = vld [vmem:[%s8739_s1 + $0x2] ss:$8 sm:$0xf] }
 0x37e   : > { %v2023_v1 = vpop.permute.xlu1 %2022 }
 0x37f   : > { %v7510_v7 = vpop.permute.xlu2 %2840  ;;  %2070 = vst [vmem:[#allocation2 + $0x100] sm:$0xff] %v2064_v26  ;;  %2566 = vrot.lane.b32.xlu0 %v6903_v48, %s5586_s13  ;;  %v2028_v54 = vsel %vm1818_vm13, %v2017_v14, %v2023_v1  ;;  %v2037_v56 = vsel %vm1818_vm13, %v2023_v1, %v2005_v19  ;;  %v7526_v14 = vperm.slane %v4670_v12, 0  ;;  %v4831_v26 = vld [vmem:[#allocation2 + $0xe0] sm:$0xf] }
 0x380   : > { %2071 = vst [vmem:[#allocation2 + $0x108] sm:$0xff] %v2065_v31  ;;  %v2050_v59 = vmul.f32 %v7491_v27, %v2037_v56  ;;  %v2053_v58 = vmul.f32 %v7493_v39, %v2028_v54  ;;  %v2878_v31 = vperm.slane %v4691_v36, 0 }
 0x381   : > { %v7521_v49 = vpop.permute.xlu0 %2092 }
 0x382   : > { %v2062_v18 = vpack.c.bf16 %v2051_v52, %v2050_v59  ;;  %v2063_v0 = vpack.c.bf16 %v2053_v58, %v2052_v28  ;;  %v2107_v19 = vsel %vm1264_vm10, %v7521_v49, %v2075_v50  ;;  %v5399_v28 = vld [vmem:[#allocation2 + $0xcc] sm:$0xf0]  ;;  %v4817_v59 = vld [vmem:[#allocation2 + $0xd0] sm:$0xf0] }
 0x383   : > { %v2120_v35 = vmul.f32 %v7526_v14, %v2107_v19  ;;  %v4815_v19 = vld [vmem:[#allocation2 + $0xc0] sm:$0xf] }
 0x384   : > { %2068 = vst [vmem:[#allocation2 + $0xf0] sm:$0xff] %v2062_v18  ;;  %2562 = vrot.lane.b32.xlu1 %v6911_v60, %s5586_s13 }
 0x385   : > { %2560 = vrot.lane.b32.xlu2 %v6901_v29, %s5586_s13  ;;  %2069 = vst [vmem:[#allocation2 + $0xf8] sm:$0xff] %v2063_v0 }
 0x386   : > { %v7537_v21 = vpop.permute.xlu1 %2080 }
 0x387   : > { %v7539_v33 = vpop.permute.xlu2 %2848  ;;  %2580 = vrot.lane.b32.xlu0 %v6990_v8, %s5586_s13  ;;  %v2104_v23 = vsel %vm1264_vm10, %v2075_v50, %v7537_v21  ;;  %v2879_v50 = vperm.slane %v4691_v36, 1 }
 0x388   : > { %9057 = vst [vmem:[#allocation18_spill] sm:$0xff] %v7539_v33  ;;  %v2121_v4 = vmul.f32 %v7535_v44, %v2104_v23 }
 0x389   : > { %v7548_v57 = vpop.permute.xlu0 %2862 }
 0x38a   : > { %v2132_v24 = vpack.c.bf16 %v2121_v4, %v2120_v35  ;;  %v2875_v54 = vsel %vm1402_vm11, %v7548_v57, %v7483_v30  ;;  %v5397_v35 = vld [vmem:[#allocation2 + $0xc4] sm:$0xf]  ;;  %v4816_v4 = vor.u32 %v5399_v28, %v4815_v19 }
 0x38b   : > { %v5403_v32 = vld [vmem:[#allocation2 + $0xec] sm:$0xf0]  ;;  %v4833_v1 = vld [vmem:[#allocation2 + $0xf0] sm:$0xf0]  ;;  %v2894_v18 = vmul.f32 %v2878_v31, %v2875_v54  ;;  %v4820_v36 = vor.u32 %v5397_v35, %v4817_v59 }
 0x38c   : > { %2578 = vrot.lane.b32.xlu1 %v6976_v55, %s5586_s13  ;;  %2138 = vst [vmem:[#allocation2 + $0x3f0] sm:$0xff] %v2132_v24  ;;  %v4832_v56 = vor.u32 %v5403_v32, %v4831_v26  ;;  %v4836_v52 = vor.u32 %v5401_v53, %v4833_v1  ;;  %v4799_v26 = vld [vmem:[#allocation2 + $0xa0] sm:$0xf]  ;;  %v5393_v32 = vld [vmem:[#allocation2 + $0xa4] sm:$0xf] }
 0x38d   : > { %2568 = vrot.lane.b32.xlu2 %v6914_v63, %s5586_s13  ;;  %v5395_v1 = vld [vmem:[#allocation2 + $0xac] sm:$0xf0]  ;;  %v4801_v54 = vld [vmem:[#allocation2 + $0xb0] sm:$0xf0] }
 0x38e   : > { %v7561_v58 = vpop.permute.xlu1 %2850  ;;  %4042 = vmatpush.bf16.msra.mxu0 %v4832_v56  ;;  %4150 = vmatpush.bf16.msrb.mxu2 %v4836_v52  ;;  %v4804_v56 = vor.u32 %v5393_v32, %v4801_v54 }
 0x38f   : > { %v7563_v12 = vpop.permute.xlu2 %2354  ;;  %v2872_v0 = vsel %vm1402_vm11, %v7483_v30, %v7561_v58  ;;  %2290 = vrot.lane.b32.xlu0 %v9055_v61, %s5584_s23  ;;  %v4800_v30 = vor.u32 %v5395_v1, %v4799_v26 }
 0x390   : > { %v2895_v23 = vmul.f32 %v2879_v50, %v2872_v0 }
 0x391   : > { %v7571_v24 = vpop.permute.xlu0 %2846 }
 0x392   : > { %4043 = vmatpush.bf16.msra.mxu0 %v4816_v4  ;;  %4151 = vmatpush.bf16.msrb.mxu2 %v4820_v36  ;;  %v2902_v53 = vpack.c.bf16 %v2895_v23, %v2894_v18  ;;  %v2870_v23 = vsel %vm1402_vm11, %v7510_v7, %v7571_v24 }
 0x393   : > { %v5499_v36 = vld [vmem:[#allocation2 + $0x3ec] sm:$0xf0] }
 0x394   : > { %2286 = vrot.lane.b32.xlu1 %v6845_v9, %s5584_s23  ;;  %2908 = vst [vmem:[#allocation2 + $0x3e0] sm:$0xff] %v2902_v53  ;;  %v2887_v53 = vmul.f32 %v2879_v50, %v2870_v23 }
 0x395   : > { %2284 = vrot.lane.b32.xlu2 %v9056_v13, %s5584_s23 }
 0x396   : > { %v2843_v52 = vpop.permute.xlu1 %2842  ;;  %4044 = vmatpush.bf16.msra.mxu0 %v4800_v30  ;;  %4152 = vmatpush.bf16.msrb.mxu2 %v4804_v56 }
 0x397   : > { %v7577_v28 = vpop.permute.xlu2 %2362  ;;  %v2871_v59 = vsel %vm1402_vm11, %v2843_v52, %v7539_v33  ;;  %2304 = vrot.lane.b32.xlu0 %v6945_v17, %s5584_s23  ;;  %v4785_v33 = vld [vmem:[#allocation2 + $0x90] sm:$0xf0] }
 0x398   : > { %v2891_v19 = vmul.f32 %v2879_v50, %v2871_v59  ;;  %v4679_v50 = vld [vmem:[%s8739_s1 + $0x2] ss:$8 sm:$0xf] }
 0x399   : > { %v7584_v18 = vpop.permute.xlu0 %2860 }
 0x39a   : > { %9058 = vst [vmem:[#allocation34_spill] sm:$0xff] %v7584_v18  ;;  %v2874_v0 = vsel %vm1402_vm11, %v7584_v18, %v2843_v52 }
 0x39b   : > { %v2890_v35 = vmul.f32 %v2878_v31, %v2874_v0  ;;  %v5215_v4 = vld [vmem:[#allocation2 + $0x3e0] sm:$0xf]  ;;  %v2391_v0 = vperm.slane %v4679_v50, 1 }
 0x39c   : > { %2302 = vrot.lane.b32.xlu1 %v6919_v22, %s5584_s23  ;;  %v5216_v32 = vor.u32 %v5499_v36, %v5215_v4 }
 0x39d   : > { %2292 = vrot.lane.b32.xlu2 %v6864_v15, %s5584_s23  ;;  %v2900_v26 = vpack.c.bf16 %v2891_v19, %v2890_v35 }
 0x39e   : > { %v7597_v1 = vpop.permute.xlu1 %2858  ;;  %4096 = vmatpush.bf16.msra.mxu3 %v5216_v32 }
 0x39f   : > { %v2353_v54 = vpop.permute.xlu2 %2352  ;;  %2906 = vst [vmem:[#allocation2 + $0x3d0] sm:$0xff] %v2900_v26  ;;  %v2873_v30 = vsel %vm1402_vm11, %v7597_v1, %v7510_v7  ;;  %2218 = vrot.lane.b32.xlu0 %v9055_v61, %s5586_s13 }
 0x3a0   : > { %v2886_v56 = vmul.f32 %v2878_v31, %v2873_v30  ;;  %v2390_v31 = vperm.slane %v4679_v50, 0 }
 0x3a1   : > { %v7605_v52 = vpop.permute.xlu0 %2360 }
 0x3a2   : > { %9059 = vst [vmem:[#allocation20_spill] sm:$0xff] %v7605_v52  ;;  %v2898_v59 = vpack.c.bf16 %v2887_v53, %v2886_v56  ;;  %v2383_v36 = vsel %vm1402_vm11, %v7563_v12, %v7605_v52 }
 0x3a3   : > { %v2403_v53 = vmul.f32 %v2391_v0, %v2383_v36  ;;  %v4690_v36 = vld [vmem:[%s8739_s1 + $0x3] ss:$8 sm:$0xf] }
 0x3a4   : > { %2904 = vst [vmem:[#allocation2 + $0x3c0] sm:$0xff] %v2898_v59  ;;  %2214 = vrot.lane.b32.xlu1 %v6845_v9, %s5586_s13 }
 0x3a5   : > { %2212 = vrot.lane.b32.xlu2 %v9056_v13, %s5586_s13 }
 0x3a6   : > { %v2357_v7 = vpop.permute.xlu1 %2356  ;;  %v5495_v23 = vld [vmem:[#allocation2 + $0x3cc] sm:$0xf0] }
 0x3a7   : > { %v2775_v19 = vpop.permute.xlu2 %2774  ;;  %v2384_v61 = vsel %vm1402_vm11, %v2357_v7, %v7577_v28  ;;  %2232 = vrot.lane.b32.xlu0 %v6945_v17, %s5586_s13 }
 0x3a8   : > { %v2407_v4 = vmul.f32 %v2391_v0, %v2384_v61 }
 0x3a9   : > { %v7619_v35 = vpop.permute.xlu0 %2374 }
 0x3aa   : > { %v2387_v9 = vsel %vm1402_vm11, %v7619_v35, %v2357_v7 }
 0x3ab   : > { %v2406_v13 = vmul.f32 %v2390_v31, %v2387_v9  ;;  %v5199_v26 = vld [vmem:[#allocation2 + $0x3c0] sm:$0xf] }
 0x3ac   : > { %2230 = vrot.lane.b32.xlu1 %v6919_v22, %s5586_s13  ;;  %v5200_v32 = vor.u32 %v5495_v23, %v5199_v26 }
 0x3ad   : > { %2220 = vrot.lane.b32.xlu2 %v6864_v15, %s5586_s13  ;;  %v2414_v17 = vpack.c.bf16 %v2407_v4, %v2406_v13 }
 0x3ae   : > { %v7632_v30 = vpop.permute.xlu1 %2372  ;;  %4097 = vmatpush.bf16.msra.mxu3 %v5200_v32  ;;  %v2808_v32 = vperm.slane %v4690_v36, 0 }
 0x3af   : > { %v2705_v56 = vpop.permute.xlu2 %2704  ;;  %2420 = vst [vmem:[#allocation2 + $0x3b0] sm:$0xff] %v2414_v17  ;;  %v2386_v59 = vsel %vm1402_vm11, %v7632_v30, %v7563_v12  ;;  %2300 = vrot.lane.b32.xlu0 %v6926_v40, %s5584_s23 }
 0x3b0   : > { %v2402_v22 = vmul.f32 %v2390_v31, %v2386_v59 }
 0x3b1   : > { %v7640_v50 = vpop.permute.xlu0 %2370 }
 0x3b2   : > { %9060 = vst [vmem:[#allocation21_spill] sm:$0xff] %v7640_v50  ;;  %v2412_v15 = vpack.c.bf16 %v2403_v53, %v2402_v22  ;;  %v2385_v7 = vsel %vm1402_vm11, %v7640_v50, %v2353_v54 }
 0x3b3   : > { %v2398_v9 = vmul.f32 %v2390_v31, %v2385_v7 }
 0x3b4   : > { %2418 = vst [vmem:[#allocation2 + $0x3a0] sm:$0xff] %v2412_v15  ;;  %2288 = vrot.lane.b32.xlu1 %v6894_v6, %s5584_s23 }
 0x3b5   : > { %2282 = vrot.lane.b32.xlu2 %v6896_v46, %s5584_s23 }
 0x3b6   : > { %v7649_v61 = vpop.permute.xlu1 %2358  ;;  %v5491_v26 = vld [vmem:[#allocation2 + $0x3ac] sm:$0xf0] }
 0x3b7   : > { %9061 = vst [vmem:[#allocation36_spill] sm:$0xff] %v7649_v61  ;;  %v7651_v12 = vpop.permute.xlu2 %2770  ;;  %v2382_v23 = vsel %vm1402_vm11, %v2353_v54, %v7649_v61  ;;  %2652 = vrot.lane.b32.xlu0 %v6974_v11, %s5585_s26  ;;  %v2809_v54 = vperm.slane %v4690_v36, 1 }
 0x3b8   : > { %v2399_v4 = vmul.f32 %v2391_v0, %v2382_v23 }
 0x3b9   : > { %v7658_v13 = vpop.permute.xlu0 %2792 }
 0x3ba   : > { %9062 = vst [vmem:[#allocation19_spill] sm:$0xff] %v7658_v13  ;;  %v2410_v17 = vpack.c.bf16 %v2399_v4, %v2398_v9  ;;  %v2805_v31 = vsel %vm1540_vm12, %v7658_v13, %v2775_v19  ;;  %v4689_v4 = vld [vmem:[%s8739_s1 + $0x4] ss:$8 sm:$0xf]  ;;  %v5119_v13 = vld [vmem:[#allocation2 + $0x320] sm:$0xf] }
 0x3bb   : > { %v5183_v53 = vld [vmem:[#allocation2 + $0x3a0] sm:$0xf]  ;;  %v2824_v15 = vmul.f32 %v2808_v32, %v2805_v31 }
 0x3bc   : > { %2640 = vrot.lane.b32.xlu1 %v6821_v38, %s5585_s26  ;;  %2416 = vst [vmem:[#allocation2 + $0x390] sm:$0xff] %v2410_v17  ;;  %v5184_v0 = vor.u32 %v5491_v26, %v5183_v53  ;;  %v7684_v26 = vperm.slane %v4689_v4, 0 }
 0x3bd   : > { %2634 = vrot.lane.b32.xlu2 %v6889_v16, %s5585_s26 }
 0x3be   : > { %v7670_v59 = vpop.permute.xlu1 %2780  ;;  %4098 = vmatpush.bf16.msra.mxu3 %v5184_v0 }
 0x3bf   : > { %9063 = vst [vmem:[#allocation37_spill] sm:$0xff] %v7670_v59  ;;  %v7672_v22 = vpop.permute.xlu2 %2778  ;;  %v2802_v7 = vsel %vm1540_vm12, %v2775_v19, %v7670_v59  ;;  %2228 = vrot.lane.b32.xlu0 %v6926_v40, %s5586_s13  ;;  %v7693_v40 = vperm.slane %v4689_v4, 1 }
 0x3c0   : > { %9064 = vst [vmem:[#allocation38_spill] sm:$0xff] %v7672_v22  ;;  %v2825_v9 = vmul.f32 %v2809_v54, %v2802_v7 }
 0x3c1   : > { %v7679_v23 = vpop.permute.xlu0 %2722 }
 0x3c2   : > { %v2832_v36 = vpack.c.bf16 %v2825_v9, %v2824_v15  ;;  %v2735_v17 = vsel %vm1818_vm13, %v7679_v23, %v2705_v56 }
 0x3c3   : > { %v2754_v53 = vmul.f32 %v7684_v26, %v2735_v17  ;;  %v5487_v9 = vld [vmem:[#allocation2 + $0x38c] sm:$0xf0] }
 0x3c4   : > { %2216 = vrot.lane.b32.xlu1 %v6894_v6, %s5586_s13  ;;  %2838 = vst [vmem:[#allocation2 + $0x380] sm:$0xff] %v2832_v36 }
 0x3c5   : > { %2210 = vrot.lane.b32.xlu2 %v6896_v46, %s5586_s13 }
 0x3c6   : > { %v7695_v19 = vpop.permute.xlu1 %2710 }
 0x3c7   : > { %v2565_v31 = vpop.permute.xlu2 %2564  ;;  %v2732_v0 = vsel %vm1818_vm13, %v2705_v56, %v7695_v19  ;;  %2510 = vrot.lane.b32.xlu0 %v6974_v11, %s5587_s6 }
 0x3c8   : > { %v2755_v6 = vmul.f32 %v7693_v40, %v2732_v0 }
 0x3c9   : > { %v7704_v15 = vpop.permute.xlu0 %2776 }
 0x3ca   : > { %9065 = vst [vmem:[#allocation39_spill] sm:$0xff] %v7704_v15  ;;  %v2762_v46 = vpack.c.bf16 %v2755_v6, %v2754_v53 }
 0x3cb   : > { %v5167_v7 = vld [vmem:[#allocation2 + $0x380] sm:$0xf] }
 0x3cc   : > { %2498 = vrot.lane.b32.xlu1 %v6821_v38, %s5587_s6  ;;  %2768 = vst [vmem:[#allocation2 + $0x1a0] sm:$0xff] %v2762_v46  ;;  %v5168_v4 = vor.u32 %v5487_v9, %v5167_v7  ;;  %v2800_v7 = vsel %vm1540_vm12, %v7651_v12, %v7704_v15 }
 0x3cd   : > { %2492 = vrot.lane.b32.xlu2 %v6889_v16, %s5587_s6  ;;  %v2817_v50 = vmul.f32 %v2809_v54, %v2800_v7 }
 0x3ce   : > { %v2773_v56 = vpop.permute.xlu1 %2772  ;;  %4099 = vmatpush.bf16.msra.mxu3 %v5168_v4  ;;  %v5427_v4 = vld [vmem:[#allocation2 + $0x1ac] sm:$0xf0] }
 0x3cf   : > { %v7710_v36 = vpop.permute.xlu2 %2700  ;;  %v2801_v17 = vsel %vm1540_vm12, %v2773_v56, %v7672_v22  ;;  %2636 = vrot.lane.b32.xlu0 %v6903_v48, %s5585_s26 }
 0x3d0   : > { %v2821_v6 = vmul.f32 %v2809_v54, %v2801_v17  ;;  %v4687_v54 = vld [vmem:[%s8739_s1 + $0x6] ss:$8 sm:$0xf] }
 0x3d1   : > { %v7717_v53 = vpop.permute.xlu0 %2790 }
 0x3d2   : > { %9066 = vst [vmem:[#allocation22_spill] sm:$0xff] %v7717_v53  ;;  %v2804_v0 = vsel %vm1540_vm12, %v7717_v53, %v2773_v56 }
 0x3d3   : > { %v2820_v46 = vmul.f32 %v2808_v32, %v2804_v0  ;;  %v4927_v9 = vld [vmem:[#allocation2 + $0x1a0] sm:$0xf] }
 0x3d4   : > { %2632 = vrot.lane.b32.xlu1 %v6911_v60, %s5585_s26  ;;  %v4928_v61 = vor.u32 %v5427_v4, %v4927_v9 }
 0x3d5   : > { %2630 = vrot.lane.b32.xlu2 %v6901_v29, %s5585_s26  ;;  %v2830_v22 = vpack.c.bf16 %v2821_v6, %v2820_v46 }
 0x3d6   : > { %v7730_v59 = vpop.permute.xlu1 %2788  ;;  %4062 = vmatpush.bf16.msra.mxu1 %v4928_v61 }
 0x3d7   : > { %9067 = vst [vmem:[#allocation40_spill] sm:$0xff] %v7730_v59  ;;  %v7732_v56 = vpop.permute.xlu2 %2708  ;;  %v2803_v17 = vsel %vm1540_vm12, %v7730_v59, %v7651_v12  ;;  %2650 = vrot.lane.b32.xlu0 %v6990_v8, %s5585_s26  ;;  %v7755_v12 = vperm.slane %v4687_v54, 1 }
 0x3d8   : > { %9068 = vst [vmem:[#allocation23_spill] sm:$0xff] %v7732_v56  ;;  %v2816_v0 = vmul.f32 %v2808_v32, %v2803_v17 }
 0x3d9   : > { %2836 = vst [vmem:[#allocation2 + $0x370] sm:$0xff] %v2830_v22  ;;  %v7740_v15 = vpop.permute.xlu0 %2582  ;;  %v7746_v22 = vperm.slane %v4687_v54, 0 }
 0x3da   : > { %9069 = vst [vmem:[#allocation41_spill] sm:$0xff] %v7740_v15  ;;  %v2828_v6 = vpack.c.bf16 %v2817_v50, %v2816_v0  ;;  %v2595_v61 = vsel %vm2234_vm15, %v7740_v15, %v2565_v31 }
 0x3db   : > { %v2614_v46 = vmul.f32 %v7746_v22, %v2595_v61  ;;  %v5135_v61 = vld [vmem:[#allocation2 + $0x340] sm:$0xf] }
 0x3dc   : > { %2834 = vst [vmem:[#allocation2 + $0x360] sm:$0xff] %v2828_v6  ;;  %2648 = vrot.lane.b32.xlu1 %v6976_v55, %s5585_s26 }
 0x3dd   : > { %2638 = vrot.lane.b32.xlu2 %v6914_v63, %s5585_s26 }
 0x3de   : > { %v7757_v32 = vpop.permute.xlu1 %2570 }
 0x3df   : > { %9070 = vst [vmem:[#allocation42_spill] sm:$0xff] %v7757_v32  ;;  %v7759_v50 = vpop.permute.xlu2 %2560  ;;  %v2592_v7 = vsel %vm2234_vm15, %v2565_v31, %v7757_v32  ;;  %2494 = vrot.lane.b32.xlu0 %v6903_v48, %s5587_s6  ;;  %v5479_v31 = vld [vmem:[#allocation2 + $0x34c] sm:$0xf0] }
 0x3e0   : > { %v2615_v9 = vmul.f32 %v7755_v12, %v2592_v7  ;;  %v5483_v17 = vld [vmem:[#allocation2 + $0x36c] sm:$0xf0] }
 0x3e1   : > { %v7768_v4 = vpop.permute.xlu0 %2706  ;;  %v5475_v32 = vld [vmem:[#allocation2 + $0x32c] sm:$0xf0] }
 0x3e2   : > { %v2622_v0 = vpack.c.bf16 %v2615_v9, %v2614_v46  ;;  %v5136_v46 = vor.u32 %v5479_v31, %v5135_v61  ;;  %v5120_v31 = vor.u32 %v5475_v32, %v5119_v13  ;;  %v4961_v13 = vld [vmem:[#allocation2 + $0x1f0] sm:$0xf0] }
 0x3e3   : > { %v5151_v54 = vld [vmem:[#allocation2 + $0x360] sm:$0xf] }
 0x3e4   : > { %2490 = vrot.lane.b32.xlu1 %v6911_v60, %s5587_s6  ;;  %2628 = vst [vmem:[#allocation2 + $0x80] sm:$0xff] %v2622_v0  ;;  %v5152_v6 = vor.u32 %v5483_v17, %v5151_v54 }
 0x3e5   : > { %2488 = vrot.lane.b32.xlu2 %v6901_v29, %s5587_s6 }
 0x3e6   : > { %v2703_v59 = vpop.permute.xlu1 %2702  ;;  %4100 = vmatpush.bf16.msra.mxu3 %v5152_v6  ;;  %v5391_v6 = vld [vmem:[#allocation2 + $0x8c] sm:$0xf0] }
 0x3e7   : > { %v7774_v53 = vpop.permute.xlu2 %2568  ;;  %v2731_v7 = vsel %vm1818_vm13, %v2703_v59, %v7732_v56  ;;  %2508 = vrot.lane.b32.xlu0 %v6990_v8, %s5587_s6  ;;  %v2730_v56 = vsel %vm1818_vm13, %v7710_v36, %v7768_v4 }
 0x3e8   : > { %v2751_v0 = vmul.f32 %v7693_v40, %v2731_v7 }
 0x3e9   : > { %v7781_v9 = vpop.permute.xlu0 %2720 }
 0x3ea   : > { %9071 = vst [vmem:[#allocation43_spill] sm:$0xff] %v7781_v9  ;;  %v2734_v17 = vsel %vm1818_vm13, %v7781_v9, %v2703_v59  ;;  %4101 = vmatpush.bf16.msra.mxu3 %v5136_v46  ;;  %v2747_v9 = vmul.f32 %v7693_v40, %v2730_v56 }
 0x3eb   : > { %v2750_v54 = vmul.f32 %v7684_v26, %v2734_v17  ;;  %v4783_v61 = vld [vmem:[#allocation2 + $0x80] sm:$0xf]  ;;  %v5389_v15 = vld [vmem:[#allocation2 + $0x84] sm:$0xf]  ;;  %v5471_v17 = vld [vmem:[#allocation2 + $0x30c] sm:$0xf0] }
 0x3ec   : > { %2506 = vrot.lane.b32.xlu1 %v6976_v55, %s5587_s6  ;;  %v4784_v7 = vor.u32 %v5391_v6, %v4783_v61  ;;  %v4788_v46 = vor.u32 %v5389_v15, %v4785_v33  ;;  %v5433_v15 = vld [vmem:[#allocation2 + $0x1e4] sm:$0xf] }
 0x3ed   : > { %2496 = vrot.lane.b32.xlu2 %v6914_v63, %s5587_s6  ;;  %v2760_v59 = vpack.c.bf16 %v2751_v0, %v2750_v54  ;;  %v5103_v0 = vld [vmem:[#allocation2 + $0x300] sm:$0xf]  ;;  %v4964_v54 = vor.u32 %v5433_v15, %v4961_v13  ;;  %v5429_v61 = vld [vmem:[#allocation2 + $0x1c4] sm:$0xf] }
 0x3ee   : > { %v7797_v18 = vpop.permute.xlu1 %2718  ;;  %4045 = vmatpush.bf16.msra.mxu0 %v4784_v7  ;;  %4102 = vmatpush.bf16.msra.mxu3 %v5120_v31  ;;  %v5104_v40 = vor.u32 %v5471_v17, %v5103_v0  ;;  %v4929_v7 = vld [vmem:[#allocation2 + $0x1b0] sm:$0xf0] }
 0x3ef   : > { %v7799_v52 = vpop.permute.xlu2 %2284  ;;  %2766 = vst [vmem:[#allocation2 + $0x190] sm:$0xff] %v2760_v59  ;;  %v2733_v32 = vsel %vm1818_vm13, %v7797_v18, %v7710_v36  ;;  %4153 = vmatpush.bf16.msrb.mxu2 %v4788_v46  ;;  %2920 = vrot.lane.b32.xlu0 %v6821_v38, %s5581_s15  ;;  %v4945_v36 = vld [vmem:[#allocation2 + $0x1d0] sm:$0xf0]  ;;  %v5425_v59 = vld [vmem:[#allocation2 + $0x1a4] sm:$0xf] }
 0x3f0   : > { %v2746_v33 = vmul.f32 %v7684_v26, %v2733_v32  ;;  %v4948_v38 = vor.u32 %v5429_v61, %v4945_v36 }
 0x3f1   : > { %v7808_v56 = vpop.permute.xlu0 %2566 }
 0x3f2   : > { %v2758_v6 = vpack.c.bf16 %v2747_v9, %v2746_v33  ;;  %4103 = vmatpush.bf16.msra.mxu3 %v5104_v40  ;;  %v2590_v40 = vsel %vm2234_vm15, %v7759_v50, %v7808_v56 }
 0x3f3   : > { %v2607_v36 = vmul.f32 %v7755_v12, %v2590_v40 }
 0x3f4   : > { %2764 = vst [vmem:[#allocation2 + $0x180] sm:$0xff] %v2758_v6  ;;  %2914 = vrot.lane.b32.xlu1 %v6889_v16, %s5581_s15  ;;  %v4932_v16 = vor.u32 %v5425_v59, %v4929_v7 }
 0x3f5   : > { %2026 = vrot.lane.b32.xlu2 %v9054_v10, %s5584_s23 }
 0x3f6   : > { %4168 = vmatpush.bf16.msrb.mxu3 %v4964_v54  ;;  %v2563_v31 = vpop.permute.xlu1 %2562  ;;  %v5423_v13 = vld [vmem:[#allocation2 + $0x18c] sm:$0xf0]  ;;  %v4913_v32 = vld [vmem:[#allocation2 + $0x190] sm:$0xf0] }
 0x3f7   : > { %v7814_v26 = vpop.permute.xlu2 %2292  ;;  %v2591_v9 = vsel %vm2234_vm15, %v2563_v31, %v7774_v53  ;;  %2912 = vrot.lane.b32.xlu0 %v6911_v60, %s5581_s15 }
 0x3f8   : > { %v2611_v0 = vmul.f32 %v7755_v12, %v2591_v9 }
 0x3f9   : > { %v7821_v46 = vpop.permute.xlu0 %2580 }
 0x3fa   : > { %4169 = vmatpush.bf16.msrb.mxu3 %v4948_v38  ;;  %v2594_v17 = vsel %vm2234_vm15, %v7821_v46, %v2563_v31 }
 0x3fb   : > { %v2610_v33 = vmul.f32 %v7746_v22, %v2594_v17  ;;  %v4911_v60 = vld [vmem:[#allocation2 + $0x180] sm:$0xf]  ;;  %v5421_v15 = vld [vmem:[#allocation2 + $0x184] sm:$0xf] }
 0x3fc   : > { %2910 = vrot.lane.b32.xlu1 %v6901_v29, %s5581_s15  ;;  %v4912_v6 = vor.u32 %v5423_v13, %v4911_v60  ;;  %v4916_v61 = vor.u32 %v5421_v15, %v4913_v32 }
 0x3fd   : > { %2932 = vrot.lane.b32.xlu2 %v6974_v11, %s5581_s15  ;;  %v2620_v54 = vpack.c.bf16 %v2611_v0, %v2610_v33 }
 0x3fe   : > { %4170 = vmatpush.bf16.msrb.mxu3 %v4932_v16  ;;  %v7837_v38 = vpop.permute.xlu1 %2578  ;;  %4063 = vmatpush.bf16.msra.mxu1 %v4912_v6 }
 0x3ff   : > { %v7839_v31 = vpop.permute.xlu2 %2212  ;;  %2626 = vst [vmem:[#allocation2 + $0x70] sm:$0xff] %v2620_v54  ;;  %v2593_v59 = vsel %vm2234_vm15, %v7837_v38, %v7759_v50  ;;  %2928 = vrot.lane.b32.xlu0 %v6976_v55, %s5581_s15  ;;  %v4678_v50 = vld [vmem:[%s8739_s1 + $0x4] ss:$8 sm:$0xf] }
 0x400   : > { %v2606_v29 = vmul.f32 %v7746_v22, %v2593_v59  ;;  %v7859_v55 = vperm.slane %v4678_v50, 1 }
 0x401   : > { %v7848_v11 = vpop.permute.xlu0 %2290 }
 0x402   : > { %4171 = vmatpush.bf16.msrb.mxu3 %v4916_v61  ;;  %v2618_v12 = vpack.c.bf16 %v2607_v36, %v2606_v29 }
 0x404   : > { %2624 = vst [vmem:[#allocation2 + $0x60] sm:$0xff] %v2618_v12  ;;  %2918 = vrot.lane.b32.xlu1 %v6914_v63, %s5581_s15  ;;  %v7866_v63 = vperm.slane %v4678_v50, 0 }
 0x405   : > { %2916 = vrot.lane.b32.xlu2 %v6903_v48, %s5581_s15 }
 0x406   : > { %v2287_v9 = vpop.permute.xlu1 %2286  ;;  %v5387_v48 = vld [vmem:[#allocation2 + $0x6c] sm:$0xf0]  ;;  %v4769_v17 = vld [vmem:[#allocation2 + $0x70] sm:$0xf0] }
 0x407   : > { %v7857_v7 = vpop.permute.xlu2 %2220  ;;  %2078 = vrot.lane.b32.xlu0 %v6745_v62, %s5581_s15  ;;  %v2314_v22 = vsel %vm1818_vm13, %v2287_v9, %v7814_v26  ;;  %v2313_v62 = vsel %vm1818_vm13, %v7799_v52, %v7848_v11 }
 0x408   : > { %9072 = vst [vmem:[#allocation44_spill] sm:$0xff] %v7857_v7  ;;  %v2337_v32 = vmul.f32 %v7859_v55, %v2314_v22  ;;  %v2333_v6 = vmul.f32 %v7859_v55, %v2313_v62 }
 0x409   : > { %v7868_v16 = vpop.permute.xlu0 %2304 }
 0x40a   : > { %v2317_v13 = vsel %vm1818_vm13, %v7868_v16, %v2287_v9 }
 0x40b   : > { %v2336_v0 = vmul.f32 %v7866_v63, %v2317_v13  ;;  %v4767_v33 = vld [vmem:[#allocation2 + $0x60] sm:$0xf]  ;;  %v5385_v40 = vld [vmem:[#allocation2 + $0x64] sm:$0xf] }
 0x40c   : > { %2076 = vrot.lane.b32.xlu1 %v6726_v43, %s5581_s15  ;;  %v4768_v60 = vor.u32 %v5387_v48, %v4767_v33  ;;  %v4772_v15 = vor.u32 %v5385_v40, %v4769_v17 }
 0x40d   : > { %2930 = vrot.lane.b32.xlu2 %v6990_v8, %s5581_s15  ;;  %v2344_v54 = vpack.c.bf16 %v2337_v32, %v2336_v0 }
 0x40e   : > { %v7884_v61 = vpop.permute.xlu1 %2302  ;;  %4046 = vmatpush.bf16.msra.mxu0 %v4768_v60  ;;  %4154 = vmatpush.bf16.msrb.mxu2 %v4772_v15 }
 0x40f   : > { %v2283_v36 = vpop.permute.xlu2 %2282  ;;  %v2316_v59 = vsel %vm1818_vm13, %v7884_v61, %v7799_v52  ;;  %2350 = vst [vmem:[#allocation2 + $0x170] sm:$0xff] %v2344_v54  ;;  %2094 = vrot.lane.b32.xlu0 %v9051_v5, %s5581_s15  ;;  %v4677_v52 = vld [vmem:[%s8739_s1 + $0x6] ss:$8 sm:$0xf] }
 0x410   : > { %v2332_v43 = vmul.f32 %v7866_v63, %v2316_v59  ;;  %v7902_v9 = vperm.slane %v4677_v52, 1  ;;  %v7909_v22 = vperm.slane %v4677_v52, 0 }
 0x411   : > { %v7893_v8 = vpop.permute.xlu0 %2218 }
 0x412   : > { %9073 = vst [vmem:[#allocation45_spill] sm:$0xff] %v7893_v8  ;;  %v2342_v29 = vpack.c.bf16 %v2333_v6, %v2332_v43  ;;  %v2242_v32 = vsel %vm2234_vm15, %v7839_v31, %v7893_v8 }
 0x413   : > { %v2263_v54 = vmul.f32 %v7902_v9, %v2242_v32 }
 0x414   : > { %2348 = vst [vmem:[#allocation2 + $0x160] sm:$0xff] %v2342_v29  ;;  %2084 = vrot.lane.b32.xlu1 %v9050_v3, %s5581_s15 }
 0x415   : > { %2082 = vrot.lane.b32.xlu2 %v6747_v47, %s5581_s15 }
 0x416   : > { %v2215_v12 = vpop.permute.xlu1 %2214  ;;  %v5419_v47 = vld [vmem:[#allocation2 + $0x16c] sm:$0xf0]  ;;  %v4897_v48 = vld [vmem:[#allocation2 + $0x170] sm:$0xf0] }
 0x417   : > { %v2635_v50 = vpop.permute.xlu2 %2634  ;;  %2856 = vrot.lane.b32.xlu0 %v7001_v41, %s5582_s16  ;;  %v2243_v5 = vsel %vm2234_vm15, %v2215_v12, %v7857_v7 }
 0x418   : > { %v2267_v13 = vmul.f32 %v7902_v9, %v2243_v5  ;;  %v9077_v5 = vld [vmem:[#allocation15_spill] sm:$0xff] }
 0x419   : > { %v7911_v3 = vpop.permute.xlu0 %2232 }
 0x41a   : > { %9074 = vst [vmem:[#allocation46_spill] sm:$0xff] %v7911_v3  ;;  %v2246_v17 = vsel %vm2234_vm15, %v7911_v3, %v2215_v12 }
 0x41b   : > { %v2266_v62 = vmul.f32 %v7909_v22, %v2246_v17  ;;  %v4895_v0 = vld [vmem:[#allocation2 + $0x160] sm:$0xf]  ;;  %v5417_v33 = vld [vmem:[#allocation2 + $0x164] sm:$0xf] }
 0x41c   : > { %2086 = vrot.lane.b32.xlu1 %v9049_v25, %s5581_s15  ;;  %v4896_v40 = vor.u32 %v5419_v47, %v4895_v0  ;;  %v4900_v60 = vor.u32 %v5417_v33, %v4897_v48  ;;  %v9076_v25 = vld [vmem:[#allocation32_spill] sm:$0xff]  ;;  %v9078_v47 = vld [vmem:[#allocation17_spill] sm:$0xff] }
 0x41d   : > { %2096 = vrot.lane.b32.xlu2 %v9054_v10, %s5581_s15  ;;  %v2274_v15 = vpack.c.bf16 %v2267_v13, %v2266_v62  ;;  %v4688_v62 = vld [vmem:[%s8739_s1 + $0x5] ss:$8 sm:$0xf] }
 0x41e   : > { %v7927_v6 = vpop.permute.xlu1 %2230  ;;  %4064 = vmatpush.bf16.msra.mxu1 %v4896_v40  ;;  %4172 = vmatpush.bf16.msrb.mxu3 %v4900_v60 }
 0x41f   : > { %9075 = vst [vmem:[#allocation3_spill] sm:$0xff] %v7927_v6  ;;  %v2211_v59 = vpop.permute.xlu2 %2210  ;;  %v2245_v43 = vsel %vm2234_vm15, %v7927_v6, %v7839_v31  ;;  %2366 = vrot.lane.b32.xlu0 %v9076_v25, %s5582_s16 }
 0x420   : > { %2280 = vst [vmem:[#allocation2 + $0x50] sm:$0xff] %v2274_v15  ;;  %v2262_v10 = vmul.f32 %v7909_v22, %v2245_v43  ;;  %v7959_v15 = vperm.slane %v4688_v62, 0  ;;  %v9080_v43 = vld [vmem:[#allocation31_spill] sm:$0xff] }
 0x421   : > { %v7936_v29 = vpop.permute.xlu0 %2300 }
 0x422   : > { %v2272_v52 = vpack.c.bf16 %v2263_v54, %v2262_v10  ;;  %v2315_v12 = vsel %vm1818_vm13, %v7936_v29, %v2283_v36  ;;  %v7968_v10 = vperm.slane %v4688_v62, 1 }
 0x423   : > { %v2328_v17 = vmul.f32 %v7866_v63, %v2315_v12 }
 0x424   : > { %2278 = vst [vmem:[#allocation2 + $0x40] sm:$0xff] %v2272_v52  ;;  %2854 = vrot.lane.b32.xlu1 %v9077_v5, %s5582_s16 }
 0x425   : > { %2852 = vrot.lane.b32.xlu2 %v9078_v47, %s5582_s16 }
 0x426   : > { %v7945_v31 = vpop.permute.xlu1 %2288 }
 0x427   : > { %v2493_v48 = vpop.permute.xlu2 %2492  ;;  %v2312_v13 = vsel %vm1818_vm13, %v2283_v36, %v7945_v31  ;;  %2786 = vrot.lane.b32.xlu0 %v7001_v41, %s5583_s17  ;;  %v5383_v33 = vld [vmem:[#allocation2 + $0x4c] sm:$0xf0]  ;;  %v4753_v40 = vld [vmem:[#allocation2 + $0x50] sm:$0xf0] }
 0x428   : > { %v2329_v32 = vmul.f32 %v7859_v55, %v2312_v13  ;;  %v9081_v55 = vld [vmem:[#allocation16_spill] sm:$0xff] }
 0x429   : > { %v7957_v0 = vpop.permute.xlu0 %2652 }
 0x42a   : > { %9079 = vst [vmem:[#allocation4_spill] sm:$0xff] %v7957_v0  ;;  %v2340_v60 = vpack.c.bf16 %v2329_v32, %v2328_v17  ;;  %v2665_v63 = vsel %vm1956_vm14, %v7957_v0, %v2635_v50 }
 0x42b   : > { %v4751_v36 = vld [vmem:[#allocation2 + $0x40] sm:$0xf]  ;;  %v5381_v54 = vld [vmem:[#allocation2 + $0x44] sm:$0xf]  ;;  %v2684_v32 = vmul.f32 %v7959_v15, %v2665_v63 }
 0x42c   : > { %2364 = vrot.lane.b32.xlu1 %v9080_v43, %s5582_s16  ;;  %2346 = vst [vmem:[#allocation2 + $0x150] sm:$0xff] %v2340_v60  ;;  %v4752_v52 = vor.u32 %v5383_v33, %v4751_v36  ;;  %v4756_v12 = vor.u32 %v5381_v54, %v4753_v40 }
 0x42d   : > { %2368 = vrot.lane.b32.xlu2 %v9081_v55, %s5582_s16 }
 0x42e   : > { %v7970_v17 = vpop.permute.xlu1 %2640  ;;  %4047 = vmatpush.bf16.msra.mxu0 %v4752_v52  ;;  %4155 = vmatpush.bf16.msrb.mxu2 %v4756_v12  ;;  %v4686_v52 = vld [vmem:[%s8739_s1 + $0x7] ss:$8 sm:$0xf] }
 0x42f   : > { %9082 = vst [vmem:[#allocation5_spill] sm:$0xff] %v7970_v17  ;;  %v7972_v13 = vpop.permute.xlu2 %2630  ;;  %v2662_v0 = vsel %vm1956_vm14, %v2635_v50, %v7970_v17  ;;  %2784 = vrot.lane.b32.xlu0 %v9077_v5, %s5583_s17 }
 0x430   : > { %v2685_v62 = vmul.f32 %v7968_v10, %v2662_v0 }
 0x431   : > { %v7981_v60 = vpop.permute.xlu0 %2228 }
 0x432   : > { %9083 = vst [vmem:[#allocation8_spill] sm:$0xff] %v7981_v60  ;;  %v2692_v33 = vpack.c.bf16 %v2685_v62, %v2684_v32  ;;  %v2244_v40 = vsel %vm2234_vm15, %v7981_v60, %v2211_v59  ;;  %v8007_v62 = vperm.slane %v4686_v52, 0 }
 0x433   : > { %v2258_v0 = vmul.f32 %v7909_v22, %v2244_v40  ;;  %v5415_v22 = vld [vmem:[#allocation2 + $0x14c] sm:$0xf0]  ;;  %v4881_v17 = vld [vmem:[#allocation2 + $0x150] sm:$0xf0] }
 0x434   : > { %2782 = vrot.lane.b32.xlu1 %v9078_v47, %s5583_s17  ;;  %2698 = vst [vmem:[#allocation2 + $0x140] sm:$0xff] %v2692_v33 }
 0x435   : > { %2716 = vrot.lane.b32.xlu2 %v7001_v41, %s5584_s23 }
 0x436   : > { %v7990_v50 = vpop.permute.xlu1 %2216 }
 0x437   : > { %9084 = vst [vmem:[#allocation6_spill] sm:$0xff] %v7990_v50  ;;  %v7992_v63 = vpop.permute.xlu2 %2638  ;;  %v2241_v36 = vsel %vm2234_vm15, %v2211_v59, %v7990_v50  ;;  %2714 = vrot.lane.b32.xlu0 %v9077_v5, %s5584_s23 }
 0x438   : > { %9085 = vst [vmem:[#allocation10_spill] sm:$0xff] %v7992_v63  ;;  %v2259_v54 = vmul.f32 %v7902_v9, %v2241_v36  ;;  %v8016_v9 = vperm.slane %v4686_v52, 1 }
 0x439   : > { %v8004_v12 = vpop.permute.xlu0 %2510 }
 0x43a   : > { %v2270_v32 = vpack.c.bf16 %v2259_v54, %v2258_v0  ;;  %v2524_v59 = vsel %vm2512_vm0, %v8004_v12, %v2493_v48 }
 0x43b   : > { %v4879_v33 = vld [vmem:[#allocation2 + $0x140] sm:$0xf]  ;;  %v5413_v40 = vld [vmem:[#allocation2 + $0x144] sm:$0xf]  ;;  %v2544_v60 = vmul.f32 %v8007_v62, %v2524_v59 }
 0x43c   : > { %2712 = vrot.lane.b32.xlu1 %v9078_v47, %s5584_s23  ;;  %2276 = vst [vmem:[#allocation2 + $0x30] sm:$0xff] %v2270_v32  ;;  %v4880_v0 = vor.u32 %v5415_v22, %v4879_v33  ;;  %v4884_v36 = vor.u32 %v5413_v40, %v4881_v17 }
 0x43d   : > { %2576 = vrot.lane.b32.xlu2 %v7001_v41, %s5586_s13 }
 0x43e   : > { %v8018_v54 = vpop.permute.xlu1 %2498  ;;  %4065 = vmatpush.bf16.msra.mxu1 %v4880_v0  ;;  %4173 = vmatpush.bf16.msrb.mxu3 %v4884_v36 }
 0x43f   : > { %v8020_v50 = vpop.permute.xlu2 %2488  ;;  %v2521_v8 = vsel %vm2512_vm0, %v2493_v48, %v8018_v54  ;;  %2296 = vrot.lane.b32.xlu0 %v9076_v25, %s5584_s23  ;;  %v5368_v48 = vld [vmem:[%s8742_s4 + $0xc] sm:$0xf] }
 0x440   : > { %v2545_v52 = vmul.f32 %v8016_v9, %v2521_v8 }
 0x441   : > { %v8029_v32 = vpop.permute.xlu0 %2636 }
 0x442   : > { %9086 = vst [vmem:[#allocation7_spill] sm:$0xff] %v8029_v32  ;;  %v2552_v17 = vpack.c.bf16 %v2545_v52, %v2544_v60  ;;  %v4705_v60 = vld [vmem:[%s8742_s4 + $0x20] sm:$0xf0] }
 0x443   : > { %v8050_v40 = vor.u32 %v5368_v48, %v4705_v60  ;;  %v5379_v36 = vld [vmem:[#allocation2 + $0x2c] sm:$0xf0]  ;;  %v4737_v3 = vld [vmem:[#allocation2 + $0x30] sm:$0xf0] }
 0x444   : > { %2574 = vrot.lane.b32.xlu1 %v9077_v5, %s5586_s13  ;;  %2558 = vst [vmem:[#allocation2 + $0x20] sm:$0xff] %v2552_v17  ;;  %v2660_v17 = vsel %vm1956_vm14, %v7972_v13, %v8029_v32 }
 0x445   : > { %2572 = vrot.lane.b32.xlu2 %v9078_v47, %s5586_s13  ;;  %4104 = vmatmul.bf16.vlgmr.msra.gmra.mxu3 %v8050_v40  ;;  %v2677_v60 = vmul.f32 %v7968_v10, %v2660_v17 }
 0x446   : > { %v2633_v22 = vpop.permute.xlu1 %2632 }
 0x447   : > { %v8035_v59 = vpop.permute.xlu2 %2496  ;;  %2226 = vrot.lane.b32.xlu0 %v9081_v55, %s5586_s13  ;;  %v2661_v8 = vsel %vm1956_vm14, %v2633_v22, %v7992_v63 }
 0x448   : > { %9087 = vst [vmem:[#allocation9_spill] sm:$0xff] %v8035_v59  ;;  %v2681_v52 = vmul.f32 %v7968_v10, %v2661_v8 }
 0x449   : > { %v8048_v33 = vpop.permute.xlu0 %2650 }
 0x44a   : > { %9088 = vst [vmem:[#allocation11_spill] sm:$0xff] %v8048_v33  ;;  %v2664_v0 = vsel %vm1956_vm14, %v8048_v33, %v2633_v22 }
 0x44b   : > { %v2680_v63 = vmul.f32 %v7959_v15, %v2664_v0  ;;  %v4735_v6 = vld [vmem:[#allocation2 + $0x20] sm:$0xf]  ;;  %v5377_v7 = vld [vmem:[#allocation2 + $0x24] sm:$0xf] }
 0x44c   : > { %2224 = vrot.lane.b32.xlu1 %v9076_v25, %s5586_s13  ;;  %v4736_v22 = vor.u32 %v5379_v36, %v4735_v6  ;;  %v4740_v8 = vor.u32 %v5377_v7, %v4737_v3 }
 0x44d   : > { %2298 = vrot.lane.b32.xlu2 %v9081_v55, %s5584_s23  ;;  %v2690_v48 = vpack.c.bf16 %v2681_v52, %v2680_v63 }
 0x44e   : > { %v8067_v33 = vpop.permute.xlu1 %2648  ;;  %4048 = vmatpush.bf16.msra.mxu0 %v4736_v22  ;;  %4156 = vmatpush.bf16.msrb.mxu2 %v4740_v8 }
 0x44f   : > { %9089 = vst [vmem:[#allocation12_spill] sm:$0xff] %v8067_v33  ;;  %v2027_v32 = vpop.permute.xlu2 %2026  ;;  %v2663_v0 = vsel %vm1956_vm14, %v8067_v33, %v7972_v13  ;;  %2222 = vrot.lane.b32.xlu0 %v9080_v43, %s5586_s13 }
 0x450   : > { %v2030_v25 = vsel %vm1818_vm13, %v7464_v51, %v2027_v32  ;;  %v2039_v7 = vsel %vm1818_vm13, %v2027_v32, %v7423_v20  ;;  %2696 = vst [vmem:[#allocation2 + $0x130] sm:$0xff] %v2690_v48  ;;  %v2676_v3 = vmul.f32 %v7959_v15, %v2663_v0  ;;  %v5560_v32 = vld [vmem:[#allocation2 + $0x500] sm:$0xff] }
 0x451   : > { %v2058_v6 = vmul.f32 %v7491_v27, %v2039_v7  ;;  %v2061_v55 = vmul.f32 %v7493_v39, %v2030_v25  ;;  %v8084_v10 = vpop.permute.xlu0 %2494  ;;  %v3694_v36 = vunpack.c.l.b16 %v5560_v32  ;;  %v3695_v52 = vunpack.c.h.b16 %v5560_v32  ;;  %v4703_v7 = vld [vmem:[%s8742_s4 + $0x8] sm:$0xf]  ;;  %v4697_v32 = vld [vmem:[%s8742_s4 + $0x18] sm:$0xf0] }
 0x452   : > { %v2688_v13 = vpack.c.bf16 %v2677_v60, %v2676_v3  ;;  %v2519_v22 = vsel %vm2512_vm0, %v8020_v50, %v8084_v10 }
 0x453   : > { %v2066_v63 = vpack.c.bf16 %v7458_v2, %v2058_v6  ;;  %v2067_v51 = vpack.c.bf16 %v2061_v55, %v7471_v34 }
 0x454   : > { %2694 = vst [vmem:[#allocation2 + $0x120] sm:$0xff] %v2688_v13  ;;  %2646 = vrot.lane.b32.xlu1 %v7001_v41, %s5585_s26  ;;  %v3858_v13 = vpack.c.b16 %v3694_v36, %v3694_v36 }
 0x455   : > { %2294 = vrot.lane.b32.xlu2 %v9080_v43, %s5584_s23  ;;  %2072 = vst [vmem:[#allocation2 + $0x110] sm:$0xff] %v2066_v63  ;;  %v5371_v63 = vld [vmem:[%s8742_s4 + $0x1c] sm:$0xf0] }
 0x456   : > { %2073 = vst [vmem:[#allocation2 + $0x118] sm:$0xff] %v2067_v51  ;;  %v2491_v20 = vpop.permute.xlu1 %2490  ;;  %v2537_v51 = vmul.f32 %v8016_v9, %v2519_v22  ;;  %v8131_v36 = vor.u32 %v5371_v63, %v4703_v7  ;;  %v5217_v7 = vld [vmem:[#allocation2 + $0x3f0] sm:$0xf0] }
 0x457   : > { %v8092_v27 = vpop.permute.xlu2 %2932  ;;  %2644 = vrot.lane.b32.xlu0 %v9077_v5, %s5585_s26  ;;  %v2520_v2 = vsel %vm2512_vm0, %v2491_v20, %v8035_v59  ;;  %v5411_v39 = vld [vmem:[#allocation2 + $0x12c] sm:$0xf0]  ;;  %v4865_v15 = vld [vmem:[#allocation2 + $0x130] sm:$0xf0]  ;;  %v5485_v59 = vld [vmem:[#allocation2 + $0x384] sm:$0xf] }
 0x458   : > { %9090 = vst [vmem:[#allocation24_spill] sm:$0xff] %v8092_v27  ;;  %v2541_v17 = vmul.f32 %v8016_v9, %v2520_v2  ;;  %4086 = vmatmul.bf16.vlgmr.msra.gmra.mxu2 %v8131_v36 }
 0x459   : > { %v8099_v34 = vpop.permute.xlu0 %2508 }
 0x45a   : > { %9091 = vst [vmem:[#allocation26_spill] sm:$0xff] %v8099_v34  ;;  %v2523_v43 = vsel %vm2512_vm0, %v8099_v34, %v2491_v20 }
 0x45b   : > { %v2540_v8 = vmul.f32 %v8007_v62, %v2523_v43  ;;  %v4863_v48 = vld [vmem:[#allocation2 + $0x120] sm:$0xf]  ;;  %v5409_v60 = vld [vmem:[#allocation2 + $0x124] sm:$0xf] }
 0x45c   : > { %2642 = vrot.lane.b32.xlu1 %v9078_v47, %s5585_s26  ;;  %v4864_v0 = vor.u32 %v5411_v39, %v4863_v48  ;;  %v4868_v25 = vor.u32 %v5409_v60, %v4865_v15  ;;  %v5407_v6 = vld [vmem:[#allocation2 + $0x10c] sm:$0xf0]  ;;  %v4849_v55 = vld [vmem:[#allocation2 + $0x110] sm:$0xf0]  ;;  %v3859_v39 = vpack.c.b16 %v3695_v52, %v3695_v52  ;;  %v5367_v15 = vld [vmem:[%s8742_s4 + $0x4] sm:$0xf] }
 0x45d   : > { %2504 = vrot.lane.b32.xlu2 %v7001_v41, %s5587_s6  ;;  %v2550_v3 = vpack.c.bf16 %v2541_v17, %v2540_v8  ;;  %v4847_v43 = vld [vmem:[#allocation2 + $0x100] sm:$0xf]  ;;  %v5405_v17 = vld [vmem:[#allocation2 + $0x104] sm:$0xf]  ;;  %v8144_v60 = vor.u32 %v5367_v15, %v4697_v32 }
 0x45e   : > { %v8121_v20 = vpop.permute.xlu1 %2506  ;;  %4066 = vmatpush.bf16.msra.mxu1 %v4864_v0  ;;  %4174 = vmatpush.bf16.msrb.mxu3 %v4868_v25  ;;  %v4848_v22 = vor.u32 %v5407_v6, %v4847_v43  ;;  %v4852_v8 = vor.u32 %v5405_v17, %v4849_v55  ;;  %v4692_v48 = vld [vmem:[%s8739_s1 + $0x1] ss:$8 sm:$0xf]  ;;  %v5493_v32 = vld [vmem:[#allocation2 + $0x3c4] sm:$0xf] }
 0x45f   : > { %v8123_v2 = vpop.permute.xlu2 %2916  ;;  %v2522_v9 = vsel %vm2512_vm0, %v8121_v20, %v8020_v50  ;;  %2556 = vst [vmem:[#allocation2 + $0x10] sm:$0xff] %v2550_v3  ;;  %2926 = vrot.lane.b32.xlu0 %v7001_v41, %s5581_s15  ;;  %v5497_v50 = vld [vmem:[#allocation2 + $0x3e4] sm:$0xf]  ;;  %v4031_v41 = vsel %vm4029_vm9, %v3858_v13, 0  ;;  %v8154_v3 = vperm.slane %v4692_v48, 0  ;;  %v8156_v6 = vperm.slane %v4692_v48, 1 }
 0x460   : > { %v2536_v52 = vmul.f32 %v8007_v62, %v2522_v9  ;;  %v4034_v62 = vsel %vm4029_vm9, %v3859_v39, 0  ;;  %v5220_v55 = vor.u32 %v5497_v50, %v5217_v7  ;;  %v5201_v13 = vld [vmem:[#allocation2 + $0x3d0] sm:$0xf0]  ;;  %v5370_v7 = vld [vmem:[%s8742_s4 + $0x14] sm:$0xf0] }
 0x461   : > { %v8146_v0 = vpop.permute.xlu0 %2920  ;;  %v5204_v17 = vor.u32 %v5493_v32, %v5201_v13  ;;  %v5185_v48 = vld [vmem:[#allocation2 + $0x3b0] sm:$0xf0]  ;;  %v5489_v13 = vld [vmem:[#allocation2 + $0x3a4] sm:$0xf] }
 0x462   : > { %9092 = vst [vmem:[#allocation25_spill] sm:$0xff] %v8146_v0  ;;  %v2548_v25 = vpack.c.bf16 %v2537_v51, %v2536_v52  ;;  %4067 = vmatpush.bf16.msra.mxu1 %v4848_v22  ;;  %4175 = vmatpush.bf16.msrb.mxu3 %v4852_v8  ;;  %v5531_v52 = vld [vmem:[#allocation2 + $0x4ec] sm:$0xf0] }
 0x464   : > { %2554 = vst [vmem:[#allocation2] sm:$0xff] %v2548_v25  ;;  %2502 = vrot.lane.b32.xlu1 %v9077_v5, %s5587_s6  ;;  %v5345_v25 = vld [vmem:[#allocation2 + $0x4f0] sm:$0xf0] }
 0x465   : > { %2500 = vrot.lane.b32.xlu2 %v9078_v47, %s5587_s6  ;;  %4068 = vmatmul.bf16.vlgmr.msra.gmra.mxu1 %v8144_v60 }
 0x466   : > { %4139 = vmatpush.bf16.msrb.mxu1 %v4031_v41  ;;  %4247 = vmatpush.bf16.msra.mxu3 %v4034_v62  ;;  %v2915_v63 = vpop.permute.xlu1 %2914  ;;  %v5375_v8 = vld [vmem:[#allocation2 + $0xc] sm:$0xf0]  ;;  %v4721_v50 = vld [vmem:[#allocation2 + $0x10] sm:$0xf0] }
 0x467   : > { %v8159_v51 = vpop.permute.xlu2 %2930  ;;  %v2945_v39 = vsel %vm1264_vm10, %v8092_v27, %v2915_v63  ;;  %v2942_v15 = vsel %vm1264_vm10, %v2915_v63, %v8146_v0  ;;  %2088 = vrot.lane.b32.xlu0 %v6776_v45, %s5581_s15  ;;  %v8176_v62 = vld [vmem:[%s8742_s4 + $0x30] sm:$0xff]  ;;  %v4695_v45 = vld [vmem:[%s8742_s4] sm:$0xf]  ;;  %v2999_v27 = vld [vmem:[%s8742_s4 + $0x38] sm:$0xff] }
 0x468   : > { %9093 = vst [vmem:[#allocation13_spill] sm:$0xff] %v8159_v51  ;;  %v2964_v9 = vmul.f32 %v8154_v3, %v2945_v39  ;;  %v2965_v43 = vmul.f32 %v8156_v6, %v2942_v15  ;;  %v5188_v15 = vor.u32 %v5489_v13, %v5185_v48  ;;  %v3185_v34 = vunpack.c.h.b16 %v8176_v62  ;;  %v5527_v48 = vld [vmem:[#allocation2 + $0x4cc] sm:$0xf0] }
 0x469   : > { %v8171_v22 = vpop.permute.xlu0 %2912  ;;  %v8189_v0 = vor.u32 %v5370_v7, %v4695_v45 }
 0x46a   : > { %4204 = vmatpush.bf16.msra.mxu1 %v5220_v55  ;;  %v2972_v41 = vpack.c.bf16 %v2965_v43, %v2964_v9  ;;  %v5343_v9 = vld [vmem:[#allocation2 + $0x4e0] sm:$0xf] }
 0x46b   : > { %v4719_v55 = vld [vmem:[#allocation2] sm:$0xf]  ;;  %v5373_v63 = vld [vmem:[#allocation2 + $0x4] sm:$0xf]  ;;  %v5344_v43 = vor.u32 %v5531_v52, %v5343_v9  ;;  %9094 = vst [vmem:[#allocation27_spill] sm:$0xff] %v8189_v0 }
 0x46c   : > { %2924 = vrot.lane.b32.xlu1 %v9077_v5, %s5581_s15  ;;  %2978 = vst [vmem:[#allocation2 + $0x4a0] sm:$0xff] %v2972_v41  ;;  %v4720_v39 = vor.u32 %v5375_v8, %v4719_v55  ;;  %v4724_v32 = vor.u32 %v5373_v63, %v4721_v50  ;;  %v5327_v8 = vld [vmem:[#allocation2 + $0x4c0] sm:$0xf]  ;;  %v3186_v50 = vunpack.c.l.b16 %v2999_v27  ;;  %v5169_v52 = vld [vmem:[#allocation2 + $0x390] sm:$0xf0] }
 0x46d   : > { %2922 = vrot.lane.b32.xlu2 %v9078_v47, %s5581_s15  ;;  %v5525_v41 = vld [vmem:[#allocation2 + $0x4c4] sm:$0xf]  ;;  %v5329_v55 = vld [vmem:[#allocation2 + $0x4d0] sm:$0xf0]  ;;  %v5172_v7 = vor.u32 %v5485_v59, %v5169_v52  ;;  %v5328_v63 = vor.u32 %v5527_v48, %v5327_v8 }
 0x46e   : > { %4205 = vmatpush.bf16.msra.mxu1 %v5204_v17  ;;  %v5529_v17 = vld [vmem:[#allocation2 + $0x4e4] sm:$0xf]  ;;  %v2911_v5 = vpop.permute.xlu1 %2910  ;;  %4049 = vmatpush.bf16.msra.mxu0 %v4720_v39  ;;  %v8199_v13 = vpack.c.b16 %v3186_v50, %v3186_v50  ;;  %v8201_v39 = vpack.c.b16 %v3185_v34, %v3185_v34  ;;  %v2944_v34 = vsel %vm1264_vm10, %v8159_v51, %v8171_v22 }
 0x46f   : > { %v8194_v33 = vpop.permute.xlu2 %2082  ;;  %v5348_v47 = vor.u32 %v5529_v17, %v5345_v25  ;;  %4157 = vmatpush.bf16.msrb.mxu2 %v4724_v32  ;;  %v2940_v45 = vsel %vm1264_vm10, %v2911_v5, %v8123_v2  ;;  %v5332_v32 = vor.u32 %v5525_v41, %v5329_v55  ;;  %v5313_v17 = vld [vmem:[#allocation2 + $0x4b0] sm:$0xf0]  ;;  %v5481_v8 = vld [vmem:[#allocation2 + $0x364] sm:$0xf] }
 0x470   : > { %9095 = vst [vmem:[#allocation28_spill] sm:$0xff] %v8194_v33  ;;  %4091 = vmatmul.bf16.gmra.mxu2 %v8199_v13  ;;  %v2957_v59 = vmul.f32 %v8156_v6, %v2940_v45  ;;  %v5477_v45 = vld [vmem:[#allocation2 + $0x344] sm:$0xf] }
 0x471   : > { %9096 = vst [vmem:[#allocation29_spill] sm:$0xff] %v8199_v13  ;;  %v8203_v25 = vpop.permute.xlu0 %2928  ;;  %4050 = vmatmul.bf16.vlgmr.msra.gmra.mxu0 %v8189_v0  ;;  %v3187_v13 = vunpack.c.h.b16 %v2999_v27 }
 0x472   : > { %4206 = vmatpush.bf16.msra.mxu1 %v5188_v15  ;;  %4114 = vmatpush.bf16.msrb.mxu0 %v5344_v43  ;;  %v5153_v15 = vld [vmem:[#allocation2 + $0x370] sm:$0xf0]  ;;  %v2943_v9 = vsel %vm1264_vm10, %v8203_v25, %v2911_v5  ;;  %v5523_v43 = vld [vmem:[#allocation2 + $0x4ac] sm:$0xf0] }
 0x473   : > { %4222 = vmatpush.bf16.msra.mxu2 %v5348_v47  ;;  %v2956_v47 = vmul.f32 %v8154_v3, %v2943_v9  ;;  %v5311_v48 = vld [vmem:[#allocation2 + $0x4a0] sm:$0xf]  ;;  %v5521_v50 = vld [vmem:[#allocation2 + $0x4a4] sm:$0xf]  ;;  %v5156_v5 = vor.u32 %v5481_v8, %v5153_v15  ;;  %v8228_v15 = vpack.c.b16 %v3187_v13, %v3187_v13  ;;  %v5105_v8 = vld [vmem:[#allocation2 + $0x310] sm:$0xf0] }
 0x474   : > { %v5312_v52 = vor.u32 %v5523_v43, %v5311_v48  ;;  %v5316_v41 = vor.u32 %v5521_v50, %v5313_v17  ;;  %v3184_v17 = vunpack.c.l.b16 %v8176_v62  ;;  %v5369_v62 = vld [vmem:[%s8742_s4 + $0x14] sm:$0xf] }
 0x475   : > { %2090 = vrot.lane.b32.xlu2 %v9053_v37, %s5581_s15  ;;  %4073 = vmatmul.bf16.gmra.mxu1 %v8201_v39  ;;  %v2968_v55 = vpack.c.bf16 %v2957_v59, %v2956_v47 }
 0x476   : > { %4207 = vmatpush.bf16.msra.mxu1 %v5172_v7  ;;  %4115 = vmatpush.bf16.msrb.mxu0 %v5328_v63  ;;  %v5137_v7 = vld [vmem:[#allocation2 + $0x350] sm:$0xf0]  ;;  %v2960_v63 = vmul.f32 %v8154_v3, %v2944_v34  ;;  %v8220_v51 = vpop.permute.xlu1 %2918  ;;  %v5473_v3 = vld [vmem:[#allocation2 + $0x324] sm:$0xf]  ;;  %v8242_v48 = vpack.c.b16 %v3184_v17, %v3184_v17 }
 0x477   : > { %4223 = vmatpush.bf16.msra.mxu2 %v5332_v32  ;;  %9097 = vst [vmem:[#allocation14_spill] sm:$0xff] %v8220_v51  ;;  %v8222_v9 = vpop.permute.xlu2 %2096  ;;  %v2941_v37 = vsel %vm1264_vm10, %v8171_v22, %v8220_v51  ;;  %v5140_v27 = vor.u32 %v5477_v45, %v5137_v7  ;;  %4109 = vmatmul.bf16.gmra.mxu3 %v8228_v15  ;;  %v5121_v34 = vld [vmem:[#allocation2 + $0x330] sm:$0xf0]  ;;  %v5561_v22 = vld [vmem:[%s8739_s1 + $0x2] ss:$8 sm:$0xf] }
 0x478   : > { %2974 = vst [vmem:[#allocation2 + $0x480] sm:$0xff] %v2968_v55  ;;  %v2961_v32 = vmul.f32 %v8156_v6, %v2941_v37  ;;  %v8238_v13 = vperm.slane %v5561_v22, 2  ;;  %v8240_v6 = vperm.slane %v5561_v22, 3  ;;  %v5124_v47 = vor.u32 %v5473_v3, %v5121_v34  ;;  %v5469_v45 = vld [vmem:[#allocation2 + $0x304] sm:$0xf] }
 0x479   : > { %v8231_v43 = vpop.permute.xlu0 %2078  ;;  %v4967_v34 = vld [vmem:[#allocation2 + $0x1e8] sm:$0xf] }
 0x47a   : > { %4208 = vmatpush.bf16.msra.mxu1 %v5156_v5  ;;  %4116 = vmatpush.bf16.msrb.mxu0 %v5312_v52  ;;  %v2970_v59 = vpack.c.bf16 %v2961_v32, %v2960_v63  ;;  %v4713_v52 = vld [vmem:[%s8742_s4 + $0x28] sm:$0xf0]  ;;  %v5108_v32 = vor.u32 %v5469_v45, %v5105_v8  ;;  %v5515_v45 = vld [vmem:[#allocation2 + $0x46c] sm:$0xf0] }
 0x47b   : > { %4224 = vmatpush.bf16.msra.mxu2 %v5316_v41  ;;  %v8261_v3 = vor.u32 %v5369_v62, %v4713_v52 }
 0x47c   : > { %2976 = vst [vmem:[#allocation2 + $0x490] sm:$0xff] %v2970_v59 }
 0x47e   : > { %4209 = vmatpush.bf16.msra.mxu1 %v5140_v27  ;;  %v2077_v50 = vpop.permute.xlu1 %2076  ;;  %v5436_v27 = vld [vmem:[#allocation2 + $0x1f4] sm:$0xf0] }
 0x47f   : > { %v2853_v5 = vpop.permute.xlu2 %2852  ;;  %v2105_v7 = vsel %vm1264_vm10, %v2077_v50, %v8194_v33  ;;  %v5517_v59 = vld [vmem:[#allocation2 + $0x484] sm:$0xf]  ;;  %v4968_v62 = vor.u32 %v5436_v27, %v4967_v34  ;;  %v4951_v34 = vld [vmem:[#allocation2 + $0x1c8] sm:$0xf] }
 0x480   : > { %v2864_v41 = vsel %vm1402_vm11, %v2853_v5, %v7597_v1  ;;  %v2867_v55 = vsel %vm1402_vm11, %v7571_v24, %v2853_v5  ;;  %v5295_v1 = vld [vmem:[#allocation2 + $0x480] sm:$0xf]  ;;  %4158 = vmatmul.bf16.vlgmr.msrb.gmra.mxu2 %v8189_v0  ;;  %v2125_v8 = vmul.f32 %v7535_v44, %v2105_v7  ;;  %v2109_v5 = vsel %vm1264_vm10, %v8222_v9, %v8231_v43  ;;  %v5513_v33 = vld [vmem:[#allocation2 + $0x464] sm:$0xf] }
 0x481   : > { %v2888_v63 = vmul.f32 %v8238_v13, %v2867_v55  ;;  %v2889_v37 = vmul.f32 %v8240_v6, %v2864_v41  ;;  %v8263_v17 = vpop.permute.xlu0 %2094  ;;  %4055 = vmatmul.bf16.gmra.mxu0 %v8242_v48  ;;  %v2128_v0 = vmul.f32 %v7526_v14, %v2109_v5 }
 0x482   : > { %4210 = vmatpush.bf16.msra.mxu1 %v5124_v47  ;;  %9098 = vst [vmem:[#allocation30_spill] sm:$0xff] %v8263_v17  ;;  %v2108_v22 = vsel %vm1264_vm10, %v8263_v17, %v2077_v50  ;;  %v5279_v47 = vld [vmem:[#allocation2 + $0x460] sm:$0xf]  ;;  %v5281_v17 = vld [vmem:[#allocation2 + $0x470] sm:$0xf0] }
 0x483   : > { %v2899_v24 = vpack.c.bf16 %v2889_v37, %v2888_v63  ;;  %v2124_v52 = vmul.f32 %v7526_v14, %v2108_v22  ;;  %v5519_v41 = vld [vmem:[#allocation2 + $0x48c] sm:$0xf0]  ;;  %v5297_v55 = vld [vmem:[#allocation2 + $0x490] sm:$0xf0]  ;;  %v5280_v51 = vor.u32 %v5515_v45, %v5279_v47  ;;  %v5432_v14 = vld [vmem:[#allocation2 + $0x1d4] sm:$0xf0] }
 0x484   : > { %v5562_v50 = vld [vmem:[%s8739_s1 + $0x2] ss:$8 sm:$0xf]  ;;  %v5296_v7 = vor.u32 %v5519_v41, %v5295_v1 }
 0x485   : > { %2905 = vst [vmem:[#allocation2 + $0x3c8] sm:$0xff] %v2899_v24  ;;  %v8279_v63 = vperm.slane %v5562_v50, 2  ;;  %v8281_v37 = vperm.slane %v5562_v50, 3  ;;  %5357 = vmatmul.msk.bf16.vlgmr.msrb.gmra.mxu1 %vm4022_vm1, %v8261_v3  ;;  %v2134_v27 = vpack.c.bf16 %v2125_v8, %v2124_v52  ;;  %v4952_v52 = vor.u32 %v5432_v14, %v4951_v34  ;;  %v5263_v41 = vld [vmem:[#allocation2 + $0x440] sm:$0xf] }
 0x486   : > { %4211 = vmatpush.bf16.msra.mxu1 %v5108_v32  ;;  %v5300_v32 = vor.u32 %v5517_v59, %v5297_v55  ;;  %v8285_v22 = vpop.permute.xlu1 %2084  ;;  %4117 = vmatpush.bf16.msrb.mxu0 %v5296_v7  ;;  %v5511_v50 = vld [vmem:[#allocation2 + $0x44c] sm:$0xf0] }
 0x487   : > { %v2369_v24 = vpop.permute.xlu2 %2368  ;;  %v2106_v1 = vsel %vm1264_vm10, %v8231_v43, %v8285_v22  ;;  %2140 = vst [vmem:[#allocation2 + $0x400] sm:$0xff] %v2134_v27  ;;  %v5284_v43 = vor.u32 %v5513_v33, %v5281_v17  ;;  %4176 = vmatmul.bf16.vlgmr.msrb.gmra.mxu3 %v8144_v60  ;;  %v5563_v7 = vld [vmem:[%s8739_s1 + $0x1] ss:$8 sm:$0xf] }
 0x488   : > { %v2378_v59 = vsel %vm1402_vm11, %v2369_v24, %v7619_v35  ;;  %v2381_v8 = vsel %vm1402_vm11, %v7577_v28, %v2369_v24  ;;  %4225 = vmatpush.bf16.msra.mxu2 %v5300_v32  ;;  %v2129_v47 = vmul.f32 %v7535_v44, %v2106_v1  ;;  %v5509_v44 = vld [vmem:[#allocation2 + $0x444] sm:$0xf]  ;;  %v8308_v32 = vperm.slane %v5563_v7, 2  ;;  %v5507_v17 = vld [vmem:[#allocation2 + $0x42c] sm:$0xf0] }
 0x489   : > { %v2408_v5 = vmul.f32 %v8279_v63, %v2381_v8  ;;  %v2857_v55 = vpop.permute.xlu0 %2856  ;;  %v8314_v27 = vperm.slane %v5563_v7, 3  ;;  %v5247_v8 = vld [vmem:[#allocation2 + $0x420] sm:$0xf] }
 0x48a   : > { %4276 = vmatpush.bf16.msrb.mxu1 %v4968_v62  ;;  %v2409_v62 = vmul.f32 %v8281_v37, %v2378_v59  ;;  %v2136_v35 = vpack.c.bf16 %v2129_v47, %v2128_v0  ;;  %4118 = vmatpush.bf16.msrb.mxu0 %v5280_v51  ;;  %v2866_v28 = vsel %vm1402_vm11, %v2857_v55, %v7548_v57  ;;  %v5564_v57 = vld [vmem:[%s8739_s1 + $0x4] ss:$8 sm:$0xf] }
 0x48b   : > { %v2869_v33 = vsel %vm1402_vm11, %v7561_v58, %v2857_v55  ;;  %v2897_v0 = vmul.f32 %v8240_v6, %v2866_v28  ;;  %v5264_v51 = vor.u32 %v5511_v50, %v5263_v41  ;;  %v8319_v34 = vperm.slane %v5564_v57, 2  ;;  %v5265_v59 = vld [vmem:[#allocation2 + $0x450] sm:$0xf0] }
 0x48c   : > { %v2415_v45 = vpack.c.bf16 %v2409_v62, %v2408_v5  ;;  %4226 = vmatpush.bf16.msra.mxu2 %v5284_v43  ;;  %2142 = vst [vmem:[#allocation2 + $0x410] sm:$0xff] %v2136_v35  ;;  %v8321_v24 = vperm.slane %v5564_v57, 3  ;;  %v2896_v1 = vmul.f32 %v8238_v13, %v2869_v33  ;;  %v5268_v58 = vor.u32 %v5509_v44, %v5265_v59  ;;  %v5505_v44 = vld [vmem:[#allocation2 + $0x424] sm:$0xf]  ;;  %v5089_v59 = vld [vmem:[#allocation2 + $0x2f0] sm:$0xf0] }
 0x48d   : > { %v5248_v62 = vor.u32 %v5507_v17, %v5247_v8  ;;  %v9099_v17 = vld [vmem:[#allocation20_spill] sm:$0xff]  ;;  %v4711_v8 = vld [vmem:[%s8742_s4 + $0x10] sm:$0xf] }
 0x48e   : > { %4277 = vmatpush.bf16.msrb.mxu1 %v4952_v52  ;;  %2421 = vst [vmem:[#allocation2 + $0x3b8] sm:$0xff] %v2415_v45  ;;  %v2087_v14 = vpop.permute.xlu1 %2086  ;;  %v2903_v5 = vpack.c.bf16 %v2897_v0, %v2896_v1  ;;  %4119 = vmatpush.bf16.msrb.mxu0 %v5264_v51  ;;  %v5249_v52 = vld [vmem:[#allocation2 + $0x430] sm:$0xf0]  ;;  %v5231_v33 = vld [vmem:[#allocation2 + $0x400] sm:$0xf] }
 0x48f   : > { %v2717_v47 = vpop.permute.xlu2 %2716  ;;  %v2098_v41 = vsel %vm1264_vm10, %v2087_v14, %v7521_v49  ;;  %v2101_v43 = vsel %vm1264_vm10, %v7537_v21, %v2087_v14  ;;  %v5252_v21 = vor.u32 %v5505_v44, %v5249_v52  ;;  %v5501_v0 = vld [vmem:[#allocation2 + $0x404] sm:$0xf] }
 0x490   : > { %v2726_v55 = vsel %vm1818_vm13, %v2717_v47, %v7679_v23  ;;  %v2729_v35 = vsel %vm1818_vm13, %v7695_v19, %v2717_v47  ;;  %4227 = vmatpush.bf16.msra.mxu2 %v5268_v58  ;;  %v2122_v45 = vmul.f32 %v8308_v32, %v2101_v43  ;;  %v2123_v28 = vmul.f32 %v8314_v27, %v2098_v41  ;;  %v5465_v1 = vld [vmem:[#allocation2 + $0x2e4] sm:$0xf]  ;;  %v5095_v58 = vld [vmem:[#allocation2 + $0x2e8] sm:$0xf] }
 0x491   : > { %v2756_v50 = vmul.f32 %v8319_v34, %v2729_v35  ;;  %v2757_v49 = vmul.f32 %v8321_v24, %v2726_v55  ;;  %2909 = vst [vmem:[#allocation2 + $0x3e8] sm:$0xff] %v2903_v5  ;;  %v2367_v7 = vpop.permute.xlu0 %2366  ;;  %v5565_v52 = vld [vmem:[%s8739_s1 + $0x6] ss:$8 sm:$0xf]  ;;  %4163 = vmatmul.bf16.gmra.mxu2 %v8242_v48 }
 0x492   : > { %v2133_v23 = vpack.c.bf16 %v2123_v28, %v2122_v45  ;;  %4120 = vmatpush.bf16.msrb.mxu0 %v5248_v62  ;;  %v2377_v19 = vsel %vm1402_vm11, %v2367_v7, %v7632_v30  ;;  %v2380_v57 = vsel %vm1402_vm11, %v9099_v17, %v2367_v7  ;;  %v5372_v30 = vld [vmem:[%s8742_s4 + $0x24] sm:$0xf0]  ;;  %v8357_v41 = vperm.slane %v5565_v52, 2  ;;  %v5468_v45 = vld [vmem:[#allocation2 + $0x2f4] sm:$0xf0]  ;;  %v8365_v44 = vld [vmem:[%s8742_s4 + $0x40] sm:$0xff] }
 0x493   : > { %v2763_v51 = vpack.c.bf16 %v2757_v49, %v2756_v50  ;;  %v2404_v14 = vmul.f32 %v8279_v63, %v2380_v57  ;;  %v2405_v47 = vmul.f32 %v8281_v37, %v2377_v19  ;;  %v5503_v5 = vld [vmem:[#allocation2 + $0x40c] sm:$0xf0]  ;;  %v5233_v62 = vld [vmem:[#allocation2 + $0x410] sm:$0xf0]  ;;  %v8359_v43 = vperm.slane %v5565_v52, 3  ;;  %v9100_v57 = vld [vmem:[#allocation34_spill] sm:$0xff] }
 0x494   : > { %4228 = vmatpush.bf16.msra.mxu2 %v5252_v21  ;;  %2139 = vst [vmem:[#allocation2 + $0x3f8] sm:$0xff] %v2133_v23  ;;  %v5232_v55 = vor.u32 %v5503_v5, %v5231_v33  ;;  %v5236_v35 = vor.u32 %v5501_v0, %v5233_v62  ;;  %v5092_v50 = vor.u32 %v5465_v1, %v5089_v59  ;;  %v5073_v19 = vld [vmem:[#allocation2 + $0x2d0] sm:$0xf0]  ;;  %v5566_v33 = vld [vmem:[%s8739_s1 + $0x3] ss:$8 sm:$0xf]  ;;  %v3189_v17 = vunpack.c.h.b16 %v8365_v44 }
 0x495   : > { %2769 = vst [vmem:[#allocation2 + $0x1a8] sm:$0xff] %v2763_v51  ;;  %v2413_v28 = vpack.c.bf16 %v2405_v47, %v2404_v14  ;;  %v5096_v49 = vor.u32 %v5468_v45, %v5095_v58  ;;  %v8367_v23 = vor.u32 %v5372_v30, %v4711_v8  ;;  %v8372_v0 = vperm.slane %v5566_v33, 2  ;;  %v9101_v59 = vld [vmem:[#allocation18_spill] sm:$0xff]  ;;  %v9102_v8 = vld [vmem:[#allocation41_spill] sm:$0xff] }
 0x496   : > { %v2855_v21 = vpop.permute.xlu1 %2854  ;;  %4121 = vmatpush.bf16.msrb.mxu0 %v5232_v55  ;;  %v8374_v51 = vperm.slane %v5566_v33, 3  ;;  %v9103_v47 = vld [vmem:[#allocation42_spill] sm:$0xff]  ;;  %v5461_v45 = vld [vmem:[#allocation2 + $0x2c4] sm:$0xf] }
 0x497   : > { %v2577_v7 = vpop.permute.xlu2 %2576  ;;  %v2865_v1 = vsel %vm1402_vm11, %v2855_v21, %v9100_v57  ;;  %v2868_v58 = vsel %vm1402_vm11, %v9101_v59, %v2855_v21  ;;  %2419 = vst [vmem:[#allocation2 + $0x3a8] sm:$0xff] %v2413_v28  ;;  %v5464_v21 = vld [vmem:[#allocation2 + $0x2d4] sm:$0xf0]  ;;  %v5076_v33 = vor.u32 %v5461_v45, %v5073_v19  ;;  %4181 = vmatmul.bf16.gmra.mxu3 %v8201_v39  ;;  %v5457_v45 = vld [vmem:[#allocation2 + $0x2a4] sm:$0xf] }
 0x498   : > { %v2586_v14 = vsel %vm2234_vm15, %v2577_v7, %v9102_v8  ;;  %v2589_v5 = vsel %vm2234_vm15, %v9103_v47, %v2577_v7  ;;  %v2892_v62 = vmul.f32 %v8238_v13, %v2868_v58  ;;  %v2893_v30 = vmul.f32 %v8240_v6, %v2865_v1  ;;  %4229 = vmatpush.bf16.msra.mxu2 %v5236_v35  ;;  %v5223_v59 = vld [vmem:[#allocation2 + $0x3e8] sm:$0xf]  ;;  %v9104_v6 = vld [vmem:[#allocation19_spill] sm:$0xff]  ;;  %v9105_v58 = vld [vmem:[#allocation37_spill] sm:$0xff] }
 0x499   : > { %v2616_v52 = vmul.f32 %v8357_v41, %v2589_v5  ;;  %v2617_v55 = vmul.f32 %v8359_v43, %v2586_v14  ;;  %v2787_v57 = vpop.permute.xlu0 %2786  ;;  %v8393_v8 = vpack.c.b16 %v3189_v17, %v3189_v17  ;;  %4122 = vmatmul.bf16.vlgmr.msrb.gmra.mxu0 %v8367_v23  ;;  %v5079_v13 = vld [vmem:[#allocation2 + $0x2c8] sm:$0xf]  ;;  %v5057_v14 = vld [vmem:[#allocation2 + $0x2b0] sm:$0xf0]  ;;  %v5460_v47 = vld [vmem:[#allocation2 + $0x2b4] sm:$0xf0] }
 0x49a   : > { %4186 = vmatpush.bf16.msra.mxu0 %v5092_v50  ;;  %v2901_v7 = vpack.c.bf16 %v2893_v30, %v2892_v62  ;;  %v2796_v1 = vsel %vm1540_vm12, %v2787_v57, %v9104_v6  ;;  %v2799_v35 = vsel %vm1540_vm12, %v9105_v58, %v2787_v57  ;;  %v5080_v50 = vor.u32 %v5464_v21, %v5079_v13  ;;  %v5428_v62 = vld [vmem:[#allocation2 + $0x1b4] sm:$0xf0]  ;;  %v5063_v21 = vld [vmem:[#allocation2 + $0x2a8] sm:$0xf]  ;;  %v9106_v58 = vld [vmem:[#allocation21_spill] sm:$0xff] }
 0x49b   : > { %v2623_v28 = vpack.c.bf16 %v2617_v55, %v2616_v52  ;;  %v2827_v19 = vmul.f32 %v8374_v51, %v2796_v1  ;;  %v5500_v17 = vld [vmem:[#allocation2 + $0x3f4] sm:$0xf0]  ;;  %5358 = vmatmul.msk.bf16.gmra.mxu1 %vm4022_vm1, %v8393_v8  ;;  %v5060_v6 = vor.u32 %v5457_v45, %v5057_v14  ;;  %v5064_v1 = vor.u32 %v5460_v47, %v5063_v21  ;;  %v9108_v45 = vld [vmem:[#allocation22_spill] sm:$0xff] }
 0x49c   : > { %4294 = vmatpush.bf16.msrb.mxu2 %v5096_v49  ;;  %v2826_v49 = vmul.f32 %v8372_v0, %v2799_v35  ;;  %2907 = vst [vmem:[#allocation2 + $0x3d8] sm:$0xff] %v2901_v7  ;;  %v4935_v5 = vld [vmem:[#allocation2 + $0x1a8] sm:$0xf]  ;;  %v5224_v30 = vor.u32 %v5500_v17, %v5223_v59  ;;  %v9107_v7 = vld [vmem:[#allocation36_spill] sm:$0xff] }
 0x49d   : > { %2629 = vst [vmem:[#allocation2 + $0x88] sm:$0xff] %v2623_v28  ;;  %v4936_v52 = vor.u32 %v5428_v62, %v4935_v5  ;;  %v5047_v5 = vld [vmem:[#allocation2 + $0x288] sm:$0xf]  ;;  %v5456_v62 = vld [vmem:[#allocation2 + $0x294] sm:$0xf0] }
 0x49e   : > { %4187 = vmatpush.bf16.msra.mxu0 %v5076_v33  ;;  %v2833_v55 = vpack.c.bf16 %v2827_v19, %v2826_v49  ;;  %v2365_v57 = vpop.permute.xlu1 %2364  ;;  %4312 = vmatpush.bf16.msrb.mxu3 %v5224_v30  ;;  %v5041_v49 = vld [vmem:[#allocation2 + $0x290] sm:$0xf0]  ;;  %v3188_v30 = vunpack.c.l.b16 %v8365_v44  ;;  %v9109_v21 = vld [vmem:[#allocation38_spill] sm:$0xff] }
 0x49f   : > { %v2573_v13 = vpop.permute.xlu2 %2572  ;;  %v2376_v35 = vsel %vm1402_vm11, %v2365_v57, %v9106_v58  ;;  %v2379_v59 = vsel %vm1402_vm11, %v9107_v7, %v2365_v57  ;;  %4278 = vmatpush.bf16.msrb.mxu1 %v4936_v52  ;;  %v5449_v57 = vld [vmem:[#allocation2 + $0x264] sm:$0xf]  ;;  %v5191_v7 = vld [vmem:[#allocation2 + $0x3a8] sm:$0xf] }
 0x4a0   : > { %4295 = vmatpush.bf16.msrb.mxu2 %v5080_v50  ;;  %v2584_v33 = vsel %vm2234_vm15, %v2573_v13, %v7837_v38  ;;  %v2587_v28 = vsel %vm2234_vm15, %v7808_v56, %v2573_v13  ;;  %v5453_v50 = vld [vmem:[#allocation2 + $0x284] sm:$0xf]  ;;  %v2400_v19 = vmul.f32 %v8279_v63, %v2379_v59  ;;  %v2401_v17 = vmul.f32 %v8281_v37, %v2376_v35  ;;  %v5031_v13 = vld [vmem:[#allocation2 + $0x268] sm:$0xf] }
 0x4a1   : > { %v2608_v14 = vmul.f32 %v8357_v41, %v2587_v28  ;;  %v2609_v47 = vmul.f32 %v8359_v43, %v2584_v33  ;;  %2839 = vst [vmem:[#allocation2 + $0x388] sm:$0xff] %v2833_v55  ;;  %v2785_v38 = vpop.permute.xlu0 %2784  ;;  %v5207_v55 = vld [vmem:[#allocation2 + $0x3c8] sm:$0xf]  ;;  %v5044_v35 = vor.u32 %v5453_v50, %v5041_v49  ;;  %v5567_v59 = vld [vmem:[%s8739_s1 + $0x4] ss:$8 sm:$0xf]  ;;  %4230 = vmatmul.bf16.vlgmr.msra.gmra.mxu2 %v8367_v23 }
 0x4a2   : > { %4188 = vmatpush.bf16.msra.mxu0 %v5060_v6  ;;  %v2411_v52 = vpack.c.bf16 %v2401_v17, %v2400_v19  ;;  %v2795_v63 = vsel %vm1540_vm12, %v2785_v38, %v9108_v45  ;;  %v2798_v37 = vsel %vm1540_vm12, %v9109_v21, %v2785_v38  ;;  %v5048_v6 = vor.u32 %v5456_v62, %v5047_v5  ;;  %v5025_v17 = vld [vmem:[#allocation2 + $0x270] sm:$0xf0]  ;;  %v5492_v49 = vld [vmem:[#allocation2 + $0x3b4] sm:$0xf0] }
 0x4a3   : > { %v2619_v56 = vpack.c.bf16 %v2609_v47, %v2608_v14  ;;  %v5496_v58 = vld [vmem:[#allocation2 + $0x3d4] sm:$0xf0]  ;;  %v2823_v44 = vmul.f32 %v8374_v51, %v2795_v63  ;;  %v8435_v33 = vperm.slane %v5567_v59, 2  ;;  %v8437_v28 = vperm.slane %v5567_v59, 3  ;;  %v5009_v63 = vld [vmem:[#allocation2 + $0x250] sm:$0xf0] }
 0x4a4   : > { %4296 = vmatpush.bf16.msrb.mxu2 %v5064_v1  ;;  %v2822_v1 = vmul.f32 %v8372_v0, %v2798_v37  ;;  %2417 = vst [vmem:[#allocation2 + $0x398] sm:$0xff] %v2411_v52  ;;  %v5208_v19 = vor.u32 %v5496_v58, %v5207_v55  ;;  %v5452_v14 = vld [vmem:[#allocation2 + $0x274] sm:$0xf0]  ;;  %v5192_v62 = vor.u32 %v5492_v49, %v5191_v7  ;;  %v9111_v55 = vld [vmem:[#allocation39_spill] sm:$0xff] }
 0x4a5   : > { %2625 = vst [vmem:[#allocation2 + $0x68] sm:$0xff] %v2619_v56  ;;  %v5028_v38 = vor.u32 %v5449_v57, %v5025_v17  ;;  %v5032_v52 = vor.u32 %v5452_v14, %v5031_v13  ;;  %v8440_v45 = vpack.c.b16 %v3188_v30, %v3188_v30  ;;  %v9110_v21 = vld [vmem:[#allocation40_spill] sm:$0xff]  ;;  %v9113_v49 = vld [vmem:[#allocation23_spill] sm:$0xff] }
 0x4a6   : > { %4189 = vmatpush.bf16.msra.mxu0 %v5044_v35  ;;  %v2831_v50 = vpack.c.bf16 %v2823_v44, %v2822_v1  ;;  %v2783_v47 = vpop.permute.xlu1 %2782  ;;  %4313 = vmatpush.bf16.msrb.mxu3 %v5208_v19  ;;  %v5445_v1 = vld [vmem:[#allocation2 + $0x244] sm:$0xf]  ;;  %v5448_v44 = vld [vmem:[#allocation2 + $0x254] sm:$0xf0] }
 0x4a7   : > { %v2299_v5 = vpop.permute.xlu2 %2298  ;;  %v2794_v37 = vsel %vm1540_vm12, %v2783_v47, %v9110_v21  ;;  %v2797_v56 = vsel %vm1540_vm12, %v9111_v55, %v2783_v47  ;;  %v5012_v7 = vor.u32 %v5445_v1, %v5009_v63  ;;  %5359 = vmatmul.msk.bf16.vlgmr.msra.gmra.mxu3 %vm4022_vm1, %v8261_v3  ;;  %v4993_v21 = vld [vmem:[#allocation2 + $0x230] sm:$0xf0] }
 0x4a8   : > { %4297 = vmatpush.bf16.msrb.mxu2 %v5048_v6  ;;  %v2308_v58 = vsel %vm1818_vm13, %v2299_v5, %v7868_v16  ;;  %v2311_v57 = vsel %vm1818_vm13, %v7814_v26, %v2299_v5  ;;  %2837 = vst [vmem:[#allocation2 + $0x378] sm:$0xff] %v2831_v50  ;;  %v2818_v30 = vmul.f32 %v8372_v0, %v2797_v56  ;;  %v5175_v16 = vld [vmem:[#allocation2 + $0x388] sm:$0xf]  ;;  %v9112_v0 = vld [vmem:[#allocation43_spill] sm:$0xff] }
 0x4a9   : > { %v2819_v13 = vmul.f32 %v8374_v51, %v2794_v37  ;;  %v2338_v35 = vmul.f32 %v8435_v33, %v2311_v57  ;;  %v2339_v6 = vmul.f32 %v8437_v28, %v2308_v58  ;;  %v2715_v59 = vpop.permute.xlu0 %2714  ;;  %4127 = vmatmul.bf16.gmra.mxu0 %v8440_v45  ;;  %v5015_v26 = vld [vmem:[#allocation2 + $0x248] sm:$0xf]  ;;  %v5444_v37 = vld [vmem:[#allocation2 + $0x234] sm:$0xf0] }
 0x4aa   : > { %4190 = vmatpush.bf16.msra.mxu0 %v5028_v38  ;;  %4314 = vmatpush.bf16.msrb.mxu3 %v5192_v62  ;;  %v2725_v51 = vsel %vm1818_vm13, %v2715_v59, %v9112_v0  ;;  %v5016_v50 = vor.u32 %v5448_v44, %v5015_v26  ;;  %v2728_v14 = vsel %vm1818_vm13, %v9113_v49, %v2715_v59  ;;  %v5441_v38 = vld [vmem:[#allocation2 + $0x224] sm:$0xf]  ;;  %v4983_v49 = vld [vmem:[#allocation2 + $0x208] sm:$0xf] }
 0x4ab   : > { %v2829_v19 = vpack.c.bf16 %v2819_v13, %v2818_v30  ;;  %v2345_v17 = vpack.c.bf16 %v2339_v6, %v2338_v35  ;;  %v2753_v47 = vmul.f32 %v8321_v24, %v2725_v51  ;;  %v5488_v5 = vld [vmem:[#allocation2 + $0x394] sm:$0xf0]  ;;  %4212 = vmatmul.bf16.vlgmr.msra.gmra.mxu1 %v8050_v40  ;;  %v2752_v62 = vmul.f32 %v8319_v34, %v2728_v14  ;;  %v4977_v13 = vld [vmem:[#allocation2 + $0x210] sm:$0xf0]  ;;  %v4839_v14 = vld [vmem:[#allocation2 + $0xe8] sm:$0xf] }
 0x4ac   : > { %4298 = vmatpush.bf16.msrb.mxu2 %v5032_v52  ;;  %v4999_v52 = vld [vmem:[#allocation2 + $0x228] sm:$0xf]  ;;  %v5176_v63 = vor.u32 %v5488_v5, %v5175_v16  ;;  %v4996_v57 = vor.u32 %v5441_v38, %v4993_v21  ;;  %v5400_v21 = vld [vmem:[#allocation2 + $0xd4] sm:$0xf0] }
 0x4ad   : > { %2835 = vst [vmem:[#allocation2 + $0x368] sm:$0xff] %v2829_v19  ;;  %v2761_v58 = vpack.c.bf16 %v2753_v47, %v2752_v62  ;;  %v5000_v30 = vor.u32 %v5444_v37, %v4999_v52  ;;  %v4825_v37 = vld [vmem:[#allocation2 + $0xd8] sm:$0xf0] }
 0x4ae   : > { %2351 = vst [vmem:[#allocation2 + $0x178] sm:$0xff] %v2345_v17  ;;  %4191 = vmatpush.bf16.msra.mxu0 %v5012_v7  ;;  %v2713_v55 = vpop.permute.xlu1 %2712  ;;  %4315 = vmatpush.bf16.msrb.mxu3 %v5176_v63  ;;  %v5437_v7 = vld [vmem:[#allocation2 + $0x204] sm:$0xf]  ;;  %v5440_v17 = vld [vmem:[#allocation2 + $0x214] sm:$0xf0] }
 0x4af   : > { %v2295_v56 = vpop.permute.xlu2 %2294  ;;  %v2724_v35 = vsel %vm1818_vm13, %v2713_v55, %v7797_v18  ;;  %v2727_v6 = vsel %vm1818_vm13, %v7768_v4, %v2713_v55  ;;  %2767 = vst [vmem:[#allocation2 + $0x198] sm:$0xff] %v2761_v58  ;;  %v5404_v4 = vld [vmem:[#allocation2 + $0xf4] sm:$0xf0]  ;;  %v4980_v26 = vor.u32 %v5437_v7, %v4977_v13  ;;  %v4984_v5 = vor.u32 %v5440_v17, %v4983_v49  ;;  %v5568_v55 = vld [vmem:[%s8739_s1 + $0x7] ss:$8 sm:$0xf] }
 0x4b0   : > { %4299 = vmatpush.bf16.msrb.mxu2 %v5016_v50  ;;  %v2306_v1 = vsel %vm1818_vm13, %v2295_v56, %v7936_v29  ;;  %v2309_v44 = vsel %vm1818_vm13, %v7945_v31, %v2295_v56  ;;  %v2748_v59 = vmul.f32 %v8319_v34, %v2727_v6  ;;  %v2749_v16 = vmul.f32 %v8321_v24, %v2724_v35  ;;  %v4841_v29 = vld [vmem:[#allocation2 + $0xf8] sm:$0xf0]  ;;  %v5484_v51 = vld [vmem:[#allocation2 + $0x374] sm:$0xf0]  ;;  %v5402_v34 = vld [vmem:[#allocation2 + $0xec] sm:$0xf] }
 0x4b1   : > { %v2330_v19 = vmul.f32 %v8435_v33, %v2309_v44  ;;  %v2331_v18 = vmul.f32 %v8437_v28, %v2306_v1  ;;  %v2297_v0 = vpop.permute.xlu0 %2296  ;;  %v4840_v38 = vor.u32 %v5404_v4, %v4839_v14  ;;  %v8497_v56 = vperm.slane %v5568_v55, 2  ;;  %4235 = vmatmul.bf16.gmra.mxu2 %v8440_v45  ;;  %v5143_v1 = vld [vmem:[#allocation2 + $0x348] sm:$0xf]  ;;  %v5480_v44 = vld [vmem:[#allocation2 + $0x354] sm:$0xf0] }
 0x4b2   : > { %4192 = vmatpush.bf16.msra.mxu0 %v4996_v57  ;;  %v2759_v50 = vpack.c.bf16 %v2749_v16, %v2748_v59  ;;  %v2307_v24 = vsel %vm1818_vm13, %v2297_v0, %v7884_v61  ;;  %v2310_v47 = vsel %vm1818_vm13, %v7848_v11, %v2297_v0  ;;  %v8499_v61 = vperm.slane %v5568_v55, 3  ;;  %v5398_v57 = vld [vmem:[#allocation2 + $0xcc] sm:$0xf]  ;;  %v5396_v49 = vld [vmem:[#allocation2 + $0xb4] sm:$0xf0] }
 0x4b3   : > { %v2341_v31 = vpack.c.bf16 %v2331_v18, %v2330_v19  ;;  %v2334_v52 = vmul.f32 %v8435_v33, %v2310_v47  ;;  %v2335_v62 = vmul.f32 %v8437_v28, %v2307_v24  ;;  %v4844_v58 = vor.u32 %v5402_v34, %v4841_v29  ;;  %v4823_v28 = vld [vmem:[#allocation2 + $0xc8] sm:$0xf]  ;;  %v4809_v14 = vld [vmem:[#allocation2 + $0xb8] sm:$0xf0] }
 0x4b4   : > { %4300 = vmatpush.bf16.msrb.mxu2 %v5000_v30  ;;  %v5159_v63 = vld [vmem:[#allocation2 + $0x368] sm:$0xf]  ;;  %2765 = vst [vmem:[#allocation2 + $0x188] sm:$0xff] %v2759_v50  ;;  %v4824_v35 = vor.u32 %v5400_v21, %v4823_v28  ;;  %v4828_v6 = vor.u32 %v5398_v57, %v4825_v37  ;;  %v5144_v0 = vor.u32 %v5480_v44, %v5143_v1  ;;  %v5390_v21 = vld [vmem:[#allocation2 + $0x8c] sm:$0xf] }
 0x4b5   : > { %v5160_v11 = vor.u32 %v5484_v51, %v5159_v63  ;;  %2347 = vst [vmem:[#allocation2 + $0x158] sm:$0xff] %v2341_v31  ;;  %v2343_v33 = vpack.c.bf16 %v2335_v62, %v2334_v52  ;;  %v9114_v34 = vld [vmem:[#allocation46_spill] sm:$0xff]  ;;  %v5392_v28 = vld [vmem:[#allocation2 + $0x94] sm:$0xf0]  ;;  %v4793_v57 = vld [vmem:[#allocation2 + $0x98] sm:$0xf0] }
 0x4b6   : > { %4193 = vmatpush.bf16.msra.mxu0 %v4980_v26  ;;  %v2575_v30 = vpop.permute.xlu1 %2574  ;;  %v4807_v26 = vld [vmem:[#allocation2 + $0xa8] sm:$0xf]  ;;  %v5424_v50 = vld [vmem:[#allocation2 + $0x194] sm:$0xf0]  ;;  %v4796_v1 = vor.u32 %v5390_v21, %v4793_v57 }
 0x4b7   : > { %v2505_v13 = vpop.permute.xlu2 %2504  ;;  %v2585_v7 = vsel %vm2234_vm15, %v2575_v30, %v7821_v46  ;;  %v2588_v59 = vsel %vm2234_vm15, %v7774_v53, %v2575_v30  ;;  %2349 = vst [vmem:[#allocation2 + $0x168] sm:$0xff] %v2343_v33  ;;  %4316 = vmatpush.bf16.msrb.mxu3 %v5160_v11  ;;  %v5127_v53 = vld [vmem:[#allocation2 + $0x328] sm:$0xf]  ;;  %v4808_v47 = vor.u32 %v5396_v49, %v4807_v26  ;;  %v5476_v11 = vld [vmem:[#allocation2 + $0x334] sm:$0xf0] }
 0x4b8   : > { %4301 = vmatpush.bf16.msrb.mxu2 %v4984_v5  ;;  %v2515_v16 = vsel %vm2512_vm0, %v2505_v13, %v8004_v12  ;;  %v2518_v19 = vsel %vm2512_vm0, %v8018_v54, %v2505_v13  ;;  %v2612_v18 = vmul.f32 %v8357_v41, %v2588_v59  ;;  %v2613_v17 = vmul.f32 %v8359_v43, %v2585_v7  ;;  %v5569_v12 = vld [vmem:[%s8739_s1 + $0x6] ss:$8 sm:$0xf]  ;;  %v4791_v63 = vld [vmem:[#allocation2 + $0x88] sm:$0xf] }
 0x4b9   : > { %v2546_v4 = vmul.f32 %v8497_v56, %v2518_v19  ;;  %v2547_v46 = vmul.f32 %v8499_v61, %v2515_v16  ;;  %v8521_v29 = vperm.slane %v5569_v12, 3  ;;  %v5394_v54 = vld [vmem:[#allocation2 + $0xac] sm:$0xf]  ;;  %v2227_v51 = vpop.permute.xlu0 %2226  ;;  %v8523_v43 = vperm.slane %v5569_v12, 2  ;;  %4194 = vmatmul.bf16.vlgmr.msra.gmra.mxu0 %v8131_v36  ;;  %v9115_v5 = vld [vmem:[#allocation44_spill] sm:$0xff]  ;;  %5360 = vmatmul.msk.bf16.gmra.mxu3 %vm4022_vm1, %v8393_v8  ;;  %v9116_v7 = vld [vmem:[#allocation3_spill] sm:$0xff] }
 0x4ba   : > { %4258 = vmatpush.bf16.msrb.mxu0 %v4840_v38  ;;  %v2621_v41 = vpack.c.bf16 %v2613_v17, %v2612_v18  ;;  %v2237_v24 = vsel %vm2234_vm15, %v2227_v51, %v9114_v34  ;;  %v2240_v38 = vsel %vm2234_vm15, %v9115_v5, %v2227_v51  ;;  %v4812_v37 = vor.u32 %v5394_v54, %v4809_v14  ;;  %v9117_v16 = vld [vmem:[#allocation45_spill] sm:$0xff]  ;;  %v5420_v54 = vld [vmem:[#allocation2 + $0x174] sm:$0xf0]  ;;  %v5434_v34 = vld [vmem:[#allocation2 + $0x1ec] sm:$0xf] }
 0x4bb   : > { %v2553_v31 = vpack.c.bf16 %v2547_v46, %v2546_v4  ;;  %v2269_v52 = vmul.f32 %v8521_v29, %v2237_v24  ;;  %v4919_v62 = vld [vmem:[#allocation2 + $0x188] sm:$0xf]  ;;  %4317 = vmatpush.bf16.msrb.mxu3 %v5144_v0  ;;  %v2268_v55 = vmul.f32 %v8523_v43, %v2240_v38  ;;  %4217 = vmatmul.bf16.gmra.mxu1 %v8228_v15  ;;  %v5472_v4 = vld [vmem:[#allocation2 + $0x314] sm:$0xf0]  ;;  %v4969_v0 = vld [vmem:[#allocation2 + $0x1f8] sm:$0xf0] }
 0x4bc   : > { %4366 = vmatpush.bf16.msra.mxu2 %v4844_v58  ;;  %2627 = vst [vmem:[#allocation2 + $0x78] sm:$0xff] %v2621_v41  ;;  %v4920_v58 = vor.u32 %v5424_v50, %v4919_v62  ;;  %v5128_v33 = vor.u32 %v5476_v11, %v5127_v53  ;;  %v9118_v24 = vld [vmem:[#allocation8_spill] sm:$0xff]  ;;  %v5430_v5 = vld [vmem:[#allocation2 + $0x1cc] sm:$0xf]  ;;  %v4775_v62 = vld [vmem:[#allocation2 + $0x68] sm:$0xf] }
 0x4bd   : > { %2559 = vst [vmem:[#allocation2 + $0x28] sm:$0xff] %v2553_v31  ;;  %v5571_v11 = vld [vmem:[%s8739_s1 + $0x1] ss:$8 sm:$0xf] }
 0x4be   : > { %4259 = vmatpush.bf16.msrb.mxu0 %v4824_v35  ;;  %v2225_v30 = vpop.permute.xlu1 %2224  ;;  %v2275_v35 = vpack.c.bf16 %v2269_v52, %v2268_v55  ;;  %v4903_v44 = vld [vmem:[#allocation2 + $0x168] sm:$0xf]  ;;  %4279 = vmatpush.bf16.msrb.mxu1 %v4920_v58  ;;  %v4972_v52 = vor.u32 %v5434_v34, %v4969_v0  ;;  %v9124_v34 = vld [vmem:[#allocation29_spill] sm:$0xff] }
 0x4bf   : > { %v2501_v13 = vpop.permute.xlu2 %2500  ;;  %v2236_v59 = vsel %vm2234_vm15, %v2225_v30, %v9116_v7  ;;  %v2239_v19 = vsel %vm2234_vm15, %v9117_v16, %v2225_v30  ;;  %4318 = vmatpush.bf16.msrb.mxu3 %v5128_v33  ;;  %v4904_v41 = vor.u32 %v5420_v54, %v4903_v44  ;;  %v8570_v33 = vperm.slane %v5571_v11, 2  ;;  %v5386_v30 = vld [vmem:[#allocation2 + $0x6c] sm:$0xf] }
 0x4c0   : > { %4367 = vmatpush.bf16.msra.mxu2 %v4828_v6  ;;  %v4792_v6 = vor.u32 %v5392_v28, %v4791_v63  ;;  %v2513_v18 = vsel %vm2512_vm0, %v2501_v13, %v8121_v20  ;;  %v2516_v17 = vsel %vm2512_vm0, %v8084_v10, %v2501_v13  ;;  %v2264_v46 = vmul.f32 %v8523_v43, %v2239_v19  ;;  %v5570_v20 = vld [vmem:[%s8739_s1 + $0x5] ss:$8 sm:$0xf]  ;;  %v5111_v10 = vld [vmem:[#allocation2 + $0x308] sm:$0xf] }
 0x4c1   : > { %v2265_v26 = vmul.f32 %v8521_v29, %v2236_v59  ;;  %v2538_v53 = vmul.f32 %v8497_v56, %v2516_v17  ;;  %v2539_v12 = vmul.f32 %v8499_v61, %v2513_v18  ;;  %2281 = vst [vmem:[#allocation2 + $0x58] sm:$0xff] %v2275_v35  ;;  %v8556_v51 = vperm.slane %v5570_v20, 2  ;;  %v2223_v50 = vpop.permute.xlu0 %2222  ;;  %4302 = vmatmul.bf16.vlgmr.msrb.gmra.mxu2 %v8131_v36  ;;  %v9120_v59 = vld [vmem:[#allocation4_spill] sm:$0xff]  ;;  %v9121_v19 = vld [vmem:[#allocation5_spill] sm:$0xff] }
 0x4c2   : > { %4260 = vmatpush.bf16.msrb.mxu0 %v4808_v47  ;;  %v8558_v14 = vperm.slane %v5570_v20, 3  ;;  %v2235_v47 = vsel %vm2234_vm15, %v2223_v50, %v9118_v24  ;;  %v5112_v38 = vor.u32 %v5472_v4, %v5111_v10  ;;  %4280 = vmatpush.bf16.msrb.mxu1 %v4904_v41  ;;  %v8572_v28 = vperm.slane %v5571_v11, 3  ;;  %v9122_v41 = vld [vmem:[#allocation11_spill] sm:$0xff] }
 0x4c3   : > { %v2273_v31 = vpack.c.bf16 %v2265_v26, %v2264_v46  ;;  %v2549_v49 = vpack.c.bf16 %v2539_v12, %v2538_v53  ;;  %v5388_v63 = vld [vmem:[#allocation2 + $0x74] sm:$0xf0]  ;;  %v4777_v21 = vld [vmem:[#allocation2 + $0x78] sm:$0xf0]  ;;  %v2261_v58 = vmul.f32 %v8521_v29, %v2235_v47  ;;  %v5426_v12 = vld [vmem:[#allocation2 + $0x1ac] sm:$0xf] }
 0x4c4   : > { %4368 = vmatpush.bf16.msra.mxu2 %v4812_v37  ;;  %v9119_v37 = vld [vmem:[#allocation6_spill] sm:$0xff]  ;;  %v4776_v57 = vor.u32 %v5388_v63, %v4775_v62  ;;  %4319 = vmatpush.bf16.msrb.mxu3 %v5112_v38  ;;  %v4780_v35 = vor.u32 %v5386_v30, %v4777_v21  ;;  %v4953_v29 = vld [vmem:[#allocation2 + $0x1d8] sm:$0xf0] }
 0x4c5   : > { %v2238_v55 = vsel %vm2234_vm15, %v9119_v37, %v2223_v50  ;;  %2279 = vst [vmem:[#allocation2 + $0x48] sm:$0xff] %v2273_v31  ;;  %v4956_v7 = vor.u32 %v5430_v5, %v4953_v29  ;;  %v4937_v50 = vld [vmem:[#allocation2 + $0x1b8] sm:$0xf0]  ;;  %v9123_v31 = vld [vmem:[#allocation10_spill] sm:$0xff] }
 0x4c6   : > { %4261 = vmatpush.bf16.msrb.mxu0 %v4792_v6  ;;  %v2260_v13 = vmul.f32 %v8523_v43, %v2238_v55  ;;  %2555 = vst [vmem:[#allocation2 + $0x8] sm:$0xff] %v2549_v49  ;;  %v2647_v6 = vpop.permute.xlu1 %2646  ;;  %v4940_v62 = vor.u32 %v5426_v12, %v4937_v50  ;;  %v5422_v55 = vld [vmem:[#allocation2 + $0x18c] sm:$0xf]  ;;  %v9125_v30 = vld [vmem:[#allocation12_spill] sm:$0xff] }
 0x4c7   : > { %v2656_v16 = vsel %vm1956_vm14, %v2647_v6, %v9120_v59  ;;  %v2659_v43 = vsel %vm1956_vm14, %v9121_v19, %v2647_v6  ;;  %v9127_v12 = vld [vmem:[#allocation24_spill] sm:$0xff] }
 0x4c8   : > { %4369 = vmatpush.bf16.msra.mxu2 %v4796_v1  ;;  %v2923_v1 = vpop.permute.xlu2 %2922  ;;  %4384 = vmatpush.bf16.msra.mxu3 %v4972_v52  ;;  %v2271_v44 = vpack.c.bf16 %v2261_v58, %v2260_v13  ;;  %v2686_v4 = vmul.f32 %v8556_v51, %v2659_v43  ;;  %v2687_v46 = vmul.f32 %v8558_v14, %v2656_v16  ;;  %v5384_v54 = vld [vmem:[#allocation2 + $0x54] sm:$0xf0]  ;;  %v4761_v20 = vld [vmem:[#allocation2 + $0x58] sm:$0xf0] }
 0x4c9   : > { %v2934_v18 = vsel %vm1264_vm10, %v2923_v1, %v8203_v25  ;;  %v2937_v17 = vsel %vm1264_vm10, %v8123_v2, %v2923_v1  ;;  %v2645_v0 = vpop.permute.xlu0 %2644  ;;  %4199 = vmatmul.bf16.gmra.mxu0 %v9124_v34  ;;  %v4921_v52 = vld [vmem:[#allocation2 + $0x198] sm:$0xf0]  ;;  %4320 = vmatmul.bf16.vlgmr.msrb.gmra.mxu3 %v8050_v40 }
 0x4ca   : > { %4262 = vmatpush.bf16.msrb.mxu0 %v4776_v57  ;;  %v2958_v26 = vmul.f32 %v8570_v33, %v2937_v17  ;;  %v2959_v53 = vmul.f32 %v8572_v28, %v2934_v18  ;;  %2277 = vst [vmem:[#allocation2 + $0x38] sm:$0xff] %v2271_v44  ;;  %v2693_v10 = vpack.c.bf16 %v2687_v46, %v2686_v4  ;;  %v4743_v18 = vld [vmem:[#allocation2 + $0x28] sm:$0xf]  ;;  %v5378_v17 = vld [vmem:[#allocation2 + $0x2c] sm:$0xf] }
 0x4cb   : > { %v2655_v2 = vsel %vm1956_vm14, %v2645_v0, %v9122_v41  ;;  %v2658_v49 = vsel %vm1956_vm14, %v9123_v31, %v2645_v0  ;;  %v4924_v57 = vor.u32 %v5422_v55, %v4921_v52  ;;  %v5418_v4 = vld [vmem:[#allocation2 + $0x16c] sm:$0xf]  ;;  %v9128_v0 = vld [vmem:[#allocation25_spill] sm:$0xff] }
 0x4cc   : > { %4370 = vmatpush.bf16.msra.mxu2 %v4780_v35  ;;  %v2969_v25 = vpack.c.bf16 %v2959_v53, %v2958_v26  ;;  %4385 = vmatpush.bf16.msra.mxu3 %v4956_v7  ;;  %v2682_v24 = vmul.f32 %v8556_v51, %v2658_v49  ;;  %v2683_v47 = vmul.f32 %v8558_v14, %v2655_v2  ;;  %v4759_v5 = vld [vmem:[#allocation2 + $0x48] sm:$0xf]  ;;  %v5382_v38 = vld [vmem:[#allocation2 + $0x4c] sm:$0xf]  ;;  %v9126_v35 = vld [vmem:[#allocation7_spill] sm:$0xff] }
 0x4cd   : > { %2699 = vst [vmem:[#allocation2 + $0x148] sm:$0xff] %v2693_v10  ;;  %v4760_v63 = vor.u32 %v5384_v54, %v4759_v5  ;;  %v4764_v21 = vor.u32 %v5382_v38, %v4761_v20  ;;  %v5416_v20 = vld [vmem:[#allocation2 + $0x154] sm:$0xf0]  ;;  %v4905_v10 = vld [vmem:[#allocation2 + $0x178] sm:$0xf0]  ;;  %v9130_v38 = vld [vmem:[#allocation9_spill] sm:$0xff] }
 0x4ce   : > { %2975 = vst [vmem:[#allocation2 + $0x488] sm:$0xff] %v2969_v25  ;;  %v2691_v37 = vpack.c.bf16 %v2683_v47, %v2682_v24  ;;  %v2643_v58 = vpop.permute.xlu1 %2642  ;;  %v4908_v2 = vor.u32 %v5418_v4, %v4905_v10  ;;  %v9129_v47 = vld [vmem:[#allocation26_spill] sm:$0xff] }
 0x4cf   : > { %4263 = vmatpush.bf16.msrb.mxu0 %v4760_v63  ;;  %v2654_v13 = vsel %vm1956_vm14, %v2643_v58, %v9125_v30  ;;  %v2657_v29 = vsel %vm1956_vm14, %v9126_v35, %v2643_v58  ;;  %v9131_v30 = vld [vmem:[#allocation30_spill] sm:$0xff]  ;;  %v9132_v35 = vld [vmem:[#allocation28_spill] sm:$0xff] }
 0x4d0   : > { %v2091_v11 = vpop.permute.xlu2 %2090  ;;  %4386 = vmatpush.bf16.msra.mxu3 %v4940_v62  ;;  %2697 = vst [vmem:[#allocation2 + $0x138] sm:$0xff] %v2691_v37  ;;  %v2678_v59 = vmul.f32 %v8556_v51, %v2657_v29  ;;  %v2679_v16 = vmul.f32 %v8558_v14, %v2654_v13  ;;  %4371 = vmatpush.bf16.msra.mxu2 %v4764_v21  ;;  %v4889_v62 = vld [vmem:[#allocation2 + $0x158] sm:$0xf0]  ;;  %v4855_v4 = vld [vmem:[#allocation2 + $0x108] sm:$0xf] }
 0x4d1   : > { %v2100_v6 = vsel %vm1264_vm10, %v2091_v11, %v8222_v9  ;;  %v2103_v1 = vsel %vm1264_vm10, %v8285_v22, %v2091_v11  ;;  %v5380_v44 = vld [vmem:[#allocation2 + $0x34] sm:$0xf0]  ;;  %v4745_v7 = vld [vmem:[#allocation2 + $0x38] sm:$0xf0]  ;;  %v2927_v9 = vpop.permute.xlu0 %2926  ;;  %4307 = vmatmul.bf16.gmra.mxu2 %v9124_v34  ;;  %v5374_v10 = vld [vmem:[#allocation2 + $0xc] sm:$0xf] }
 0x4d2   : > { %v2130_v19 = vmul.f32 %v8308_v32, %v2103_v1  ;;  %v2131_v43 = vmul.f32 %v8314_v27, %v2100_v6  ;;  %v4744_v46 = vor.u32 %v5380_v44, %v4743_v18  ;;  %v4748_v26 = vor.u32 %v5378_v17, %v4745_v7  ;;  %v9133_v18 = vld [vmem:[#allocation13_spill] sm:$0xff] }
 0x4d3   : > { %v2689_v53 = vpack.c.bf16 %v2679_v16, %v2678_v59  ;;  %v2936_v51 = vsel %vm1264_vm10, %v2927_v9, %v9127_v12  ;;  %v2939_v14 = vsel %vm1264_vm10, %v9128_v0, %v2927_v9  ;;  %v5408_v16 = vld [vmem:[#allocation2 + $0x114] sm:$0xf0]  ;;  %v5406_v9 = vld [vmem:[#allocation2 + $0x10c] sm:$0xf]  ;;  %v4727_v0 = vld [vmem:[#allocation2 + $0x8] sm:$0xf] }
 0x4d4   : > { %v2137_v22 = vpack.c.bf16 %v2131_v43, %v2130_v19  ;;  %4387 = vmatpush.bf16.msra.mxu3 %v4924_v57  ;;  %v4887_v54 = vld [vmem:[#allocation2 + $0x148] sm:$0xf]  ;;  %v2966_v25 = vmul.f32 %v8570_v33, %v2939_v14  ;;  %v2967_v50 = vmul.f32 %v8572_v28, %v2936_v51  ;;  %4264 = vmatpush.bf16.msrb.mxu0 %v4744_v46  ;;  %v5414_v49 = vld [vmem:[#allocation2 + $0x14c] sm:$0xf]  ;;  %v4857_v19 = vld [vmem:[#allocation2 + $0x118] sm:$0xf0] }
 0x4d5   : > { %2695 = vst [vmem:[#allocation2 + $0x128] sm:$0xff] %v2689_v53  ;;  %v4888_v41 = vor.u32 %v5416_v20, %v4887_v54  ;;  %4372 = vmatpush.bf16.msra.mxu2 %v4748_v26  ;;  %v4892_v37 = vor.u32 %v5414_v49, %v4889_v62  ;;  %v4856_v53 = vor.u32 %v5408_v16, %v4855_v4  ;;  %v5532_v12 = vld [vmem:[#allocation2 + $0x4f4] sm:$0xf0]  ;;  %v5353_v14 = vld [vmem:[#allocation2 + $0x4f8] sm:$0xf0] }
 0x4d6   : > { %2143 = vst [vmem:[#allocation2 + $0x418] sm:$0xff] %v2137_v22  ;;  %v2973_v31 = vpack.c.bf16 %v2967_v50, %v2966_v25  ;;  %v2503_v24 = vpop.permute.xlu1 %2502  ;;  %v4860_v22 = vor.u32 %v5406_v9, %v4857_v19  ;;  %v5498_v54 = vld [vmem:[#allocation2 + $0x3ec] sm:$0xf]  ;;  %v9135_v50 = vld [vmem:[#allocation33_spill] sm:$0xff] }
 0x4d7   : > { %4281 = vmatpush.bf16.msrb.mxu1 %v4888_v41  ;;  %v2514_v5 = vsel %vm2512_vm0, %v2503_v24, %v9129_v47  ;;  %v2517_v52 = vsel %vm2512_vm0, %v9130_v38, %v2503_v24  ;;  %v5412_v58 = vld [vmem:[#allocation2 + $0x134] sm:$0xf0]  ;;  %v4873_v11 = vld [vmem:[#allocation2 + $0x138] sm:$0xf0]  ;;  %v9136_v41 = vld [vmem:[#allocation35_spill] sm:$0xff] }
 0x4d8   : > { %4388 = vmatpush.bf16.msra.mxu3 %v4908_v2  ;;  %2979 = vst [vmem:[#allocation2 + $0x4a8] sm:$0xff] %v2973_v31  ;;  %v2542_v63 = vmul.f32 %v8497_v56, %v2517_v52  ;;  %v2543_v21 = vmul.f32 %v8499_v61, %v2514_v5  ;;  %v5351_v31 = vld [vmem:[#allocation2 + $0x4e8] sm:$0xf]  ;;  %v5530_v49 = vld [vmem:[#allocation2 + $0x4ec] sm:$0xf] }
 0x4d9   : > { %v2089_v55 = vpop.permute.xlu0 %2088  ;;  %4325 = vmatmul.bf16.gmra.mxu3 %v8228_v15  ;;  %v5352_v24 = vor.u32 %v5532_v12, %v5351_v31  ;;  %v5356_v47 = vor.u32 %v5530_v49, %v5353_v14  ;;  %v5335_v5 = vld [vmem:[#allocation2 + $0x4c8] sm:$0xf]  ;;  %v5225_v38 = vld [vmem:[#allocation2 + $0x3f8] sm:$0xf0]  ;;  %v5528_v52 = vld [vmem:[#allocation2 + $0x4d4] sm:$0xf0] }
 0x4da   : > { %v2551_v57 = vpack.c.bf16 %v2543_v21, %v2542_v63  ;;  %v2099_v13 = vsel %vm1264_vm10, %v2089_v55, %v9131_v30  ;;  %v2102_v29 = vsel %vm1264_vm10, %v9132_v35, %v2089_v55  ;;  %v5526_v62 = vld [vmem:[#allocation2 + $0x4cc] sm:$0xf]  ;;  %v5337_v63 = vld [vmem:[#allocation2 + $0x4d8] sm:$0xf0]  ;;  %v5228_v21 = vor.u32 %v5498_v54, %v5225_v38 }
 0x4db   : > { %v2126_v6 = vmul.f32 %v8308_v32, %v2102_v29  ;;  %v2127_v56 = vmul.f32 %v8314_v27, %v2099_v13  ;;  %v9134_v32 = vld [vmem:[#allocation14_spill] sm:$0xff]  ;;  %v5336_v30 = vor.u32 %v5528_v52, %v5335_v5  ;;  %v5340_v13 = vor.u32 %v5526_v62, %v5337_v63  ;;  %v5524_v29 = vld [vmem:[#allocation2 + $0x4b4] sm:$0xf0]  ;;  %v5289_v12 = vld [vmem:[#allocation2 + $0x478] sm:$0xf0] }
 0x4dc   : > { %4389 = vmatpush.bf16.msra.mxu3 %v4892_v37  ;;  %v4871_v1 = vld [vmem:[#allocation2 + $0x128] sm:$0xf]  ;;  %v5410_v61 = vld [vmem:[#allocation2 + $0x12c] sm:$0xf]  ;;  %2557 = vst [vmem:[#allocation2 + $0x18] sm:$0xff] %v2551_v57  ;;  %v9137_v57 = vld [vmem:[#allocation27_spill] sm:$0xff] }
 0x4dd   : > { %v4872_v44 = vor.u32 %v5412_v58, %v4871_v1  ;;  %v4876_v7 = vor.u32 %v5410_v61, %v4873_v11  ;;  %v2135_v59 = vpack.c.bf16 %v2127_v56, %v2126_v6  ;;  %v5209_v37 = vld [vmem:[#allocation2 + $0x3d8] sm:$0xf0]  ;;  %v8659_v11 = vpop.f32.mrf.mxu3  ;;  %v5494_v35 = vld [vmem:[#allocation2 + $0x3cc] sm:$0xf]  ;;  %v5508_v62 = vld [vmem:[#allocation2 + $0x434] sm:$0xf0] }
 0x4de   : > { %v2925_v43 = vpop.permute.xlu1 %2924  ;;  %v5321_v6 = vld [vmem:[#allocation2 + $0x4b8] sm:$0xf0]  ;;  %v5212_v56 = vor.u32 %v5494_v35, %v5209_v37  ;;  %v5518_v4 = vld [vmem:[#allocation2 + $0x48c] sm:$0xf] }
 0x4df   : > { %4282 = vmatpush.bf16.msrb.mxu1 %v4872_v44  ;;  %v2935_v17 = vsel %vm1264_vm10, %v2925_v43, %v9133_v18  ;;  %v2938_v27 = vsel %vm1264_vm10, %v9134_v32, %v2925_v43  ;;  %2141 = vst [vmem:[#allocation2 + $0x408] sm:$0xff] %v2135_v59  ;;  %v5319_v55 = vld [vmem:[#allocation2 + $0x4a8] sm:$0xf]  ;;  %v5522_v58 = vld [vmem:[#allocation2 + $0x4ac] sm:$0xf] }
 0x4e0   : > { %4390 = vmatpush.bf16.msra.mxu3 %v4876_v7  ;;  %v2962_v46 = vmul.f32 %v8570_v33, %v2938_v27  ;;  %v2963_v26 = vmul.f32 %v8572_v28, %v2935_v17  ;;  %v8656_v33 = vpop.f32.mrf.mxu2  ;;  %v5320_v61 = vor.u32 %v5524_v29, %v5319_v55  ;;  %v5324_v44 = vor.u32 %v5522_v58, %v5321_v6  ;;  %v5490_v7 = vld [vmem:[#allocation2 + $0x3ac] sm:$0xf]  ;;  %v5193_v59 = vld [vmem:[#allocation2 + $0x3b8] sm:$0xf0]  ;;  %v5303_v27 = vld [vmem:[#allocation2 + $0x488] sm:$0xf] }
 0x4e1   : > { %v5196_v18 = vor.u32 %v5490_v7, %v5193_v59  ;;  %v5486_v32 = vld [vmem:[#allocation2 + $0x38c] sm:$0xf]  ;;  %v5161_v54 = vld [vmem:[#allocation2 + $0x378] sm:$0xf0]  ;;  %v5255_v58 = vld [vmem:[#allocation2 + $0x428] sm:$0xf] }
 0x4e2   : > { %v2971_v51 = vpack.c.bf16 %v2963_v26, %v2962_v46  ;;  %v8652_v20 = vpop.f32.mrf.mxu1  ;;  %v5287_v26 = vld [vmem:[#allocation2 + $0x468] sm:$0xf]  ;;  %v5478_v49 = vld [vmem:[#allocation2 + $0x34c] sm:$0xf]  ;;  %v5273_v5 = vld [vmem:[#allocation2 + $0x458] sm:$0xf0] }
 0x4e3   : > { %4283 = vmatpush.bf16.msrb.mxu1 %v4856_v53  ;;  %v5376_v42 = vld [vmem:[#allocation2 + $0x14] sm:$0xf0]  ;;  %v4729_v25 = vld [vmem:[#allocation2 + $0x18] sm:$0xf0]  ;;  %v5474_v55 = vld [vmem:[#allocation2 + $0x32c] sm:$0xf] }
 0x4e4   : > { %4391 = vmatpush.bf16.msra.mxu3 %v4860_v22  ;;  %2977 = vst [vmem:[#allocation2 + $0x498] sm:$0xff] %v2971_v51  ;;  %v4728_v28 = vor.u32 %v5376_v42, %v4727_v0  ;;  %v4732_v2 = vor.u32 %v5374_v10, %v4729_v25  ;;  %v5177_v53 = vld [vmem:[#allocation2 + $0x398] sm:$0xf0]  ;;  %v5516_v22 = vld [vmem:[#allocation2 + $0x474] sm:$0xf0] }
 0x4e5   : > { %v5180_v51 = vor.u32 %v5486_v32, %v5177_v53  ;;  %v8670_v0 = vpop.f32.mrf.mxu3  ;;  %v5288_v42 = vor.u32 %v5516_v22, %v5287_v26  ;;  %v5482_v25 = vld [vmem:[#allocation2 + $0x36c] sm:$0xf]  ;;  %v5257_v63 = vld [vmem:[#allocation2 + $0x438] sm:$0xf0] }
 0x4e6   : > { %4284 = vmatmul.bf16.vlgmr.msrb.gmra.mxu1 %v8144_v60  ;;  %4265 = vmatpush.bf16.msrb.mxu0 %v4728_v28  ;;  %v5510_v28 = vld [vmem:[#allocation2 + $0x44c] sm:$0xf]  ;;  %v5129_v29 = vld [vmem:[#allocation2 + $0x338] sm:$0xf0] }
 0x4e7   : > { %4355 = vmatpush.bf16.msra.mxu1 %v9135_v50  ;;  %4373 = vmatpush.bf16.msra.mxu2 %v4732_v2  ;;  %v5164_v2 = vor.u32 %v5482_v25, %v5161_v54  ;;  %v5276_v52 = vor.u32 %v5510_v28, %v5273_v5  ;;  %v5466_v7 = vld [vmem:[#allocation2 + $0x2ec] sm:$0xf]  ;;  %v5113_v59 = vld [vmem:[#allocation2 + $0x318] sm:$0xf0] }
 0x4e8   : > { %4463 = vmatpush.bf16.msrb.mxu3 %v9136_v41  ;;  %v8666_v16 = vpop.f32.mrf.mxu2  ;;  %v5271_v41 = vld [vmem:[#allocation2 + $0x448] sm:$0xf]  ;;  %v5097_v32 = vld [vmem:[#allocation2 + $0x2f8] sm:$0xf0]  ;;  %v5462_v22 = vld [vmem:[#allocation2 + $0x2cc] sm:$0xf] }
 0x4e9   : > { %4266 = vmatmul.bf16.vlgmr.msrb.gmra.mxu0 %v9137_v57  ;;  %4392 = vmatmul.bf16.vlgmr.msra.gmra.mxu3 %v8144_v60  ;;  %v5514_v60 = vld [vmem:[#allocation2 + $0x46c] sm:$0xf]  ;;  %v5065_v54 = vld [vmem:[#allocation2 + $0x2b8] sm:$0xf0] }
 0x4ea   : > { %4330 = vmatpush.bf16.msra.mxu0 %v5352_v24  ;;  %4374 = vmatmul.bf16.vlgmr.msra.gmra.mxu2 %v9137_v57  ;;  %v8663_v1 = vpop.f32.mrf.mxu1  ;;  %v5292_v10 = vor.u32 %v5514_v60, %v5289_v12  ;;  %v5145_v24 = vld [vmem:[#allocation2 + $0x358] sm:$0xf0]  ;;  %v5506_v57 = vld [vmem:[#allocation2 + $0x42c] sm:$0xf] }
 0x4eb   : > { %4438 = vmatpush.bf16.msrb.mxu2 %v5356_v47  ;;  %4420 = vmatpush.bf16.msrb.mxu1 %v5228_v21  ;;  %v5520_v19 = vld [vmem:[#allocation2 + $0x494] sm:$0xf0]  ;;  %v5305_v43 = vld [vmem:[#allocation2 + $0x498] sm:$0xf0]  ;;  %v5148_v21 = vor.u32 %v5478_v49, %v5145_v24  ;;  %v5260_v35 = vor.u32 %v5506_v57, %v5257_v63  ;;  %v5454_v25 = vld [vmem:[#allocation2 + $0x28c] sm:$0xf] }
 0x4ec   : > { %v5304_v9 = vor.u32 %v5520_v19, %v5303_v27  ;;  %v5308_v46 = vor.u32 %v5518_v4, %v5305_v43  ;;  %v5512_v47 = vld [vmem:[#allocation2 + $0x454] sm:$0xf0]  ;;  %v5241_v43 = vld [vmem:[#allocation2 + $0x418] sm:$0xf0]  ;;  %v5470_v27 = vld [vmem:[#allocation2 + $0x30c] sm:$0xf]  ;;  %v5100_v4 = vor.u32 %v5466_v7, %v5097_v32 }
 0x4ed   : > { %v5272_v38 = vor.u32 %v5512_v47, %v5271_v41  ;;  %v5504_v19 = vld [vmem:[#allocation2 + $0x414] sm:$0xf0]  ;;  %v5049_v41 = vld [vmem:[#allocation2 + $0x298] sm:$0xf0]  ;;  %v5450_v5 = vld [vmem:[#allocation2 + $0x26c] sm:$0xf] }
 0x4ee   : > { %4331 = vmatpush.bf16.msra.mxu0 %v5336_v30  ;;  %v8668_v17 = vpop.f32.mrf.mxu0  ;;  %v5052_v24 = vor.u32 %v5454_v25, %v5049_v41 }
 0x4ef   : > { %4439 = vmatpush.bf16.msrb.mxu2 %v5340_v13  ;;  %4421 = vmatpush.bf16.msrb.mxu1 %v5212_v56  ;;  %v5256_v13 = vor.u32 %v5508_v62, %v5255_v58  ;;  %v5239_v56 = vld [vmem:[#allocation2 + $0x408] sm:$0xf]  ;;  %v4070_v49 = vadd.f32 %v8652_v20, %v8668_v17  ;;  %v5017_v62 = vld [vmem:[#allocation2 + $0x258] sm:$0xf0] }
 0x4f2   : > { %4332 = vmatpush.bf16.msra.mxu0 %v5320_v61  ;;  %v8672_v14 = vpop.f32.mrf.mxu1  ;;  %v5132_v61 = vor.u32 %v5474_v55, %v5129_v29 }
 0x4f3   : > { %4440 = vmatpush.bf16.msrb.mxu2 %v5324_v44  ;;  %4422 = vmatpush.bf16.msrb.mxu1 %v5196_v18  ;;  %v8675_v50 = vpop.f32.mrf.mxu2  ;;  %v5240_v18 = vor.u32 %v5504_v19, %v5239_v56 }
 0x4f6   : > { %4333 = vmatpush.bf16.msra.mxu0 %v5304_v9  ;;  %4289 = vmatmul.bf16.gmra.mxu1 %v8201_v39  ;;  %v8677_v31 = vpop.f32.mrf.mxu0  ;;  %v5116_v9 = vor.u32 %v5470_v27, %v5113_v59 }
 0x4f7   : > { %4441 = vmatpush.bf16.msrb.mxu2 %v5308_v46  ;;  %4423 = vmatpush.bf16.msrb.mxu1 %v5180_v51  ;;  %v5081_v46 = vld [vmem:[#allocation2 + $0x2d8] sm:$0xf0]  ;;  %v4072_v20 = vadd.f32 %v8663_v1, %v8677_v31  ;;  %v5438_v1 = vld [vmem:[#allocation2 + $0x20c] sm:$0xf] }
 0x4f8   : > { %v5084_v12 = vor.u32 %v5462_v22, %v5081_v46 }
 0x4f9   : > { %4271 = vmatmul.bf16.gmra.mxu0 %v8242_v48  ;;  %4397 = vmatmul.bf16.gmra.mxu3 %v8201_v39 }
 0x4fa   : > { %4334 = vmatpush.bf16.msra.mxu0 %v5288_v42  ;;  %4379 = vmatmul.bf16.gmra.mxu2 %v8242_v48  ;;  %v4076_v37 = vpop.f32.mrf.mxu1  ;;  %v8682_v30 = vpop.f32.mrf.mxu3  ;;  %v5502_v48 = vld [vmem:[#allocation2 + $0x40c] sm:$0xf] }
 0x4fb   : > { %4442 = vmatpush.bf16.msrb.mxu2 %v5292_v10  ;;  %4424 = vmatpush.bf16.msrb.mxu1 %v5164_v2  ;;  %v4094_v6 = vpop.f32.mrf.mxu2  ;;  %v5244_v39 = vor.u32 %v5502_v48, %v5241_v43  ;;  %v5458_v42 = vld [vmem:[#allocation2 + $0x2ac] sm:$0xf] }
 0x4fc   : > { %v5068_v10 = vor.u32 %v5458_v42, %v5065_v54  ;;  %v5442_v37 = vld [vmem:[#allocation2 + $0x22c] sm:$0xf]  ;;  %v4985_v6 = vld [vmem:[#allocation2 + $0x218] sm:$0xf0] }
 0x4fd   : > { %v4988_v48 = vor.u32 %v5438_v1, %v4985_v6 }
 0x4fe   : > { %4335 = vmatpush.bf16.msra.mxu0 %v5272_v38  ;;  %v8684_v44 = vpop.f32.mrf.mxu0  ;;  %v5033_v38 = vld [vmem:[#allocation2 + $0x278] sm:$0xf0] }
 0x4ff   : > { %4443 = vmatpush.bf16.msrb.mxu2 %v5276_v52  ;;  %4425 = vmatpush.bf16.msrb.mxu1 %v5148_v21  ;;  %v5036_v52 = vor.u32 %v5450_v5, %v5033_v38  ;;  %v5446_v21 = vld [vmem:[#allocation2 + $0x24c] sm:$0xf]  ;;  %v4075_v56 = vadd.f32 %v8672_v14, %v8684_v44 }
 0x500   : > { %v5020_v17 = vor.u32 %v5446_v21, %v5017_v62 }
 0x501   : > { %v4093_v19 = vadd.f32 %v8675_v50, %v4075_v56 }
 0x502   : > { %4336 = vmatpush.bf16.msra.mxu0 %v5256_v13  ;;  %v4112_v26 = vpop.f32.mrf.mxu3  ;;  %v4141_v53 = vpop.f32.mrf.mxu1  ;;  %v5001_v13 = vld [vmem:[#allocation2 + $0x238] sm:$0xf0] }
 0x503   : > { %4444 = vmatpush.bf16.msrb.mxu2 %v5260_v35  ;;  %4426 = vmatpush.bf16.msrb.mxu1 %v5132_v61  ;;  %v8688_v60 = vpop.f32.mrf.mxu2  ;;  %v4090_v35 = vadd.f32 %v8666_v16, %v4072_v20  ;;  %v5004_v29 = vor.u32 %v5442_v37, %v5001_v13 }
 0x505   : > { %v4108_v31 = vadd.f32 %v8670_v0, %v4090_v35 }
 0x506   : > { %4337 = vmatpush.bf16.msra.mxu0 %v5240_v18  ;;  %5361 = vmatmul.msk.bf16.vlgmr.msra.gmra.mxu1 %vm4022_vm1, %v8261_v3  ;;  %v4058_v51 = vpop.f32.mrf.mxu0 }
 0x507   : > { %4445 = vmatpush.bf16.msrb.mxu2 %v5244_v39  ;;  %4427 = vmatpush.bf16.msrb.mxu1 %v5116_v9 }
 0x509   : > { %4338 = vmatmul.bf16.vlgmr.msra.gmra.mxu0 %v8367_v23  ;;  %5363 = vmatmul.msk.bf16.vlgmr.msrb.gmra.mxu3 %vm4022_vm1, %v8261_v3 }
 0x50a   : > { %4402 = vmatpush.bf16.msrb.mxu0 %v5100_v4  ;;  %4446 = vmatmul.bf16.vlgmr.msrb.gmra.mxu2 %v8367_v23  ;;  %v8694_v28 = vpop.f32.mrf.mxu3  ;;  %v4143_v47 = vpop.f32.mrf.mxu1  ;;  %v4088_v23 = vadd.f32 %v8656_v33, %v4070_v49 }
 0x50b   : > { %v8696_v2 = vpop.f32.mrf.mxu2 }
 0x50c   : > { %v4106_v3 = vadd.f32 %v8659_v11, %v4088_v23 }
 0x50e   : > { %4403 = vmatpush.bf16.msrb.mxu0 %v5084_v12 }
 0x512   : > { %4404 = vmatpush.bf16.msrb.mxu0 %v5068_v10  ;;  %v4179_v63 = vpop.f32.mrf.mxu3 }
 0x513   : > { %v4180_v54 = vadd.f32 %v4179_v63, %v8696_v2 }
 0x514   : > { %v4164_v58 = vpop.f32.mrf.mxu2 }
 0x516   : > { %4405 = vmatpush.bf16.msrb.mxu0 %v5052_v24  ;;  %5362 = vmatmul.msk.bf16.gmra.mxu1 %vm4022_vm1, %v8393_v8  ;;  %v4123_v55 = vpop.f32.mrf.mxu0 }
 0x517   : > { %v4124_v33 = vadd.f32 %v4123_v55, %v4106_v3 }
 0x518   : > { %v4146_v57 = vpop.f32.mrf.mxu1 }
 0x519   : > { %4343 = vmatmul.bf16.gmra.mxu0 %v8440_v45  ;;  %v4142_v11 = vadd.f32 %v4141_v53, %v4124_v33  ;;  %5364 = vmatmul.msk.bf16.gmra.mxu3 %vm4022_vm1, %v8393_v8  ;;  %v4111_v8 = vadd.f32 %v8682_v30, %v4093_v19 }
 0x51a   : > { %4406 = vmatpush.bf16.msrb.mxu0 %v5036_v52  ;;  %4451 = vmatmul.bf16.gmra.mxu2 %v8440_v45  ;;  %v4182_v61 = vpop.f32.mrf.mxu3 }
 0x51b   : > { %4474 = vst [vmem:[%s5764_s27] sm:$0xff] %v4142_v11  ;;  %v4183_v24 = vadd.f32 %v4182_v61, %v4164_v58 }
 0x51c   : > { %v4166_v7 = vpop.f32.mrf.mxu2 }
 0x51e   : > { %4407 = vmatpush.bf16.msrb.mxu0 %v5020_v17  ;;  %v4125_v45 = vpop.f32.mrf.mxu0 }
 0x51f   : > { %v4126_v16 = vadd.f32 %v4125_v45, %v4108_v31 }
 0x520   : > { %v4148_v59 = vpop.f32.mrf.mxu1 }
 0x521   : > { %v4144_v43 = vadd.f32 %v4143_v47, %v4126_v16 }
 0x522   : > { %4408 = vmatpush.bf16.msrb.mxu0 %v5004_v29  ;;  %v4184_v0 = vpop.f32.mrf.mxu3 }
 0x523   : > { %4478 = vst [vmem:[%s5764_s27 + $0x40] sm:$0xff] %v4144_v43 }
 0x524   : > { %v4231_v39 = vpop.f32.mrf.mxu2 }
 0x526   : > { %4409 = vmatpush.bf16.msrb.mxu0 %v4988_v48  ;;  %4428 = vmatmul.bf16.vlgmr.msrb.gmra.mxu1 %v8050_v40  ;;  %v4128_v18 = vpop.f32.mrf.mxu0  ;;  %v4178_v40 = vadd.f32 %v8694_v28, %v8688_v60 }
 0x527   : > { %v4129_v14 = vadd.f32 %v4128_v18, %v4111_v8 }
 0x528   : > { %v4213_v44 = vpop.f32.mrf.mxu1 }
 0x529   : > { %4410 = vmatmul.bf16.vlgmr.msrb.gmra.mxu0 %v8131_v36  ;;  %v4147_v32 = vadd.f32 %v4146_v57, %v4129_v14 }
 0x52a   : > { %v4249_v27 = vpop.f32.mrf.mxu3 }
 0x52b   : > { %4482 = vst [vmem:[%s5764_s27 + $0x80] sm:$0xff] %v4147_v32 }
 0x52c   : > { %v4233_v9 = vpop.f32.mrf.mxu2 }
 0x52e   : > { %v4130_v4 = vpop.f32.mrf.mxu0 }
 0x530   : > { %v4215_v46 = vpop.f32.mrf.mxu1 }
 0x532   : > { %v4251_v50 = vpop.f32.mrf.mxu3 }
 0x534   : > { %v4236_v30 = vpop.f32.mrf.mxu2 }
 0x536   : > { %4433 = vmatmul.bf16.gmra.mxu1 %v8228_v15  ;;  %v4195_v26 = vpop.f32.mrf.mxu0 }
 0x537   : > { %v4196_v53 = vadd.f32 %v4195_v26, %v4178_v40 }
 0x538   : > { %v4218_v22 = vpop.f32.mrf.mxu1 }
 0x539   : > { %4415 = vmatmul.bf16.gmra.mxu0 %v9124_v34  ;;  %v4214_v36 = vadd.f32 %v4213_v44, %v4196_v53 }
 0x53b   : > { %v4232_v12 = vadd.f32 %v4231_v39, %v4214_v36 }
 0x53c   : > { %v4254_v51 = vpop.f32.mrf.mxu3  ;;  %v4238_v10 = vpop.f32.mrf.mxu2 }
 0x53d   : > { %v4250_v42 = vadd.f32 %v4249_v27, %v4232_v12 }
 0x53e   : > { %v4197_v25 = vpop.f32.mrf.mxu0 }
 0x53f   : > { %4475 = vst [vmem:[%s5764_s27 + $0x8] sm:$0xff] %v4250_v42  ;;  %v4198_v15 = vadd.f32 %v4197_v25, %v4180_v54 }
 0x540   : > { %v4220_v41 = vpop.f32.mrf.mxu1 }
 0x541   : > { %v4216_v60 = vadd.f32 %v4215_v46, %v4198_v15 }
 0x543   : > { %v4234_v28 = vadd.f32 %v4233_v9, %v4216_v60 }
 0x544   : > { %v4256_v49 = vpop.f32.mrf.mxu3  ;;  %v4303_v47 = vpop.f32.mrf.mxu2 }
 0x545   : > { %v4252_v34 = vadd.f32 %v4251_v50, %v4234_v28 }
 0x546   : > { %v4200_v5 = vpop.f32.mrf.mxu0 }
 0x547   : > { %4479 = vst [vmem:[%s5764_s27 + $0x48] sm:$0xff] %v4252_v34  ;;  %v4201_v38 = vadd.f32 %v4200_v5, %v4183_v24 }
 0x549   : > { %v4219_v23 = vadd.f32 %v4218_v22, %v4201_v38 }
 0x54b   : > { %v4237_v52 = vadd.f32 %v4236_v30, %v4219_v23 }
 0x54c   : > { %v4321_v62 = vpop.f32.mrf.mxu3  ;;  %v4305_v63 = vpop.f32.mrf.mxu2 }
 0x54d   : > { %v4255_v2 = vadd.f32 %v4254_v51, %v4237_v52 }
 0x54e   : > { %v4202_v21 = vpop.f32.mrf.mxu0 }
 0x54f   : > { %4483 = vst [vmem:[%s5764_s27 + $0x88] sm:$0xff] %v4255_v2 }
 0x554   : > { %v4323_v3 = vpop.f32.mrf.mxu3  ;;  %v4308_v20 = vpop.f32.mrf.mxu2 }
 0x55c   : > { %v4326_v17 = vpop.f32.mrf.mxu3  ;;  %v4310_v37 = vpop.f32.mrf.mxu2 }
 0x563   : > { %v4285_v55 = vpop.f32.mrf.mxu1 }
 0x564   : > { %v4328_v57 = vpop.f32.mrf.mxu3 }
 0x566   : > { %v4267_v33 = vpop.f32.mrf.mxu0 }
 0x567   : > { %v4286_v61 = vadd.f32 %v4285_v55, %v4267_v33 }
 0x569   : > { %v4304_v16 = vadd.f32 %v4303_v47, %v4286_v61 }
 0x56b   : > { %v4287_v58 = vpop.f32.mrf.mxu1  ;;  %v4322_v8 = vadd.f32 %v4321_v62, %v4304_v16 }
 0x56c   : > { %v4393_v29 = vpop.f32.mrf.mxu3 }
 0x56d   : > { %v4375_v13 = vpop.f32.mrf.mxu2 }
 0x56e   : > { %v4269_v35 = vpop.f32.mrf.mxu0  ;;  %v4394_v49 = vadd.f32 %v4393_v29, %v4375_v13 }
 0x56f   : > { %v4288_v43 = vadd.f32 %v4287_v58, %v4269_v35 }
 0x571   : > { %v4306_v14 = vadd.f32 %v4305_v63, %v4288_v43 }
 0x573   : > { %v4290_v11 = vpop.f32.mrf.mxu1  ;;  %v4324_v9 = vadd.f32 %v4323_v3, %v4306_v14 }
 0x574   : > { %v4395_v31 = vpop.f32.mrf.mxu3 }
 0x575   : > { %v4377_v6 = vpop.f32.mrf.mxu2 }
 0x576   : > { %v4272_v1 = vpop.f32.mrf.mxu0  ;;  %v4396_v52 = vadd.f32 %v4395_v31, %v4377_v6 }
 0x577   : > { %v4291_v4 = vadd.f32 %v4290_v11, %v4272_v1 }
 0x579   : > { %v4309_v30 = vadd.f32 %v4308_v20, %v4291_v4 }
 0x57b   : > { %v4292_v56 = vpop.f32.mrf.mxu1  ;;  %v4327_v36 = vadd.f32 %v4326_v17, %v4309_v30 }
 0x57c   : > { %v4398_v7 = vpop.f32.mrf.mxu3 }
 0x57d   : > { %v4380_v48 = vpop.f32.mrf.mxu2 }
 0x57e   : > { %v4274_v45 = vpop.f32.mrf.mxu0  ;;  %v4399_v17 = vadd.f32 %v4398_v7, %v4380_v48 }
 0x583   : > { %v4357_v59 = vpop.f32.mrf.mxu1 }
 0x584   : > { %v4400_v39 = vpop.f32.mrf.mxu3 }
 0x585   : > { %v4382_v19 = vpop.f32.mrf.mxu2 }
 0x586   : > { %v4339_v0 = vpop.f32.mrf.mxu0 }
 0x587   : > { %v4340_v18 = vadd.f32 %v4339_v0, %v4322_v8 }
 0x589   : > { %v4358_v44 = vadd.f32 %v4357_v59, %v4340_v18 }
 0x58b   : > { %v4359_v32 = vpop.f32.mrf.mxu1  ;;  %4476 = vst [vmem:[%s5764_s27 + $0x10] sm:$0xff] %v4358_v44 }
 0x58c   : > { %v4465_v40 = vpop.f32.mrf.mxu3 }
 0x58d   : > { %v4447_v27 = vpop.f32.mrf.mxu2 }
 0x58e   : > { %v4341_v46 = vpop.f32.mrf.mxu0 }
 0x58f   : > { %v4342_v50 = vadd.f32 %v4341_v46, %v4324_v9 }
 0x591   : > { %v4360_v26 = vadd.f32 %v4359_v32, %v4342_v50 }
 0x593   : > { %v4362_v53 = vpop.f32.mrf.mxu1  ;;  %4480 = vst [vmem:[%s5764_s27 + $0x50] sm:$0xff] %v4360_v26 }
 0x594   : > { %v4467_v54 = vpop.f32.mrf.mxu3 }
 0x595   : > { %v4449_v22 = vpop.f32.mrf.mxu2 }
 0x596   : > { %v4344_v12 = vpop.f32.mrf.mxu0 }
 0x597   : > { %v4345_v51 = vadd.f32 %v4344_v12, %v4327_v36 }
 0x599   : > { %v4363_v42 = vadd.f32 %v4362_v53, %v4345_v51 }
 0x59b   : > { %v4364_v10 = vpop.f32.mrf.mxu1  ;;  %4484 = vst [vmem:[%s5764_s27 + $0x90] sm:$0xff] %v4363_v42 }
 0x59c   : > { %v4470_v41 = vpop.f32.mrf.mxu3 }
 0x59d   : > { %v4452_v25 = vpop.f32.mrf.mxu2 }
 0x59e   : > { %v4346_v15 = vpop.f32.mrf.mxu0 }
 0x5a3   : > { %v4429_v60 = vpop.f32.mrf.mxu1 }
 0x5a4   : > { %v4472_v47 = vpop.f32.mrf.mxu3 }
 0x5a5   : > { %v4454_v28 = vpop.f32.mrf.mxu2 }
 0x5a6   : > { %v4411_v24 = vpop.f32.mrf.mxu0 }
 0x5a7   : > { %v4412_v34 = vadd.f32 %v4411_v24, %v4394_v49 }
 0x5a9   : > { %v4430_v5 = vadd.f32 %v4429_v60, %v4412_v34 }
 0x5ab   : > { %v4431_v38 = vpop.f32.mrf.mxu1  ;;  %v4448_v23 = vadd.f32 %v4447_v27, %v4430_v5 }
 0x5ad   : > { %v4466_v62 = vadd.f32 %v4465_v40, %v4448_v23 }
 0x5ae   : > { %v4413_v2 = vpop.f32.mrf.mxu0 }
 0x5af   : > { %4477 = vst [vmem:[%s5764_s27 + $0x18] sm:$0xff] %v4466_v62  ;;  %v4414_v63 = vadd.f32 %v4413_v2, %v4396_v52 }
 0x5b1   : > { %v4432_v21 = vadd.f32 %v4431_v38, %v4414_v63 }
 0x5b3   : > { %v4434_v3 = vpop.f32.mrf.mxu1  ;;  %v4450_v20 = vadd.f32 %v4449_v22, %v4432_v21 }
 0x5b5   : > { %v4468_v37 = vadd.f32 %v4467_v54, %v4450_v20 }
 0x5b6   : > { %v4416_v55 = vpop.f32.mrf.mxu0 }
 0x5b7   : > { %4481 = vst [vmem:[%s5764_s27 + $0x58] sm:$0xff] %v4468_v37  ;;  %v4417_v33 = vadd.f32 %v4416_v55, %v4399_v17 }
 0x5b9   : > { %v4435_v57 = vadd.f32 %v4434_v3, %v4417_v33 }
 0x5bb   : > { %v4436_v58 = vpop.f32.mrf.mxu1  ;;  %v4453_v13 = vadd.f32 %v4452_v25, %v4435_v57 }
 0x5bd   : > { %v4471_v35 = vadd.f32 %v4470_v41, %v4453_v13 }
 0x5be   : > { %v4418_v29 = vpop.f32.mrf.mxu0 }
 0x5bf   : > { %4485 = vst [vmem:[%s5764_s27 + $0x98] sm:$0xff] %v4471_v35 }
 0x5c0 PF: > { %s15_s18 = sadd.s32 1, %s5578_s18  }
 0x5c1   : > { %p12_p4 = scmp.ge.s32.totalorder %s15_s18, 4  }
 0x5c3   :  { %14 = sbr.rel (!%p12_p4) target bundleno = 1 (0x1), region = 84 }

</bundles_post_ra>
